<compile_context>
chip_gen: v6e
topology: v6e:2x2x1
jax: 0.10.0
libtpu: 0.0.40
codegen_flags: <defaults>
</compile_context>

<pallas_src>
import functools
import math

import jax
import jax.numpy as jnp
from jax import lax
from jax.experimental import pallas as pl
from jax.experimental.pallas import tpu as pltpu

EPS = 1e-5
_LANES = 128


# --------------------------------------------------------------------------------------
# Small host-side helpers.
# --------------------------------------------------------------------------------------
def _round_up(x, m):
    return (x + m - 1) // m * m


def _pick_strip_h(H, W):
    """Largest divisor of H with strip_h*W <= 128 rows (keeps the f32 strip acc ~<=64 KiB @ Kp=128)."""
    best = 1
    for sh in range(1, H + 1):
        if H % sh == 0 and sh * W <= 128:
            best = sh
    return best


def _pick_tile_m(M, target=2048):
    for t in (target, 1536, 1024, 768, 512, 384, 256, 128, 64, 32, 16, 8):
        if t <= M and M % t == 0:
            return t
    return M  # TODO(synk): cdiv grid + masked tail for divisor-less M.


def _vmem_limit(*nbytes):
    """Double-buffered block bytes + headroom, clamped well below v7x's 64 MiB physical VMEM."""
    need = 2 * sum(int(b) for b in nbytes) + (8 << 20)
    return int(min(48 << 20, max(16 << 20, need)))


# --------------------------------------------------------------------------------------
# In-kernel building blocks (shared by the two conv kernels).
# --------------------------------------------------------------------------------------
def _fill_zero_halo(pad_ref, get_strip, H, W, SH):
    """Zero the (H+2, W+2, C) halo buffer, then fill its interior strip-by-strip.

    get_strip(h0) must return the (SH, W, C) interior rows starting at row h0.
    """
    pad_ref[...] = jnp.zeros(pad_ref.shape, pad_ref.dtype)

    @pl.loop(0, H // SH)
    def _(si):
        h0 = pl.multiple_of(si * SH, SH)
        pad_ref[pl.ds(h0 + 1, SH), 1:W + 1, :] = get_strip(h0).astype(pad_ref.dtype)


def _conv3x3_strips(pad_ref, w_ref, out_ref, H, W, SH):
    """3x3 'same' conv from the zero-halo buffer, strip-by-strip.

    pad_ref: (H+2, W+2, Cp) zero-halo input (conv dtype)
    w_ref  : (9, Cp, Kp)    resident taps (conv dtype)
    out_ref: (H*W, Kp)      conv output (conv dtype)
    Returns per-image (1, Kp) f32 (sum, sum_of_squares) accumulated from the f32 strip acc.
    """
    Cp = pad_ref.shape[-1]
    Kp = out_ref.shape[-1]
    rows = SH * W
    n_strips = H // SH

    def strip(si, carry):
        s_acc, q_acc = carry
        r0 = pl.multiple_of(si * SH, SH)
        acc = jnp.zeros((rows, Kp), jnp.float32)
        for dh in range(3):
            band = pad_ref[pl.ds(r0 + dh, SH), :, :]          # (SH, W+2, Cp), hoisted per dh
            for dw in range(3):
                patch = band[:, dw:dw + W, :].reshape(rows, Cp)
                acc = acc + jnp.dot(patch, w_ref[dh * 3 + dw],
                                    preferred_element_type=jnp.float32)
        row0 = pl.multiple_of(si * rows, rows)
        out_ref[pl.ds(row0, rows), :] = acc.astype(out_ref.dtype)
        s_acc = s_acc + jnp.sum(acc, axis=0, keepdims=True)
        q_acc = q_acc + jnp.sum(acc * acc, axis=0, keepdims=True)
        return s_acc, q_acc
    # TODO(synk): pair taps along the contraction dim for the 256-deep MXU on v6e/v7x.

    init = (jnp.zeros((1, Kp), jnp.float32), jnp.zeros((1, Kp), jnp.float32))
    return lax.fori_loop(0, n_strips, strip, init)


# --------------------------------------------------------------------------------------
# Kernel A: conv1 + per-image BN1 partial stats.    Grid: (N,), "parallel".
# --------------------------------------------------------------------------------------
def _conv1_bnstats_kernel(x_ref, w_ref, conv_ref, sum_ref, sq_ref, xpad_ref, *, H, W, SH):
    # x_ref   : (H, W, Cp) bf16 (one image, channel-padded; spatial halo built in VMEM)
    # w_ref   : (9, Cp, Kp) bf16 resident
    # conv_ref: (HW, Kp)   bf16 conv1 output
    # sum/sq  : (1, Kp)    f32 per-image partial stats
    _fill_zero_halo(xpad_ref, lambda h0: x_ref[pl.ds(h0, SH), :, :], H, W, SH)
    s, q = _conv3x3_strips(xpad_ref, w_ref, conv_ref, H, W, SH)
    sum_ref[...] = s
    sq_ref[...] = q


def _conv1_bnstats(xc, w9, conv_dtype):
    N, H, W, Cp = xc.shape
    Kp = w9.shape[-1]
    HW = H * W
    SH = _pick_strip_h(H, W)
    itm = jnp.dtype(conv_dtype).itemsize
    vmem = _vmem_limit(H * W * Cp * itm, 9 * Cp * Kp * itm, HW * Kp * itm,
                       (H + 2) * (W + 2) * Cp * itm)
    kernel = functools.partial(_conv1_bnstats_kernel, H=H, W=W, SH=SH)
    return pl.pallas_call(
        kernel,
        out_shape=(jax.ShapeDtypeStruct((N, HW, Kp), conv_dtype),
                   jax.ShapeDtypeStruct((N, 1, Kp), jnp.float32),
                   jax.ShapeDtypeStruct((N, 1, Kp), jnp.float32)),
        grid=(N,),
        in_specs=[
            pl.BlockSpec((None, H, W, Cp), lambda n: (n, 0, 0, 0)),
            pl.BlockSpec((9, Cp, Kp), lambda n: (0, 0, 0)),        # resident taps
        ],
        out_specs=(
            pl.BlockSpec((None, HW, Kp), lambda n: (n, 0, 0)),
            pl.BlockSpec((None, 1, Kp), lambda n: (n, 0, 0)),      # per-image partial stats
            pl.BlockSpec((None, 1, Kp), lambda n: (n, 0, 0)),
        ),
        scratch_shapes=[pltpu.VMEM((H + 2, W + 2, Cp), conv_dtype)],
        compiler_params=pltpu.CompilerParams(
            dimension_semantics=("parallel",),
            vmem_limit_bytes=vmem),
    )(xc, w9)


# --------------------------------------------------------------------------------------
# Kernel B (fused): BN1 affine + ReLU + zero-halo pad (all in VMEM) + conv2 + BN2 stats.
# Grid: (N,), "parallel".
# --------------------------------------------------------------------------------------
def _conv2_fused_kernel(conv1_ref, scale_ref, shift_ref, w_ref,
                        conv2_ref, sum_ref, sq_ref, ypad_ref, *, H, W, SH):
    Kp = conv1_ref.shape[-1]
    rows = SH * W
    scale = scale_ref[...]
    shift = shift_ref[...]

    def strip_y1(h0):
        r0 = pl.multiple_of(h0 * W, rows)
        y = conv1_ref[pl.ds(r0, rows), :].astype(jnp.float32) * scale + shift
        return jnp.maximum(y, 0.0).reshape(SH, W, Kp)

    _fill_zero_halo(ypad_ref, strip_y1, H, W, SH)
    s, q = _conv3x3_strips(ypad_ref, w_ref, conv2_ref, H, W, SH)
    sum_ref[...] = s
    sq_ref[...] = q


def _conv2_fused(conv1, scale1, shift1, w9, H, W, conv_dtype):
    N, HW, Kp = conv1.shape
    SH = _pick_strip_h(H, W)
    itm = jnp.dtype(conv_dtype).itemsize
    vmem = _vmem_limit(HW * Kp * itm, 9 * Kp * Kp * itm, HW * Kp * itm,
                       (H + 2) * (W + 2) * Kp * itm)
    kernel = functools.partial(_conv2_fused_kernel, H=H, W=W, SH=SH)
    return pl.pallas_call(
        kernel,
        out_shape=(jax.ShapeDtypeStruct((N, HW, Kp), conv_dtype),
                   jax.ShapeDtypeStruct((N, 1, Kp), jnp.float32),
                   jax.ShapeDtypeStruct((N, 1, Kp), jnp.float32)),
        grid=(N,),
        in_specs=[
            pl.BlockSpec((None, HW, Kp), lambda n: (n, 0, 0)),
            pl.BlockSpec((1, Kp), lambda n: (0, 0)),               # resident scale1
            pl.BlockSpec((1, Kp), lambda n: (0, 0)),               # resident shift1
            pl.BlockSpec((9, Kp, Kp), lambda n: (0, 0, 0)),        # resident taps
        ],
        out_specs=(
            pl.BlockSpec((None, HW, Kp), lambda n: (n, 0, 0)),
            pl.BlockSpec((None, 1, Kp), lambda n: (n, 0, 0)),
            pl.BlockSpec((None, 1, Kp), lambda n: (n, 0, 0)),
        ),
        scratch_shapes=[pltpu.VMEM((H + 2, W + 2, Kp), conv_dtype)],
        compiler_params=pltpu.CompilerParams(
            dimension_semantics=("parallel",),
            vmem_limit_bytes=vmem),
    )(conv1, scale1, shift1, w9)


# --------------------------------------------------------------------------------------
# Kernel C: folded BN2 affine + residual + ReLU, tiled over M, "parallel".
# --------------------------------------------------------------------------------------
def _bn_res_relu_kernel(conv_ref, scale_ref, shift_ref, ident_ref, out_ref):
    y = (conv_ref[...].astype(jnp.float32) * scale_ref[...] + shift_ref[...]
         + ident_ref[...].astype(jnp.float32))
    out_ref[...] = jnp.maximum(y, 0.0).astype(out_ref.dtype)


def _bn_res_relu(conv_flat, scale, shift, identity, out_dtype):
    M, Kp = conv_flat.shape
    tm = _pick_tile_m(M)
    itm = jnp.dtype(conv_flat.dtype).itemsize
    vmem = _vmem_limit(2 * tm * Kp * itm, tm * Kp * 4)
    return pl.pallas_call(
        _bn_res_relu_kernel,
        out_shape=jax.ShapeDtypeStruct((M, Kp), out_dtype),
        grid=(M // tm,),
        in_specs=[pl.BlockSpec((tm, Kp), lambda i: (i, 0)),
                  pl.BlockSpec((1, Kp), lambda i: (0, 0)),
                  pl.BlockSpec((1, Kp), lambda i: (0, 0)),
                  pl.BlockSpec((tm, Kp), lambda i: (i, 0))],
        out_specs=pl.BlockSpec((tm, Kp), lambda i: (i, 0)),
        compiler_params=pltpu.CompilerParams(
            dimension_semantics=("parallel",),
            vmem_limit_bytes=vmem),
    )(conv_flat, scale, shift, identity)


# --------------------------------------------------------------------------------------
# Host-side per-channel math / layout plumbing.
# --------------------------------------------------------------------------------------
def _prep_w(w_hwio, cin_pad, cout_pad, dtype):
    kh, kw, ci, co = w_hwio.shape
    w = jnp.pad(w_hwio.astype(jnp.float32),
                ((0, 0), (0, 0), (0, cin_pad - ci), (0, cout_pad - co)))
    return w.reshape(kh * kw, cin_pad, cout_pad).astype(dtype)


def _pad_vec(v, kp):
    v = jnp.asarray(v, jnp.float32).reshape(1, -1)
    return jnp.pad(v, ((0, 0), (0, kp - v.shape[1])))


def _fold_bn(s_partial, q_partial, count, gamma_p, beta_p):
    # Per-image f32 partials (N,1,Kp) reduced to global stats; biased var (training-mode BN).
    s = jnp.sum(s_partial, axis=0)
    q = jnp.sum(q_partial, axis=0)
    mean = s / count
    var = jnp.maximum(q / count - mean * mean, 0.0)   # clamp f32 cancellation
    scale = gamma_p * lax.rsqrt(var + EPS)
    shift = beta_p - mean * scale
    return scale, shift


def basic_block_act(x_nchw, w1, gamma1, beta1, w2, gamma2, beta2,
                    conv_dtype=jnp.bfloat16):
    """Forward pass of BasicBlock_act (stride=1, downsample=None), training-mode BN."""
    x = jnp.transpose(x_nchw, (0, 2, 3, 1))                      # NCHW -> NHWC
    N, H, W, Cin = x.shape
    planes = w1.shape[-1]
    assert Cin == planes, "stride=1 / downsample=None requires inplanes == planes"
    Cp = _round_up(Cin, _LANES)
    Kp = _round_up(planes, _LANES)
    M = N * H * W

    # Lane-dense channel padding; this single bf16 array is both the conv1 input and the residual.
    # TODO(synk): for tiny channel counts (Cin=4) pack W into the lane dim instead of padding to 128.
    xc = jnp.pad(x.astype(conv_dtype), ((0, 0), (0, 0), (0, 0), (0, Cp - Cin)))
    identity = xc.reshape(M, Cp)

    w1_9 = _prep_w(w1, Cp, Kp, conv_dtype)
    w2_9 = _prep_w(w2, Kp, Kp, conv_dtype)
    g1, b1 = _pad_vec(gamma1, Kp), _pad_vec(beta1, Kp)
    g2, b2 = _pad_vec(gamma2, Kp), _pad_vec(beta2, Kp)

    # ---- stage 1: conv1 + per-image BN1 partial stats ----
    conv1, s1, q1 = _conv1_bnstats(xc, w1_9, conv_dtype)
    scale1, shift1 = _fold_bn(s1, q1, float(M), g1, b1)

    # ---- stage 2 (fused): BN1 affine + ReLU + zero-halo pad in VMEM + conv2 + BN2 stats ----
    conv2, s2, q2 = _conv2_fused(conv1, scale1, shift1, w2_9, H, W, conv_dtype)
    scale2, shift2 = _fold_bn(s2, q2, float(M), g2, b2)

    # ---- stage 3: BN2 affine + residual + ReLU ----
    out = _bn_res_relu(conv2.reshape(M, Kp), scale2, shift2, identity,
                       out_dtype=jnp.float32)
    out = out.reshape(N, H, W, Kp)[..., :planes]
    return jnp.transpose(out, (0, 3, 1, 2))                      # back to NCHW


# ---------------- pure-JAX reference (correctness check only) ----------------
def _ref_forward(x_nchw, w1, g1, b1, w2, g2, b2, conv_dtype=jnp.bfloat16):
    """Module semantics (training-mode BN, biased var). Conv operands cast to `conv_dtype` with
    f32 accumulation, matching the kernel's MXU input precision; BN / residual math in f32."""
    def conv(t, w_hwio):
        w = jnp.transpose(w_hwio, (3, 2, 0, 1))                  # HWIO -> OIHW
        return lax.conv_general_dilated(
            t.astype(conv_dtype), w.astype(conv_dtype),
            window_strides=(1, 1), padding=((1, 1), (1, 1)),
            dimension_numbers=("NCHW", "OIHW", "NCHW"),
            preferred_element_type=jnp.float32)

    def bn(t, g, b):
        mean = jnp.mean(t, axis=(0, 2, 3), keepdims=True)
        var = jnp.mean((t - mean) ** 2, axis=(0, 2, 3), keepdims=True)
        return ((t - mean) * lax.rsqrt(var + EPS) * g.reshape(1, -1, 1, 1)
                + b.reshape(1, -1, 1, 1))

    identity = x_nchw
    out = jnp.maximum(bn(conv(x_nchw, w1), g1, b1), 0.0)
    out = bn(conv(out, w2), g2, b2) + identity
    return jnp.maximum(out, 0.0)


if __name__ == "__main__":
    N, Cin, H, W = 2, 4, 16, 16
    planes = Cin  # BasicBlock with downsample=None requires inplanes == planes

    key = jax.random.PRNGKey(0)
    kx, k1, k2, k3, k4, k5, k6 = jax.random.split(key, 7)

    x = jax.random.normal(kx, (N, Cin, H, W), jnp.float32)

    fan1 = 3 * 3 * Cin
    fan2 = 3 * 3 * planes
    w1 = jax.random.normal(k1, (3, 3, Cin, planes), jnp.float32) / math.sqrt(fan1)  # HWIO
    w2 = jax.random.normal(k2, (3, 3, planes, planes), jnp.float32) / math.sqrt(fan2)
    gamma1 = 1.0 + 0.1 * jax.random.normal(k3, (planes,), jnp.float32)
    beta1 = 0.1 * jax.random.normal(k4, (planes,), jnp.float32)
    gamma2 = 1.0 + 0.1 * jax.random.normal(k5, (planes,), jnp.float32)
    beta2 = 0.1 * jax.random.normal(k6, (planes,), jnp.float32)

    fwd = jax.jit(basic_block_act)
    out = jax.block_until_ready(fwd(x, w1, gamma1, beta1, w2, gamma2, beta2))

    ref = _ref_forward(x, w1, gamma1, beta1, w2, gamma2, beta2)
    assert out.shape == (N, planes, H, W)
    err = float(jnp.max(jnp.abs(out - ref)))
    # bf16 conv intermediates + bf16 residual stream => allow a few bf16 ULPs of drift vs the
    # f32-intermediate reference; real bugs give O(0.5+) errors.
    assert err < 6e-2, f"mismatch vs reference: max abs err = {err}"

    print("KERNEL_OK")
</pallas_src>

<mosaic_0001>
module attributes {stable_mosaic.version = 11 : i64} {
  func.func @_conv1_bnstats_kernel(%arg0: i32, %arg1: memref<1x16x16x128xbf16, #tpu.memory_space<vmem>>, %arg2: memref<9x128x128xbf16, #tpu.memory_space<vmem>>, %arg3: memref<1x256x128xbf16, #tpu.memory_space<vmem>>, %arg4: memref<1x1x128xf32, #tpu.memory_space<vmem>>, %arg5: memref<1x1x128xf32, #tpu.memory_space<vmem>>, %arg6: memref<18x18x128xbf16, #tpu.memory_space<vmem>>) attributes {dimension_semantics = [#tpu.dimension_semantics<parallel>], iteration_bounds = array<i64: 2>, scalar_prefetch = 0 : i64, scratch_operands = 1 : i64, tpu.core_type = #tpu.core_type<tc>, window_params = [{transform_indices = @transform_0, window_bounds = array<i64: 1, 16, 16, 128>}, {pipeline_mode = #tpu.pipeline_mode<synchronous>, transform_indices = @transform_1, window_bounds = array<i64: 9, 128, 128>}, {transform_indices = @transform_2, window_bounds = array<i64: 1, 256, 128>}, {transform_indices = @transform_3, window_bounds = array<i64: 1, 1, 128>}, {transform_indices = @transform_4, window_bounds = array<i64: 1, 1, 128>}]} {
    %cst = arith.constant 0.000000e+00 : bf16
    %0 = vector.broadcast %cst : bf16 to vector<18x18x128xbf16>
    %c0 = arith.constant 0 : index
    %c0_0 = arith.constant 0 : index
    %c0_1 = arith.constant 0 : index
    %1 = vector.load %arg6[%c0, %c0_0, %c0_1] : memref<18x18x128xbf16, #tpu.memory_space<vmem>>, vector<18x18x128xbf16>
    tpu.vector_store %arg6[%c0, %c0_0, %c0_1], %0 {strides = array<i32>} : memref<18x18x128xbf16, #tpu.memory_space<vmem>>, vector<18x18x128xbf16>,
    %c0_i32 = arith.constant 0 : i32
    %c2_i32 = arith.constant 2 : i32
    %2 = arith.addi %c0_i32, %c2_i32 : i32
    %c1_i32 = arith.constant 1 : i32
    scf.for %arg7 = %c0_i32 to %2 step %c1_i32  : i32 {
      %c1_i32_15 = arith.constant 1 : i32
      %13 = arith.muli %arg7, %c1_i32_15 : i32
      %c0_i32_16 = arith.constant 0 : i32
      %14 = arith.addi %c0_i32_16, %13 : i32
      %c8_i32 = arith.constant 8 : i32
      %15 = arith.muli %14, %c8_i32 : i32
      %16 = tpu.assume_multiple %15, 8 : i32
      %c0_17 = arith.constant 0 : index
      %17 = arith.index_cast %16 : i32 to index
      %c0_18 = arith.constant 0 : index
      %c0_19 = arith.constant 0 : index
      %18 = vector.load %arg1[%c0_17, %17, %c0_18, %c0_19] : memref<1x16x16x128xbf16, #tpu.memory_space<vmem>>, vector<1x8x16x128xbf16>
      %19 = vector.shape_cast %18 : vector<1x8x16x128xbf16> to vector<8x16x128xbf16>
      %c1_i32_20 = arith.constant 1 : i32
      %20 = arith.addi %16, %c1_i32_20 : i32
      %21 = arith.index_cast %20 : i32 to index
      %c1 = arith.constant 1 : index
      %c0_21 = arith.constant 0 : index
      %22 = vector.load %arg6[%21, %c1, %c0_21] : memref<18x18x128xbf16, #tpu.memory_space<vmem>>, vector<8x16x128xbf16>
      tpu.vector_store %arg6[%21, %c1, %c0_21], %19 {strides = array<i32>} : memref<18x18x128xbf16, #tpu.memory_space<vmem>>, vector<8x16x128xbf16>,
    }
    %c2_i32_2 = arith.constant 2 : i32
    %cst_3 = arith.constant 0.000000e+00 : f32
    %3 = vector.broadcast %cst_3 : f32 to vector<1x128xf32>
    %cst_4 = arith.constant 0.000000e+00 : f32
    %4 = vector.broadcast %cst_4 : f32 to vector<1x128xf32>
    %c0_i32_5 = arith.constant 0 : i32
    %c2_i32_6 = arith.constant 2 : i32
    %5 = arith.addi %c0_i32_5, %c2_i32_6 : i32
    %c1_i32_7 = arith.constant 1 : i32
    %6:2 = scf.for %arg7 = %c0_i32_5 to %5 step %c1_i32_7 iter_args(%arg8 = %3, %arg9 = %4) -> (vector<1x128xf32>, vector<1x128xf32>)  : i32 {
      %c8_i32 = arith.constant 8 : i32
      %13 = arith.muli %arg7, %c8_i32 : i32
      %14 = tpu.assume_multiple %13, 8 : i32
      %cst_15 = arith.constant 0.000000e+00 : f32
      %15 = vector.broadcast %cst_15 : f32 to vector<128x128xf32>
      %c0_i32_16 = arith.constant 0 : i32
      %16 = arith.addi %14, %c0_i32_16 : i32
      %17 = arith.index_cast %16 : i32 to index
      %c0_17 = arith.constant 0 : index
      %c0_18 = arith.constant 0 : index
      %18 = vector.load %arg6[%17, %c0_17, %c0_18] : memref<18x18x128xbf16, #tpu.memory_space<vmem>>, vector<8x18x128xbf16>
      %19 = vector.extract_strided_slice %18 {offsets = [0, 0, 0], sizes = [8, 16, 128], strides = [1, 1, 1]} : vector<8x18x128xbf16> to vector<8x16x128xbf16>
      %20 = vector.shape_cast %19 : vector<8x16x128xbf16> to vector<128x128xbf16>
      %c0_19 = arith.constant 0 : index
      %c0_20 = arith.constant 0 : index
      %c0_21 = arith.constant 0 : index
      %21 = vector.load %arg2[%c0_19, %c0_20, %c0_21] : memref<9x128x128xbf16, #tpu.memory_space<vmem>>, vector<1x128x128xbf16>
      %22 = vector.shape_cast %21 : vector<1x128x128xbf16> to vector<128x128xbf16>
      %cst_22 = arith.constant dense<0.000000e+00> : vector<128x128xf32>
      %23 = tpu.matmul %20, %22, %cst_22 {dimension_numbers = #tpu.dot_dimension_numbers<[1], [0], [0], [1], [0, 0, 1, 1], [], []>} : vector<128x128xbf16>, vector<128x128xbf16>, vector<128x128xf32> -> vector<128x128xf32>
      %24 = arith.addf %15, %23 : vector<128x128xf32>
      %25 = vector.extract_strided_slice %18 {offsets = [0, 1, 0], sizes = [8, 16, 128], strides = [1, 1, 1]} : vector<8x18x128xbf16> to vector<8x16x128xbf16>
      %26 = vector.shape_cast %25 : vector<8x16x128xbf16> to vector<128x128xbf16>
      %c1 = arith.constant 1 : index
      %c0_23 = arith.constant 0 : index
      %c0_24 = arith.constant 0 : index
      %27 = vector.load %arg2[%c1, %c0_23, %c0_24] : memref<9x128x128xbf16, #tpu.memory_space<vmem>>, vector<1x128x128xbf16>
      %28 = vector.shape_cast %27 : vector<1x128x128xbf16> to vector<128x128xbf16>
      %cst_25 = arith.constant dense<0.000000e+00> : vector<128x128xf32>
      %29 = tpu.matmul %26, %28, %cst_25 {dimension_numbers = #tpu.dot_dimension_numbers<[1], [0], [0], [1], [0, 0, 1, 1], [], []>} : vector<128x128xbf16>, vector<128x128xbf16>, vector<128x128xf32> -> vector<128x128xf32>
      %30 = arith.addf %24, %29 : vector<128x128xf32>
      %31 = vector.extract_strided_slice %18 {offsets = [0, 2, 0], sizes = [8, 16, 128], strides = [1, 1, 1]} : vector<8x18x128xbf16> to vector<8x16x128xbf16>
      %32 = vector.shape_cast %31 : vector<8x16x128xbf16> to vector<128x128xbf16>
      %c2 = arith.constant 2 : index
      %c0_26 = arith.constant 0 : index
      %c0_27 = arith.constant 0 : index
      %33 = vector.load %arg2[%c2, %c0_26, %c0_27] : memref<9x128x128xbf16, #tpu.memory_space<vmem>>, vector<1x128x128xbf16>
      %34 = vector.shape_cast %33 : vector<1x128x128xbf16> to vector<128x128xbf16>
      %cst_28 = arith.constant dense<0.000000e+00> : vector<128x128xf32>
      %35 = tpu.matmul %32, %34, %cst_28 {dimension_numbers = #tpu.dot_dimension_numbers<[1], [0], [0], [1], [0, 0, 1, 1], [], []>} : vector<128x128xbf16>, vector<128x128xbf16>, vector<128x128xf32> -> vector<128x128xf32>
      %36 = arith.addf %30, %35 : vector<128x128xf32>
      %c1_i32_29 = arith.constant 1 : i32
      %37 = arith.addi %14, %c1_i32_29 : i32
      %38 = arith.index_cast %37 : i32 to index
      %c0_30 = arith.constant 0 : index
      %c0_31 = arith.constant 0 : index
      %39 = vector.load %arg6[%38, %c0_30, %c0_31] : memref<18x18x128xbf16, #tpu.memory_space<vmem>>, vector<8x18x128xbf16>
      %40 = vector.extract_strided_slice %39 {offsets = [0, 0, 0], sizes = [8, 16, 128], strides = [1, 1, 1]} : vector<8x18x128xbf16> to vector<8x16x128xbf16>
      %41 = vector.shape_cast %40 : vector<8x16x128xbf16> to vector<128x128xbf16>
      %c3 = arith.constant 3 : index
      %c0_32 = arith.constant 0 : index
      %c0_33 = arith.constant 0 : index
      %42 = vector.load %arg2[%c3, %c0_32, %c0_33] : memref<9x128x128xbf16, #tpu.memory_space<vmem>>, vector<1x128x128xbf16>
      %43 = vector.shape_cast %42 : vector<1x128x128xbf16> to vector<128x128xbf16>
      %cst_34 = arith.constant dense<0.000000e+00> : vector<128x128xf32>
      %44 = tpu.matmul %41, %43, %cst_34 {dimension_numbers = #tpu.dot_dimension_numbers<[1], [0], [0], [1], [0, 0, 1, 1], [], []>} : vector<128x128xbf16>, vector<128x128xbf16>, vector<128x128xf32> -> vector<128x128xf32>
      %45 = arith.addf %36, %44 : vector<128x128xf32>
      %46 = vector.extract_strided_slice %39 {offsets = [0, 1, 0], sizes = [8, 16, 128], strides = [1, 1, 1]} : vector<8x18x128xbf16> to vector<8x16x128xbf16>
      %47 = vector.shape_cast %46 : vector<8x16x128xbf16> to vector<128x128xbf16>
      %c4 = arith.constant 4 : index
      %c0_35 = arith.constant 0 : index
      %c0_36 = arith.constant 0 : index
      %48 = vector.load %arg2[%c4, %c0_35, %c0_36] : memref<9x128x128xbf16, #tpu.memory_space<vmem>>, vector<1x128x128xbf16>
      %49 = vector.shape_cast %48 : vector<1x128x128xbf16> to vector<128x128xbf16>
      %cst_37 = arith.constant dense<0.000000e+00> : vector<128x128xf32>
      %50 = tpu.matmul %47, %49, %cst_37 {dimension_numbers = #tpu.dot_dimension_numbers<[1], [0], [0], [1], [0, 0, 1, 1], [], []>} : vector<128x128xbf16>, vector<128x128xbf16>, vector<128x128xf32> -> vector<128x128xf32>
      %51 = arith.addf %45, %50 : vector<128x128xf32>
      %52 = vector.extract_strided_slice %39 {offsets = [0, 2, 0], sizes = [8, 16, 128], strides = [1, 1, 1]} : vector<8x18x128xbf16> to vector<8x16x128xbf16>
      %53 = vector.shape_cast %52 : vector<8x16x128xbf16> to vector<128x128xbf16>
      %c5 = arith.constant 5 : index
      %c0_38 = arith.constant 0 : index
      %c0_39 = arith.constant 0 : index
      %54 = vector.load %arg2[%c5, %c0_38, %c0_39] : memref<9x128x128xbf16, #tpu.memory_space<vmem>>, vector<1x128x128xbf16>
      %55 = vector.shape_cast %54 : vector<1x128x128xbf16> to vector<128x128xbf16>
      %cst_40 = arith.constant dense<0.000000e+00> : vector<128x128xf32>
      %56 = tpu.matmul %53, %55, %cst_40 {dimension_numbers = #tpu.dot_dimension_numbers<[1], [0], [0], [1], [0, 0, 1, 1], [], []>} : vector<128x128xbf16>, vector<128x128xbf16>, vector<128x128xf32> -> vector<128x128xf32>
      %57 = arith.addf %51, %56 : vector<128x128xf32>
      %c2_i32_41 = arith.constant 2 : i32
      %58 = arith.addi %14, %c2_i32_41 : i32
      %59 = arith.index_cast %58 : i32 to index
      %c0_42 = arith.constant 0 : index
      %c0_43 = arith.constant 0 : index
      %60 = vector.load %arg6[%59, %c0_42, %c0_43] : memref<18x18x128xbf16, #tpu.memory_space<vmem>>, vector<8x18x128xbf16>
      %61 = vector.extract_strided_slice %60 {offsets = [0, 0, 0], sizes = [8, 16, 128], strides = [1, 1, 1]} : vector<8x18x128xbf16> to vector<8x16x128xbf16>
      %62 = vector.shape_cast %61 : vector<8x16x128xbf16> to vector<128x128xbf16>
      %c6 = arith.constant 6 : index
      %c0_44 = arith.constant 0 : index
      %c0_45 = arith.constant 0 : index
      %63 = vector.load %arg2[%c6, %c0_44, %c0_45] : memref<9x128x128xbf16, #tpu.memory_space<vmem>>, vector<1x128x128xbf16>
      %64 = vector.shape_cast %63 : vector<1x128x128xbf16> to vector<128x128xbf16>
      %cst_46 = arith.constant dense<0.000000e+00> : vector<128x128xf32>
      %65 = tpu.matmul %62, %64, %cst_46 {dimension_numbers = #tpu.dot_dimension_numbers<[1], [0], [0], [1], [0, 0, 1, 1], [], []>} : vector<128x128xbf16>, vector<128x128xbf16>, vector<128x128xf32> -> vector<128x128xf32>
      %66 = arith.addf %57, %65 : vector<128x128xf32>
      %67 = vector.extract_strided_slice %60 {offsets = [0, 1, 0], sizes = [8, 16, 128], strides = [1, 1, 1]} : vector<8x18x128xbf16> to vector<8x16x128xbf16>
      %68 = vector.shape_cast %67 : vector<8x16x128xbf16> to vector<128x128xbf16>
      %c7 = arith.constant 7 : index
      %c0_47 = arith.constant 0 : index
      %c0_48 = arith.constant 0 : index
      %69 = vector.load %arg2[%c7, %c0_47, %c0_48] : memref<9x128x128xbf16, #tpu.memory_space<vmem>>, vector<1x128x128xbf16>
      %70 = vector.shape_cast %69 : vector<1x128x128xbf16> to vector<128x128xbf16>
      %cst_49 = arith.constant dense<0.000000e+00> : vector<128x128xf32>
      %71 = tpu.matmul %68, %70, %cst_49 {dimension_numbers = #tpu.dot_dimension_numbers<[1], [0], [0], [1], [0, 0, 1, 1], [], []>} : vector<128x128xbf16>, vector<128x128xbf16>, vector<128x128xf32> -> vector<128x128xf32>
      %72 = arith.addf %66, %71 : vector<128x128xf32>
      %73 = vector.extract_strided_slice %60 {offsets = [0, 2, 0], sizes = [8, 16, 128], strides = [1, 1, 1]} : vector<8x18x128xbf16> to vector<8x16x128xbf16>
      %74 = vector.shape_cast %73 : vector<8x16x128xbf16> to vector<128x128xbf16>
      %c8 = arith.constant 8 : index
      %c0_50 = arith.constant 0 : index
      %c0_51 = arith.constant 0 : index
      %75 = vector.load %arg2[%c8, %c0_50, %c0_51] : memref<9x128x128xbf16, #tpu.memory_space<vmem>>, vector<1x128x128xbf16>
      %76 = vector.shape_cast %75 : vector<1x128x128xbf16> to vector<128x128xbf16>
      %cst_52 = arith.constant dense<0.000000e+00> : vector<128x128xf32>
      %77 = tpu.matmul %74, %76, %cst_52 {dimension_numbers = #tpu.dot_dimension_numbers<[1], [0], [0], [1], [0, 0, 1, 1], [], []>} : vector<128x128xbf16>, vector<128x128xbf16>, vector<128x128xf32> -> vector<128x128xf32>
      %78 = arith.addf %72, %77 : vector<128x128xf32>
      %c128_i32 = arith.constant 128 : i32
      %79 = arith.muli %arg7, %c128_i32 : i32
      %80 = tpu.assume_multiple %79, 128 : i32
      %81 = arith.truncf %78 : vector<128x128xf32> to vector<128x128xbf16>
      %c0_53 = arith.constant 0 : index
      %82 = arith.index_cast %80 : i32 to index
      %c0_54 = arith.constant 0 : index
      %83 = vector.load %arg3[%c0_53, %82, %c0_54] : memref<1x256x128xbf16, #tpu.memory_space<vmem>>, vector<1x128x128xbf16>
      %84 = vector.shape_cast %83 : vector<1x128x128xbf16> to vector<128x128xbf16>
      %85 = vector.shape_cast %81 : vector<128x128xbf16> to vector<1x128x128xbf16>
      tpu.vector_store %arg3[%c0_53, %82, %c0_54], %85 {strides = array<i32>} : memref<1x256x128xbf16, #tpu.memory_space<vmem>>, vector<1x128x128xbf16>,
      %cst_55 = arith.constant dense<0.000000e+00> : vector<128xf32>
      %86 = vector.multi_reduction <add>, %78, %cst_55 [0] : vector<128x128xf32> to vector<128xf32>
      %87 = vector.shape_cast %86 : vector<128xf32> to vector<1x128xf32>
      %88 = arith.addf %arg8, %87 : vector<1x128xf32>
      %89 = arith.mulf %78, %78 : vector<128x128xf32>
      %cst_56 = arith.constant dense<0.000000e+00> : vector<128xf32>
      %90 = vector.multi_reduction <add>, %89, %cst_56 [0] : vector<128x128xf32> to vector<128xf32>
      %91 = vector.shape_cast %90 : vector<128xf32> to vector<1x128xf32>
      %92 = arith.addf %arg9, %91 : vector<1x128xf32>
      scf.yield %88, %92 : vector<1x128xf32>, vector<1x128xf32>
    }
    %c2_i32_8 = arith.constant 2 : i32
    %c0_9 = arith.constant 0 : index
    %c0_10 = arith.constant 0 : index
    %c0_11 = arith.constant 0 : index
    %7 = vector.load %arg4[%c0_9, %c0_10, %c0_11] : memref<1x1x128xf32, #tpu.memory_space<vmem>>, vector<1x1x128xf32>
    %8 = vector.shape_cast %7 : vector<1x1x128xf32> to vector<1x128xf32>
    %9 = vector.shape_cast %6#0 : vector<1x128xf32> to vector<1x1x128xf32>
    tpu.vector_store %arg4[%c0_9, %c0_10, %c0_11], %9 {strides = array<i32>} : memref<1x1x128xf32, #tpu.memory_space<vmem>>, vector<1x1x128xf32>,
    %c0_12 = arith.constant 0 : index
    %c0_13 = arith.constant 0 : index
    %c0_14 = arith.constant 0 : index
    %10 = vector.load %arg5[%c0_12, %c0_13, %c0_14] : memref<1x1x128xf32, #tpu.memory_space<vmem>>, vector<1x1x128xf32>
    %11 = vector.shape_cast %10 : vector<1x1x128xf32> to vector<1x128xf32>
    %12 = vector.shape_cast %6#1 : vector<1x128xf32> to vector<1x1x128xf32>
    tpu.vector_store %arg5[%c0_12, %c0_13, %c0_14], %12 {strides = array<i32>} : memref<1x1x128xf32, #tpu.memory_space<vmem>>, vector<1x1x128xf32>,
    return
  }
  func.func @transform_0(%arg0: i32) -> (i32, i32, i32, i32) {
    %c0_i32 = arith.constant 0 : i32
    %c0_i32_0 = arith.constant 0 : i32
    %c0_i32_1 = arith.constant 0 : i32
    %c0_i32_2 = arith.constant 0 : i32
    return %arg0, %c0_i32, %c0_i32_0, %c0_i32_1 : i32, i32, i32, i32
  }
  func.func @transform_1(%arg0: i32) -> (i32, i32, i32) {
    %c0_i32 = arith.constant 0 : i32
    %c0_i32_0 = arith.constant 0 : i32
    %c0_i32_1 = arith.constant 0 : i32
    %c0_i32_2 = arith.constant 0 : i32
    return %c0_i32, %c0_i32_0, %c0_i32_1 : i32, i32, i32
  }
  func.func @transform_2(%arg0: i32) -> (i32, i32, i32) {
    %c0_i32 = arith.constant 0 : i32
    %c0_i32_0 = arith.constant 0 : i32
    %c0_i32_1 = arith.constant 0 : i32
    return %arg0, %c0_i32, %c0_i32_0 : i32, i32, i32
  }
  func.func @transform_3(%arg0: i32) -> (i32, i32, i32) {
    %c0_i32 = arith.constant 0 : i32
    %c0_i32_0 = arith.constant 0 : i32
    %c0_i32_1 = arith.constant 0 : i32
    return %arg0, %c0_i32, %c0_i32_0 : i32, i32, i32
  }
  func.func @transform_4(%arg0: i32) -> (i32, i32, i32) {
    %c0_i32 = arith.constant 0 : i32
    %c0_i32_0 = arith.constant 0 : i32
    %c0_i32_1 = arith.constant 0 : i32
    return %arg0, %c0_i32, %c0_i32_0 : i32, i32, i32
  }
}

module attributes {stable_mosaic.version = 11 : i64} {
  func.func @_conv2_fused_kernel(%arg0: i32, %arg1: memref<1x256x128xbf16, #tpu.memory_space<vmem>>, %arg2: memref<1x128xf32, #tpu.memory_space<vmem>>, %arg3: memref<1x128xf32, #tpu.memory_space<vmem>>, %arg4: memref<9x128x128xbf16, #tpu.memory_space<vmem>>, %arg5: memref<1x256x128xbf16, #tpu.memory_space<vmem>>, %arg6: memref<1x1x128xf32, #tpu.memory_space<vmem>>, %arg7: memref<1x1x128xf32, #tpu.memory_space<vmem>>, %arg8: memref<18x18x128xbf16, #tpu.memory_space<vmem>>) attributes {dimension_semantics = [#tpu.dimension_semantics<parallel>], iteration_bounds = array<i64: 2>, scalar_prefetch = 0 : i64, scratch_operands = 1 : i64, tpu.core_type = #tpu.core_type<tc>, window_params = [{transform_indices = @transform_0, window_bounds = array<i64: 1, 256, 128>}, {pipeline_mode = #tpu.pipeline_mode<synchronous>, transform_indices = @transform_1, window_bounds = array<i64: 1, 128>}, {pipeline_mode = #tpu.pipeline_mode<synchronous>, transform_indices = @transform_2, window_bounds = array<i64: 1, 128>}, {pipeline_mode = #tpu.pipeline_mode<synchronous>, transform_indices = @transform_3, window_bounds = array<i64: 9, 128, 128>}, {transform_indices = @transform_4, window_bounds = array<i64: 1, 256, 128>}, {transform_indices = @transform_5, window_bounds = array<i64: 1, 1, 128>}, {transform_indices = @transform_6, window_bounds = array<i64: 1, 1, 128>}]} {
    %c0 = arith.constant 0 : index
    %c0_0 = arith.constant 0 : index
    %0 = vector.load %arg2[%c0, %c0_0] : memref<1x128xf32, #tpu.memory_space<vmem>>, vector<1x128xf32>
    %c0_1 = arith.constant 0 : index
    %c0_2 = arith.constant 0 : index
    %1 = vector.load %arg3[%c0_1, %c0_2] : memref<1x128xf32, #tpu.memory_space<vmem>>, vector<1x128xf32>
    %cst = arith.constant 0.000000e+00 : bf16
    %2 = vector.broadcast %cst : bf16 to vector<18x18x128xbf16>
    %c0_3 = arith.constant 0 : index
    %c0_4 = arith.constant 0 : index
    %c0_5 = arith.constant 0 : index
    %3 = vector.load %arg8[%c0_3, %c0_4, %c0_5] : memref<18x18x128xbf16, #tpu.memory_space<vmem>>, vector<18x18x128xbf16>
    tpu.vector_store %arg8[%c0_3, %c0_4, %c0_5], %2 {strides = array<i32>} : memref<18x18x128xbf16, #tpu.memory_space<vmem>>, vector<18x18x128xbf16>,
    %c0_i32 = arith.constant 0 : i32
    %c2_i32 = arith.constant 2 : i32
    %4 = arith.addi %c0_i32, %c2_i32 : i32
    %c1_i32 = arith.constant 1 : i32
    scf.for %arg9 = %c0_i32 to %4 step %c1_i32  : i32 {
      %c1_i32_19 = arith.constant 1 : i32
      %15 = arith.muli %arg9, %c1_i32_19 : i32
      %c0_i32_20 = arith.constant 0 : i32
      %16 = arith.addi %c0_i32_20, %15 : i32
      %c8_i32 = arith.constant 8 : i32
      %17 = arith.muli %16, %c8_i32 : i32
      %18 = tpu.assume_multiple %17, 8 : i32
      %c16_i32 = arith.constant 16 : i32
      %19 = arith.muli %18, %c16_i32 : i32
      %20 = tpu.assume_multiple %19, 128 : i32
      %c0_21 = arith.constant 0 : index
      %21 = arith.index_cast %20 : i32 to index
      %c0_22 = arith.constant 0 : index
      %22 = vector.load %arg1[%c0_21, %21, %c0_22] : memref<1x256x128xbf16, #tpu.memory_space<vmem>>, vector<1x128x128xbf16>
      %23 = vector.shape_cast %22 : vector<1x128x128xbf16> to vector<128x128xbf16>
      %24 = arith.extf %23 : vector<128x128xbf16> to vector<128x128xf32>
      %25 = vector.broadcast %0 : vector<1x128xf32> to vector<128x128xf32>
      %26 = arith.mulf %24, %25 : vector<128x128xf32>
      %27 = vector.broadcast %1 : vector<1x128xf32> to vector<128x128xf32>
      %28 = arith.addf %26, %27 : vector<128x128xf32>
      %cst_23 = arith.constant 0.000000e+00 : f32
      %29 = vector.broadcast %cst_23 : f32 to vector<128x128xf32>
      %30 = arith.maximumf %28, %29 : vector<128x128xf32>
      %31 = vector.shape_cast %30 : vector<128x128xf32> to vector<8x16x128xf32>
      %32 = arith.truncf %31 : vector<8x16x128xf32> to vector<8x16x128xbf16>
      %c1_i32_24 = arith.constant 1 : i32
      %33 = arith.addi %18, %c1_i32_24 : i32
      %34 = arith.index_cast %33 : i32 to index
      %c1 = arith.constant 1 : index
      %c0_25 = arith.constant 0 : index
      %35 = vector.load %arg8[%34, %c1, %c0_25] : memref<18x18x128xbf16, #tpu.memory_space<vmem>>, vector<8x16x128xbf16>
      tpu.vector_store %arg8[%34, %c1, %c0_25], %32 {strides = array<i32>} : memref<18x18x128xbf16, #tpu.memory_space<vmem>>, vector<8x16x128xbf16>,
    }
    %c2_i32_6 = arith.constant 2 : i32
    %cst_7 = arith.constant 0.000000e+00 : f32
    %5 = vector.broadcast %cst_7 : f32 to vector<1x128xf32>
    %cst_8 = arith.constant 0.000000e+00 : f32
    %6 = vector.broadcast %cst_8 : f32 to vector<1x128xf32>
    %c0_i32_9 = arith.constant 0 : i32
    %c2_i32_10 = arith.constant 2 : i32
    %7 = arith.addi %c0_i32_9, %c2_i32_10 : i32
    %c1_i32_11 = arith.constant 1 : i32
    %8:2 = scf.for %arg9 = %c0_i32_9 to %7 step %c1_i32_11 iter_args(%arg10 = %5, %arg11 = %6) -> (vector<1x128xf32>, vector<1x128xf32>)  : i32 {
      %c8_i32 = arith.constant 8 : i32
      %15 = arith.muli %arg9, %c8_i32 : i32
      %16 = tpu.assume_multiple %15, 8 : i32
      %cst_19 = arith.constant 0.000000e+00 : f32
      %17 = vector.broadcast %cst_19 : f32 to vector<128x128xf32>
      %c0_i32_20 = arith.constant 0 : i32
      %18 = arith.addi %16, %c0_i32_20 : i32
      %19 = arith.index_cast %18 : i32 to index
      %c0_21 = arith.constant 0 : index
      %c0_22 = arith.constant 0 : index
      %20 = vector.load %arg8[%19, %c0_21, %c0_22] : memref<18x18x128xbf16, #tpu.memory_space<vmem>>, vector<8x18x128xbf16>
      %21 = vector.extract_strided_slice %20 {offsets = [0, 0, 0], sizes = [8, 16, 128], strides = [1, 1, 1]} : vector<8x18x128xbf16> to vector<8x16x128xbf16>
      %22 = vector.shape_cast %21 : vector<8x16x128xbf16> to vector<128x128xbf16>
      %c0_23 = arith.constant 0 : index
      %c0_24 = arith.constant 0 : index
      %c0_25 = arith.constant 0 : index
      %23 = vector.load %arg4[%c0_23, %c0_24, %c0_25] : memref<9x128x128xbf16, #tpu.memory_space<vmem>>, vector<1x128x128xbf16>
      %24 = vector.shape_cast %23 : vector<1x128x128xbf16> to vector<128x128xbf16>
      %cst_26 = arith.constant dense<0.000000e+00> : vector<128x128xf32>
      %25 = tpu.matmul %22, %24, %cst_26 {dimension_numbers = #tpu.dot_dimension_numbers<[1], [0], [0], [1], [0, 0, 1, 1], [], []>} : vector<128x128xbf16>, vector<128x128xbf16>, vector<128x128xf32> -> vector<128x128xf32>
      %26 = arith.addf %17, %25 : vector<128x128xf32>
      %27 = vector.extract_strided_slice %20 {offsets = [0, 1, 0], sizes = [8, 16, 128], strides = [1, 1, 1]} : vector<8x18x128xbf16> to vector<8x16x128xbf16>
      %28 = vector.shape_cast %27 : vector<8x16x128xbf16> to vector<128x128xbf16>
      %c1 = arith.constant 1 : index
      %c0_27 = arith.constant 0 : index
      %c0_28 = arith.constant 0 : index
      %29 = vector.load %arg4[%c1, %c0_27, %c0_28] : memref<9x128x128xbf16, #tpu.memory_space<vmem>>, vector<1x128x128xbf16>
      %30 = vector.shape_cast %29 : vector<1x128x128xbf16> to vector<128x128xbf16>
      %cst_29 = arith.constant dense<0.000000e+00> : vector<128x128xf32>
      %31 = tpu.matmul %28, %30, %cst_29 {dimension_numbers = #tpu.dot_dimension_numbers<[1], [0], [0], [1], [0, 0, 1, 1], [], []>} : vector<128x128xbf16>, vector<128x128xbf16>, vector<128x128xf32> -> vector<128x128xf32>
      %32 = arith.addf %26, %31 : vector<128x128xf32>
      %33 = vector.extract_strided_slice %20 {offsets = [0, 2, 0], sizes = [8, 16, 128], strides = [1, 1, 1]} : vector<8x18x128xbf16> to vector<8x16x128xbf16>
      %34 = vector.shape_cast %33 : vector<8x16x128xbf16> to vector<128x128xbf16>
      %c2 = arith.constant 2 : index
      %c0_30 = arith.constant 0 : index
      %c0_31 = arith.constant 0 : index
      %35 = vector.load %arg4[%c2, %c0_30, %c0_31] : memref<9x128x128xbf16, #tpu.memory_space<vmem>>, vector<1x128x128xbf16>
      %36 = vector.shape_cast %35 : vector<1x128x128xbf16> to vector<128x128xbf16>
      %cst_32 = arith.constant dense<0.000000e+00> : vector<128x128xf32>
      %37 = tpu.matmul %34, %36, %cst_32 {dimension_numbers = #tpu.dot_dimension_numbers<[1], [0], [0], [1], [0, 0, 1, 1], [], []>} : vector<128x128xbf16>, vector<128x128xbf16>, vector<128x128xf32> -> vector<128x128xf32>
      %38 = arith.addf %32, %37 : vector<128x128xf32>
      %c1_i32_33 = arith.constant 1 : i32
      %39 = arith.addi %16, %c1_i32_33 : i32
      %40 = arith.index_cast %39 : i32 to index
      %c0_34 = arith.constant 0 : index
      %c0_35 = arith.constant 0 : index
      %41 = vector.load %arg8[%40, %c0_34, %c0_35] : memref<18x18x128xbf16, #tpu.memory_space<vmem>>, vector<8x18x128xbf16>
      %42 = vector.extract_strided_slice %41 {offsets = [0, 0, 0], sizes = [8, 16, 128], strides = [1, 1, 1]} : vector<8x18x128xbf16> to vector<8x16x128xbf16>
      %43 = vector.shape_cast %42 : vector<8x16x128xbf16> to vector<128x128xbf16>
      %c3 = arith.constant 3 : index
      %c0_36 = arith.constant 0 : index
      %c0_37 = arith.constant 0 : index
      %44 = vector.load %arg4[%c3, %c0_36, %c0_37] : memref<9x128x128xbf16, #tpu.memory_space<vmem>>, vector<1x128x128xbf16>
      %45 = vector.shape_cast %44 : vector<1x128x128xbf16> to vector<128x128xbf16>
      %cst_38 = arith.constant dense<0.000000e+00> : vector<128x128xf32>
      %46 = tpu.matmul %43, %45, %cst_38 {dimension_numbers = #tpu.dot_dimension_numbers<[1], [0], [0], [1], [0, 0, 1, 1], [], []>} : vector<128x128xbf16>, vector<128x128xbf16>, vector<128x128xf32> -> vector<128x128xf32>
      %47 = arith.addf %38, %46 : vector<128x128xf32>
      %48 = vector.extract_strided_slice %41 {offsets = [0, 1, 0], sizes = [8, 16, 128], strides = [1, 1, 1]} : vector<8x18x128xbf16> to vector<8x16x128xbf16>
      %49 = vector.shape_cast %48 : vector<8x16x128xbf16> to vector<128x128xbf16>
      %c4 = arith.constant 4 : index
      %c0_39 = arith.constant 0 : index
      %c0_40 = arith.constant 0 : index
      %50 = vector.load %arg4[%c4, %c0_39, %c0_40] : memref<9x128x128xbf16, #tpu.memory_space<vmem>>, vector<1x128x128xbf16>
      %51 = vector.shape_cast %50 : vector<1x128x128xbf16> to vector<128x128xbf16>
      %cst_41 = arith.constant dense<0.000000e+00> : vector<128x128xf32>
      %52 = tpu.matmul %49, %51, %cst_41 {dimension_numbers = #tpu.dot_dimension_numbers<[1], [0], [0], [1], [0, 0, 1, 1], [], []>} : vector<128x128xbf16>, vector<128x128xbf16>, vector<128x128xf32> -> vector<128x128xf32>
      %53 = arith.addf %47, %52 : vector<128x128xf32>
      %54 = vector.extract_strided_slice %41 {offsets = [0, 2, 0], sizes = [8, 16, 128], strides = [1, 1, 1]} : vector<8x18x128xbf16> to vector<8x16x128xbf16>
      %55 = vector.shape_cast %54 : vector<8x16x128xbf16> to vector<128x128xbf16>
      %c5 = arith.constant 5 : index
      %c0_42 = arith.constant 0 : index
      %c0_43 = arith.constant 0 : index
      %56 = vector.load %arg4[%c5, %c0_42, %c0_43] : memref<9x128x128xbf16, #tpu.memory_space<vmem>>, vector<1x128x128xbf16>
      %57 = vector.shape_cast %56 : vector<1x128x128xbf16> to vector<128x128xbf16>
      %cst_44 = arith.constant dense<0.000000e+00> : vector<128x128xf32>
      %58 = tpu.matmul %55, %57, %cst_44 {dimension_numbers = #tpu.dot_dimension_numbers<[1], [0], [0], [1], [0, 0, 1, 1], [], []>} : vector<128x128xbf16>, vector<128x128xbf16>, vector<128x128xf32> -> vector<128x128xf32>
      %59 = arith.addf %53, %58 : vector<128x128xf32>
      %c2_i32_45 = arith.constant 2 : i32
      %60 = arith.addi %16, %c2_i32_45 : i32
      %61 = arith.index_cast %60 : i32 to index
      %c0_46 = arith.constant 0 : index
      %c0_47 = arith.constant 0 : index
      %62 = vector.load %arg8[%61, %c0_46, %c0_47] : memref<18x18x128xbf16, #tpu.memory_space<vmem>>, vector<8x18x128xbf16>
      %63 = vector.extract_strided_slice %62 {offsets = [0, 0, 0], sizes = [8, 16, 128], strides = [1, 1, 1]} : vector<8x18x128xbf16> to vector<8x16x128xbf16>
      %64 = vector.shape_cast %63 : vector<8x16x128xbf16> to vector<128x128xbf16>
      %c6 = arith.constant 6 : index
      %c0_48 = arith.constant 0 : index
      %c0_49 = arith.constant 0 : index
      %65 = vector.load %arg4[%c6, %c0_48, %c0_49] : memref<9x128x128xbf16, #tpu.memory_space<vmem>>, vector<1x128x128xbf16>
      %66 = vector.shape_cast %65 : vector<1x128x128xbf16> to vector<128x128xbf16>
      %cst_50 = arith.constant dense<0.000000e+00> : vector<128x128xf32>
      %67 = tpu.matmul %64, %66, %cst_50 {dimension_numbers = #tpu.dot_dimension_numbers<[1], [0], [0], [1], [0, 0, 1, 1], [], []>} : vector<128x128xbf16>, vector<128x128xbf16>, vector<128x128xf32> -> vector<128x128xf32>
      %68 = arith.addf %59, %67 : vector<128x128xf32>
      %69 = vector.extract_strided_slice %62 {offsets = [0, 1, 0], sizes = [8, 16, 128], strides = [1, 1, 1]} : vector<8x18x128xbf16> to vector<8x16x128xbf16>
      %70 = vector.shape_cast %69 : vector<8x16x128xbf16> to vector<128x128xbf16>
      %c7 = arith.constant 7 : index
      %c0_51 = arith.constant 0 : index
      %c0_52 = arith.constant 0 : index
      %71 = vector.load %arg4[%c7, %c0_51, %c0_52] : memref<9x128x128xbf16, #tpu.memory_space<vmem>>, vector<1x128x128xbf16>
      %72 = vector.shape_cast %71 : vector<1x128x128xbf16> to vector<128x128xbf16>
      %cst_53 = arith.constant dense<0.000000e+00> : vector<128x128xf32>
      %73 = tpu.matmul %70, %72, %cst_53 {dimension_numbers = #tpu.dot_dimension_numbers<[1], [0], [0], [1], [0, 0, 1, 1], [], []>} : vector<128x128xbf16>, vector<128x128xbf16>, vector<128x128xf32> -> vector<128x128xf32>
      %74 = arith.addf %68, %73 : vector<128x128xf32>
      %75 = vector.extract_strided_slice %62 {offsets = [0, 2, 0], sizes = [8, 16, 128], strides = [1, 1, 1]} : vector<8x18x128xbf16> to vector<8x16x128xbf16>
      %76 = vector.shape_cast %75 : vector<8x16x128xbf16> to vector<128x128xbf16>
      %c8 = arith.constant 8 : index
      %c0_54 = arith.constant 0 : index
      %c0_55 = arith.constant 0 : index
      %77 = vector.load %arg4[%c8, %c0_54, %c0_55] : memref<9x128x128xbf16, #tpu.memory_space<vmem>>, vector<1x128x128xbf16>
      %78 = vector.shape_cast %77 : vector<1x128x128xbf16> to vector<128x128xbf16>
      %cst_56 = arith.constant dense<0.000000e+00> : vector<128x128xf32>
      %79 = tpu.matmul %76, %78, %cst_56 {dimension_numbers = #tpu.dot_dimension_numbers<[1], [0], [0], [1], [0, 0, 1, 1], [], []>} : vector<128x128xbf16>, vector<128x128xbf16>, vector<128x128xf32> -> vector<128x128xf32>
      %80 = arith.addf %74, %79 : vector<128x128xf32>
      %c128_i32 = arith.constant 128 : i32
      %81 = arith.muli %arg9, %c128_i32 : i32
      %82 = tpu.assume_multiple %81, 128 : i32
      %83 = arith.truncf %80 : vector<128x128xf32> to vector<128x128xbf16>
      %c0_57 = arith.constant 0 : index
      %84 = arith.index_cast %82 : i32 to index
      %c0_58 = arith.constant 0 : index
      %85 = vector.load %arg5[%c0_57, %84, %c0_58] : memref<1x256x128xbf16, #tpu.memory_space<vmem>>, vector<1x128x128xbf16>
      %86 = vector.shape_cast %85 : vector<1x128x128xbf16> to vector<128x128xbf16>
      %87 = vector.shape_cast %83 : vector<128x128xbf16> to vector<1x128x128xbf16>
      tpu.vector_store %arg5[%c0_57, %84, %c0_58], %87 {strides = array<i32>} : memref<1x256x128xbf16, #tpu.memory_space<vmem>>, vector<1x128x128xbf16>,
      %cst_59 = arith.constant dense<0.000000e+00> : vector<128xf32>
      %88 = vector.multi_reduction <add>, %80, %cst_59 [0] : vector<128x128xf32> to vector<128xf32>
      %89 = vector.shape_cast %88 : vector<128xf32> to vector<1x128xf32>
      %90 = arith.addf %arg10, %89 : vector<1x128xf32>
      %91 = arith.mulf %80, %80 : vector<128x128xf32>
      %cst_60 = arith.constant dense<0.000000e+00> : vector<128xf32>
      %92 = vector.multi_reduction <add>, %91, %cst_60 [0] : vector<128x128xf32> to vector<128xf32>
      %93 = vector.shape_cast %92 : vector<128xf32> to vector<1x128xf32>
      %94 = arith.addf %arg11, %93 : vector<1x128xf32>
      scf.yield %90, %94 : vector<1x128xf32>, vector<1x128xf32>
    }
    %c2_i32_12 = arith.constant 2 : i32
    %c0_13 = arith.constant 0 : index
    %c0_14 = arith.constant 0 : index
    %c0_15 = arith.constant 0 : index
    %9 = vector.load %arg6[%c0_13, %c0_14, %c0_15] : memref<1x1x128xf32, #tpu.memory_space<vmem>>, vector<1x1x128xf32>
    %10 = vector.shape_cast %9 : vector<1x1x128xf32> to vector<1x128xf32>
    %11 = vector.shape_cast %8#0 : vector<1x128xf32> to vector<1x1x128xf32>
    tpu.vector_store %arg6[%c0_13, %c0_14, %c0_15], %11 {strides = array<i32>} : memref<1x1x128xf32, #tpu.memory_space<vmem>>, vector<1x1x128xf32>,
    %c0_16 = arith.constant 0 : index
    %c0_17 = arith.constant 0 : index
    %c0_18 = arith.constant 0 : index
    %12 = vector.load %arg7[%c0_16, %c0_17, %c0_18] : memref<1x1x128xf32, #tpu.memory_space<vmem>>, vector<1x1x128xf32>
    %13 = vector.shape_cast %12 : vector<1x1x128xf32> to vector<1x128xf32>
    %14 = vector.shape_cast %8#1 : vector<1x128xf32> to vector<1x1x128xf32>
    tpu.vector_store %arg7[%c0_16, %c0_17, %c0_18], %14 {strides = array<i32>} : memref<1x1x128xf32, #tpu.memory_space<vmem>>, vector<1x1x128xf32>,
    return
  }
  func.func @transform_0(%arg0: i32) -> (i32, i32, i32) {
    %c0_i32 = arith.constant 0 : i32
    %c0_i32_0 = arith.constant 0 : i32
    %c0_i32_1 = arith.constant 0 : i32
    return %arg0, %c0_i32, %c0_i32_0 : i32, i32, i32
  }
  func.func @transform_1(%arg0: i32) -> (i32, i32) {
    %c0_i32 = arith.constant 0 : i32
    %c0_i32_0 = arith.constant 0 : i32
    %c0_i32_1 = arith.constant 0 : i32
    return %c0_i32, %c0_i32_0 : i32, i32
  }
  func.func @transform_2(%arg0: i32) -> (i32, i32) {
    %c0_i32 = arith.constant 0 : i32
    %c0_i32_0 = arith.constant 0 : i32
    %c0_i32_1 = arith.constant 0 : i32
    return %c0_i32, %c0_i32_0 : i32, i32
  }
  func.func @transform_3(%arg0: i32) -> (i32, i32, i32) {
    %c0_i32 = arith.constant 0 : i32
    %c0_i32_0 = arith.constant 0 : i32
    %c0_i32_1 = arith.constant 0 : i32
    %c0_i32_2 = arith.constant 0 : i32
    return %c0_i32, %c0_i32_0, %c0_i32_1 : i32, i32, i32
  }
  func.func @transform_4(%arg0: i32) -> (i32, i32, i32) {
    %c0_i32 = arith.constant 0 : i32
    %c0_i32_0 = arith.constant 0 : i32
    %c0_i32_1 = arith.constant 0 : i32
    return %arg0, %c0_i32, %c0_i32_0 : i32, i32, i32
  }
  func.func @transform_5(%arg0: i32) -> (i32, i32, i32) {
    %c0_i32 = arith.constant 0 : i32
    %c0_i32_0 = arith.constant 0 : i32
    %c0_i32_1 = arith.constant 0 : i32
    return %arg0, %c0_i32, %c0_i32_0 : i32, i32, i32
  }
  func.func @transform_6(%arg0: i32) -> (i32, i32, i32) {
    %c0_i32 = arith.constant 0 : i32
    %c0_i32_0 = arith.constant 0 : i32
    %c0_i32_1 = arith.constant 0 : i32
    return %arg0, %c0_i32, %c0_i32_0 : i32, i32, i32
  }
}

module attributes {stable_mosaic.version = 11 : i64} {
  func.func @_bn_res_relu_kernel(%arg0: i32, %arg1: memref<512x128xbf16, #tpu.memory_space<vmem>>, %arg2: memref<1x128xf32, #tpu.memory_space<vmem>>, %arg3: memref<1x128xf32, #tpu.memory_space<vmem>>, %arg4: memref<512x128xbf16, #tpu.memory_space<vmem>>, %arg5: memref<512x128xf32, #tpu.memory_space<vmem>>) attributes {dimension_semantics = [#tpu.dimension_semantics<parallel>], iteration_bounds = array<i64: 1>, scalar_prefetch = 0 : i64, scratch_operands = 0 : i64, tpu.core_type = #tpu.core_type<tc>, window_params = [{transform_indices = @transform_0, window_bounds = array<i64: 512, 128>}, {pipeline_mode = #tpu.pipeline_mode<synchronous>, transform_indices = @transform_1, window_bounds = array<i64: 1, 128>}, {pipeline_mode = #tpu.pipeline_mode<synchronous>, transform_indices = @transform_2, window_bounds = array<i64: 1, 128>}, {transform_indices = @transform_3, window_bounds = array<i64: 512, 128>}, {transform_indices = @transform_4, window_bounds = array<i64: 512, 128>}]} {
    %c0 = arith.constant 0 : index
    %c0_0 = arith.constant 0 : index
    %0 = vector.load %arg1[%c0, %c0_0] : memref<512x128xbf16, #tpu.memory_space<vmem>>, vector<512x128xbf16>
    %1 = arith.extf %0 : vector<512x128xbf16> to vector<512x128xf32>
    %c0_1 = arith.constant 0 : index
    %c0_2 = arith.constant 0 : index
    %2 = vector.load %arg2[%c0_1, %c0_2] : memref<1x128xf32, #tpu.memory_space<vmem>>, vector<1x128xf32>
    %3 = vector.broadcast %2 : vector<1x128xf32> to vector<512x128xf32>
    %4 = arith.mulf %1, %3 : vector<512x128xf32>
    %c0_3 = arith.constant 0 : index
    %c0_4 = arith.constant 0 : index
    %5 = vector.load %arg3[%c0_3, %c0_4] : memref<1x128xf32, #tpu.memory_space<vmem>>, vector<1x128xf32>
    %6 = vector.broadcast %5 : vector<1x128xf32> to vector<512x128xf32>
    %7 = arith.addf %4, %6 : vector<512x128xf32>
    %c0_5 = arith.constant 0 : index
    %c0_6 = arith.constant 0 : index
    %8 = vector.load %arg4[%c0_5, %c0_6] : memref<512x128xbf16, #tpu.memory_space<vmem>>, vector<512x128xbf16>
    %9 = arith.extf %8 : vector<512x128xbf16> to vector<512x128xf32>
    %10 = arith.addf %7, %9 : vector<512x128xf32>
    %cst = arith.constant 0.000000e+00 : f32
    %11 = vector.broadcast %cst : f32 to vector<512x128xf32>
    %12 = arith.maximumf %10, %11 : vector<512x128xf32>
    %c0_7 = arith.constant 0 : index
    %c0_8 = arith.constant 0 : index
    %13 = vector.load %arg5[%c0_7, %c0_8] : memref<512x128xf32, #tpu.memory_space<vmem>>, vector<512x128xf32>
    tpu.vector_store %arg5[%c0_7, %c0_8], %12 {strides = array<i32>} : memref<512x128xf32, #tpu.memory_space<vmem>>, vector<512x128xf32>,
    return
  }
  func.func @transform_0(%arg0: i32) -> (i32, i32) {
    %c0_i32 = arith.constant 0 : i32
    %c0_i32_0 = arith.constant 0 : i32
    return %arg0, %c0_i32 : i32, i32
  }
  func.func @transform_1(%arg0: i32) -> (i32, i32) {
    %c0_i32 = arith.constant 0 : i32
    %c0_i32_0 = arith.constant 0 : i32
    %c0_i32_1 = arith.constant 0 : i32
    return %c0_i32, %c0_i32_0 : i32, i32
  }
  func.func @transform_2(%arg0: i32) -> (i32, i32) {
    %c0_i32 = arith.constant 0 : i32
    %c0_i32_0 = arith.constant 0 : i32
    %c0_i32_1 = arith.constant 0 : i32
    return %c0_i32, %c0_i32_0 : i32, i32
  }
  func.func @transform_3(%arg0: i32) -> (i32, i32) {
    %c0_i32 = arith.constant 0 : i32
    %c0_i32_0 = arith.constant 0 : i32
    return %arg0, %c0_i32 : i32, i32
  }
  func.func @transform_4(%arg0: i32) -> (i32, i32) {
    %c0_i32 = arith.constant 0 : i32
    %c0_i32_0 = arith.constant 0 : i32
    return %arg0, %c0_i32 : i32, i32
  }
}

</mosaic_0001>

<bundles_post_ra>
// kernel: basic_block_act.5
= control target key start
LH: loop header
LB: loop body
LE: loop exit
PB: predicated region body
PF: predicated region fallthrough
CT: control target
= control target key end

     0   :  { %s1478_s0 = inlined_call_operand.vmem [shape: bf16[512,128], index: 0, kind: input, shape index: {}]   ;;  %s1479_s1 = inlined_call_operand.vmem [shape: f32[1,128], index: 1, kind: input, shape index: {}]   ;;  %s1480_s2 = inlined_call_operand.vmem [shape: f32[1,128], index: 2, kind: input, shape index: {}]   ;;  %s1481_s3 = inlined_call_operand.vmem [shape: bf16[512,128], index: 3, kind: input, shape index: {}]   ;;  %s1482_s4 = inlined_call_operand.vmem [shape: f32[512,128], index: 4, kind: output, shape index: {}]  }
   0x1   :  { %v614_v0 = vld [vmem:[%s1478_s0] sm:$0xff]   ;;  %v869_v5 = vld [vmem:[%s1478_s0 + $0x8] sm:$0xff]   ;;  %v870_v12 = vld [vmem:[%s1478_s0 + $0x10] sm:$0xff]  }
   0x2   :  { %v962_v1 = vld [vmem:[%s1479_s1] ss:$0 sm:$0xff]  ;;  %v615_v2 = vunpack.c.l.bf16 %v614_v0  ;;  %v616_v4 = vunpack.c.h.bf16 %v614_v0  ;;  %v900_v6 = vld [vmem:[%s1481_s3 + $0x8] sm:$0xff]   ;;  %v619_v10 = vunpack.c.l.bf16 %v869_v5  ;;  %v901_v13 = vld [vmem:[%s1481_s3 + $0x10] sm:$0xff]   ;;  %v620_v16 = vunpack.c.h.bf16 %v869_v5 }
   0x3   :  { %v742_v3 = vld [vmem:[%s1481_s3] sm:$0xff]   ;;  %v747_v11 = vunpack.c.l.bf16 %v900_v6  ;;  %v748_v17 = vunpack.c.h.bf16 %v900_v6  ;;  %v871_v18 = vld [vmem:[%s1478_s0 + $0x18] sm:$0xff]   ;;  %v623_v20 = vunpack.c.l.bf16 %v870_v12  ;;  %v751_v21 = vunpack.c.l.bf16 %v901_v13  ;;  %v873_v54 = vld [vmem:[%s1478_s0 + $0x28] sm:$0xff]  }
   0x4   :  { %v976_v7 = vld [vmem:[%s1480_s2] ss:$0 sm:$0xff]  ;;  %v743_v8 = vunpack.c.l.bf16 %v742_v3  ;;  %v744_v9 = vunpack.c.h.bf16 %v742_v3  ;;  %v152_v14 = vmul.f32 %v615_v2, %v962_v1  ;;  %v153_v15 = vmul.f32 %v616_v4, %v962_v1  ;;  %v902_v23 = vld [vmem:[%s1481_s3 + $0x18] sm:$0xff]   ;;  %v904_v55 = vld [vmem:[%s1481_s3 + $0x28] sm:$0xff]  }
   0x5   :  { %v154_v19 = vmul.f32 %v619_v10, %v962_v1  ;;  %v624_v22 = vunpack.c.h.bf16 %v870_v12  ;;  %v155_v26 = vmul.f32 %v620_v16, %v962_v1  ;;  %v752_v27 = vunpack.c.h.bf16 %v901_v13  ;;  %v872_v40 = vld [vmem:[%s1478_s0 + $0x20] sm:$0xff]   ;;  %v874_v0 = vld [vmem:[%s1478_s0 + $0x30] sm:$0xff]   ;;  %v875_v16 = vld [vmem:[%s1478_s0 + $0x38] sm:$0xff]  }
   0x6   :  { %v223_v24 = vadd.f32 %v976_v7, %v152_v14  ;;  %v224_v25 = vadd.f32 %v976_v7, %v153_v15  ;;  %v156_v29 = vmul.f32 %v623_v20, %v962_v1  ;;  %v627_v31 = vunpack.c.l.bf16 %v871_v18  ;;  %v903_v45 = vld [vmem:[%s1481_s3 + $0x20] sm:$0xff]   ;;  %v905_v2 = vld [vmem:[%s1481_s3 + $0x30] sm:$0xff]  }
   0x7   :  { %v225_v28 = vadd.f32 %v976_v7, %v154_v19  ;;  %v157_v30 = vmul.f32 %v624_v22, %v962_v1  ;;  %v226_v34 = vadd.f32 %v976_v7, %v155_v26  ;;  %v755_v35 = vunpack.c.l.bf16 %v902_v23 }
   0x8   :  { %v415_v32 = vadd.f32 %v743_v8, %v223_v24  ;;  %v416_v33 = vadd.f32 %v744_v9, %v224_v25  ;;  %v227_v37 = vadd.f32 %v976_v7, %v156_v29  ;;  %v158_v39 = vmul.f32 %v627_v31, %v962_v1 }
   0x9   :  { %v417_v36 = vadd.f32 %v747_v11, %v225_v28  ;;  %v228_v38 = vadd.f32 %v976_v7, %v157_v30  ;;  %v418_v43 = vadd.f32 %v748_v17, %v226_v34  ;;  %v628_v44 = vunpack.c.h.bf16 %v871_v18  ;;  %v876_v34 = vld [vmem:[%s1478_s0 + $0x40] sm:$0xff]  }
   0xa   :  { %v479_v41 = vmax.f32 %v415_v32, 0.0  ;;  %v480_v42 = vmax.f32 %v416_v33, 0.0  ;;  %v419_v47 = vadd.f32 %v751_v21, %v227_v37  ;;  %v229_v49 = vadd.f32 %v976_v7, %v158_v39  ;;  %v906_v21 = vld [vmem:[%s1481_s3 + $0x38] sm:$0xff]   ;;  %v907_v39 = vld [vmem:[%s1481_s3 + $0x40] sm:$0xff]  }
   0xb   :  { %v481_v46 = vmax.f32 %v417_v36, 0.0  ;;  %v420_v48 = vadd.f32 %v752_v27, %v228_v38  ;;  %v482_v50 = vmax.f32 %v418_v43, 0.0  ;;  %v159_v51 = vmul.f32 %v628_v44, %v962_v1 }
   0xc   :  { %543 = vst [vmem:[%s1482_s4] sm:$0xff] %v479_v41  ;;  %544 = vst [vmem:[%s1482_s4 + $0x8] sm:$0xff] %v480_v42  ;;  %v756_v52 = vunpack.c.h.bf16 %v902_v23  ;;  %v631_v53 = vunpack.c.l.bf16 %v872_v40  ;;  %v483_v56 = vmax.f32 %v419_v47, 0.0  ;;  %v421_v58 = vadd.f32 %v755_v35, %v229_v49  ;;  %v908_v49 = vld [vmem:[%s1481_s3 + $0x48] sm:$0xff]  }
   0xd   :  { %545 = vst [vmem:[%s1482_s4 + $0x10] sm:$0xff] %v481_v46  ;;  %v484_v57 = vmax.f32 %v420_v48, 0.0  ;;  %v759_v59 = vunpack.c.l.bf16 %v903_v45  ;;  %546 = vst [vmem:[%s1482_s4 + $0x18] sm:$0xff] %v482_v50  ;;  %v230_v60 = vadd.f32 %v976_v7, %v159_v51  ;;  %v632_v62 = vunpack.c.h.bf16 %v872_v40  ;;  %v877_v48 = vld [vmem:[%s1478_s0 + $0x48] sm:$0xff]  }
   0xe   :  { %v160_v61 = vmul.f32 %v631_v53, %v962_v1  ;;  %v760_v63 = vunpack.c.h.bf16 %v903_v45  ;;  %547 = vst [vmem:[%s1482_s4 + $0x20] sm:$0xff] %v483_v56  ;;  %v485_v3 = vmax.f32 %v421_v58, 0.0  ;;  %v635_v4 = vunpack.c.l.bf16 %v873_v54  ;;  %v878_v58 = vld [vmem:[%s1478_s0 + $0x50] sm:$0xff]  }
   0xf   :  { %548 = vst [vmem:[%s1482_s4 + $0x28] sm:$0xff] %v484_v57  ;;  %v763_v5 = vunpack.c.l.bf16 %v904_v55  ;;  %v636_v6 = vunpack.c.h.bf16 %v873_v54  ;;  %v422_v8 = vadd.f32 %v756_v52, %v230_v60  ;;  %v161_v10 = vmul.f32 %v632_v62, %v962_v1 }
  0x10   :  { %v231_v9 = vadd.f32 %v976_v7, %v160_v61  ;;  %v764_v11 = vunpack.c.h.bf16 %v904_v55  ;;  %549 = vst [vmem:[%s1482_s4 + $0x30] sm:$0xff] %v485_v3  ;;  %v162_v12 = vmul.f32 %v635_v4, %v962_v1  ;;  %v639_v14 = vunpack.c.l.bf16 %v874_v0 }
  0x11   :  { %v163_v13 = vmul.f32 %v636_v6, %v962_v1  ;;  %v767_v15 = vunpack.c.l.bf16 %v905_v2  ;;  %v486_v17 = vmax.f32 %v422_v8, 0.0  ;;  %v232_v19 = vadd.f32 %v976_v7, %v161_v10  ;;  %v879_v10 = vld [vmem:[%s1478_s0 + $0x58] sm:$0xff]  }
  0x12   :  { %v423_v18 = vadd.f32 %v759_v59, %v231_v9  ;;  %v640_v20 = vunpack.c.h.bf16 %v874_v0  ;;  %v233_v22 = vadd.f32 %v976_v7, %v162_v12  ;;  %v164_v24 = vmul.f32 %v639_v14, %v962_v1 }
  0x13   :  { %v234_v23 = vadd.f32 %v976_v7, %v163_v13  ;;  %v768_v25 = vunpack.c.h.bf16 %v905_v2  ;;  %550 = vst [vmem:[%s1482_s4 + $0x38] sm:$0xff] %v486_v17  ;;  %v424_v27 = vadd.f32 %v760_v63, %v232_v19  ;;  %v643_v29 = vunpack.c.l.bf16 %v875_v16  ;;  %v909_v63 = vld [vmem:[%s1481_s3 + $0x50] sm:$0xff]   ;;  %v910_v19 = vld [vmem:[%s1481_s3 + $0x58] sm:$0xff]  }
  0x14   :  { %v487_v26 = vmax.f32 %v423_v18, 0.0  ;;  %v165_v28 = vmul.f32 %v640_v20, %v962_v1  ;;  %v425_v30 = vadd.f32 %v763_v5, %v233_v22  ;;  %v235_v32 = vadd.f32 %v976_v7, %v164_v24 }
  0x15   :  { %v426_v31 = vadd.f32 %v764_v11, %v234_v23  ;;  %v771_v33 = vunpack.c.l.bf16 %v906_v21  ;;  %v488_v35 = vmax.f32 %v424_v27, 0.0  ;;  %v166_v37 = vmul.f32 %v643_v29, %v962_v1 }
  0x16   :  { %551 = vst [vmem:[%s1482_s4 + $0x40] sm:$0xff] %v487_v26  ;;  %v236_v36 = vadd.f32 %v976_v7, %v165_v28  ;;  %v644_v38 = vunpack.c.h.bf16 %v875_v16  ;;  %v489_v40 = vmax.f32 %v425_v30, 0.0  ;;  %v427_v42 = vadd.f32 %v767_v15, %v235_v32  ;;  %v880_v28 = vld [vmem:[%s1478_s0 + $0x60] sm:$0xff]  }
  0x17   :  { %v490_v41 = vmax.f32 %v426_v31, 0.0  ;;  %v772_v43 = vunpack.c.h.bf16 %v906_v21  ;;  %552 = vst [vmem:[%s1482_s4 + $0x48] sm:$0xff] %v488_v35  ;;  %v237_v45 = vadd.f32 %v976_v7, %v166_v37  ;;  %v647_v47 = vunpack.c.l.bf16 %v876_v34 }
  0x18   :  { %v428_v44 = vadd.f32 %v768_v25, %v236_v36  ;;  %v167_v46 = vmul.f32 %v644_v38, %v962_v1  ;;  %553 = vst [vmem:[%s1482_s4 + $0x50] sm:$0xff] %v489_v40  ;;  %v491_v50 = vmax.f32 %v427_v42, 0.0  ;;  %v775_v51 = vunpack.c.l.bf16 %v907_v39  ;;  %v881_v42 = vld [vmem:[%s1478_s0 + $0x68] sm:$0xff]  }
  0x19   :  { %554 = vst [vmem:[%s1482_s4 + $0x58] sm:$0xff] %v490_v41  ;;  %v648_v52 = vunpack.c.h.bf16 %v876_v34  ;;  %v776_v53 = vunpack.c.h.bf16 %v907_v39  ;;  %v429_v55 = vadd.f32 %v771_v33, %v237_v45  ;;  %v168_v57 = vmul.f32 %v647_v47, %v962_v1  ;;  %v911_v33 = vld [vmem:[%s1481_s3 + $0x60] sm:$0xff]  }
  0x1a   :  { %v492_v54 = vmax.f32 %v428_v44, 0.0  ;;  %v238_v56 = vadd.f32 %v976_v7, %v167_v46  ;;  %555 = vst [vmem:[%s1482_s4 + $0x60] sm:$0xff] %v491_v50  ;;  %v651_v60 = vunpack.c.l.bf16 %v877_v48  ;;  %v779_v61 = vunpack.c.l.bf16 %v908_v49 }
  0x1b   :  { %v169_v59 = vmul.f32 %v648_v52, %v962_v1  ;;  %v652_v62 = vunpack.c.h.bf16 %v877_v48  ;;  %v493_v0 = vmax.f32 %v429_v55, 0.0  ;;  %v239_v3 = vadd.f32 %v976_v7, %v168_v57  ;;  %v882_v52 = vld [vmem:[%s1478_s0 + $0x70] sm:$0xff]  }
  0x1c   :  { %556 = vst [vmem:[%s1482_s4 + $0x68] sm:$0xff] %v492_v54  ;;  %v430_v2 = vadd.f32 %v772_v43, %v238_v56  ;;  %v780_v4 = vunpack.c.h.bf16 %v908_v49  ;;  %v170_v6 = vmul.f32 %v651_v60, %v962_v1  ;;  %v655_v9 = vunpack.c.l.bf16 %v878_v58  ;;  %v912_v43 = vld [vmem:[%s1481_s3 + $0x68] sm:$0xff]   ;;  %v913_v57 = vld [vmem:[%s1481_s3 + $0x70] sm:$0xff]  }
  0x1d   :  { %v240_v5 = vadd.f32 %v976_v7, %v169_v59  ;;  %v171_v8 = vmul.f32 %v652_v62, %v962_v1  ;;  %557 = vst [vmem:[%s1482_s4 + $0x70] sm:$0xff] %v493_v0  ;;  %v431_v12 = vadd.f32 %v775_v51, %v239_v3  ;;  %v783_v13 = vunpack.c.l.bf16 %v909_v63  ;;  %v883_v3 = vld [vmem:[%s1478_s0 + $0x78] sm:$0xff]  }
  0x1e   :  { %v494_v11 = vmax.f32 %v430_v2, 0.0  ;;  %v656_v14 = vunpack.c.h.bf16 %v878_v58  ;;  %v241_v16 = vadd.f32 %v976_v7, %v170_v6  ;;  %v172_v18 = vmul.f32 %v655_v9, %v962_v1 }
  0x1f   :  { %v432_v15 = vadd.f32 %v776_v53, %v240_v5  ;;  %v242_v17 = vadd.f32 %v976_v7, %v171_v8  ;;  %v495_v20 = vmax.f32 %v431_v12, 0.0  ;;  %v784_v22 = vunpack.c.h.bf16 %v909_v63 }
  0x20   :  { %558 = vst [vmem:[%s1482_s4 + $0x78] sm:$0xff] %v494_v11  ;;  %v173_v21 = vmul.f32 %v656_v14, %v962_v1  ;;  %v659_v23 = vunpack.c.l.bf16 %v879_v10  ;;  %v433_v25 = vadd.f32 %v779_v61, %v241_v16  ;;  %v243_v27 = vadd.f32 %v976_v7, %v172_v18 }
  0x21   :  { %v496_v24 = vmax.f32 %v432_v15, 0.0  ;;  %v434_v26 = vadd.f32 %v780_v4, %v242_v17  ;;  %559 = vst [vmem:[%s1482_s4 + $0x80] sm:$0xff] %v495_v20  ;;  %v787_v31 = vunpack.c.l.bf16 %v910_v19  ;;  %v660_v32 = vunpack.c.h.bf16 %v879_v10 }
  0x22   :  { %v244_v29 = vadd.f32 %v976_v7, %v173_v21  ;;  %v174_v30 = vmul.f32 %v659_v23, %v962_v1  ;;  %v497_v34 = vmax.f32 %v433_v25, 0.0  ;;  %v435_v36 = vadd.f32 %v783_v13, %v243_v27  ;;  %v914_v13 = vld [vmem:[%s1481_s3 + $0x78] sm:$0xff]   ;;  %v915_v27 = vld [vmem:[%s1481_s3 + $0x80] sm:$0xff]  }
  0x23   :  { %560 = vst [vmem:[%s1482_s4 + $0x88] sm:$0xff] %v496_v24  ;;  %v498_v35 = vmax.f32 %v434_v26, 0.0  ;;  %v788_v37 = vunpack.c.h.bf16 %v910_v19  ;;  %v175_v40 = vmul.f32 %v660_v32, %v962_v1  ;;  %v663_v41 = vunpack.c.l.bf16 %v880_v28 }
  0x24   :  { %v436_v38 = vadd.f32 %v784_v22, %v244_v29  ;;  %v245_v39 = vadd.f32 %v976_v7, %v174_v30  ;;  %561 = vst [vmem:[%s1482_s4 + $0x90] sm:$0xff] %v497_v34  ;;  %v499_v44 = vmax.f32 %v435_v36, 0.0  ;;  %v791_v45 = vunpack.c.l.bf16 %v911_v33  ;;  %v884_v22 = vld [vmem:[%s1478_s0 + $0x80] sm:$0xff]   ;;  %v885_v36 = vld [vmem:[%s1478_s0 + $0x88] sm:$0xff]  }
  0x25   :  { %562 = vst [vmem:[%s1482_s4 + $0x98] sm:$0xff] %v498_v35  ;;  %v664_v46 = vunpack.c.h.bf16 %v880_v28  ;;  %v792_v47 = vunpack.c.h.bf16 %v911_v33  ;;  %v246_v50 = vadd.f32 %v976_v7, %v175_v40  ;;  %v176_v51 = vmul.f32 %v663_v41, %v962_v1 }
  0x26   :  { %v500_v48 = vmax.f32 %v436_v38, 0.0  ;;  %v437_v49 = vadd.f32 %v787_v31, %v245_v39  ;;  %563 = vst [vmem:[%s1482_s4 + $0xa0] sm:$0xff] %v499_v44  ;;  %v667_v54 = vunpack.c.l.bf16 %v881_v42  ;;  %v795_v55 = vunpack.c.l.bf16 %v912_v43 }
  0x27   :  { %v177_v53 = vmul.f32 %v664_v46, %v962_v1  ;;  %v668_v56 = vunpack.c.h.bf16 %v881_v42  ;;  %v438_v59 = vadd.f32 %v788_v37, %v246_v50  ;;  %v247_v60 = vadd.f32 %v976_v7, %v176_v51  ;;  %v916_v37 = vld [vmem:[%s1481_s3 + $0x88] sm:$0xff]   ;;  %v886_v46 = vld [vmem:[%s1478_s0 + $0x90] sm:$0xff]  }
  0x28   :  { %564 = vst [vmem:[%s1482_s4 + $0xa8] sm:$0xff] %v500_v48  ;;  %v501_v58 = vmax.f32 %v437_v49, 0.0  ;;  %v796_v61 = vunpack.c.h.bf16 %v912_v43  ;;  %v178_v63 = vmul.f32 %v667_v54, %v962_v1  ;;  %v671_v2 = vunpack.c.l.bf16 %v882_v52  ;;  %v917_v51 = vld [vmem:[%s1481_s3 + $0x90] sm:$0xff]  }
  0x29   :  { %v248_v62 = vadd.f32 %v976_v7, %v177_v53  ;;  %v179_v0 = vmul.f32 %v668_v56, %v962_v1  ;;  %v502_v4 = vmax.f32 %v438_v59, 0.0  ;;  %v439_v5 = vadd.f32 %v791_v45, %v247_v60  ;;  %v887_v60 = vld [vmem:[%s1478_s0 + $0x98] sm:$0xff]  }
  0x2a   :  { %565 = vst [vmem:[%s1482_s4 + $0xb0] sm:$0xff] %v501_v58  ;;  %v799_v6 = vunpack.c.l.bf16 %v913_v57  ;;  %v672_v8 = vunpack.c.h.bf16 %v882_v52  ;;  %v249_v10 = vadd.f32 %v976_v7, %v178_v63  ;;  %v180_v12 = vmul.f32 %v671_v2, %v962_v1 }
  0x2b   :  { %v440_v9 = vadd.f32 %v792_v47, %v248_v62  ;;  %v250_v11 = vadd.f32 %v976_v7, %v179_v0  ;;  %566 = vst [vmem:[%s1482_s4 + $0xb8] sm:$0xff] %v502_v4  ;;  %v503_v14 = vmax.f32 %v439_v5, 0.0  ;;  %v800_v16 = vunpack.c.h.bf16 %v913_v57 }
  0x2c   :  { %v181_v15 = vmul.f32 %v672_v8, %v962_v1  ;;  %v675_v17 = vunpack.c.l.bf16 %v883_v3  ;;  %v441_v19 = vadd.f32 %v795_v55, %v249_v10  ;;  %v251_v21 = vadd.f32 %v976_v7, %v180_v12 }
  0x2d   :  { %v504_v18 = vmax.f32 %v440_v9, 0.0  ;;  %v442_v20 = vadd.f32 %v796_v61, %v250_v11  ;;  %567 = vst [vmem:[%s1482_s4 + $0xc0] sm:$0xff] %v503_v14  ;;  %v803_v25 = vunpack.c.l.bf16 %v914_v13  ;;  %v676_v26 = vunpack.c.h.bf16 %v883_v3 }
  0x2e   :  { %v252_v23 = vadd.f32 %v976_v7, %v181_v15  ;;  %v182_v24 = vmul.f32 %v675_v17, %v962_v1  ;;  %v505_v28 = vmax.f32 %v441_v19, 0.0  ;;  %v443_v30 = vadd.f32 %v799_v6, %v251_v21  ;;  %v918_v6 = vld [vmem:[%s1481_s3 + $0x98] sm:$0xff]   ;;  %v919_v21 = vld [vmem:[%s1481_s3 + $0xa0] sm:$0xff]  }
  0x2f   :  { %568 = vst [vmem:[%s1482_s4 + $0xc8] sm:$0xff] %v504_v18  ;;  %v506_v29 = vmax.f32 %v442_v20, 0.0  ;;  %v804_v31 = vunpack.c.h.bf16 %v914_v13  ;;  %v183_v34 = vmul.f32 %v676_v26, %v962_v1  ;;  %v679_v35 = vunpack.c.l.bf16 %v884_v22 }
  0x30   :  { %v444_v32 = vadd.f32 %v800_v16, %v252_v23  ;;  %v253_v33 = vadd.f32 %v976_v7, %v182_v24  ;;  %569 = vst [vmem:[%s1482_s4 + $0xd0] sm:$0xff] %v505_v28  ;;  %v507_v38 = vmax.f32 %v443_v30, 0.0  ;;  %v807_v39 = vunpack.c.l.bf16 %v915_v27  ;;  %v888_v16 = vld [vmem:[%s1478_s0 + $0xa0] sm:$0xff]   ;;  %v889_v30 = vld [vmem:[%s1478_s0 + $0xa8] sm:$0xff]  }
  0x31   :  { %570 = vst [vmem:[%s1482_s4 + $0xd8] sm:$0xff] %v506_v29  ;;  %v680_v40 = vunpack.c.h.bf16 %v884_v22  ;;  %v808_v41 = vunpack.c.h.bf16 %v915_v27  ;;  %v254_v44 = vadd.f32 %v976_v7, %v183_v34  ;;  %v184_v45 = vmul.f32 %v679_v35, %v962_v1 }
  0x32   :  { %v508_v42 = vmax.f32 %v444_v32, 0.0  ;;  %v445_v43 = vadd.f32 %v803_v25, %v253_v33  ;;  %571 = vst [vmem:[%s1482_s4 + $0xe0] sm:$0xff] %v507_v38  ;;  %v683_v48 = vunpack.c.l.bf16 %v885_v36  ;;  %v811_v49 = vunpack.c.l.bf16 %v916_v37 }
  0x33   :  { %v185_v47 = vmul.f32 %v680_v40, %v962_v1  ;;  %v684_v50 = vunpack.c.h.bf16 %v885_v36  ;;  %v446_v53 = vadd.f32 %v804_v31, %v254_v44  ;;  %v255_v54 = vadd.f32 %v976_v7, %v184_v45  ;;  %v920_v31 = vld [vmem:[%s1481_s3 + $0xa8] sm:$0xff]   ;;  %v890_v40 = vld [vmem:[%s1478_s0 + $0xb0] sm:$0xff]  }
  0x34   :  { %572 = vst [vmem:[%s1482_s4 + $0xe8] sm:$0xff] %v508_v42  ;;  %v509_v52 = vmax.f32 %v445_v43, 0.0  ;;  %v812_v55 = vunpack.c.h.bf16 %v916_v37  ;;  %v186_v57 = vmul.f32 %v683_v48, %v962_v1  ;;  %v687_v59 = vunpack.c.l.bf16 %v886_v46  ;;  %v921_v45 = vld [vmem:[%s1481_s3 + $0xb0] sm:$0xff]  }
  0x35   :  { %v256_v56 = vadd.f32 %v976_v7, %v185_v47  ;;  %v187_v58 = vmul.f32 %v684_v50, %v962_v1  ;;  %v510_v61 = vmax.f32 %v446_v53, 0.0  ;;  %v447_v62 = vadd.f32 %v807_v39, %v255_v54  ;;  %v891_v54 = vld [vmem:[%s1478_s0 + $0xb8] sm:$0xff]  }
  0x36   :  { %573 = vst [vmem:[%s1482_s4 + $0xf0] sm:$0xff] %v509_v52  ;;  %v815_v63 = vunpack.c.l.bf16 %v917_v51  ;;  %v688_v0 = vunpack.c.h.bf16 %v886_v46  ;;  %v257_v3 = vadd.f32 %v976_v7, %v186_v57  ;;  %v188_v5 = vmul.f32 %v687_v59, %v962_v1 }
  0x37   :  { %v448_v2 = vadd.f32 %v808_v41, %v256_v56  ;;  %v258_v4 = vadd.f32 %v976_v7, %v187_v58  ;;  %574 = vst [vmem:[%s1482_s4 + $0xf8] sm:$0xff] %v510_v61  ;;  %v511_v8 = vmax.f32 %v447_v62, 0.0  ;;  %v816_v10 = vunpack.c.h.bf16 %v917_v51 }
  0x38   :  { %v189_v9 = vmul.f32 %v688_v0, %v962_v1  ;;  %v691_v11 = vunpack.c.l.bf16 %v887_v60  ;;  %v449_v13 = vadd.f32 %v811_v49, %v257_v3  ;;  %v259_v15 = vadd.f32 %v976_v7, %v188_v5 }
  0x39   :  { %v512_v12 = vmax.f32 %v448_v2, 0.0  ;;  %v450_v14 = vadd.f32 %v812_v55, %v258_v4  ;;  %575 = vst [vmem:[%s1482_s4 + $0x100] sm:$0xff] %v511_v8  ;;  %v819_v19 = vunpack.c.l.bf16 %v918_v6  ;;  %v692_v20 = vunpack.c.h.bf16 %v887_v60 }
  0x3a   :  { %v260_v17 = vadd.f32 %v976_v7, %v189_v9  ;;  %v190_v18 = vmul.f32 %v691_v11, %v962_v1  ;;  %v513_v22 = vmax.f32 %v449_v13, 0.0  ;;  %v451_v24 = vadd.f32 %v815_v63, %v259_v15  ;;  %v922_v63 = vld [vmem:[%s1481_s3 + $0xb8] sm:$0xff]   ;;  %v923_v15 = vld [vmem:[%s1481_s3 + $0xc0] sm:$0xff]  }
  0x3b   :  { %576 = vst [vmem:[%s1482_s4 + $0x108] sm:$0xff] %v512_v12  ;;  %v514_v23 = vmax.f32 %v450_v14, 0.0  ;;  %v820_v25 = vunpack.c.h.bf16 %v918_v6  ;;  %v191_v28 = vmul.f32 %v692_v20, %v962_v1  ;;  %v695_v29 = vunpack.c.l.bf16 %v888_v16 }
  0x3c   :  { %v452_v26 = vadd.f32 %v816_v10, %v260_v17  ;;  %v261_v27 = vadd.f32 %v976_v7, %v190_v18  ;;  %577 = vst [vmem:[%s1482_s4 + $0x110] sm:$0xff] %v513_v22  ;;  %v515_v32 = vmax.f32 %v451_v24, 0.0  ;;  %v823_v33 = vunpack.c.l.bf16 %v919_v21  ;;  %v892_v10 = vld [vmem:[%s1478_s0 + $0xc0] sm:$0xff]   ;;  %v893_v24 = vld [vmem:[%s1478_s0 + $0xc8] sm:$0xff]  }
  0x3d   :  { %578 = vst [vmem:[%s1482_s4 + $0x118] sm:$0xff] %v514_v23  ;;  %v696_v34 = vunpack.c.h.bf16 %v888_v16  ;;  %v824_v35 = vunpack.c.h.bf16 %v919_v21  ;;  %v262_v38 = vadd.f32 %v976_v7, %v191_v28  ;;  %v192_v39 = vmul.f32 %v695_v29, %v962_v1 }
  0x3e   :  { %v516_v36 = vmax.f32 %v452_v26, 0.0  ;;  %v453_v37 = vadd.f32 %v819_v19, %v261_v27  ;;  %579 = vst [vmem:[%s1482_s4 + $0x120] sm:$0xff] %v515_v32  ;;  %v699_v42 = vunpack.c.l.bf16 %v889_v30  ;;  %v827_v43 = vunpack.c.l.bf16 %v920_v31 }
  0x3f   :  { %v193_v41 = vmul.f32 %v696_v34, %v962_v1  ;;  %v700_v44 = vunpack.c.h.bf16 %v889_v30  ;;  %v454_v47 = vadd.f32 %v820_v25, %v262_v38  ;;  %v263_v48 = vadd.f32 %v976_v7, %v192_v39  ;;  %v924_v25 = vld [vmem:[%s1481_s3 + $0xc8] sm:$0xff]   ;;  %v894_v34 = vld [vmem:[%s1478_s0 + $0xd0] sm:$0xff]  }
  0x40   :  { %580 = vst [vmem:[%s1482_s4 + $0x128] sm:$0xff] %v516_v36  ;;  %v517_v46 = vmax.f32 %v453_v37, 0.0  ;;  %v828_v49 = vunpack.c.h.bf16 %v920_v31  ;;  %v194_v51 = vmul.f32 %v699_v42, %v962_v1  ;;  %v703_v53 = vunpack.c.l.bf16 %v890_v40  ;;  %v925_v39 = vld [vmem:[%s1481_s3 + $0xd0] sm:$0xff]  }
  0x41   :  { %v264_v50 = vadd.f32 %v976_v7, %v193_v41  ;;  %v195_v52 = vmul.f32 %v700_v44, %v962_v1  ;;  %v518_v55 = vmax.f32 %v454_v47, 0.0  ;;  %v455_v56 = vadd.f32 %v823_v33, %v263_v48  ;;  %v895_v48 = vld [vmem:[%s1478_s0 + $0xd8] sm:$0xff]  }
  0x42   :  { %581 = vst [vmem:[%s1482_s4 + $0x130] sm:$0xff] %v517_v46  ;;  %v831_v57 = vunpack.c.l.bf16 %v921_v45  ;;  %v704_v58 = vunpack.c.h.bf16 %v890_v40  ;;  %v265_v60 = vadd.f32 %v976_v7, %v194_v51  ;;  %v196_v62 = vmul.f32 %v703_v53, %v962_v1 }
  0x43   :  { %v456_v59 = vadd.f32 %v824_v35, %v264_v50  ;;  %v266_v61 = vadd.f32 %v976_v7, %v195_v52  ;;  %582 = vst [vmem:[%s1482_s4 + $0x138] sm:$0xff] %v518_v55  ;;  %v519_v0 = vmax.f32 %v455_v56, 0.0  ;;  %v832_v3 = vunpack.c.h.bf16 %v921_v45 }
  0x44   :  { %v197_v2 = vmul.f32 %v704_v58, %v962_v1  ;;  %v707_v4 = vunpack.c.l.bf16 %v891_v54  ;;  %v457_v6 = vadd.f32 %v827_v43, %v265_v60  ;;  %v267_v9 = vadd.f32 %v976_v7, %v196_v62 }
  0x45   :  { %v520_v5 = vmax.f32 %v456_v59, 0.0  ;;  %v458_v8 = vadd.f32 %v828_v49, %v266_v61  ;;  %583 = vst [vmem:[%s1482_s4 + $0x140] sm:$0xff] %v519_v0  ;;  %v835_v13 = vunpack.c.l.bf16 %v922_v63  ;;  %v708_v14 = vunpack.c.h.bf16 %v891_v54 }
  0x46   :  { %v268_v11 = vadd.f32 %v976_v7, %v197_v2  ;;  %v198_v12 = vmul.f32 %v707_v4, %v962_v1  ;;  %v521_v16 = vmax.f32 %v457_v6, 0.0  ;;  %v459_v18 = vadd.f32 %v831_v57, %v267_v9  ;;  %v926_v57 = vld [vmem:[%s1481_s3 + $0xd8] sm:$0xff]   ;;  %v927_v9 = vld [vmem:[%s1481_s3 + $0xe0] sm:$0xff]  }
  0x47   :  { %584 = vst [vmem:[%s1482_s4 + $0x148] sm:$0xff] %v520_v5  ;;  %v522_v17 = vmax.f32 %v458_v8, 0.0  ;;  %v836_v19 = vunpack.c.h.bf16 %v922_v63  ;;  %v199_v22 = vmul.f32 %v708_v14, %v962_v1  ;;  %v711_v23 = vunpack.c.l.bf16 %v892_v10 }
  0x48   :  { %v460_v20 = vadd.f32 %v832_v3, %v268_v11  ;;  %v269_v21 = vadd.f32 %v976_v7, %v198_v12  ;;  %585 = vst [vmem:[%s1482_s4 + $0x150] sm:$0xff] %v521_v16  ;;  %v523_v26 = vmax.f32 %v459_v18, 0.0  ;;  %v839_v27 = vunpack.c.l.bf16 %v923_v15  ;;  %v896_v3 = vld [vmem:[%s1478_s0 + $0xe0] sm:$0xff]   ;;  %v897_v18 = vld [vmem:[%s1478_s0 + $0xe8] sm:$0xff]  }
  0x49   :  { %586 = vst [vmem:[%s1482_s4 + $0x158] sm:$0xff] %v522_v17  ;;  %v712_v28 = vunpack.c.h.bf16 %v892_v10  ;;  %v840_v29 = vunpack.c.h.bf16 %v923_v15  ;;  %v270_v32 = vadd.f32 %v976_v7, %v199_v22  ;;  %v200_v33 = vmul.f32 %v711_v23, %v962_v1 }
  0x4a   :  { %v524_v30 = vmax.f32 %v460_v20, 0.0  ;;  %v461_v31 = vadd.f32 %v835_v13, %v269_v21  ;;  %587 = vst [vmem:[%s1482_s4 + $0x160] sm:$0xff] %v523_v26  ;;  %v715_v36 = vunpack.c.l.bf16 %v893_v24  ;;  %v843_v37 = vunpack.c.l.bf16 %v924_v25 }
  0x4b   :  { %v201_v35 = vmul.f32 %v712_v28, %v962_v1  ;;  %v716_v38 = vunpack.c.h.bf16 %v893_v24  ;;  %v462_v41 = vadd.f32 %v836_v19, %v270_v32  ;;  %v271_v42 = vadd.f32 %v976_v7, %v200_v33  ;;  %v928_v19 = vld [vmem:[%s1481_s3 + $0xe8] sm:$0xff]   ;;  %v898_v28 = vld [vmem:[%s1478_s0 + $0xf0] sm:$0xff]  }
  0x4c   :  { %588 = vst [vmem:[%s1482_s4 + $0x168] sm:$0xff] %v524_v30  ;;  %v525_v40 = vmax.f32 %v461_v31, 0.0  ;;  %v844_v43 = vunpack.c.h.bf16 %v924_v25  ;;  %v202_v45 = vmul.f32 %v715_v36, %v962_v1  ;;  %v719_v47 = vunpack.c.l.bf16 %v894_v34  ;;  %v929_v33 = vld [vmem:[%s1481_s3 + $0xf0] sm:$0xff]  }
  0x4d   :  { %v272_v44 = vadd.f32 %v976_v7, %v201_v35  ;;  %v203_v46 = vmul.f32 %v716_v38, %v962_v1  ;;  %v526_v49 = vmax.f32 %v462_v41, 0.0  ;;  %v463_v50 = vadd.f32 %v839_v27, %v271_v42  ;;  %v899_v42 = vld [vmem:[%s1478_s0 + $0xf8] sm:$0xff]  }
  0x4e   :  { %589 = vst [vmem:[%s1482_s4 + $0x170] sm:$0xff] %v525_v40  ;;  %v847_v51 = vunpack.c.l.bf16 %v925_v39  ;;  %v720_v52 = vunpack.c.h.bf16 %v894_v34  ;;  %v273_v54 = vadd.f32 %v976_v7, %v202_v45  ;;  %v204_v56 = vmul.f32 %v719_v47, %v962_v1 }
  0x4f   :  { %v464_v53 = vadd.f32 %v840_v29, %v272_v44  ;;  %v274_v55 = vadd.f32 %v976_v7, %v203_v46  ;;  %590 = vst [vmem:[%s1482_s4 + $0x178] sm:$0xff] %v526_v49  ;;  %v527_v58 = vmax.f32 %v463_v50, 0.0  ;;  %v848_v60 = vunpack.c.h.bf16 %v925_v39 }
  0x50   :  { %v205_v59 = vmul.f32 %v720_v52, %v962_v1  ;;  %v723_v61 = vunpack.c.l.bf16 %v895_v48  ;;  %v465_v63 = vadd.f32 %v843_v37, %v273_v54  ;;  %v275_v2 = vadd.f32 %v976_v7, %v204_v56 }
  0x51   :  { %v528_v62 = vmax.f32 %v464_v53, 0.0  ;;  %v466_v0 = vadd.f32 %v844_v43, %v274_v55  ;;  %591 = vst [vmem:[%s1482_s4 + $0x180] sm:$0xff] %v527_v58  ;;  %v851_v6 = vunpack.c.l.bf16 %v926_v57  ;;  %v724_v8 = vunpack.c.h.bf16 %v895_v48 }
  0x52   :  { %v276_v4 = vadd.f32 %v976_v7, %v205_v59  ;;  %v206_v5 = vmul.f32 %v723_v61, %v962_v1  ;;  %v529_v10 = vmax.f32 %v465_v63, 0.0  ;;  %v467_v12 = vadd.f32 %v847_v51, %v275_v2  ;;  %v930_v51 = vld [vmem:[%s1481_s3 + $0xf8] sm:$0xff]  }
  0x53   :  { %592 = vst [vmem:[%s1482_s4 + $0x188] sm:$0xff] %v528_v62  ;;  %v530_v11 = vmax.f32 %v466_v0, 0.0  ;;  %v852_v13 = vunpack.c.h.bf16 %v926_v57  ;;  %v207_v16 = vmul.f32 %v724_v8, %v962_v1  ;;  %v727_v17 = vunpack.c.l.bf16 %v896_v3 }
  0x54   :  { %v468_v14 = vadd.f32 %v848_v60, %v276_v4  ;;  %v277_v15 = vadd.f32 %v976_v7, %v206_v5  ;;  %593 = vst [vmem:[%s1482_s4 + $0x190] sm:$0xff] %v529_v10  ;;  %v531_v20 = vmax.f32 %v467_v12, 0.0  ;;  %v855_v21 = vunpack.c.l.bf16 %v927_v9 }
  0x55   :  { %594 = vst [vmem:[%s1482_s4 + $0x198] sm:$0xff] %v530_v11  ;;  %v728_v22 = vunpack.c.h.bf16 %v896_v3  ;;  %v856_v23 = vunpack.c.h.bf16 %v927_v9  ;;  %v278_v26 = vadd.f32 %v976_v7, %v207_v16  ;;  %v208_v27 = vmul.f32 %v727_v17, %v962_v1 }
  0x56   :  { %v532_v24 = vmax.f32 %v468_v14, 0.0  ;;  %v469_v25 = vadd.f32 %v851_v6, %v277_v15  ;;  %595 = vst [vmem:[%s1482_s4 + $0x1a0] sm:$0xff] %v531_v20  ;;  %v731_v30 = vunpack.c.l.bf16 %v897_v18  ;;  %v859_v31 = vunpack.c.l.bf16 %v928_v19 }
  0x57   :  { %v209_v29 = vmul.f32 %v728_v22, %v962_v1  ;;  %v732_v32 = vunpack.c.h.bf16 %v897_v18  ;;  %v470_v35 = vadd.f32 %v852_v13, %v278_v26  ;;  %v279_v36 = vadd.f32 %v976_v7, %v208_v27 }
  0x58   :  { %596 = vst [vmem:[%s1482_s4 + $0x1a8] sm:$0xff] %v532_v24  ;;  %v533_v34 = vmax.f32 %v469_v25, 0.0  ;;  %v860_v37 = vunpack.c.h.bf16 %v928_v19  ;;  %v210_v39 = vmul.f32 %v731_v30, %v962_v1  ;;  %v735_v41 = vunpack.c.l.bf16 %v898_v28 }
  0x59   :  { %v280_v38 = vadd.f32 %v976_v7, %v209_v29  ;;  %v211_v40 = vmul.f32 %v732_v32, %v962_v1  ;;  %v534_v43 = vmax.f32 %v470_v35, 0.0  ;;  %v471_v44 = vadd.f32 %v855_v21, %v279_v36 }
  0x5a   :  { %597 = vst [vmem:[%s1482_s4 + $0x1b0] sm:$0xff] %v533_v34  ;;  %v863_v45 = vunpack.c.l.bf16 %v929_v33  ;;  %v736_v46 = vunpack.c.h.bf16 %v898_v28  ;;  %v281_v48 = vadd.f32 %v976_v7, %v210_v39  ;;  %v212_v50 = vmul.f32 %v735_v41, %v962_v1 }
  0x5b   :  { %v472_v47 = vadd.f32 %v856_v23, %v280_v38  ;;  %v282_v49 = vadd.f32 %v976_v7, %v211_v40  ;;  %598 = vst [vmem:[%s1482_s4 + $0x1b8] sm:$0xff] %v534_v43  ;;  %v535_v52 = vmax.f32 %v471_v44, 0.0  ;;  %v864_v54 = vunpack.c.h.bf16 %v929_v33 }
  0x5c   :  { %v213_v53 = vmul.f32 %v736_v46, %v962_v1  ;;  %v739_v55 = vunpack.c.l.bf16 %v899_v42  ;;  %v473_v57 = vadd.f32 %v859_v31, %v281_v48  ;;  %v283_v59 = vadd.f32 %v976_v7, %v212_v50 }
  0x5d   :  { %v536_v56 = vmax.f32 %v472_v47, 0.0  ;;  %v474_v58 = vadd.f32 %v860_v37, %v282_v49  ;;  %599 = vst [vmem:[%s1482_s4 + $0x1c0] sm:$0xff] %v535_v52  ;;  %v867_v62 = vunpack.c.l.bf16 %v930_v51  ;;  %v740_v63 = vunpack.c.h.bf16 %v899_v42 }
  0x5e   :  { %v284_v60 = vadd.f32 %v976_v7, %v213_v53  ;;  %v214_v61 = vmul.f32 %v739_v55, %v962_v1  ;;  %v537_v0 = vmax.f32 %v473_v57, 0.0  ;;  %v475_v3 = vadd.f32 %v863_v45, %v283_v59 }
  0x5f   :  { %600 = vst [vmem:[%s1482_s4 + $0x1c8] sm:$0xff] %v536_v56  ;;  %v538_v2 = vmax.f32 %v474_v58, 0.0  ;;  %v215_v6 = vmul.f32 %v740_v63, %v962_v1  ;;  %v868_v8 = vunpack.c.h.bf16 %v930_v51 }
  0x60   :  { %v476_v4 = vadd.f32 %v864_v54, %v284_v60  ;;  %v285_v5 = vadd.f32 %v976_v7, %v214_v61  ;;  %601 = vst [vmem:[%s1482_s4 + $0x1d0] sm:$0xff] %v537_v0  ;;  %v539_v9 = vmax.f32 %v475_v3, 0.0 }
  0x61   :  { %602 = vst [vmem:[%s1482_s4 + $0x1d8] sm:$0xff] %v538_v2  ;;  %v286_v12 = vadd.f32 %v976_v7, %v215_v6 }
  0x62   :  { %v540_v10 = vmax.f32 %v476_v4, 0.0  ;;  %v477_v11 = vadd.f32 %v867_v62, %v285_v5  ;;  %603 = vst [vmem:[%s1482_s4 + $0x1e0] sm:$0xff] %v539_v9 }
  0x63   :  { %v478_v13 = vadd.f32 %v868_v8, %v286_v12 }
  0x64   :  { %604 = vst [vmem:[%s1482_s4 + $0x1e8] sm:$0xff] %v540_v10  ;;  %v541_v1 = vmax.f32 %v477_v11, 0.0 }
  0x65   :  { %v542_v14 = vmax.f32 %v478_v13, 0.0 }
  0x66   :  { %605 = vst [vmem:[%s1482_s4 + $0x1f0] sm:$0xff] %v541_v1 }
  0x67   :  { %606 = vst [vmem:[%s1482_s4 + $0x1f8] sm:$0xff] %v542_v14 }

// kernel: basic_block_act.4
= control target key start
LH: loop header
LB: loop body
LE: loop exit
PB: predicated region body
PF: predicated region fallthrough
CT: control target
= control target key end

     0   :  { %s4989_s21 = smov 0   ;;  %s6372_s0 = inlined_call_operand.vmem [shape: bf16[2,256,128], index: 0, kind: input, shape index: {}]   ;;  %s6373_s1 = inlined_call_operand.vmem [shape: f32[1,128], index: 1, kind: input, shape index: {}]   ;;  %s6374_s2 = inlined_call_operand.vmem [shape: f32[1,128], index: 2, kind: input, shape index: {}]   ;;  %s6375_s3 = inlined_call_operand.vmem [shape: bf16[9,128,128], index: 3, kind: input, shape index: {}]   ;;  %s6376_s4 = inlined_call_operand.vmem [shape: bf16[2,256,128], index: 4, kind: output, shape index: {0}]   ;;  %s6377_s5 = inlined_call_operand.vmem [shape: f32[2,1,128], index: 5, kind: output, shape index: {1}]   ;;  %s6378_s6 = inlined_call_operand.vmem [shape: f32[2,1,128], index: 6, kind: output, shape index: {2}]  }
   0x1 LB: > { %s3763_s22 = sadd.s32 4294967295, %s4935_s21   ;;  %p3767_p0 = scmp.ge.s32.totalorder %s4935_s21, 1  ;;  %s4935_s21 = sphi %s4989_s21, %s17_s21  }
   0x2   : > { %p217_p1 = scmp.lt.s32.totalorder %s4935_s21, 3 }
   0x4   : > { %p218_p2 = pnand %p3767_p0, %p217_p1 }
   0x5   : > { %p4999_p3 = scmp.lt.s32.totalorder (!%p218_p2), %s3763_s22, 1  ;;  %s5038_s17 = smov (!%p218_p2), 0  }
   0x6   : > { %221 = sbr.rel (%p218_p2) target bundleno = 514 (0x202), region = 36 }
   0xb   : > { %v5006_v0 = vld [vmem:[%s6373_s1] ss:$0 sm:$0xff]  ;;  %v4953_v2 = vmov 0   ;;  %s6434_s22 = smov (!%p4999_p3, %s3763_s22), 1 }
   0xc   : > { %v5011_v1 = vld [vmem:[%s6374_s2] ss:$0 sm:$0xff]  ;;  %272 = vst [vmem:[#allocation2] sm:$0xf] %v4953_v2  ;;  %273 = vst [vmem:[#allocation2 + $0x4] sm:$0xf] %v4953_v2  ;;  %s265_s7 = scalar_lea.vmem %s6377_s5, %s6434_s22  ;;  %s268_s16 = scalar_lea.vmem %s6378_s6, %s6434_s22 }
   0xd   : > { %274 = vst [vmem:[#allocation2 + $0x8] sm:$0x1] %v4953_v2  ;;  %275 = vst [vmem:[#allocation2 + $0xc] sm:$0xf] %v4953_v2  ;;  %s4206_s28 = sshll.u32 %s6434_s22, 7 }
   0xe   : > { %276 = vst [vmem:[#allocation2 + $0x10] sm:$0xf] %v4953_v2  ;;  %277 = vst [vmem:[#allocation2 + $0x14] sm:$0x1] %v4953_v2  ;;  %s5027_s10 = scalar_lea.vmem %s6372_s0, %s4206_s28  ;;  %s5032_s13 = scalar_lea.vmem %s6376_s4, %s4206_s28 }
   0xf   : > { %278 = vst [vmem:[#allocation2 + $0x18] sm:$0xf] %v4953_v2  ;;  %279 = vst [vmem:[#allocation2 + $0x1c] sm:$0xf] %v4953_v2 }
  0x10   : > { %280 = vst [vmem:[#allocation2 + $0x20] sm:$0x1] %v4953_v2  ;;  %281 = vst [vmem:[#allocation2 + $0x24] sm:$0xf] %v4953_v2 }
  0x11   : > { %282 = vst [vmem:[#allocation2 + $0x28] sm:$0xf] %v4953_v2  ;;  %283 = vst [vmem:[#allocation2 + $0x2c] sm:$0x1] %v4953_v2 }
  0x12   : > { %284 = vst [vmem:[#allocation2 + $0x30] sm:$0xf] %v4953_v2  ;;  %285 = vst [vmem:[#allocation2 + $0x34] sm:$0xf] %v4953_v2 }
  0x13   : > { %286 = vst [vmem:[#allocation2 + $0x38] sm:$0x1] %v4953_v2  ;;  %287 = vst [vmem:[#allocation2 + $0x3c] sm:$0xf] %v4953_v2 }
  0x14   : > { %288 = vst [vmem:[#allocation2 + $0x40] sm:$0xf] %v4953_v2  ;;  %289 = vst [vmem:[#allocation2 + $0x44] sm:$0x1] %v4953_v2 }
  0x15   : > { %290 = vst [vmem:[#allocation2 + $0x48] sm:$0xf] %v4953_v2  ;;  %291 = vst [vmem:[#allocation2 + $0x4c] sm:$0xf] %v4953_v2 }
  0x16   : > { %292 = vst [vmem:[#allocation2 + $0x50] sm:$0x1] %v4953_v2  ;;  %293 = vst [vmem:[#allocation2 + $0x54] sm:$0xf] %v4953_v2 }
  0x17   : > { %294 = vst [vmem:[#allocation2 + $0x58] sm:$0xf] %v4953_v2  ;;  %295 = vst [vmem:[#allocation2 + $0x5c] sm:$0x1] %v4953_v2 }
  0x18   : > { %296 = vst [vmem:[#allocation2 + $0x60] sm:$0xf] %v4953_v2  ;;  %297 = vst [vmem:[#allocation2 + $0x64] sm:$0xf] %v4953_v2 }
  0x19   : > { %298 = vst [vmem:[#allocation2 + $0x68] sm:$0x1] %v4953_v2  ;;  %299 = vst [vmem:[#allocation2 + $0x6c] sm:$0xf] %v4953_v2 }
  0x1a   : > { %300 = vst [vmem:[#allocation2 + $0x70] sm:$0xf] %v4953_v2  ;;  %301 = vst [vmem:[#allocation2 + $0x74] sm:$0x1] %v4953_v2 }
  0x1b   : > { %302 = vst [vmem:[#allocation2 + $0x78] sm:$0xf] %v4953_v2  ;;  %303 = vst [vmem:[#allocation2 + $0x7c] sm:$0xf] %v4953_v2 }
  0x1c   : > { %304 = vst [vmem:[#allocation2 + $0x80] sm:$0x1] %v4953_v2  ;;  %305 = vst [vmem:[#allocation2 + $0x84] sm:$0xf] %v4953_v2 }
  0x1d   : > { %306 = vst [vmem:[#allocation2 + $0x88] sm:$0xf] %v4953_v2  ;;  %307 = vst [vmem:[#allocation2 + $0x8c] sm:$0x1] %v4953_v2 }
  0x1e   : > { %308 = vst [vmem:[#allocation2 + $0x90] sm:$0xf] %v4953_v2  ;;  %309 = vst [vmem:[#allocation2 + $0x94] sm:$0xf] %v4953_v2 }
  0x1f   : > { %310 = vst [vmem:[#allocation2 + $0x98] sm:$0x1] %v4953_v2  ;;  %311 = vst [vmem:[#allocation2 + $0x9c] sm:$0xf] %v4953_v2 }
  0x20   : > { %312 = vst [vmem:[#allocation2 + $0xa0] sm:$0xf] %v4953_v2  ;;  %313 = vst [vmem:[#allocation2 + $0xa4] sm:$0x1] %v4953_v2 }
  0x21   : > { %314 = vst [vmem:[#allocation2 + $0xa8] sm:$0xf] %v4953_v2  ;;  %315 = vst [vmem:[#allocation2 + $0xac] sm:$0xf] %v4953_v2 }
  0x22   : > { %316 = vst [vmem:[#allocation2 + $0xb0] sm:$0x1] %v4953_v2  ;;  %317 = vst [vmem:[#allocation2 + $0xb4] sm:$0xf] %v4953_v2 }
  0x23   : > { %318 = vst [vmem:[#allocation2 + $0xb8] sm:$0xf] %v4953_v2  ;;  %319 = vst [vmem:[#allocation2 + $0xbc] sm:$0x1] %v4953_v2 }
  0x24   : > { %320 = vst [vmem:[#allocation2 + $0xc0] sm:$0xf] %v4953_v2  ;;  %321 = vst [vmem:[#allocation2 + $0xc4] sm:$0xf] %v4953_v2 }
  0x25   : > { %322 = vst [vmem:[#allocation2 + $0xc8] sm:$0x1] %v4953_v2  ;;  %323 = vst [vmem:[#allocation2 + $0xcc] sm:$0xf] %v4953_v2 }
  0x26   : > { %324 = vst [vmem:[#allocation2 + $0xd0] sm:$0xf] %v4953_v2  ;;  %325 = vst [vmem:[#allocation2 + $0xd4] sm:$0x1] %v4953_v2 }
  0x27 LB: >> { %s4208_s18 = sshll.u32 %s4939_s17, 7  ;;  %vm645_vm0 = vcmask 1043456   ;;  %vm646_vm1 = vsmask.f32 7938  ;;  %vm479_vm2 = vsmask.f32 256  ;;  %s4939_s17 = sphi %s5038_s17, %s331_s17  }
  0x28   : >> { %s334_s19 = sshra.s32 %s4208_s18, 3  ;;  %vm480_vm3 = vsmask.f32 4368  ;;  %vm652_vm4 = vcmask 1040384   ;;  %s3794_s24 = smul.u32 96, %s4939_s17  ;;  %vm5070_vm5 = vmand %vm645_vm0, %vm646_vm1 }
  0x29   : >> { %s3774_s20 = sshll.u32 %s334_s19, 2  ;;  %vm5081_vm6 = vmor %vm479_vm2, %vm480_vm3  ;;  %s331_s17 = sadd.s32 1, %s4939_s17  }
  0x2a   : >> { %s5045_s23 = scalar_lea.vmem %s5027_s10, %s3774_s20  ;;  %s5076_s25 = scalar_lea.vmem [#allocation2], %s3794_s24  ;;  %vm5087_vm7 = vmand %vm652_vm4, %vm479_vm2 }
  0x2b   : >> { %v4243_v3 = vld [vmem:[%s5045_s23] sm:$0xff]   ;;  %v4314_v4 = vld [vmem:[%s5045_s23 + $0x8] sm:$0xff]   ;;  %v4315_v9 = vld [vmem:[%s5045_s23 + $0x10] sm:$0xff]   ;;  %p328_p4 = scmp.ge.s32.totalorder %s331_s17, 2  }
  0x2c   : >> { %v4244_v5 = vunpack.c.l.bf16 %v4243_v3  ;;  %v4245_v6 = vunpack.c.h.bf16 %v4243_v3  ;;  %v4248_v7 = vunpack.c.l.bf16 %v4314_v4  ;;  %v4249_v8 = vunpack.c.h.bf16 %v4314_v4  ;;  %v4316_v12 = vld [vmem:[%s5045_s23 + $0x18] sm:$0xff]   ;;  %s5209_s26 = smov (%p328_p4), 0  }
  0x2d   : >> { %v4252_v10 = vunpack.c.l.bf16 %v4315_v9  ;;  %v4253_v11 = vunpack.c.h.bf16 %v4315_v9  ;;  %v4256_v19 = vunpack.c.l.bf16 %v4316_v12  ;;  %v4257_v20 = vunpack.c.h.bf16 %v4316_v12  ;;  %v3795_v55 = vld [vmem:[%s5076_s25 + $0xc] sm:$0xf]  ;;  %v3798_v61 = vld [vmem:[%s5076_s25 + $0x14] sm:$0x1]  ;;  %v3803_v9 = vld [vmem:[%s5076_s25 + $0x20] sm:$0x1] }
  0x2e   : >> { %v376_v13 = vmul.f32 %v4244_v5, %v5006_v0  ;;  %v377_v14 = vmul.f32 %v4245_v6, %v5006_v0  ;;  %v378_v15 = vmul.f32 %v4248_v7, %v5006_v0  ;;  %v379_v16 = vmul.f32 %v4249_v8, %v5006_v0  ;;  %v3800_v8 = vld [vmem:[%s5076_s25 + $0x18] sm:$0xf] }
  0x2f   : >> { %v380_v17 = vmul.f32 %v4252_v10, %v5006_v0  ;;  %v381_v18 = vmul.f32 %v4253_v11, %v5006_v0  ;;  %v382_v27 = vmul.f32 %v4256_v19, %v5006_v0  ;;  %v383_v28 = vmul.f32 %v4257_v20, %v5006_v0 }
  0x30   : >> { %v398_v21 = vadd.f32 %v5011_v1, %v376_v13  ;;  %v399_v22 = vadd.f32 %v5011_v1, %v377_v14  ;;  %v400_v23 = vadd.f32 %v5011_v1, %v378_v15  ;;  %v401_v24 = vadd.f32 %v5011_v1, %v379_v16 }
  0x31   : >> { %v402_v25 = vadd.f32 %v5011_v1, %v380_v17  ;;  %v403_v26 = vadd.f32 %v5011_v1, %v381_v18  ;;  %v404_v35 = vadd.f32 %v5011_v1, %v382_v27  ;;  %v405_v36 = vadd.f32 %v5011_v1, %v383_v28  ;;  %v4317_v18 = vld [vmem:[%s5045_s23 + $0x20] sm:$0xff]  }
  0x32   : >> { %v414_v29 = vmax.f32 %v398_v21, 0.0  ;;  %v415_v30 = vmax.f32 %v399_v22, 0.0  ;;  %v416_v31 = vmax.f32 %v400_v23, 0.0  ;;  %v417_v32 = vmax.f32 %v401_v24, 0.0  ;;  %v3805_v22 = vld [vmem:[%s5076_s25 + $0x24] sm:$0xf] }
  0x33   : >> { %v418_v33 = vmax.f32 %v402_v25, 0.0  ;;  %v419_v34 = vmax.f32 %v403_v26, 0.0  ;;  %v420_v43 = vmax.f32 %v404_v35, 0.0  ;;  %v421_v44 = vmax.f32 %v405_v36, 0.0  ;;  %v3808_v26 = vld [vmem:[%s5076_s25 + $0x2c] sm:$0x1] }
  0x34   : >> { %v4209_v37 = vpack.c.bf16 %v414_v29, %v414_v29  ;;  %v4210_v38 = vpack.c.bf16 %v415_v30, %v415_v30  ;;  %v4211_v39 = vpack.c.bf16 %v416_v31, %v416_v31  ;;  %v4212_v40 = vpack.c.bf16 %v417_v32, %v417_v32 }
  0x35   : >> { %v4213_v41 = vpack.c.bf16 %v418_v33, %v418_v33  ;;  %v4214_v42 = vpack.c.bf16 %v419_v34, %v419_v34  ;;  %v4215_v27 = vpack.c.bf16 %v420_v43, %v420_v43  ;;  %v4216_v28 = vpack.c.bf16 %v421_v44, %v421_v44  ;;  %v4318_v33 = vld [vmem:[%s5045_s23 + $0x28] sm:$0xff]  }
  0x36   : >> { %v483_v45 = vshrl.u32 %v4209_v37, 16  ;;  %v486_v46 = vshll.u32 %v4209_v37, 16  ;;  %v491_v47 = vshrl.u32 %v4210_v38, 16  ;;  %v494_v48 = vshll.u32 %v4210_v38, 16  ;;  %v4319_v38 = vld [vmem:[%s5045_s23 + $0x30] sm:$0xff]  }
  0x37   : >> { %v500_v50 = vshrl.u32 %v4211_v39, 16  ;;  %v503_v51 = vshll.u32 %v4211_v39, 16  ;;  %v508_v52 = vshrl.u32 %v4212_v40, 16  ;;  %v511_v53 = vshll.u32 %v4212_v40, 16 }
  0x38   : >> { %v485_v54 = vrot.slane %v483_v45, 7  ;;  %v493_v57 = vrot.slane %v491_v47, 7  ;;  %v517_v58 = vshrl.u32 %v4213_v41, 16  ;;  %v520_v59 = vshll.u32 %v4213_v41, 16  ;;  %v3810_v47 = vld [vmem:[%s5076_s25 + $0x30] sm:$0xf] }
  0x39   : >> { %v502_v62 = vrot.slane %v500_v50, 7  ;;  %v510_v63 = vrot.slane %v508_v52, 7  ;;  %v525_v2 = vshrl.u32 %v4214_v42, 16  ;;  %v528_v3 = vshll.u32 %v4214_v42, 16 }
  0x3a   : >> { %v488_v4 = vor.u32 %v486_v46, %v485_v54  ;;  %v489_v5 = vrot.slane %v485_v54, 4  ;;  %v496_v6 = vor.u32 %v494_v48, %v493_v57  ;;  %v498_v7 = vrot.slane %v493_v57, 4  ;;  %v3813_v48 = vld [vmem:[%s5076_s25 + $0x38] sm:$0x1] }
  0x3b   : >> { %v505_v10 = vor.u32 %v503_v51, %v502_v62  ;;  %v506_v11 = vrot.slane %v502_v62, 4  ;;  %v513_v12 = vor.u32 %v511_v53, %v510_v63  ;;  %v515_v13 = vrot.slane %v510_v63, 4 }
  0x3c   : >> { %v649_v14 = vsel %vm5070_vm5, %v488_v4, %v3795_v55  ;;  %v497_v15 = vsel %vm5081_vm6, %v489_v5, %v496_v6  ;;  %v655_v16 = vsel %vm5087_vm7, %v498_v7, %v3798_v61  ;;  %v519_v17 = vrot.slane %v517_v58, 7 }
  0x3d   : >> { %3796 = vst [vmem:[%s5076_s25 + $0xc] sm:$0xf] %v649_v14  ;;  %3797 = vst [vmem:[%s5076_s25 + $0x10] sm:$0xf] %v497_v15  ;;  %v658_v19 = vsel %vm5070_vm5, %v505_v10, %v3800_v8  ;;  %v514_v20 = vsel %vm5081_vm6, %v506_v11, %v513_v12  ;;  %v662_v21 = vsel %vm5087_vm7, %v515_v13, %v3803_v9  ;;  %v527_v23 = vrot.slane %v525_v2, 7  ;;  %v5135_v2 = vld [vmem:[%s5045_s23 + $0x38] sm:$0xff]  }
  0x3e   : >> { %3799 = vst [vmem:[%s5076_s25 + $0x14] sm:$0x1] %v655_v16  ;;  %3801 = vst [vmem:[%s5076_s25 + $0x18] sm:$0xf] %v658_v19  ;;  %v522_v24 = vor.u32 %v520_v59, %v519_v17  ;;  %v523_v25 = vrot.slane %v519_v17, 4  ;;  %v4260_v31 = vunpack.c.l.bf16 %v4317_v18  ;;  %v4261_v32 = vunpack.c.h.bf16 %v4317_v18 }
  0x3f   : >> { %3802 = vst [vmem:[%s5076_s25 + $0x1c] sm:$0xf] %v514_v20  ;;  %3804 = vst [vmem:[%s5076_s25 + $0x20] sm:$0x1] %v662_v21  ;;  %v530_v29 = vor.u32 %v528_v3, %v527_v23  ;;  %v532_v30 = vrot.slane %v527_v23, 4  ;;  %v534_v35 = vshrl.u32 %v4215_v27, 16  ;;  %v4264_v46 = vunpack.c.l.bf16 %v4318_v33 }
  0x40   : >> { %v665_v34 = vsel %vm5070_vm5, %v522_v24, %v3805_v22  ;;  %v537_v36 = vshll.u32 %v4215_v27, 16  ;;  %v542_v37 = vshrl.u32 %v4216_v28, 16  ;;  %v545_v41 = vshll.u32 %v4216_v28, 16  ;;  %v3815_v27 = vld [vmem:[%s5076_s25 + $0x3c] sm:$0xf] }
  0x41   : >> { %3806 = vst [vmem:[%s5076_s25 + $0x24] sm:$0xf] %v665_v34  ;;  %v531_v39 = vsel %vm5081_vm6, %v523_v25, %v530_v29  ;;  %v669_v40 = vsel %vm5087_vm7, %v532_v30, %v3808_v26  ;;  %v384_v42 = vmul.f32 %v4260_v31, %v5006_v0  ;;  %v536_v43 = vrot.slane %v534_v35, 7 }
  0x42   : >> { %3807 = vst [vmem:[%s5076_s25 + $0x28] sm:$0xf] %v531_v39  ;;  %3809 = vst [vmem:[%s5076_s25 + $0x2c] sm:$0x1] %v669_v40  ;;  %v544_v44 = vrot.slane %v542_v37, 7  ;;  %v385_v45 = vmul.f32 %v4261_v32, %v5006_v0  ;;  %v4265_v51 = vunpack.c.h.bf16 %v4318_v33  ;;  %v4268_v52 = vunpack.c.l.bf16 %v4319_v38 }
  0x43   : >> { %v406_v50 = vadd.f32 %v5011_v1, %v384_v42  ;;  %v4269_v53 = vunpack.c.h.bf16 %v4319_v38  ;;  %v539_v54 = vor.u32 %v537_v36, %v536_v43  ;;  %v540_v55 = vrot.slane %v536_v43, 4  ;;  %v3818_v36 = vld [vmem:[%s5076_s25 + $0x44] sm:$0x1] }
  0x44   : >> { %v547_v57 = vor.u32 %v545_v41, %v544_v44  ;;  %v549_v58 = vrot.slane %v544_v44, 4  ;;  %v407_v61 = vadd.f32 %v5011_v1, %v385_v45  ;;  %v386_v62 = vmul.f32 %v4264_v46, %v5006_v0  ;;  %v3820_v45 = vld [vmem:[%s5076_s25 + $0x48] sm:$0xf] }
  0x45   : >> { %v422_v59 = vmax.f32 %v406_v50, 0.0  ;;  %v387_v63 = vmul.f32 %v4265_v51, %v5006_v0  ;;  %v672_v3 = vsel %vm5070_vm5, %v539_v54, %v3810_v47  ;;  %v388_v6 = vmul.f32 %v4268_v52, %v5006_v0 }
  0x46   : >> { %v548_v4 = vsel %vm5081_vm6, %v540_v55, %v547_v57  ;;  %v676_v5 = vsel %vm5087_vm7, %v549_v58, %v3813_v48  ;;  %3811 = vst [vmem:[%s5076_s25 + $0x30] sm:$0xf] %v672_v3  ;;  %v423_v8 = vmax.f32 %v407_v61, 0.0  ;;  %v408_v9 = vadd.f32 %v5011_v1, %v386_v62  ;;  %v3823_v55 = vld [vmem:[%s5076_s25 + $0x50] sm:$0x1] }
  0x47   : >> { %3812 = vst [vmem:[%s5076_s25 + $0x34] sm:$0xf] %v548_v4  ;;  %3814 = vst [vmem:[%s5076_s25 + $0x38] sm:$0x1] %v676_v5  ;;  %v4217_v7 = vpack.c.bf16 %v422_v59, %v422_v59  ;;  %v409_v10 = vadd.f32 %v5011_v1, %v387_v63  ;;  %v410_v11 = vadd.f32 %v5011_v1, %v388_v6  ;;  %v4272_v13 = vunpack.c.l.bf16 %v5135_v2  ;;  %v3825_v57 = vld [vmem:[%s5076_s25 + $0x54] sm:$0xf] }
  0x48   : >> { %v389_v12 = vmul.f32 %v4269_v53, %v5006_v0  ;;  %v4273_v14 = vunpack.c.h.bf16 %v5135_v2  ;;  %v4218_v17 = vpack.c.bf16 %v423_v8, %v423_v8  ;;  %v424_v18 = vmax.f32 %v408_v9, 0.0 }
  0x49   : >> { %v551_v15 = vshrl.u32 %v4217_v7, 16  ;;  %v554_v16 = vshll.u32 %v4217_v7, 16  ;;  %v425_v19 = vmax.f32 %v409_v10, 0.0  ;;  %v426_v20 = vmax.f32 %v410_v11, 0.0  ;;  %v3828_v11 = vld [vmem:[%s5076_s25 + $0x5c] sm:$0x1] }
  0x4a   : >> { %v411_v21 = vadd.f32 %v5011_v1, %v389_v12  ;;  %v390_v22 = vmul.f32 %v4272_v13, %v5006_v0  ;;  %v559_v24 = vshrl.u32 %v4218_v17, 16  ;;  %v562_v25 = vshll.u32 %v4218_v17, 16 }
  0x4b   : >> { %v553_v23 = vrot.slane %v551_v15, 7  ;;  %v4219_v26 = vpack.c.bf16 %v424_v18, %v424_v18  ;;  %v4220_v28 = vpack.c.bf16 %v425_v19, %v425_v19  ;;  %v4221_v29 = vpack.c.bf16 %v426_v20, %v426_v20 }
  0x4c   : >> { %v427_v30 = vmax.f32 %v411_v21, 0.0  ;;  %v412_v31 = vadd.f32 %v5011_v1, %v390_v22  ;;  %v561_v34 = vrot.slane %v559_v24, 7  ;;  %v391_v7 = vmul.f32 %v4273_v14, %v5006_v0  ;;  %v3830_v21 = vld [vmem:[%s5076_s25 + $0x60] sm:$0xf] }
  0x4d   : >> { %v556_v32 = vor.u32 %v554_v16, %v553_v23  ;;  %v557_v33 = vrot.slane %v553_v23, 4  ;;  %v568_v35 = vshrl.u32 %v4219_v26, 16  ;;  %v571_v37 = vshll.u32 %v4219_v26, 16 }
  0x4e   : >> { %v576_v38 = vshrl.u32 %v4220_v28, 16  ;;  %v579_v39 = vshll.u32 %v4220_v28, 16  ;;  %v585_v40 = vshrl.u32 %v4221_v29, 16  ;;  %v564_v42 = vor.u32 %v562_v25, %v561_v34 }
  0x4f   : >> { %v679_v41 = vsel %vm5070_vm5, %v556_v32, %v3815_v27  ;;  %v566_v43 = vrot.slane %v561_v34, 4  ;;  %v570_v44 = vrot.slane %v568_v35, 7  ;;  %v588_v48 = vshll.u32 %v4221_v29, 16  ;;  %v3833_v29 = vld [vmem:[%s5076_s25 + $0x68] sm:$0x1] }
  0x50   : >> { %3816 = vst [vmem:[%s5076_s25 + $0x3c] sm:$0xf] %v679_v41  ;;  %v578_v46 = vrot.slane %v576_v38, 7  ;;  %v587_v47 = vrot.slane %v585_v40, 7  ;;  %v4222_v50 = vpack.c.bf16 %v427_v30, %v427_v30  ;;  %v565_v51 = vsel %vm5081_vm6, %v557_v33, %v564_v42 }
  0x51   : >> { %v683_v52 = vsel %vm5087_vm7, %v566_v43, %v3818_v36  ;;  %v573_v53 = vor.u32 %v571_v37, %v570_v44  ;;  %v574_v54 = vrot.slane %v570_v44, 4  ;;  %3817 = vst [vmem:[%s5076_s25 + $0x40] sm:$0xf] %v565_v51  ;;  %v428_v3 = vmax.f32 %v412_v31, 0.0 }
  0x52   : >> { %3819 = vst [vmem:[%s5076_s25 + $0x44] sm:$0x1] %v683_v52  ;;  %v581_v58 = vor.u32 %v579_v39, %v578_v46  ;;  %v583_v59 = vrot.slane %v578_v46, 4  ;;  %v590_v61 = vor.u32 %v588_v48, %v587_v47  ;;  %v593_v63 = vshrl.u32 %v4222_v50, 16 }
  0x53   : >> { %v686_v62 = vsel %vm5070_vm5, %v573_v53, %v3820_v45  ;;  %v596_v2 = vshll.u32 %v4222_v50, 16  ;;  %v591_v8 = vrot.slane %v587_v47, 4  ;;  %v4223_v10 = vpack.c.bf16 %v428_v3, %v428_v3 }
  0x54   : >> { %3821 = vst [vmem:[%s5076_s25 + $0x48] sm:$0xf] %v686_v62  ;;  %v582_v4 = vsel %vm5081_vm6, %v574_v54, %v581_v58  ;;  %v690_v5 = vsel %vm5087_vm7, %v583_v59, %v3823_v55  ;;  %v693_v6 = vsel %vm5070_vm5, %v590_v61, %v3825_v57  ;;  %v595_v9 = vrot.slane %v593_v63, 7 }
  0x55   : >> { %3822 = vst [vmem:[%s5076_s25 + $0x4c] sm:$0xf] %v582_v4  ;;  %3824 = vst [vmem:[%s5076_s25 + $0x50] sm:$0x1] %v690_v5  ;;  %v413_v12 = vadd.f32 %v5011_v1, %v391_v7  ;;  %v602_v16 = vshrl.u32 %v4223_v10, 16  ;;  %v605_v17 = vshll.u32 %v4223_v10, 16 }
  0x56   : >> { %3826 = vst [vmem:[%s5076_s25 + $0x54] sm:$0xf] %v693_v6  ;;  %v598_v13 = vor.u32 %v596_v2, %v595_v9  ;;  %v600_v15 = vrot.slane %v595_v9, 4  ;;  %v5205_v49 = vmov (%p328_p4), 0.0   ;;  %v5207_v34 = vmov (%p328_p4), 0.0  }
  0x57   : >> { %v429_v18 = vmax.f32 %v413_v12, 0.0  ;;  %v604_v20 = vrot.slane %v602_v16, 7 }
  0x58   : >> { %v599_v14 = vsel %vm5081_vm6, %v591_v8, %v598_v13  ;;  %v697_v19 = vsel %vm5087_vm7, %v600_v15, %v3828_v11 }
  0x59   : >> { %3827 = vst [vmem:[%s5076_s25 + $0x58] sm:$0xf] %v599_v14  ;;  %3829 = vst [vmem:[%s5076_s25 + $0x5c] sm:$0x1] %v697_v19  ;;  %v4224_v22 = vpack.c.bf16 %v429_v18, %v429_v18  ;;  %v607_v23 = vor.u32 %v605_v17, %v604_v20  ;;  %v608_v27 = vrot.slane %v604_v20, 4 }
  0x5b   : >> { %v610_v24 = vshrl.u32 %v4224_v22, 16  ;;  %v613_v25 = vshll.u32 %v4224_v22, 16  ;;  %v700_v26 = vsel %vm5070_vm5, %v607_v23, %v3830_v21 }
  0x5c   : >> { %3831 = vst [vmem:[%s5076_s25 + $0x60] sm:$0xf] %v700_v26 }
  0x5d   : >> { %v612_v28 = vrot.slane %v610_v24, 7 }
  0x5e   : > { %330 = sbr.rel (!%p328_p4) target bundleno = 39 (0x27), region = 118 }
  0x5f   : >> { %v615_v30 = vor.u32 %v613_v25, %v612_v28  ;;  %v617_v31 = vrot.slane %v612_v28, 4 }
  0x61   : >> { %v616_v32 = vsel %vm5081_vm6, %v608_v27, %v615_v30  ;;  %v704_v33 = vsel %vm5087_vm7, %v617_v31, %v3833_v29 }
  0x62   : >> { %3832 = vst [vmem:[%s5076_s25 + $0x64] sm:$0xf] %v616_v32  ;;  %3834 = vst [vmem:[%s5076_s25 + $0x68] sm:$0x1] %v704_v33 }
  0x63 LB: >> { %6386 = vst [vmem:[#allocation3_spill] sm:$0xff] %v4943_v49  ;;  %6387 = vst [vmem:[#allocation4_spill] sm:$0xff] %v4947_v34  ;;  %v4817_v0 = vld [vmem:[%s6375_s3 + $0x78] sm:$0xff]   ;;  %v4819_v56 = vld [vmem:[%s6375_s3 + $0x70] sm:$0xff]   ;;  %s4225_s24 = smul.u32 96, %s4951_s26  ;;  %vm1348_vm11 = vcmask 1042432   ;;  %s4951_s26 = sphi %s5209_s26, %s711_s26   ;;  %v4947_v34 = vphi %v5207_v34, %v6432_v34   ;;  %v4943_v49 = vphi %v5205_v49, %v6431_v49  }
  0x64   : >> { %v4818_v1 = vld [vmem:[%s6375_s3 + $0x38] sm:$0xff]   ;;  %4472 = vmatprep.subr.bf16.mxu0 %v4817_v0  ;;  %v4820_v60 = vld [vmem:[%s6375_s3 + $0x30] sm:$0xff]   ;;  %v4821_v35 = vld [vmem:[%s6375_s3 + $0x68] sm:$0xff]   ;;  %vm758_vm8 = vsmask.f32 3328  ;;  %vm1349_vm12 = vcmask 1046532  }
  0x65   : >> { %4504 = vmatprep.subr.bf16.mxu1 %v4818_v1  ;;  %4473 = vmatpush3.bf16.msra.mxu0 %v4817_v0  ;;  %v4822_v36 = vld [vmem:[%s6375_s3 + $0x28] sm:$0xff]   ;;  %v4823_v37 = vld [vmem:[%s6375_s3 + $0x60] sm:$0xff]   ;;  %v4825_v39 = vld [vmem:[%s6375_s3 + $0x58] sm:$0xff]   ;;  %s5257_s11 = scalar_lea.vmem [#allocation2], %s4225_s24  ;;  %vm759_vm9 = vsmask.f32 7440 }
  0x66   : >> { %4505 = vmatpush3.bf16.msra.mxu1 %v4818_v1  ;;  %4474 = vmatprep.subr.bf16.mxu0 %v4819_v56  ;;  %v4824_v38 = vld [vmem:[%s6375_s3 + $0x20] sm:$0xff]   ;;  %v4826_v40 = vld [vmem:[%s6375_s3 + $0x18] sm:$0xff]   ;;  %v4827_v41 = vld [vmem:[%s6375_s3 + $0x50] sm:$0xff]   ;;  %s4186_s12 = sshll.u32 %s4951_s26, 7  ;;  %s711_s26 = sadd.s32 1, %s4951_s26  }
  0x67   : >> { %4506 = vmatprep.subr.bf16.mxu1 %v4820_v60  ;;  %v4828_v42 = vld [vmem:[%s6375_s3 + $0x10] sm:$0xff]   ;;  %v4829_v59 = vld [vmem:[%s6375_s3 + $0x48] sm:$0xff]   ;;  %vm5296_vm10 = vmor %vm758_vm8, %vm759_vm9  ;;  %s6299_s14 = sshra.s32 %s4186_s12, 3  ;;  %p708_p5 = scmp.ge.s32.totalorder %s711_s26, 2  }
  0x68   : >> { %v4830_v2 = vld [vmem:[%s6375_s3 + $0x8] sm:$0xff]   ;;  %v4831_v17 = vld [vmem:[%s6375_s3 + $0x40] sm:$0xff]   ;;  %v4835_v25 = vld [vmem:[%s6375_s3 + $0xb8] sm:$0xff]   ;;  %s4203_s15 = sshll.u32 %s6299_s14, 2 }
  0x69   : >> { %4475 = vmatpush3.bf16.msra.mxu0 %v4819_v56  ;;  %v5260_v43 = vld [vmem:[%s5257_s11] sm:$0xf]  ;;  %v5263_v44 = vld [vmem:[%s5257_s11 + $0x4] sm:$0xf]  ;;  %v5266_v45 = vld [vmem:[%s5257_s11 + $0x8] sm:$0x1]  ;;  %s6321_s17 = scalar_lea.vmem %s5032_s13, %s4203_s15 }
  0x6a   : >> { %4507 = vmatpush3.bf16.msra.mxu1 %v4820_v60  ;;  %4476 = vmatprep.subr.bf16.mxu0 %v4821_v35  ;;  %v762_v46 = vshrl.u32 %v5260_v43, 16  ;;  %v765_v47 = vshll.u32 %v5260_v43, 16  ;;  %v771_v48 = vshll.u32 %v5263_v44, 16  ;;  %v775_v50 = vshrl.u32 %v5263_v44, 16  ;;  %v5274_v52 = vld [vmem:[%s5257_s11 + $0xc] sm:$0xf]  ;;  %vm5476_vm13 = vmor %vm1348_vm11, %vm1349_vm12 }
  0x6b   : >> { %4508 = vmatprep.subr.bf16.mxu1 %v4822_v36  ;;  %v781_v51 = vshll.u32 %v5266_v45, 16  ;;  %v3870_v55 = vcombine.low %v5260_v43, %v5263_v44  ;;  %v5279_v57 = vld [vmem:[%s5257_s11 + $0x10] sm:$0xf]  ;;  %v5282_v58 = vld [vmem:[%s5257_s11 + $0x14] sm:$0x1]  ;;  %v786_v63 = vshrl.u32 %v5274_v52, 16 }
  0x6c   : >> { %v764_v53 = vrot.slane %v762_v46, 4  ;;  %v767_v54 = vrot.slane %v765_v47, 5  ;;  %v773_v61 = vrot.slane %v771_v48, 5  ;;  %v777_v62 = vrot.slane %v775_v50, 4  ;;  %v4832_v14 = vld [vmem:[%s6375_s3] sm:$0xff]   ;;  %v4836_v32 = vld [vmem:[%s6375_s3 + $0xf8] sm:$0xff]  }
  0x6d   : >> { %4477 = vmatpush3.bf16.msra.mxu0 %v4821_v35  ;;  %4520 = vmatprep.mubr.bf16.mxu1 %v3870_v55  ;;  %v789_v4 = vshll.u32 %v5274_v52, 16  ;;  %v795_v5 = vshll.u32 %v5279_v57, 16  ;;  %v799_v6 = vshrl.u32 %v5279_v57, 16  ;;  %v783_v9 = vrot.slane %v781_v51, 5  ;;  %v5317_v26 = vld [vmem:[%s5257_s11 + $0x18] sm:$0xf] }
  0x6e   : >> { %4509 = vmatpush3.bf16.msra.mxu1 %v4822_v36  ;;  %4478 = vmatprep.subr.bf16.mxu0 %v4823_v37  ;;  %v768_v3 = vor.u32 %v767_v54, %v764_v53  ;;  %v778_v8 = vor.u32 %v777_v62, %v773_v61  ;;  %v788_v10 = vrot.slane %v786_v63, 4  ;;  %v805_v11 = vshll.u32 %v5282_v58, 16  ;;  %v5320_v27 = vld [vmem:[%s5257_s11 + $0x1c] sm:$0xf]  ;;  %v5327_v33 = vld [vmem:[%s5257_s11 + $0x20] sm:$0x1] }
  0x6f   : >> { %4510 = vmatprep.subr.bf16.mxu1 %v4824_v38  ;;  %v791_v13 = vrot.slane %v789_v4, 5  ;;  %v797_v15 = vrot.slane %v795_v5, 5  ;;  %v801_v16 = vrot.slane %v799_v6, 4  ;;  %v3871_v24 = vcombine.low %v5274_v52, %v5279_v57  ;;  %v5335_v36 = vld [vmem:[%s5257_s11 + $0x24] sm:$0xf]  ;;  %v4837_v47 = vld [vmem:[%s6375_s3 + $0xb0] sm:$0xff]  }
  0x70   : >> { %v769_v12 = vrot.slane %v768_v3, 4  ;;  %v779_v18 = vrot.slane %v778_v8, 4  ;;  %v807_v22 = vrot.slane %v805_v11, 5  ;;  %v3886_v28 = vrot.slane %v5260_v43, 9  ;;  %v4838_v3 = vld [vmem:[%s6375_s3 + $0xf0] sm:$0xff]  }
  0x71   : >> { %4479 = vmatpush3.bf16.msra.mxu0 %v4823_v37  ;;  %v792_v20 = vor.u32 %v791_v13, %v788_v10  ;;  %v802_v21 = vor.u32 %v801_v16, %v797_v15  ;;  %v810_v0 = vshrl.u32 %v5317_v26, 16  ;;  %v813_v1 = vshll.u32 %v5317_v26, 16  ;;  %v5364_v16 = vld [vmem:[%s5257_s11 + $0x30] sm:$0xf] }
  0x72   : >> { %4511 = vmatpush3.bf16.msra.mxu1 %v4824_v38  ;;  %4480 = vmatprep.subr.bf16.mxu0 %v4825_v39  ;;  %v774_v19 = vsel %vm5296_vm10, %v769_v12, %v773_v61  ;;  %v784_v23 = vsel %vm5296_vm10, %v779_v18, %v783_v9  ;;  %v819_v56 = vshll.u32 %v5320_v27, 16  ;;  %v823_v60 = vshrl.u32 %v5320_v27, 16 }
  0x73   : >> { %4512 = vmatprep.subr.bf16.mxu1 %v4826_v40  ;;  %v3854_v29 = vcombine.low %v774_v19, %v784_v23  ;;  %v793_v30 = vrot.slane %v792_v20, 4  ;;  %v803_v31 = vrot.slane %v802_v21, 4  ;;  %v829_v35 = vshll.u32 %v5327_v33, 16  ;;  %v4841_v19 = vld [vmem:[%s6375_s3 + $0xa8] sm:$0xff]   ;;  %v5374_v20 = vld [vmem:[%s5257_s11 + $0x34] sm:$0xf] }
  0x74   : >> { %v815_v48 = vrot.slane %v813_v1, 5  ;;  %v821_v50 = vrot.slane %v819_v56, 5  ;;  %v825_v51 = vrot.slane %v823_v60, 4  ;;  %v834_v54 = vshrl.u32 %v5335_v36, 16  ;;  %v5377_v21 = vld [vmem:[%s5257_s11 + $0x38] sm:$0x1] }
  0x75   : >> { %4481 = vmatpush3.bf16.msra.mxu0 %v4825_v39  ;;  %4488 = vmatprep.mubr.bf16.mxu0 %v3854_v29  ;;  %v798_v37 = vsel %vm5296_vm10, %v793_v30, %v797_v15  ;;  %v808_v38 = vsel %vm5296_vm10, %v803_v31, %v807_v22  ;;  %v812_v39 = vrot.slane %v810_v0, 4  ;;  %v831_v53 = vrot.slane %v829_v35, 5  ;;  %v5386_v31 = vld [vmem:[%s5257_s11 + $0x3c] sm:$0xf]  ;;  %v5391_v60 = vld [vmem:[%s5257_s11 + $0x40] sm:$0xf] }
  0x76   : >> { %4513 = vmatpush3.bf16.msra.mxu1 %v4826_v40  ;;  %4482 = vmatprep.subr.bf16.mxu0 %v4827_v41  ;;  %v5342_v40 = vld [vmem:[%s5257_s11 + $0x28] sm:$0xf]  ;;  %v3855_v46 = vcombine.low %v798_v37, %v808_v38  ;;  %v837_v55 = vshll.u32 %v5335_v36, 16  ;;  %v826_v62 = vor.u32 %v825_v51, %v821_v50  ;;  %v3872_v4 = vcombine.low %v5317_v26, %v5320_v27  ;;  %v4843_v37 = vld [vmem:[%s6375_s3 + $0xa0] sm:$0xff]  }
  0x77   : >> { %4514 = vmatprep.subr.bf16.mxu1 %v4828_v42  ;;  %v816_v61 = vor.u32 %v815_v48, %v812_v39  ;;  %v847_v63 = vshrl.u32 %v5342_v40, 16  ;;  %v836_v5 = vrot.slane %v834_v54, 4  ;;  %v3873_v15 = vcombine.low %v5335_v36, %v5342_v40  ;;  %v5401_v48 = vld [vmem:[%s5257_s11 + $0x44] sm:$0x1] }
  0x78   : >> { %v839_v6 = vrot.slane %v837_v55, 5  ;;  %v827_v10 = vrot.slane %v826_v62, 4  ;;  %v858_v22 = vshrl.u32 %v5364_v16, 16  ;;  %v861_v29 = vshll.u32 %v5364_v16, 16 }
  0x79   : >> { %4483 = vmatpush3.bf16.msra.mxu0 %v4827_v41  ;;  %v5345_v41 = vld [vmem:[%s5257_s11 + $0x2c] sm:$0x1]  ;;  %v817_v9 = vrot.slane %v816_v61, 4  ;;  %v849_v11 = vrot.slane %v847_v63, 4  ;;  %v867_v30 = vshll.u32 %v5374_v20, 16  ;;  %v871_v1 = vshrl.u32 %v5374_v20, 16 }
  0x7a   : >> { %4515 = vmatpush3.bf16.msra.mxu1 %v4828_v42  ;;  %4484 = vmatprep.subr.bf16.mxu0 %v4829_v59  ;;  %v1353_v42 = vrot.slane %v5263_v44, 5  ;;  %v840_v13 = vor.u32 %v839_v6, %v836_v5  ;;  %v832_v18 = vsel %vm5296_vm10, %v827_v10, %v831_v53  ;;  %v860_v0 = vrot.slane %v858_v22, 4 }
  0x7b   : >> { %4516 = vmatprep.subr.bf16.mxu1 %v4830_v2  ;;  %v877_v56 = vshll.u32 %v5377_v21, 16  ;;  %v863_v38 = vrot.slane %v861_v29, 5  ;;  %v869_v39 = vrot.slane %v867_v30, 5  ;;  %v873_v51 = vrot.slane %v871_v1, 4  ;;  %v5437_v30 = vld [vmem:[%s5257_s11 + $0x54] sm:$0xf] }
  0x7c   : >> { %v882_v54 = vshrl.u32 %v5386_v31, 16  ;;  %v885_v61 = vshll.u32 %v5386_v31, 16  ;;  %v891_v62 = vshll.u32 %v5391_v60, 16  ;;  %v4849_v1 = vld [vmem:[%s6375_s3 + $0x90] sm:$0xff]  }
  0x7d   : >> { %4485 = vmatpush3.bf16.msra.mxu0 %v4829_v59  ;;  %v843_v59 = vshll.u32 %v5342_v40, 16  ;;  %v879_v53 = vrot.slane %v877_v56, 5  ;;  %v874_v63 = vor.u32 %v873_v51, %v869_v39 }
  0x7e   : >> { %4517 = vmatpush3.bf16.msra.mxu1 %v4830_v2  ;;  %4486 = vmatprep.subr.bf16.mxu0 %v4831_v17  ;;  %v853_v2 = vshll.u32 %v5345_v41, 16  ;;  %v887_v6 = vrot.slane %v885_v61, 5 }
  0x7f   : >> { %4518 = vmatprep.subr.bf16.mxu1 %v4832_v14  ;;  %v845_v8 = vrot.slane %v843_v59, 5  ;;  %v864_v59 = vor.u32 %v863_v38, %v860_v0  ;;  %v875_v10 = vrot.slane %v874_v63, 4  ;;  %v5445_v38 = vld [vmem:[%s5257_s11 + $0x58] sm:$0xf] }
  0x80   : >> { %v855_v12 = vrot.slane %v853_v2, 5  ;;  %v884_v2 = vrot.slane %v882_v54, 4  ;;  %v5452_v54 = vld [vmem:[%s5257_s11 + $0x5c] sm:$0x1] }
  0x81   : >> { %4487 = vmatpush3.bf16.msra.mxu0 %v4831_v17  ;;  %v822_v17 = vsel %vm5296_vm10, %v817_v9, %v821_v50  ;;  %v865_v5 = vrot.slane %v864_v59, 4  ;;  %v4847_v9 = vld [vmem:[%s6375_s3 + $0x98] sm:$0xff]   ;;  %v880_v22 = vsel %vm5296_vm10, %v875_v10, %v879_v53 }
  0x82   : >> { %4519 = vmatpush3.bf16.msra.mxu1 %v4832_v14  ;;  %4536 = vmatprep.subr.bf16.mxu0 %v4835_v25  ;;  %v850_v14 = vor.u32 %v849_v11, %v845_v8  ;;  %v3856_v23 = vcombine.low %v822_v17, %v832_v18  ;;  %v888_v17 = vor.u32 %v887_v6, %v884_v2  ;;  %v930_v2 = vshrl.u32 %v5437_v30, 16 }
  0x83   : >> { %4568 = vmatprep.subr.bf16.mxu1 %v4836_v32  ;;  %v3875_v18 = vcombine.low %v5386_v31, %v5391_v60  ;;  %v939_v6 = vshll.u32 %v5445_v38, 16 }
  0x84   : >> { %4489 = vmatmul.mubr.bf16.vlgmr.msra.gmra.mxu0 %v3855_v46  ;;  %v3874_v46 = vcombine.low %v5364_v16, %v5374_v20  ;;  %v889_v0 = vrot.slane %v888_v17, 4 }
  0x85   : >> { %4521 = vmatmul.mubr.bf16.vlgmr.msra.gmra.mxu1 %v3871_v24  ;;  %4537 = vmatpush3.bf16.msra.mxu0 %v4835_v25  ;;  %v841_v24 = vrot.slane %v840_v13, 4  ;;  %v4842_v25 = vld [vmem:[%s6375_s3 + $0xe8] sm:$0xff]   ;;  %v4848_v13 = vld [vmem:[%s6375_s3 + $0xd8] sm:$0xff]  }
  0x86   : >> { %4569 = vmatpush3.bf16.msra.mxu1 %v4836_v32  ;;  %4538 = vmatprep.subr.bf16.mxu0 %v4837_v47  ;;  %v851_v32 = vrot.slane %v850_v14, 4  ;;  %v5424_v14 = vld [vmem:[%s5257_s11 + $0x48] sm:$0xf] }
  0x87   : >> { %4570 = vmatprep.subr.bf16.mxu1 %v4838_v3  ;;  %4524 = vmatprep.mubr.bf16.mxu1 %v3872_v4  ;;  %v846_v35 = vsel %vm5296_vm10, %v841_v24, %v845_v8  ;;  %v901_v4 = vshll.u32 %v5401_v48, 16  ;;  %v893_v8 = vrot.slane %v891_v62, 5  ;;  %v5432_v24 = vld [vmem:[%s5257_s11 + $0x50] sm:$0x1]  ;;  %v909_v29 = vshll.u32 %v5424_v14, 16 }
  0x88   : >> { %4492 = vmatprep.mubr.bf16.mxu0 %v3856_v23  ;;  %v856_v50 = vsel %vm5296_vm10, %v851_v32, %v855_v12  ;;  %v925_v53 = vshll.u32 %v5432_v24, 16 }
  0x89   : >> { %4539 = vmatpush3.bf16.msra.mxu0 %v4837_v47  ;;  %v4844_v47 = vld [vmem:[%s6375_s3 + $0xe0] sm:$0xff]   ;;  %v3857_v55 = vcombine.low %v846_v35, %v856_v50  ;;  %v903_v12 = vrot.slane %v901_v4, 5  ;;  %v911_v51 = vrot.slane %v909_v29, 5 }
  0x8a   : >> { %4571 = vmatpush3.bf16.msra.mxu1 %v4838_v3  ;;  %4540 = vmatprep.subr.bf16.mxu0 %v4841_v19  ;;  %v895_v3 = vshrl.u32 %v5391_v60, 16  ;;  %v927_v63 = vrot.slane %v925_v53, 5 }
  0x8b   : >> { %4572 = vmatprep.subr.bf16.mxu1 %v4842_v25 }
  0x8c   : >> { %4493 = vmatmul.mubr.bf16.gmra.mxu0 %v3857_v55  ;;  %v897_v11 = vrot.slane %v895_v3, 4  ;;  %v894_v55 = vsel %vm5296_vm10, %v889_v0, %v893_v8  ;;  %v1363_v0 = vrot.slane %v5282_v58, 5 }
  0x8d   : >> { %4525 = vmatmul.mubr.bf16.gmra.mxu1 %v3873_v15  ;;  %4541 = vmatpush3.bf16.msra.mxu0 %v4841_v19  ;;  %v870_v15 = vsel %vm5296_vm10, %v865_v5, %v869_v39  ;;  %v5427_v19 = vld [vmem:[%s5257_s11 + $0x4c] sm:$0xf]  ;;  %v933_v5 = vshll.u32 %v5437_v30, 16 }
  0x8e   : >> { %4573 = vmatpush3.bf16.msra.mxu1 %v4842_v25  ;;  %4542 = vmatprep.subr.bf16.mxu0 %v4843_v37  ;;  %v898_v23 = vor.u32 %v897_v11, %v893_v8  ;;  %v906_v25 = vshrl.u32 %v5424_v14, 16  ;;  %v3858_v32 = vcombine.low %v870_v15, %v880_v22  ;;  %v915_v56 = vshll.u32 %v5427_v19, 16  ;;  %v4853_v8 = vld [vmem:[%s6375_s3 + $0x88] sm:$0xff]  }
  0x8f   : >> { %4574 = vmatprep.subr.bf16.mxu1 %v4844_v47  ;;  %4528 = vmatprep.mubr.bf16.mxu1 %v3874_v46  ;;  %v919_v35 = vshrl.u32 %v5427_v19, 16  ;;  %v4850_v46 = vld [vmem:[%s6375_s3 + $0xd0] sm:$0xff]   ;;  %v932_v11 = vrot.slane %v930_v2, 4  ;;  %v949_v15 = vshll.u32 %v5452_v54, 16  ;;  %v941_v22 = vrot.slane %v939_v6, 5 }
  0x90   : >> { %v899_v39 = vrot.slane %v898_v23, 4  ;;  %v908_v50 = vrot.slane %v906_v25, 4  ;;  %4496 = vmatprep.mubr.bf16.mxu0 %v3858_v32  ;;  %v917_v59 = vrot.slane %v915_v56, 5  ;;  %v4854_v23 = vld [vmem:[%s6375_s3 + $0xc8] sm:$0xff]   ;;  %v1355_v32 = vrot.slane %v1353_v42, 4 }
  0x91   : >> { %4543 = vmatpush3.bf16.msra.mxu0 %v4843_v37  ;;  %v921_v61 = vrot.slane %v919_v35, 4  ;;  %v3876_v37 = vcombine.low %v5424_v14, %v5427_v19  ;;  %v3877_v35 = vcombine.low %v5437_v30, %v5445_v38  ;;  %v1360_v2 = vrot.slane %v5279_v57, 5 }
  0x92   : >> { %4575 = vmatpush3.bf16.msra.mxu1 %v4844_v47  ;;  %4544 = vmatprep.subr.bf16.mxu0 %v4847_v9  ;;  %v904_v47 = vsel %vm5296_vm10, %v899_v39, %v903_v12  ;;  %v912_v62 = vor.u32 %v911_v51, %v908_v50  ;;  %v943_v12 = vshrl.u32 %v5445_v38, 16  ;;  %v4855_v39 = vld [vmem:[%s6375_s3 + $0x80] sm:$0xff]   ;;  %v5491_v50 = vld [vmem:[%s5257_s11 + $0xc] sm:$0xf]  ;;  %v5494_v51 = vld [vmem:[%s5257_s11 + $0x10] sm:$0xf] }
  0x93   : >> { %4576 = vmatprep.subr.bf16.mxu1 %v4848_v13  ;;  %v3859_v3 = vcombine.low %v894_v55, %v904_v47  ;;  %v922_v4 = vor.u32 %v921_v61, %v917_v59  ;;  %v951_v55 = vrot.slane %v949_v15, 5  ;;  %v5500_v61 = vld [vmem:[%s5257_s11 + $0x18] sm:$0xf]  ;;  %v1875_v44 = vshll.u32 %v5491_v50, 16 }
  0x94   : >> { %v913_v10 = vrot.slane %v912_v62, 4  ;;  %v945_v25 = vrot.slane %v943_v12, 4  ;;  %v1362_v57 = vrot.slane %v1360_v2, 4  ;;  %v5534_v12 = vld [vmem:[%s5257_s11 + $0x24] sm:$0xf]  ;;  %v1896_v15 = vshrl.u32 %v5500_v61, 16 }
  0x95   : >> { %4529 = vmatmul.mubr.bf16.gmra.mxu1 %v3875_v18  ;;  %4545 = vmatpush3.bf16.msra.mxu0 %v4847_v9  ;;  %v923_v17 = vrot.slane %v922_v4, 4  ;;  %v935_v18 = vrot.slane %v933_v5, 5  ;;  %v1356_v9 = vrot.slane %v5266_v45, 5  ;;  %v1885_v4 = vshrl.u32 %v5494_v51, 16 }
  0x96   : >> { %4577 = vmatpush3.bf16.msra.mxu1 %v4848_v13  ;;  %4497 = vmatmul.mubr.bf16.gmra.mxu0 %v3859_v3  ;;  %v918_v13 = vsel %vm5296_vm10, %v913_v10, %v917_v59  ;;  %v946_v58 = vor.u32 %v945_v25, %v941_v22  ;;  %v4856_v59 = vld [vmem:[%s6375_s3 + $0xc0] sm:$0xff]   ;;  %v5515_v3 = vld [vmem:[%s5257_s11 + $0x1c] sm:$0xf] }
  0x97   : >> { %4546 = vmatprep.subr.bf16.mxu0 %v4849_v1  ;;  %4578 = vmatprep.subr.bf16.mxu1 %v4850_v46  ;;  %v928_v45 = vsel %vm5296_vm10, %v923_v17, %v927_v63  ;;  %v936_v56 = vor.u32 %v935_v18, %v932_v11  ;;  %v1357_v62 = vsel %vm5476_vm13, %v1355_v32, %v1356_v9  ;;  %v1367_v11 = vrot.slane %v5320_v27, 5 }
  0x98   : >> { %4532 = vmatprep.mubr.bf16.mxu1 %v3876_v37  ;;  %v3860_v53 = vcombine.low %v918_v13, %v928_v45  ;;  %v947_v47 = vrot.slane %v946_v58, 4  ;;  %v3968_v63 = vcombine.low %v5491_v50, %v5494_v51  ;;  %v3969_v10 = vcombine.low %v5500_v61, %v5515_v3  ;;  %v4862_v13 = vld [vmem:[%s6375_s3 + $0x170] sm:$0xff]  }
  0x99   : >> { %4547 = vmatpush3.bf16.msra.mxu0 %v4849_v1  ;;  %v937_v37 = vrot.slane %v936_v56, 4  ;;  %v1354_v1 = vsel %vm5476_vm13, %v3886_v28, %v1353_v42  ;;  %v3887_v28 = vrot.slane %v5274_v52, 9  ;;  %v4859_v52 = vld [vmem:[%s6375_s3 + $0x138] sm:$0xff]   ;;  %v1899_v17 = vshll.u32 %v5500_v61, 16 }
  0x9a   : >> { %4579 = vmatpush3.bf16.msra.mxu1 %v4850_v46  ;;  %4548 = vmatprep.subr.bf16.mxu0 %v4853_v8  ;;  %v1872_v46 = vshrl.u32 %v5491_v50, 16  ;;  %v952_v42 = vsel %vm5296_vm10, %v947_v47, %v951_v55  ;;  %v3910_v6 = vcombine.low %v1354_v1, %v1357_v62  ;;  %v3888_v18 = vrot.slane %v5317_v26, 9 }
  0x9b   : >> { %4580 = vmatprep.subr.bf16.mxu1 %v4854_v23  ;;  %4500 = vmatprep.mubr.bf16.mxu0 %v3860_v53  ;;  %v942_v43 = vsel %vm5296_vm10, %v937_v37, %v941_v22  ;;  %v1370_v22 = vrot.slane %v5327_v33, 5  ;;  %v1361_v9 = vsel %vm5476_vm13, %v3887_v28, %v1360_v2  ;;  %v1909_v27 = vshrl.u32 %v5515_v3, 16 }
  0x9c   : >> { %v3861_v5 = vcombine.low %v942_v43, %v952_v42  ;;  %v1369_v25 = vrot.slane %v1367_v11, 4  ;;  %v1920_v32 = vshrl.u32 %v5534_v12, 16  ;;  %v1364_v26 = vsel %vm5476_vm13, %v1362_v57, %v1363_v0  ;;  %v4866_v43 = vld [vmem:[%s6375_s3 + $0x168] sm:$0xff]   ;;  %v5584_v57 = vld [vmem:[%s5257_s11 + $0x3c] sm:$0xf] }
  0x9d   : >> { %4533 = vmatmul.mubr.bf16.gmra.mxu1 %v3877_v35  ;;  %4549 = vmatpush3.bf16.msra.mxu0 %v4853_v8  ;;  %v4860_v8 = vld [vmem:[%s6375_s3 + $0x178] sm:$0xff]   ;;  %v1923_v45 = vshll.u32 %v5534_v12, 16  ;;  %v1374_v56 = vrot.slane %v5342_v40, 5  ;;  %v5557_v35 = vld [vmem:[%s5257_s11 + $0x30] sm:$0xf]  ;;  %v3889_v58 = vrot.slane %v5335_v36, 9  ;;  %v1368_v0 = vsel %vm5476_vm13, %v3888_v18, %v1367_v11 }
  0x9e   : >> { %4581 = vmatpush3.bf16.msra.mxu1 %v4854_v23  ;;  %4550 = vmatprep.subr.bf16.mxu0 %v4855_v39  ;;  %v5541_v23 = vld [vmem:[%s5257_s11 + $0x28] sm:$0xf]  ;;  %v1371_v55 = vsel %vm5476_vm13, %v1369_v25, %v1370_v22  ;;  %v1377_v40 = vrot.slane %v5345_v41, 5  ;;  %v3911_v37 = vcombine.low %v1361_v9, %v1364_v26  ;;  %v4861_v36 = vld [vmem:[%s6375_s3 + $0x130] sm:$0xff]   ;;  %v1944_v47 = vshrl.u32 %v5557_v35, 16  ;;  %v4868_v18 = vld [vmem:[%s6375_s3 + $0x160] sm:$0xff]  }
  0x9f   : >> { %4582 = vmatprep.subr.bf16.mxu1 %v4856_v59  ;;  %4584 = vmatprep.mubr.bf16.mxu1 %v3968_v63  ;;  %v3970_v33 = vcombine.low %v5534_v12, %v5541_v23  ;;  %v1933_v53 = vshrl.u32 %v5541_v23, 16  ;;  %v1947_v62 = vshll.u32 %v5557_v35, 16  ;;  %v1381_v63 = vrot.slane %v5374_v20, 5  ;;  %v5609_v26 = vld [vmem:[%s5257_s11 + $0x4c] sm:$0xf] }
  0xa0   : >> { %4501 = vmatmul.mubr.bf16.gmra.mxu0 %v3861_v5  ;;  %v3912_v41 = vcombine.low %v1368_v0, %v1371_v55  ;;  %v3890_v28 = vrot.slane %v5364_v16, 9  ;;  %v1384_v42 = vrot.slane %v5377_v21, 5  ;;  %v1968_v20 = vshrl.u32 %v5584_v57, 16  ;;  %v4865_v21 = vld [vmem:[%s6375_s3 + $0x128] sm:$0xff]  }
  0xa1   : >> { %4551 = vmatpush3.bf16.msra.mxu0 %v4855_v39  ;;  %4552 = vmatprep.mubr.bf16.mxu0 %v3910_v6  ;;  %v5562_v39 = vld [vmem:[%s5257_s11 + $0x34] sm:$0xf]  ;;  %v1383_v5 = vrot.slane %v1381_v63, 4  ;;  %v5587_v6 = vld [vmem:[%s5257_s11 + $0x40] sm:$0xf]  ;;  %v1375_v11 = vsel %vm5476_vm13, %v3889_v58, %v1374_v56  ;;  %v1388_v9 = vrot.slane %v5391_v60, 5 }
  0xa2   : >> { %4583 = vmatpush3.bf16.msra.mxu1 %v4856_v59  ;;  %4600 = vmatprep.subr.bf16.mxu0 %v4859_v52  ;;  %v1376_v59 = vrot.slane %v1374_v56, 4  ;;  %v3971_v1 = vcombine.low %v5557_v35, %v5562_v39  ;;  %v1957_v2 = vshrl.u32 %v5562_v39, 16  ;;  %v1981_v22 = vshrl.u32 %v5587_v6, 16 }
  0xa3   : >> { %4632 = vmatprep.subr.bf16.mxu1 %v4860_v8  ;;  %v1391_v25 = vrot.slane %v5401_v48, 5  ;;  %v1382_v56 = vsel %vm5476_vm13, %v3890_v28, %v1381_v63  ;;  %v1385_v58 = vsel %vm5476_vm13, %v1383_v5, %v1384_v42  ;;  %v1390_v0 = vrot.slane %v1388_v9, 4 }
  0xa4   : >> { %v1378_v16 = vsel %vm5476_vm13, %v1376_v59, %v1377_v40  ;;  %v3972_v48 = vcombine.low %v5584_v57, %v5587_v6  ;;  %v2005_v55 = vshrl.u32 %v5609_v26, 16  ;;  %v3892_v59 = vrot.slane %v5424_v14, 9  ;;  %v4872_v14 = vld [vmem:[%s6375_s3 + $0x158] sm:$0xff]  }
  0xa5   : >> { %4585 = vmatmul.mubr.bf16.vlgmr.msra.gmra.mxu1 %v3969_v10  ;;  %v1971_v10 = vshll.u32 %v5584_v57, 16  ;;  %v1395_v40 = vrot.slane %v5427_v19, 5  ;;  %v3914_v63 = vcombine.low %v1382_v56, %v1385_v58  ;;  %v5638_v19 = vld [vmem:[%s5257_s11 + $0x54] sm:$0xf]  ;;  %v4871_v56 = vld [vmem:[%s6375_s3 + $0x118] sm:$0xff]  }
  0xa6   : >> { %4633 = vmatpush3.bf16.msra.mxu1 %v4860_v8  ;;  %4588 = vmatprep.mubr.bf16.mxu1 %v3970_v33  ;;  %v3891_v8 = vrot.slane %v5386_v31, 9  ;;  %v5605_v31 = vld [vmem:[%s5257_s11 + $0x48] sm:$0xf]  ;;  %v2016_v28 = vshrl.u32 %v5638_v19, 16  ;;  %v4874_v58 = vld [vmem:[%s6375_s3 + $0x150] sm:$0xff]  }
  0xa7   : >> { %4634 = vmatprep.subr.bf16.mxu1 %v4862_v13  ;;  %v1992_v33 = vshrl.u32 %v5605_v31, 16  ;;  %v1995_v60 = vshll.u32 %v5605_v31, 16 }
  0xa8   : >> { %4553 = vmatmul.mubr.bf16.vlgmr.msra.gmra.mxu0 %v3911_v37  ;;  %v1398_v37 = vrot.slane %v5432_v24, 5  ;;  %v5641_v24 = vld [vmem:[%s5257_s11 + $0x58] sm:$0xf] }
  0xa9   : >> { %4601 = vmatpush3.bf16.msra.mxu0 %v4859_v52  ;;  %4556 = vmatprep.mubr.bf16.mxu0 %v3912_v41  ;;  %v3913_v52 = vcombine.low %v1375_v11, %v1378_v16  ;;  %v5628_v41 = vsel %vm5476_vm13, %v3891_v8, %v1388_v9  ;;  %v5648_v8 = vld [vmem:[%s5257_s11 + $0x60] sm:$0xf]  ;;  %v5652_v11 = vsel %vm5476_vm13, %v3892_v59, %v1395_v40  ;;  %v1402_v16 = vrot.slane %v5445_v38, 5  ;;  %v5657_v9 = vld [vmem:[%s5257_s11 + $0x64] sm:$0xf] }
  0xaa   : >> { %4635 = vmatpush3.bf16.msra.mxu1 %v4862_v13  ;;  %4602 = vmatprep.subr.bf16.mxu0 %v4861_v36  ;;  %v4867_v13 = vld [vmem:[%s6375_s3 + $0x120] sm:$0xff]  }
  0xab   : >> { %4636 = vmatprep.subr.bf16.mxu1 %v4866_v43  ;;  %v1404_v59 = vrot.slane %v1402_v16, 4 }
  0xad   : >> { %4589 = vmatmul.mubr.bf16.gmra.mxu1 %v3971_v1  ;;  %4603 = vmatpush3.bf16.msra.mxu0 %v4861_v36  ;;  %v5632_v1 = vsel %vm5476_vm13, %v1390_v0, %v1391_v25  ;;  %v3893_v36 = vrot.slane %v5437_v30, 9  ;;  %v1405_v30 = vrot.slane %v5452_v54, 5  ;;  %v3973_v25 = vcombine.low %v5605_v31, %v5609_v26 }
  0xae   : >> { %4637 = vmatpush3.bf16.msra.mxu1 %v4866_v43  ;;  %4604 = vmatprep.subr.bf16.mxu0 %v4865_v21  ;;  %v1397_v43 = vrot.slane %v1395_v40, 4  ;;  %v2283_v54 = vrot.slane %v5494_v51, 5 }
  0xaf   : >> { %4638 = vmatprep.subr.bf16.mxu1 %v4868_v18  ;;  %4592 = vmatprep.mubr.bf16.mxu1 %v3972_v48  ;;  %v5675_v48 = vsel %vm5476_vm13, %v3893_v36, %v1402_v16  ;;  %v1881_v36 = vshll.u32 %v5494_v51, 16 }
  0xb0   : >> { %4557 = vmatmul.mubr.bf16.gmra.mxu0 %v3913_v52  ;;  %v1399_v0 = vsel %vm5476_vm13, %v1397_v43, %v1398_v37  ;;  %v3915_v52 = vcombine.low %v5628_v41, %v5632_v1  ;;  %v3974_v43 = vcombine.low %v5638_v19, %v5641_v24  ;;  %v3930_v41 = vld [vmem:[%s5257_s11 + $0x14] sm:$0x1]  ;;  %v1874_v1 = vrot.slane %v1872_v46, 4  ;;  %v5702_v46 = vld [vmem:[%s5257_s11 + $0x20] sm:$0x1] }
  0xb1   : >> { %4605 = vmatpush3.bf16.msra.mxu0 %v4865_v21  ;;  %4560 = vmatprep.mubr.bf16.mxu0 %v3914_v63  ;;  %v3916_v37 = vcombine.low %v5652_v11, %v1399_v0  ;;  %v3975_v21 = vcombine.low %v5648_v8, %v5657_v9  ;;  %v1877_v63 = vrot.slane %v1875_v44, 5  ;;  %v4873_v11 = vld [vmem:[%s6375_s3 + $0x110] sm:$0xff]   ;;  %v1891_v0 = vshll.u32 %v3930_v41, 16  ;;  %v4878_v44 = vld [vmem:[%s6375_s3 + $0x148] sm:$0xff]  }
  0xb2   : >> { %4639 = vmatpush3.bf16.msra.mxu1 %v4868_v18  ;;  %4606 = vmatprep.subr.bf16.mxu0 %v4867_v13  ;;  %v5685_v18 = vsel %vm5476_vm13, %v1404_v59, %v1405_v30  ;;  %v1887_v30 = vrot.slane %v1885_v4, 4  ;;  %v4016_v59 = vrot.slane %v5491_v50, 9  ;;  %v1883_v40 = vrot.slane %v1881_v36, 5 }
  0xb3   : >> { %4640 = vmatprep.subr.bf16.mxu1 %v4872_v14  ;;  %v3917_v16 = vcombine.low %v5675_v48, %v5685_v18  ;;  %v2286_v38 = vrot.slane %v3930_v41, 5  ;;  %v1893_v5 = vrot.slane %v1891_v0, 5  ;;  %v1898_v4 = vrot.slane %v1896_v15, 4  ;;  %v4881_v48 = vld [vmem:[%s6375_s3 + $0x1b8] sm:$0xff]   ;;  %v4884_v18 = vld [vmem:[%s6375_s3 + $0x1f0] sm:$0xff]  }
  0xb4   : >> { %v1901_v50 = vrot.slane %v1899_v17, 5  ;;  %v1888_v42 = vor.u32 %v1887_v30, %v1883_v40  ;;  %v1911_v36 = vrot.slane %v1909_v27, 4  ;;  %v1915_v15 = vshll.u32 %v5702_v46, 16  ;;  %v4877_v27 = vld [vmem:[%s6375_s3 + $0x108] sm:$0xff]  }
  0xb5   : >> { %4593 = vmatmul.mubr.bf16.gmra.mxu1 %v3973_v25  ;;  %4607 = vmatpush3.bf16.msra.mxu0 %v4867_v13  ;;  %v1878_v25 = vor.u32 %v1877_v63, %v1874_v1  ;;  %v1905_v13 = vshll.u32 %v5515_v3, 16  ;;  %v2284_v1 = vsel %vm5476_vm13, %v4016_v59, %v2283_v54  ;;  %v2285_v63 = vrot.slane %v2283_v54, 4 }
  0xb6   : >> { %4641 = vmatpush3.bf16.msra.mxu1 %v4872_v14  ;;  %4608 = vmatprep.subr.bf16.mxu0 %v4871_v56  ;;  %v1902_v51 = vor.u32 %v1901_v50, %v1898_v4  ;;  %v4017_v54 = vrot.slane %v5500_v61, 9  ;;  %v1917_v0 = vrot.slane %v1915_v15, 5  ;;  %v2290_v61 = vrot.slane %v5515_v3, 5  ;;  %v3939_v15 = vld [vmem:[%s5257_s11 + $0x38] sm:$0x1] }
  0xb7   : >> { %4642 = vmatprep.subr.bf16.mxu1 %v4874_v58  ;;  %4596 = vmatprep.mubr.bf16.mxu1 %v3974_v43  ;;  %v1879_v14 = vrot.slane %v1878_v25, 4  ;;  %v1907_v41 = vrot.slane %v1905_v13, 5  ;;  %v1889_v43 = vrot.slane %v1888_v42, 4  ;;  %v2287_v30 = vsel %vm5476_vm13, %v2285_v63, %v2286_v38  ;;  %v4879_v25 = vld [vmem:[%s6375_s3 + $0x100] sm:$0xff]  }
  0xb8   : >> { %4561 = vmatmul.mubr.bf16.gmra.mxu0 %v3915_v52  ;;  %v1903_v52 = vrot.slane %v1902_v51, 4  ;;  %v2293_v38 = vrot.slane %v5702_v46, 5  ;;  %v1922_v59 = vrot.slane %v1920_v32, 4  ;;  %v2291_v3 = vsel %vm5476_vm13, %v4017_v54, %v2290_v61 }
  0xb9   : >> { %4609 = vmatpush3.bf16.msra.mxu0 %v4871_v56  ;;  %v1884_v17 = vsel %vm5296_vm10, %v1879_v14, %v1883_v40  ;;  %4564 = vmatprep.mubr.bf16.mxu0 %v3916_v37  ;;  %v4880_v56 = vld [vmem:[%s6375_s3 + $0x140] sm:$0xff]   ;;  %v1912_v40 = vor.u32 %v1911_v36, %v1907_v41  ;;  %v1894_v42 = vsel %vm5296_vm10, %v1889_v43, %v1893_v5  ;;  %v3936_v37 = vld [vmem:[%s5257_s11 + $0x2c] sm:$0x1]  ;;  %v1925_v5 = vrot.slane %v1923_v45, 5 }
  0xba   : >> { %4643 = vmatpush3.bf16.msra.mxu1 %v4874_v58  ;;  %4610 = vmatprep.subr.bf16.mxu0 %v4873_v11  ;;  %v4040_v58 = vcombine.low %v2284_v1, %v2287_v30  ;;  %v4000_v4 = vcombine.low %v1884_v17, %v1894_v42  ;;  %v1908_v50 = vsel %vm5296_vm10, %v1903_v52, %v1907_v41  ;;  %v2292_v32 = vrot.slane %v2290_v61, 4  ;;  %v5782_v61 = vld [vmem:[%s5257_s11 + $0x44] sm:$0x1] }
  0xbb   : >> { %4644 = vmatprep.subr.bf16.mxu1 %v4878_v44  ;;  %v1913_v13 = vrot.slane %v1912_v40, 4  ;;  %v1929_v46 = vshll.u32 %v5541_v23, 16  ;;  %v1935_v14 = vrot.slane %v1933_v53, 4  ;;  %v4018_v1 = vrot.slane %v5534_v12, 9 }
  0xbc   : >> { %v2294_v51 = vsel %vm5476_vm13, %v2292_v32, %v2293_v38  ;;  %v2297_v36 = vrot.slane %v5541_v23, 5  ;;  %v2300_v30 = vrot.slane %v3936_v37, 5  ;;  %v1946_v23 = vrot.slane %v1944_v47, 4 }
  0xbd   : >> { %4597 = vmatmul.mubr.bf16.gmra.mxu1 %v3975_v21  ;;  %4611 = vmatpush3.bf16.msra.mxu0 %v4873_v11  ;;  %v4882_v21 = vld [vmem:[%s6375_s3 + $0x1f8] sm:$0xff]   ;;  %v1918_v45 = vsel %vm5296_vm10, %v1913_v13, %v1917_v0  ;;  %v1926_v11 = vor.u32 %v1925_v5, %v1922_v59  ;;  %v1931_v41 = vrot.slane %v1929_v46, 5  ;;  %v4041_v53 = vcombine.low %v2291_v3, %v2294_v51  ;;  %v4885_v51 = vld [vmem:[%s6375_s3 + $0x1a8] sm:$0xff]  }
  0xbe   : >> { %4645 = vmatpush3.bf16.msra.mxu1 %v4878_v44  ;;  %4612 = vmatprep.subr.bf16.mxu0 %v4877_v27  ;;  %v1939_v44 = vshll.u32 %v3936_v37, 16  ;;  %v4001_v63 = vcombine.low %v1908_v50, %v1918_v45  ;;  %v2298_v54 = vsel %vm5476_vm13, %v4018_v1, %v2297_v36  ;;  %v1959_v47 = vrot.slane %v1957_v2, 4  ;;  %v4883_v2 = vld [vmem:[%s6375_s3 + $0x1b0] sm:$0xff]  }
  0xbf   : >> { %4646 = vmatprep.subr.bf16.mxu1 %v4880_v56  ;;  %4648 = vmatprep.mubr.bf16.mxu1 %v4040_v58  ;;  %v1927_v17 = vrot.slane %v1926_v11, 4  ;;  %v1936_v12 = vor.u32 %v1935_v14, %v1931_v41  ;;  %v2299_v58 = vrot.slane %v2297_v36, 4  ;;  %v1963_v0 = vshll.u32 %v3939_v15, 16 }
  0xc0   : >> { %4565 = vmatmul.mubr.bf16.gmra.mxu0 %v3917_v16  ;;  %v1941_v43 = vrot.slane %v1939_v44, 5  ;;  %v4019_v42 = vrot.slane %v5557_v35, 9  ;;  %v2307_v13 = vrot.slane %v3939_v15, 5  ;;  %v1970_v35 = vrot.slane %v1968_v20, 4  ;;  %v3945_v15 = vld [vmem:[%s5257_s11 + $0x50] sm:$0x1] }
  0xc1   : >> { %4613 = vmatpush3.bf16.msra.mxu0 %v4877_v27  ;;  %4616 = vmatprep.mubr.bf16.mxu0 %v4000_v4  ;;  %v1932_v16 = vsel %vm5296_vm10, %v1927_v17, %v1931_v41  ;;  %v1949_v27 = vrot.slane %v1947_v62, 5  ;;  %v1937_v52 = vrot.slane %v1936_v12, 4  ;;  %v2301_v40 = vsel %vm5476_vm13, %v2299_v58, %v2300_v30 }
  0xc2   : >> { %4647 = vmatpush3.bf16.msra.mxu1 %v4880_v56  ;;  %4614 = vmatprep.subr.bf16.mxu0 %v4879_v25  ;;  %v1953_v56 = vshll.u32 %v5562_v39, 16  ;;  %v4042_v38 = vcombine.low %v2298_v54, %v2301_v40  ;;  %v2304_v62 = vrot.slane %v5562_v39, 5  ;;  %v1965_v50 = vrot.slane %v1963_v0, 5 }
  0xc3   : >> { %4696 = vmatprep.subr.bf16.mxu1 %v4882_v21  ;;  %v1950_v37 = vor.u32 %v1949_v27, %v1946_v23  ;;  %v1942_v4 = vsel %vm5296_vm10, %v1937_v52, %v1941_v43  ;;  %v1973_v46 = vrot.slane %v1971_v10, 5  ;;  %v1977_v20 = vshll.u32 %v5587_v6, 16 }
  0xc4   : >> { %v1955_v59 = vrot.slane %v1953_v56, 5  ;;  %v4002_v5 = vcombine.low %v1932_v16, %v1942_v4  ;;  %v2305_v39 = vsel %vm5476_vm13, %v4019_v42, %v2304_v62  ;;  %v1983_v14 = vrot.slane %v1981_v22, 4  ;;  %v4888_v22 = vld [vmem:[%s6375_s3 + $0x1e0] sm:$0xff]  }
  0xc5   : >> { %4649 = vmatmul.mubr.bf16.vlgmr.msra.gmra.mxu1 %v4041_v53  ;;  %4615 = vmatpush3.bf16.msra.mxu0 %v4879_v25  ;;  %v1951_v3 = vrot.slane %v1950_v37, 4  ;;  %v4886_v25 = vld [vmem:[%s6375_s3 + $0x1e8] sm:$0xff]   ;;  %v1987_v44 = vshll.u32 %v5782_v61, 16  ;;  %v4020_v1 = vrot.slane %v5584_v57, 9  ;;  %v1979_v41 = vrot.slane %v1977_v20, 5  ;;  %v4887_v16 = vld [vmem:[%s6375_s3 + $0x1a0] sm:$0xff]  }
  0xc6   : >> { %4697 = vmatpush3.bf16.msra.mxu1 %v4882_v21  ;;  %4664 = vmatprep.subr.bf16.mxu0 %v4881_v48  ;;  %v1960_v32 = vor.u32 %v1959_v47, %v1955_v59  ;;  %v2306_v21 = vrot.slane %v2304_v62, 4  ;;  %v2311_v36 = vrot.slane %v5587_v6, 5  ;;  %v2314_v43 = vrot.slane %v5782_v61, 5 }
  0xc7   : >> { %4698 = vmatprep.subr.bf16.mxu1 %v4884_v18  ;;  %4652 = vmatprep.mubr.bf16.mxu1 %v4042_v38  ;;  %v1956_v45 = vsel %vm5296_vm10, %v1951_v3, %v1955_v59  ;;  %v1989_v17 = vrot.slane %v1987_v44, 5  ;;  %v1984_v54 = vor.u32 %v1983_v14, %v1979_v41  ;;  %v1994_v6 = vrot.slane %v1992_v33, 4 }
  0xc8   : >> { %4617 = vmatmul.mubr.bf16.vlgmr.msra.gmra.mxu0 %v4001_v63  ;;  %v1961_v11 = vrot.slane %v1960_v32, 4  ;;  %v2308_v10 = vsel %vm5476_vm13, %v2306_v21, %v2307_v13  ;;  %v1974_v63 = vor.u32 %v1973_v46, %v1970_v35  ;;  %v2312_v58 = vsel %vm5476_vm13, %v4020_v1, %v2311_v36 }
  0xc9   : >> { %4665 = vmatpush3.bf16.msra.mxu0 %v4881_v48  ;;  %4620 = vmatprep.mubr.bf16.mxu0 %v4002_v5  ;;  %v4043_v53 = vcombine.low %v2305_v39, %v2308_v10  ;;  %v2313_v23 = vrot.slane %v2311_v36, 4  ;;  %v1997_v48 = vrot.slane %v1995_v60, 5  ;;  %v1985_v56 = vrot.slane %v1984_v54, 4  ;;  %v4889_v39 = vld [vmem:[%s6375_s3 + $0x198] sm:$0xff]  }
  0xca   : >> { %4699 = vmatpush3.bf16.msra.mxu1 %v4884_v18  ;;  %4666 = vmatprep.subr.bf16.mxu0 %v4883_v2  ;;  %v1966_v57 = vsel %vm5296_vm10, %v1961_v11, %v1965_v50  ;;  %v1975_v12 = vrot.slane %v1974_v63, 4  ;;  %v2001_v18 = vshll.u32 %v5609_v26, 16  ;;  %v2007_v47 = vrot.slane %v2005_v55, 4  ;;  %v4890_v55 = vld [vmem:[%s6375_s3 + $0x1d8] sm:$0xff]  }
  0xcb   : >> { %v4003_v30 = vcombine.low %v1956_v45, %v1966_v57  ;;  %4700 = vmatprep.subr.bf16.mxu1 %v4886_v25  ;;  %v2011_v52 = vshll.u32 %v3945_v15, 16  ;;  %v2315_v33 = vsel %vm5476_vm13, %v2313_v23, %v2314_v43  ;;  %v1998_v60 = vor.u32 %v1997_v48, %v1994_v6  ;;  %v3948_v50 = vld [vmem:[%s5257_s11 + $0x5c] sm:$0x1] }
  0xcc   : >> { %v1980_v27 = vsel %vm5296_vm10, %v1975_v12, %v1979_v41  ;;  %v2003_v40 = vrot.slane %v2001_v18, 5  ;;  %v4021_v0 = vrot.slane %v5605_v31, 9  ;;  %v1990_v42 = vsel %vm5296_vm10, %v1985_v56, %v1989_v17  ;;  %v5885_v18 = vld [vmem:[%s5257_s11 + $0x18] sm:$0xf] }
  0xcd   : >> { %4653 = vmatmul.mubr.bf16.gmra.mxu1 %v4043_v53  ;;  %4667 = vmatpush3.bf16.msra.mxu0 %v4883_v2  ;;  %v4044_v61 = vcombine.low %v2312_v58, %v2315_v33  ;;  %v2013_v38 = vrot.slane %v2011_v52, 5  ;;  %v2318_v37 = vrot.slane %v5609_v26, 5  ;;  %v4004_v59 = vcombine.low %v1980_v27, %v1990_v42  ;;  %v4893_v52 = vld [vmem:[%s6375_s3 + $0x188] sm:$0xff]   ;;  %v5894_v33 = vld [vmem:[%s5257_s11 + $0x1c] sm:$0xf] }
  0xce   : >> { %4701 = vmatpush3.bf16.msra.mxu1 %v4886_v25  ;;  %4668 = vmatprep.subr.bf16.mxu0 %v4885_v51  ;;  %v1999_v62 = vrot.slane %v1998_v60, 4  ;;  %v2008_v2 = vor.u32 %v2007_v47, %v2003_v40  ;;  %v2321_v4 = vrot.slane %v3945_v15, 5  ;;  %v2018_v35 = vrot.slane %v2016_v28, 4  ;;  %v4892_v25 = vld [vmem:[%s6375_s3 + $0x1d0] sm:$0xff]   ;;  %v3951_v15 = vld [vmem:[%s5257_s11 + $0x68] sm:$0x1] }
  0xcf   : >> { %4702 = vmatprep.subr.bf16.mxu1 %v4888_v22  ;;  %v2319_v31 = vsel %vm5476_vm13, %v4021_v0, %v2318_v37  ;;  %v2320_v13 = vrot.slane %v2318_v37, 4  ;;  %v6392_v26 = vshll.u32 %v5638_v19, 16  ;;  %v2025_v21 = vshll.u32 %v5641_v24, 16  ;;  %4656 = vmatprep.mubr.bf16.mxu1 %v4044_v61  ;;  %v5898_v61 = vld [vmem:[%s5257_s11 + $0x20] sm:$0x1] }
  0xd0   : >> { %4621 = vmatmul.mubr.bf16.gmra.mxu0 %v4003_v30  ;;  %v2004_v3 = vsel %vm5296_vm10, %v1999_v62, %v2003_v40  ;;  %v2009_v32 = vrot.slane %v2008_v2, 4  ;;  %v6393_v28 = vshrl.u32 %v5641_v24, 16  ;;  %v2035_v45 = vshll.u32 %v3948_v50, 16  ;;  %v4894_v30 = vld [vmem:[%s6375_s3 + $0x1c8] sm:$0xff]  }
  0xd1   : >> { %4669 = vmatpush3.bf16.msra.mxu0 %v4885_v51  ;;  %v2021_v5 = vrot.slane %v6392_v26, 5  ;;  %4624 = vmatprep.mubr.bf16.mxu0 %v4004_v59  ;;  %v2322_v20 = vsel %vm5476_vm13, %v2320_v13, %v2321_v4  ;;  %v4022_v11 = vrot.slane %v5638_v19, 9  ;;  %v2027_v10 = vrot.slane %v2025_v21, 5  ;;  %v4891_v19 = vld [vmem:[%s6375_s3 + $0x190] sm:$0xff]   ;;  %v4896_v4 = vld [vmem:[%s6375_s3 + $0x1c0] sm:$0xff]  }
  0xd2   : >> { %4703 = vmatpush3.bf16.msra.mxu1 %v4888_v22  ;;  %4670 = vmatprep.subr.bf16.mxu0 %v4887_v16  ;;  %v2031_v46 = vrot.slane %v6393_v28, 4  ;;  %v2014_v44 = vsel %vm5296_vm10, %v2009_v32, %v2013_v38  ;;  %v4045_v1 = vcombine.low %v2319_v31, %v2322_v20  ;;  %v2325_v51 = vrot.slane %v5641_v24, 5  ;;  %v5913_v26 = vld [vmem:[%s5257_s11 + $0x24] sm:$0xf] }
  0xd3   : >> { %4704 = vmatprep.subr.bf16.mxu1 %v4890_v55  ;;  %v2022_v14 = vor.u32 %v2021_v5, %v2018_v35  ;;  %v4005_v22 = vcombine.low %v2004_v3, %v2014_v44  ;;  %v2037_v41 = vrot.slane %v2035_v45, 5  ;;  %v2328_v36 = vrot.slane %v3948_v50, 5  ;;  %v4895_v28 = vld [vmem:[%s6375_s3 + $0x180] sm:$0xff]   ;;  %v5928_v45 = vld [vmem:[%s5257_s11 + $0x2c] sm:$0x1] }
  0xd4   : >> { %v2032_v57 = vor.u32 %v2031_v46, %v2027_v10  ;;  %v2326_v53 = vsel %vm5476_vm13, %v4022_v11, %v2325_v51  ;;  %v2327_v24 = vrot.slane %v2325_v51, 4  ;;  %v6394_v17 = vshrl.u32 %v5648_v8, 16  ;;  %v5933_v51 = vld [vmem:[%s5257_s11 + $0x30] sm:$0xf] }
  0xd5   : >> { %4671 = vmatpush3.bf16.msra.mxu0 %v4887_v16  ;;  %v2023_v63 = vrot.slane %v2022_v14, 4  ;;  %4657 = vmatmul.mubr.bf16.gmra.mxu1 %v4045_v1  ;;  %v6395_v54 = vshll.u32 %v5648_v8, 16  ;;  %v2049_v23 = vshll.u32 %v5657_v9, 16  ;;  %v6396_v6 = vshrl.u32 %v5657_v9, 16 }
  0xd6   : >> { %4705 = vmatpush3.bf16.msra.mxu1 %v4890_v55  ;;  %4672 = vmatprep.subr.bf16.mxu0 %v4889_v39  ;;  %v2042_v43 = vrot.slane %v6394_v17, 4  ;;  %v2033_v16 = vrot.slane %v2032_v57, 4  ;;  %v2329_v27 = vsel %vm5476_vm13, %v2327_v24, %v2328_v36  ;;  %v2059_v56 = vshll.u32 %v3951_v15, 16 }
  0xd7   : >> { %4706 = vmatprep.subr.bf16.mxu1 %v4892_v25  ;;  %v2028_v12 = vsel %vm5296_vm10, %v2023_v63, %v2027_v10  ;;  %v2045_v58 = vrot.slane %v6395_v54, 5  ;;  %v2055_v48 = vrot.slane %v6396_v6, 4  ;;  %v4023_v47 = vrot.slane %v5648_v8, 9 }
  0xd8   : >> { %4625 = vmatmul.mubr.bf16.gmra.mxu0 %v4005_v22  ;;  %v4046_v60 = vcombine.low %v2326_v53, %v2329_v27  ;;  %v2051_v0 = vrot.slane %v2049_v23, 5  ;;  %v2332_v42 = vrot.slane %v5657_v9, 5  ;;  %v2038_v8 = vsel %vm5296_vm10, %v2033_v16, %v2037_v41  ;;  %v5936_v22 = vld [vmem:[%s5257_s11 + $0x34] sm:$0xf] }
  0xd9   : >> { %4673 = vmatpush3.bf16.msra.mxu0 %v4889_v39  ;;  %v2046_v40 = vor.u32 %v2045_v58, %v2042_v43  ;;  %v2061_v38 = vrot.slane %v2059_v56, 5  ;;  %v2335_v37 = vrot.slane %v3951_v15, 5  ;;  %v4098_v55 = vcombine.low %v5885_v18, %v5894_v33 }
  0xda   : >> { %4707 = vmatpush3.bf16.msra.mxu1 %v4892_v25  ;;  %4674 = vmatprep.subr.bf16.mxu0 %v4891_v19  ;;  %v4006_v59 = vcombine.low %v2028_v12, %v2038_v8  ;;  %v2056_v2 = vor.u32 %v2055_v48, %v2051_v0  ;;  %v2333_v9 = vsel %vm5476_vm13, %v4023_v47, %v2332_v42  ;;  %v2334_v50 = vrot.slane %v2332_v42, 4  ;;  %v5920_v25 = vld [vmem:[%s5257_s11 + $0x28] sm:$0xf]  ;;  %v5964_v8 = vld [vmem:[%s5257_s11 + $0x3c] sm:$0xf] }
  0xdb   : >> { %4708 = vmatprep.subr.bf16.mxu1 %v4894_v30  ;;  %4660 = vmatprep.mubr.bf16.mxu1 %v4046_v60  ;;  %v2047_v62 = vrot.slane %v2046_v40, 4  ;;  %v2802_v31 = vshrl.u32 %v5885_v18, 16  ;;  %v2805_v13 = vshll.u32 %v5885_v18, 16  ;;  %v2815_v35 = vshrl.u32 %v5894_v33, 16 }
  0xdc   : >> { %4628 = vmatprep.mubr.bf16.mxu0 %v4006_v59  ;;  %v2057_v3 = vrot.slane %v2056_v2, 4  ;;  %v2811_v32 = vshll.u32 %v5894_v33, 16  ;;  %v2821_v39 = vshll.u32 %v5898_v61, 16  ;;  %v2336_v21 = vsel %vm5476_vm13, %v2334_v50, %v2335_v37  ;;  %v4900_v37 = vld [vmem:[%s6375_s3 + $0x230] sm:$0xff]   ;;  %v5972_v2 = vld [vmem:[%s5257_s11 + $0x40] sm:$0xf] }
  0xdd   : >> { %4675 = vmatpush3.bf16.msra.mxu0 %v4891_v19  ;;  %v2052_v5 = vsel %vm5296_vm10, %v2047_v62, %v2051_v0  ;;  %v2804_v46 = vrot.slane %v2802_v31, 4  ;;  %v2807_v20 = vrot.slane %v2805_v13, 5  ;;  %v2817_v14 = vrot.slane %v2815_v35, 4  ;;  %v5944_v19 = vld [vmem:[%s6375_s3 + $0x238] sm:$0xff]   ;;  %v5976_v13 = vld [vmem:[%s5257_s11 + $0x44] sm:$0x1] }
  0xde   : >> { %4676 = vmatprep.subr.bf16.mxu0 %v4893_v52  ;;  %4709 = vmatpush3.bf16.msra.mxu1 %v4894_v30  ;;  %v2062_v11 = vsel %vm5296_vm10, %v2057_v3, %v2061_v38  ;;  %v4047_v44 = vcombine.low %v2333_v9, %v2336_v21  ;;  %v2813_v1 = vrot.slane %v2811_v32, 5  ;;  %v2823_v10 = vrot.slane %v2821_v39, 5 }
  0xdf   : >> { %4710 = vmatprep.subr.bf16.mxu1 %v4896_v4  ;;  %v4007_v63 = vcombine.low %v2052_v5, %v2062_v11  ;;  %v2808_v41 = vor.u32 %v2807_v20, %v2804_v46  ;;  %v4099_v36 = vcombine.low %v5913_v26, %v5920_v25  ;;  %v2826_v15 = vshrl.u32 %v5913_v26, 16 }
  0xe0   : >> { %4661 = vmatmul.mubr.bf16.gmra.mxu1 %v4047_v44  ;;  %v2818_v57 = vor.u32 %v2817_v14, %v2813_v1  ;;  %v2829_v53 = vshll.u32 %v5913_v26, 16  ;;  %v2839_v24 = vshrl.u32 %v5920_v25, 16  ;;  %v2835_v17 = vshll.u32 %v5920_v25, 16 }
  0xe1   : >> { %4677 = vmatpush3.bf16.msra.mxu0 %v4893_v52  ;;  %v2809_v43 = vrot.slane %v2808_v41, 4  ;;  %v2828_v30 = vrot.slane %v2826_v15, 4  ;;  %v2845_v12 = vshll.u32 %v5928_v45, 16  ;;  %v4100_v54 = vcombine.low %v5933_v51, %v5936_v22  ;;  %v5958_v52 = vld [vmem:[%s5257_s11 + $0x38] sm:$0x1] }
  0xe2   : >> { %4629 = vmatmul.mubr.bf16.gmra.mxu0 %v4007_v63  ;;  %4678 = vmatprep.subr.bf16.mxu0 %v4895_v28  ;;  %v2819_v58 = vrot.slane %v2818_v57, 4  ;;  %v2831_v23 = vrot.slane %v2829_v53, 5  ;;  %v2837_v6 = vrot.slane %v2835_v17, 5  ;;  %v2841_v48 = vrot.slane %v2839_v24, 4  ;;  %v5994_v57 = vld [vmem:[%s5257_s11 + $0x4c] sm:$0xf] }
  0xe3   : >> { %4711 = vmatpush3.bf16.msra.mxu1 %v4896_v4  ;;  %4680 = vmatprep.mubr.bf16.mxu0 %v4098_v55  ;;  %v2814_v16 = vsel %vm5296_vm10, %v2809_v43, %v2813_v1  ;;  %v2847_v27 = vrot.slane %v2845_v12, 5  ;;  %v2850_v56 = vshrl.u32 %v5933_v51, 16  ;;  %v2853_v47 = vshll.u32 %v5933_v51, 16  ;;  %v5988_v1 = vld [vmem:[%s5257_s11 + $0x48] sm:$0xf] }
  0xe4   : >> { %4760 = vmatprep.subr.bf16.mxu1 %v5944_v19  ;;  %v2824_v60 = vsel %vm5296_vm10, %v2819_v58, %v2823_v10  ;;  %v2832_v40 = vor.u32 %v2831_v23, %v2828_v30  ;;  %v2842_v0 = vor.u32 %v2841_v48, %v2837_v6  ;;  %v2863_v42 = vshrl.u32 %v5936_v22, 16  ;;  %v4903_v17 = vld [vmem:[%s6375_s3 + $0x228] sm:$0xff]   ;;  %v6006_v23 = vld [vmem:[%s5257_s11 + $0x50] sm:$0x1] }
  0xe5   : >> { %4679 = vmatpush3.bf16.msra.mxu0 %v4895_v28  ;;  %v4130_v38 = vcombine.low %v2814_v16, %v2824_v60  ;;  %v2852_v55 = vrot.slane %v2850_v56, 4  ;;  %v2855_v59 = vrot.slane %v2853_v47, 5  ;;  %v2859_v62 = vshll.u32 %v5936_v22, 16  ;;  %v6014_v56 = vld [vmem:[%s5257_s11 + $0x54] sm:$0xf] }
  0xe6   : >> { %4728 = vmatprep.subr.bf16.mxu0 %v5944_v19  ;;  %v2833_v9 = vrot.slane %v2832_v40, 4  ;;  %v2843_v4 = vrot.slane %v2842_v0, 4  ;;  %v2865_v50 = vrot.slane %v2863_v42, 4  ;;  %v2869_v31 = vshll.u32 %v5958_v52, 16  ;;  %v4904_v40 = vld [vmem:[%s6375_s3 + $0x220] sm:$0xff]  }
  0xe7   : >> { %4712 = vmatprep.mubr.bf16.mxu1 %v4130_v38  ;;  %v2856_v35 = vor.u32 %v2855_v59, %v2852_v55  ;;  %v2861_v5 = vrot.slane %v2859_v62, 5  ;;  %v4101_v3 = vcombine.low %v5964_v8, %v5972_v2  ;;  %v2874_v32 = vshrl.u32 %v5964_v8, 16  ;;  %v6021_v62 = vld [vmem:[%s5257_s11 + $0x58] sm:$0xf] }
  0xe8   : >> { %v2838_v39 = vsel %vm5296_vm10, %v2833_v9, %v2837_v6  ;;  %v2848_v21 = vsel %vm5296_vm10, %v2843_v4, %v2847_v27  ;;  %v2871_v28 = vrot.slane %v2869_v31, 5  ;;  %v2877_v46 = vshll.u32 %v5964_v8, 16 }
  0xe9   : >> { %v4131_v20 = vcombine.low %v2838_v39, %v2848_v21  ;;  %v2857_v14 = vrot.slane %v2856_v35, 4  ;;  %v2866_v11 = vor.u32 %v2865_v50, %v2861_v5  ;;  %v2887_v44 = vshrl.u32 %v5972_v2, 16 }
  0xea   : >> { %4681 = vmatmul.mubr.bf16.vlgmr.msra.gmra.mxu0 %v4099_v36  ;;  %v2876_v10 = vrot.slane %v2874_v32, 4  ;;  %v2879_v63 = vrot.slane %v2877_v46, 5  ;;  %v2883_v41 = vshll.u32 %v5972_v2, 16  ;;  %v2893_v15 = vshll.u32 %v5976_v13, 16 }
  0xeb   : >> { %4729 = vmatpush3.bf16.msra.mxu0 %v5944_v19  ;;  %4684 = vmatprep.mubr.bf16.mxu0 %v4100_v54  ;;  %v2862_v36 = vsel %vm5296_vm10, %v2857_v14, %v2861_v5  ;;  %v2867_v53 = vrot.slane %v2866_v11, 4  ;;  %v2889_v24 = vrot.slane %v2887_v44, 4  ;;  %v4102_v43 = vcombine.low %v5988_v1, %v5994_v57 }
  0xec   : >> { %4713 = vmatmul.mubr.bf16.vlgmr.msra.gmra.mxu1 %v4131_v20  ;;  %4730 = vmatprep.subr.bf16.mxu0 %v4900_v37  ;;  %v2880_v30 = vor.u32 %v2879_v63, %v2876_v10  ;;  %v2885_v12 = vrot.slane %v2883_v41, 5  ;;  %v2895_v54 = vrot.slane %v2893_v15, 5  ;;  %v2898_v58 = vshrl.u32 %v5988_v1, 16  ;;  %v4907_v10 = vld [vmem:[%s6375_s3 + $0x218] sm:$0xff]   ;;  %v6041_v63 = vld [vmem:[%s5257_s11 + $0x60] sm:$0xf] }
  0xed   : >> { %4768 = vmatpush3.bf16.msra.mxu1 %v5944_v19  ;;  %v2872_v6 = vsel %vm5296_vm10, %v2867_v53, %v2871_v28  ;;  %v2901_v48 = vshll.u32 %v5988_v1, 16  ;;  %v2911_v16 = vshrl.u32 %v5994_v57, 16  ;;  %v2907_v27 = vshll.u32 %v5994_v57, 16 }
  0xee   : >> { %4761 = vmatprep.subr.bf16.mxu1 %v4900_v37  ;;  %v4132_v19 = vcombine.low %v2862_v36, %v2872_v6  ;;  %v2881_v47 = vrot.slane %v2880_v30, 4  ;;  %v2890_v60 = vor.u32 %v2889_v24, %v2885_v12  ;;  %v2900_v0 = vrot.slane %v2898_v58, 4  ;;  %v6049_v24 = vld [vmem:[%s5257_s11 + $0x64] sm:$0xf] }
  0xef   : >> { %4731 = vmatpush3.bf16.msra.mxu0 %v4900_v37  ;;  %v2903_v42 = vrot.slane %v2901_v48, 5  ;;  %v2909_v38 = vrot.slane %v2907_v27, 5  ;;  %v2913_v55 = vrot.slane %v2911_v16, 4  ;;  %v2917_v59 = vshll.u32 %v6006_v23, 16  ;;  %v4908_v16 = vld [vmem:[%s6375_s3 + $0x210] sm:$0xff]  }
  0xf0   : >> { %4732 = vmatprep.subr.bf16.mxu0 %v4903_v17  ;;  %4716 = vmatprep.mubr.bf16.mxu1 %v4132_v19  ;;  %v2886_v9 = vsel %vm5296_vm10, %v2881_v47, %v2885_v12  ;;  %v2891_v4 = vrot.slane %v2890_v60, 4  ;;  %v4103_v50 = vcombine.low %v6014_v56, %v6021_v62  ;;  %v2922_v31 = vshrl.u32 %v6014_v56, 16 }
  0xf1   : >> { %4769 = vmatpush3.bf16.msra.mxu1 %v4900_v37  ;;  %v2904_v35 = vor.u32 %v2903_v42, %v2900_v0  ;;  %v2914_v5 = vor.u32 %v2913_v55, %v2909_v38  ;;  %v2919_v32 = vrot.slane %v2917_v59, 5  ;;  %v2925_v39 = vshll.u32 %v6014_v56, 16  ;;  %v6069_v42 = vld [vmem:[%s5257_s11 + $0x6c] sm:$0xf] }
  0xf2   : >> { %4685 = vmatmul.mubr.bf16.gmra.mxu0 %v4101_v3  ;;  %4762 = vmatprep.subr.bf16.mxu1 %v4903_v17  ;;  %v2896_v37 = vsel %vm5296_vm10, %v2891_v4, %v2895_v54  ;;  %v2935_v21 = vshrl.u32 %v6021_v62, 16  ;;  %v4151_v28 = vrot.slane %v6014_v56, 9  ;;  %v3248_v46 = vrot.slane %v6021_v62, 5  ;;  %v6035_v3 = vld [vmem:[%s5257_s11 + $0x5c] sm:$0x1] }
  0xf3   : >> { %4733 = vmatpush3.bf16.msra.mxu0 %v4903_v17  ;;  %4688 = vmatprep.mubr.bf16.mxu0 %v4102_v43  ;;  %v4133_v20 = vcombine.low %v2886_v9, %v2896_v37  ;;  %v2905_v14 = vrot.slane %v2904_v35, 4  ;;  %v2915_v11 = vrot.slane %v2914_v5, 4  ;;  %v2924_v44 = vrot.slane %v2922_v31, 4  ;;  %v6058_v54 = vld [vmem:[%s5257_s11 + $0x68] sm:$0x1] }
  0xf4   : >> { %4734 = vmatprep.subr.bf16.mxu0 %v4904_v40  ;;  %v6045_v41 = vrot.slane %v3248_v46, 4  ;;  %v2927_v15 = vrot.slane %v2925_v39, 5  ;;  %v2931_v36 = vshll.u32 %v6021_v62, 16  ;;  %v2937_v53 = vrot.slane %v2935_v21, 4  ;;  %v6074_v4 = vld [vmem:[%s5257_s11 + $0x70] sm:$0xf] }
  0xf5   : >> { %4770 = vmatpush3.bf16.msra.mxu1 %v4903_v17  ;;  %v2910_v43 = vsel %vm5296_vm10, %v2905_v14, %v2909_v38  ;;  %v2920_v30 = vsel %vm5296_vm10, %v2915_v11, %v2919_v32  ;;  %v2941_v17 = vshll.u32 %v6035_v3, 16  ;;  %v3251_v12 = vrot.slane %v6035_v3, 5  ;;  %v6079_v39 = vld [vmem:[%s5257_s11 + $0x74] sm:$0x1] }
  0xf6   : >> { %4717 = vmatmul.mubr.bf16.gmra.mxu1 %v4133_v20  ;;  %4763 = vmatprep.subr.bf16.mxu1 %v4904_v40  ;;  %v4134_v58 = vcombine.low %v2910_v43, %v2920_v30  ;;  %v2928_v6 = vor.u32 %v2927_v15, %v2924_v44  ;;  %v2933_v48 = vrot.slane %v2931_v36, 5  ;;  %v4104_v27 = vcombine.low %v6041_v63, %v6049_v24  ;;  %v4911_v15 = vld [vmem:[%s6375_s3 + $0x208] sm:$0xff]  }
  0xf7   : >> { %4735 = vmatpush3.bf16.msra.mxu0 %v4904_v40  ;;  %v2943_v19 = vrot.slane %v2941_v17, 5  ;;  %v2946_v47 = vshrl.u32 %v6041_v63, 16  ;;  %v2949_v60 = vshll.u32 %v6041_v63, 16  ;;  %v2959_v0 = vshrl.u32 %v6049_v24, 16 }
  0xf8   : >> { %4736 = vmatprep.subr.bf16.mxu0 %v4907_v10  ;;  %4720 = vmatprep.mubr.bf16.mxu1 %v4134_v58  ;;  %v2929_v38 = vrot.slane %v2928_v6, 4  ;;  %v2938_v55 = vor.u32 %v2937_v53, %v2933_v48  ;;  %v2955_v59 = vshll.u32 %v6049_v24, 16  ;;  %v2965_v9 = vshll.u32 %v6058_v54, 16 }
  0xf9   : >> { %4771 = vmatpush3.bf16.msra.mxu1 %v4904_v40  ;;  %v2948_v31 = vrot.slane %v2946_v47, 4  ;;  %v2951_v35 = vrot.slane %v2949_v60, 5  ;;  %v2961_v5 = vrot.slane %v2959_v0, 4  ;;  %v4105_v32 = vcombine.low %v6069_v42, %v6074_v4 }
  0xfa   : >> { %4689 = vmatmul.mubr.bf16.gmra.mxu0 %v4103_v50  ;;  %4764 = vmatprep.subr.bf16.mxu1 %v4907_v10  ;;  %v2934_v40 = vsel %vm5296_vm10, %v2929_v38, %v2933_v48  ;;  %v2939_v37 = vrot.slane %v2938_v55, 4  ;;  %v2957_v21 = vrot.slane %v2955_v59, 5  ;;  %v2967_v20 = vrot.slane %v2965_v9, 5  ;;  %v4912_v38 = vld [vmem:[%s6375_s3 + $0x200] sm:$0xff]  }
  0xfb   : >> { %4737 = vmatpush3.bf16.msra.mxu0 %v4907_v10  ;;  %4692 = vmatprep.mubr.bf16.mxu0 %v4104_v27  ;;  %v2952_v14 = vor.u32 %v2951_v35, %v2948_v31  ;;  %v2970_v50 = vshrl.u32 %v6069_v42, 16  ;;  %v2973_v11 = vshll.u32 %v6069_v42, 16  ;;  %v2983_v44 = vshrl.u32 %v6074_v4, 16 }
  0xfc   : >> { %4738 = vmatprep.subr.bf16.mxu0 %v4908_v16  ;;  %v2944_v36 = vsel %vm5296_vm10, %v2939_v37, %v2943_v19  ;;  %v2962_v53 = vor.u32 %v2961_v5, %v2957_v21  ;;  %v2979_v43 = vshll.u32 %v6074_v4, 16  ;;  %v2989_v30 = vshll.u32 %v6079_v39, 16 }
  0xfd   : >> { %4772 = vmatpush3.bf16.msra.mxu1 %v4907_v10  ;;  %v4135_v17 = vcombine.low %v2934_v40, %v2944_v36  ;;  %v2953_v58 = vrot.slane %v2952_v14, 4  ;;  %v2972_v6 = vrot.slane %v2970_v50, 4  ;;  %v2975_v48 = vrot.slane %v2973_v11, 5 }
  0xfe   : >> { %4765 = vmatprep.subr.bf16.mxu1 %v4908_v16  ;;  %v2963_v27 = vrot.slane %v2962_v53, 4  ;;  %v2981_v47 = vrot.slane %v2979_v43, 5  ;;  %v2985_v60 = vrot.slane %v2983_v44, 4  ;;  %v2991_v0 = vrot.slane %v2989_v30, 5 }
  0xff   : >> { %4739 = vmatpush3.bf16.msra.mxu0 %v4908_v16  ;;  %4721 = vmatmul.mubr.bf16.gmra.mxu1 %v4135_v17  ;;  %v2958_v19 = vsel %vm5296_vm10, %v2953_v58, %v2957_v21  ;;  %v2976_v10 = vor.u32 %v2975_v48, %v2972_v6  ;;  %v4146_v55 = vrot.slane %v5885_v18, 9  ;;  %v3213_v59 = vrot.slane %v5894_v33, 5 }
 0x100   : >> { %4740 = vmatprep.subr.bf16.mxu0 %v4911_v15  ;;  %v2968_v9 = vsel %vm5296_vm10, %v2963_v27, %v2967_v20  ;;  %v2986_v31 = vor.u32 %v2985_v60, %v2981_v47  ;;  %v3216_v35 = vrot.slane %v5898_v61, 5  ;;  %v4150_v5 = vrot.slane %v5988_v1, 9 }
 0x101   : >> { %4773 = vmatpush3.bf16.msra.mxu1 %v4908_v16  ;;  %v4136_v40 = vcombine.low %v2958_v19, %v2968_v9  ;;  %v2977_v37 = vrot.slane %v2976_v10, 4  ;;  %v3214_v21 = vsel %vm5476_vm13, %v4146_v55, %v3213_v59  ;;  %v3215_v14 = vrot.slane %v3213_v59, 4 }
 0x102   : >> { %4693 = vmatmul.mubr.bf16.gmra.mxu0 %v4105_v32  ;;  %4766 = vmatprep.subr.bf16.mxu1 %v4911_v15  ;;  %v2987_v18 = vrot.slane %v2986_v31, 4  ;;  %v3241_v33 = vrot.slane %v5994_v57, 5  ;;  %v3244_v16 = vrot.slane %v6006_v23, 5  ;;  %v4147_v20 = vrot.slane %v5913_v26, 9 }
 0x103   : >> { %4741 = vmatpush3.bf16.msra.mxu0 %v4911_v15  ;;  %4724 = vmatprep.mubr.bf16.mxu1 %v4136_v40  ;;  %v2982_v61 = vsel %vm5296_vm10, %v2977_v37, %v2981_v47  ;;  %v3217_v1 = vsel %vm5476_vm13, %v3215_v14, %v3216_v35  ;;  %v3220_v32 = vrot.slane %v5920_v25, 5  ;;  %v3223_v50 = vrot.slane %v5928_v45, 5 }
 0x104   : >> { %4742 = vmatprep.subr.bf16.mxu0 %v4912_v38  ;;  %v2992_v11 = vsel %vm5296_vm10, %v2987_v18, %v2991_v0  ;;  %v4170_v57 = vcombine.low %v3214_v21, %v3217_v1  ;;  %v3242_v26 = vsel %vm5476_vm13, %v4150_v5, %v3241_v33  ;;  %v3243_v23 = vrot.slane %v3241_v33, 4 }
 0x105   : >> { %4774 = vmatpush3.bf16.msra.mxu1 %v4911_v15  ;;  %v4137_v44 = vcombine.low %v2982_v61, %v2992_v11  ;;  %v3221_v36 = vsel %vm5476_vm13, %v4147_v20, %v3220_v32  ;;  %v3222_v53 = vrot.slane %v3220_v32, 4  ;;  %v3249_v7 = vsel %vm5476_vm13, %v4151_v28, %v3248_v46 }
 0x106   : >> { %4767 = vmatprep.subr.bf16.mxu1 %v4912_v38  ;;  %4744 = vmatprep.mubr.bf16.mxu0 %v4170_v57  ;;  %v3245_v25 = vsel %vm5476_vm13, %v3243_v23, %v3244_v16  ;;  %v4148_v45 = vrot.slane %v5933_v51, 9  ;;  %v3227_v15 = vrot.slane %v5936_v22, 5  ;;  %v3252_v62 = vsel %vm5476_vm13, %v6045_v41, %v3251_v12 }
 0x107   : >> { %4743 = vmatpush3.bf16.msra.mxu0 %v4912_v38  ;;  %4725 = vmatmul.mubr.bf16.gmra.mxu1 %v4137_v44  ;;  %v4174_v43 = vcombine.low %v3242_v26, %v3245_v25  ;;  %v3224_v30 = vsel %vm5476_vm13, %v3222_v53, %v3223_v50  ;;  %v3230_v56 = vrot.slane %v5958_v52, 5  ;;  %v4152_v22 = vrot.slane %v6041_v63, 9 }
 0x108   : >> { %v4171_v17 = vcombine.low %v3221_v36, %v3224_v30  ;;  %v3228_v51 = vsel %vm5476_vm13, %v4148_v45, %v3227_v15  ;;  %v3229_v28 = vrot.slane %v3227_v15, 4  ;;  %v3255_v46 = vrot.slane %v6049_v24, 5 }
 0x109   : >> { %4775 = vmatpush3.bf16.msra.mxu1 %v4912_v38  ;;  %4752 = vmatprep.mubr.bf16.mxu1 %v4174_v43  ;;  %v3258_v58 = vrot.slane %v6058_v54, 5  ;;  %v4149_v3 = vrot.slane %v5964_v8, 9  ;;  %v3234_v6 = vrot.slane %v5972_v2, 5  ;;  %v4175_v41 = vcombine.low %v3249_v7, %v3252_v62 }
 0x10a   : >> { %4745 = vmatmul.mubr.bf16.vlgmr.msra.gmra.mxu0 %v4171_v17  ;;  %v3231_v52 = vsel %vm5476_vm13, %v3229_v28, %v3230_v56  ;;  %v3237_v12 = vrot.slane %v5976_v13, 5  ;;  %v3262_v48 = vrot.slane %v6074_v4, 5  ;;  %v3256_v63 = vsel %vm5476_vm13, %v4152_v22, %v3255_v46 }
 0x10b   : >> { %v4172_v27 = vcombine.low %v3228_v51, %v3231_v52  ;;  %v3257_v24 = vrot.slane %v3255_v46, 4  ;;  %v4153_v54 = vrot.slane %v6069_v42, 9  ;;  %v3235_v8 = vsel %vm5476_vm13, %v4149_v3, %v3234_v6 }
 0x10c   : >> { %v3236_v2 = vrot.slane %v3234_v6, 4  ;;  %v3264_v47 = vrot.slane %v3262_v48, 4  ;;  %v3265_v60 = vrot.slane %v6079_v39, 5 }
 0x10d   : >> { %4748 = vmatprep.mubr.bf16.mxu0 %v4172_v27  ;;  %v3259_v13 = vsel %vm5476_vm13, %v3257_v24, %v3258_v58  ;;  %v3263_v42 = vsel %vm5476_vm13, %v4153_v54, %v3262_v48 }
 0x10e   : >> { %v4176_v0 = vcombine.low %v3256_v63, %v3259_v13  ;;  %v3238_v4 = vsel %vm5476_vm13, %v3236_v2, %v3237_v12  ;;  %v3266_v10 = vsel %vm5476_vm13, %v3264_v47, %v3265_v60 }
 0x10f   : >> { %4753 = vmatmul.mubr.bf16.vlgmr.msra.gmra.mxu1 %v4175_v41  ;;  %v4173_v19 = vcombine.low %v3235_v8, %v3238_v4  ;;  %v4177_v38 = vcombine.low %v3263_v42, %v3266_v10 }
 0x110   : >> { %4756 = vmatprep.mubr.bf16.mxu1 %v4176_v0 }
 0x112   : >> { %4749 = vmatmul.mubr.bf16.gmra.mxu0 %v4173_v19 }
 0x117   : >> { %4757 = vmatmul.mubr.bf16.gmra.mxu1 %v4177_v38 }
 0x144   : >> { %v4490_v39 = vpop.f32.mrf.mxu0 }
 0x145   : >> { %v4522_v55 = vpop.f32.mrf.mxu1 }
 0x146   : >> { %v1286_v59 = vadd.f32 %v4522_v55, %v4490_v39  ;;  %v1084_v9 = vpop.f32.mrf.mxu0 }
 0x147   : >> { %v1277_v31 = vpop.f32.mrf.mxu1 }
 0x148   : >> { %v1278_v35 = vadd.f32 %v1277_v31, %v1084_v9  ;;  %v4491_v5 = vpop.f32.mrf.mxu0 }
 0x149   : >> { %v4523_v40 = vpop.f32.mrf.mxu1 }
 0x14a   : >> { %v1289_v37 = vadd.f32 %v4523_v40, %v4491_v5  ;;  %v1087_v21 = vpop.f32.mrf.mxu0 }
 0x14b   : >> { %v1280_v14 = vpop.f32.mrf.mxu1 }
 0x14c   : >> { %v1281_v18 = vadd.f32 %v1280_v14, %v1087_v21  ;;  %v4494_v33 = vpop.f32.mrf.mxu0 }
 0x14d   : >> { %v4526_v16 = vpop.f32.mrf.mxu1 }
 0x14e   : >> { %v1302_v20 = vadd.f32 %v4526_v16, %v4494_v33  ;;  %v1100_v29 = vpop.f32.mrf.mxu0 }
 0x14f   : >> { %v1293_v61 = vpop.f32.mrf.mxu1 }
 0x150   : >> { %v1294_v1 = vadd.f32 %v1293_v61, %v1100_v29  ;;  %v4495_v32 = vpop.f32.mrf.mxu0 }
 0x151   : >> { %v4527_v50 = vpop.f32.mrf.mxu1 }
 0x152   : >> { %v1305_v11 = vadd.f32 %v4527_v50, %v4495_v32  ;;  %v1103_v57 = vpop.f32.mrf.mxu0 }
 0x153   : >> { %v1296_v26 = vpop.f32.mrf.mxu1 }
 0x154   : >> { %v1297_v23 = vadd.f32 %v1296_v26, %v1103_v57 }
 0x155   : >> { %v4530_v44 = vpop.f32.mrf.mxu1 }
 0x156   : >> { %v4498_v36 = vpop.f32.mrf.mxu0 }
 0x157   : >> { %v1309_v53 = vpop.f32.mrf.mxu1  ;;  %v1318_v25 = vadd.f32 %v4530_v44, %v4498_v36 }
 0x158   : >> { %v1116_v7 = vpop.f32.mrf.mxu0 }
 0x159   : >> { %v4531_v45 = vpop.f32.mrf.mxu1  ;;  %v1310_v15 = vadd.f32 %v1309_v53, %v1116_v7 }
 0x15a   : >> { %v4499_v43 = vpop.f32.mrf.mxu0 }
 0x15b   : >> { %v1312_v30 = vpop.f32.mrf.mxu1  ;;  %v1321_v62 = vadd.f32 %v4531_v45, %v4499_v43 }
 0x15c   : >> { %v1119_v56 = vpop.f32.mrf.mxu0 }
 0x15d   : >> { %v4534_v17 = vpop.f32.mrf.mxu1  ;;  %v1313_v51 = vadd.f32 %v1312_v30, %v1119_v56 }
 0x15f   : >> { %v1325_v28 = vpop.f32.mrf.mxu1 }
 0x160   : >> { %v4502_v22 = vpop.f32.mrf.mxu0 }
 0x161   : >> { %v4535_v46 = vpop.f32.mrf.mxu1  ;;  %v1334_v58 = vadd.f32 %v4534_v17, %v4502_v22 }
 0x162   : >> { %v1132_v3 = vpop.f32.mrf.mxu0 }
 0x163   : >> { %v1328_v6 = vpop.f32.mrf.mxu1  ;;  %v1326_v41 = vadd.f32 %v1325_v28, %v1132_v3 }
 0x164   : >> { %v4503_v52 = vpop.f32.mrf.mxu0 }
 0x165   : >> { %v4586_v12 = vpop.f32.mrf.mxu1  ;;  %v1337_v48 = vadd.f32 %v4535_v46, %v4503_v52 }
 0x166   : >> { %v1135_v27 = vpop.f32.mrf.mxu0 }
 0x167   : >> { %v1792_v63 = vpop.f32.mrf.mxu1  ;;  %v6164_v24 = vadd.f32 %v1328_v6, %v1135_v27 }
 0x168   : >> { %v4554_v54 = vpop.f32.mrf.mxu0 }
 0x169   : >> { %v4587_v8 = vpop.f32.mrf.mxu1  ;;  %v1603_v2 = vadd.f32 %v4554_v54, %v1286_v59 }
 0x16a   : >> { %v1538_v47 = vpop.f32.mrf.mxu0 }
 0x16b   : >> { %v1795_v60 = vpop.f32.mrf.mxu1  ;;  %v6166_v13 = vadd.f32 %v4586_v12, %v1603_v2  ;;  %v1601_v0 = vadd.f32 %v1538_v47, %v1278_v35 }
 0x16c   : >> { %v4555_v4 = vpop.f32.mrf.mxu0 }
 0x16d   : >> { %v4590_v19 = vpop.f32.mrf.mxu1  ;;  %v6168_v42 = vadd.f32 %v1792_v63, %v1601_v0  ;;  %v1604_v10 = vadd.f32 %v4555_v4, %v1289_v37 }
 0x16e   : >> { %v1541_v38 = vpop.f32.mrf.mxu0 }
 0x16f   : >> { %v1808_v39 = vpop.f32.mrf.mxu1  ;;  %v6170_v55 = vadd.f32 %v4587_v8, %v1604_v10  ;;  %v1602_v9 = vadd.f32 %v1541_v38, %v1281_v18 }
 0x170   : >> { %v4558_v31 = vpop.f32.mrf.mxu0 }
 0x171   : >> { %v4591_v5 = vpop.f32.mrf.mxu1  ;;  %v6172_v40 = vadd.f32 %v1795_v60, %v1602_v9  ;;  %v1607_v59 = vadd.f32 %v4558_v31, %v1302_v20 }
 0x172   : >> { %v1554_v21 = vpop.f32.mrf.mxu0 }
 0x173   : >> { %v1811_v14 = vpop.f32.mrf.mxu1  ;;  %v6174_v33 = vadd.f32 %v4590_v19, %v1607_v59  ;;  %v1605_v35 = vadd.f32 %v1554_v21, %v1294_v1 }
 0x174   : >> { %v4559_v16 = vpop.f32.mrf.mxu0 }
 0x175   : >> { %v4594_v29 = vpop.f32.mrf.mxu1  ;;  %v6176_v61 = vadd.f32 %v1808_v39, %v1605_v35  ;;  %v1608_v37 = vadd.f32 %v4559_v16, %v1305_v11 }
 0x176   : >> { %v1557_v32 = vpop.f32.mrf.mxu0 }
 0x177   : >> { %v1824_v50 = vpop.f32.mrf.mxu1  ;;  %v6178_v57 = vadd.f32 %v4591_v5, %v1608_v37  ;;  %v1606_v18 = vadd.f32 %v1557_v32, %v1297_v23 }
 0x178   : >> { %v4562_v26 = vpop.f32.mrf.mxu0 }
 0x179   : >> { %v4595_v44 = vpop.f32.mrf.mxu1  ;;  %v6180_v36 = vadd.f32 %v1811_v14, %v1606_v18  ;;  %v1611_v20 = vadd.f32 %v4562_v26, %v1318_v25 }
 0x17a   : >> { %v1570_v53 = vpop.f32.mrf.mxu0 }
 0x17b   : >> { %v1827_v7 = vpop.f32.mrf.mxu1  ;;  %v6182_v45 = vadd.f32 %v4594_v29, %v1611_v20  ;;  %v1609_v1 = vadd.f32 %v1570_v53, %v1310_v15 }
 0x17c   : >> { %v4563_v43 = vpop.f32.mrf.mxu0 }
 0x17d   : >> { %v4598_v30 = vpop.f32.mrf.mxu1  ;;  %v6184_v56 = vadd.f32 %v1824_v50, %v1609_v1  ;;  %v1612_v11 = vadd.f32 %v4563_v43, %v1321_v62 }
 0x17e   : >> { %v1573_v17 = vpop.f32.mrf.mxu0 }
 0x17f   : >> { %v1840_v28 = vpop.f32.mrf.mxu1  ;;  %v6186_v22 = vadd.f32 %v4595_v44, %v1612_v11  ;;  %v1610_v23 = vadd.f32 %v1573_v17, %v1313_v51 }
 0x180   : >> { %v4566_v46 = vpop.f32.mrf.mxu0 }
 0x181   : >> { %v4599_v3 = vpop.f32.mrf.mxu1  ;;  %v6188_v6 = vadd.f32 %v1827_v7, %v1610_v23  ;;  %v1615_v25 = vadd.f32 %v4566_v46, %v1334_v58 }
 0x182   : >> { %v1586_v52 = vpop.f32.mrf.mxu0 }
 0x183   : >> { %v1843_v12 = vpop.f32.mrf.mxu1  ;;  %v6190_v27 = vadd.f32 %v4598_v30, %v1615_v25  ;;  %v1613_v15 = vadd.f32 %v1586_v52, %v1326_v41 }
 0x184   : >> { %v4567_v63 = vpop.f32.mrf.mxu0 }
 0x185   : >> { %v6192_v54 = vpop.f32.mrf.mxu1  ;;  %v6194_v8 = vadd.f32 %v1840_v28, %v1613_v15  ;;  %v1616_v62 = vadd.f32 %v4567_v63, %v1337_v48 }
 0x186   : >> { %v1589_v2 = vpop.f32.mrf.mxu0 }
 0x187   : >> { %v6196_v47 = vpop.f32.mrf.mxu1  ;;  %v6198_v51 = vadd.f32 %v4599_v3, %v1616_v62  ;;  %v1614_v60 = vadd.f32 %v1589_v2, %v6164_v24 }
 0x188   : >> { %v4618_v0 = vpop.f32.mrf.mxu0 }
 0x189   : >> { %v6201_v58 = vpop.f32.mrf.mxu1  ;;  %v6203_v4 = vadd.f32 %v1843_v12, %v1614_v60 }
 0x18a   : >> { %v2194_v19 = vpop.f32.mrf.mxu0 }
 0x18b   : >> { %v6205_v41 = vpop.f32.mrf.mxu1 }
 0x18c   : >> { %v4619_v10 = vpop.f32.mrf.mxu0 }
 0x18d   : >> { %v6207_v38 = vpop.f32.mrf.mxu1 }
 0x18e   : >> { %v2197_v39 = vpop.f32.mrf.mxu0 }
 0x18f   : >> { %v6209_v48 = vpop.f32.mrf.mxu1 }
 0x190   : >> { %v4622_v9 = vpop.f32.mrf.mxu0 }
 0x191   : >> { %v6211_v31 = vpop.f32.mrf.mxu1 }
 0x192   : >> { %v2210_v5 = vpop.f32.mrf.mxu0 }
 0x193   : >> { %v6213_v59 = vpop.f32.mrf.mxu1 }
 0x194   : >> { %v4623_v24 = vpop.f32.mrf.mxu0 }
 0x195   : >> { %v6215_v14 = vpop.f32.mrf.mxu1 }
 0x196   : >> { %v2213_v21 = vpop.f32.mrf.mxu0 }
 0x197   : >> { %v6217_v16 = vpop.f32.mrf.mxu1 }
 0x198   : >> { %v4626_v35 = vpop.f32.mrf.mxu0 }
 0x199   : >> { %v6219_v37 = vpop.f32.mrf.mxu1 }
 0x19a   : >> { %v2226_v29 = vpop.f32.mrf.mxu0 }
 0x19b   : >> { %v6221_v50 = vpop.f32.mrf.mxu1 }
 0x19c   : >> { %v4627_v32 = vpop.f32.mrf.mxu0 }
 0x19e   : >> { %v2229_v18 = vpop.f32.mrf.mxu0 }
 0x1a0   : >> { %v6223_v26 = vpop.f32.mrf.mxu1 }
 0x1a1   : >> { %6397 = vst [vmem:[#allocation5_spill] sm:$0xff] %v6223_v26 }
 0x1a2   : >> { %v4630_v44 = vpop.f32.mrf.mxu0  ;;  %v6225_v20 = vpop.f32.mrf.mxu1 }
 0x1a3   : >> { %6398 = vst [vmem:[#allocation6_spill] sm:$0xff] %v6225_v20 }
 0x1a4   : >> { %v2242_v53 = vpop.f32.mrf.mxu0  ;;  %v6227_v7 = vpop.f32.mrf.mxu1 }
 0x1a5   : >> { %6399 = vst [vmem:[#allocation7_spill] sm:$0xff] %v6227_v7 }
 0x1a6   : >> { %v4631_v1 = vpop.f32.mrf.mxu0  ;;  %v6229_v30 = vpop.f32.mrf.mxu1 }
 0x1a7   : >> { %6400 = vst [vmem:[#allocation8_spill] sm:$0xff] %v6229_v30 }
 0x1a8   : >> { %v2245_v43 = vpop.f32.mrf.mxu0 }
 0x1aa   : >> { %v4682_v11 = vpop.f32.mrf.mxu0 }
 0x1ac   : >> { %v6231_v17 = vpop.f32.mrf.mxu1  ;;  %v2722_v28 = vpop.f32.mrf.mxu0 }
 0x1ad   : >> { %6401 = vst [vmem:[#allocation9_spill] sm:$0xff] %v6231_v17  ;;  %v2259_v17 = vadd.f32 %v4618_v0, %v6166_v13  ;;  %v2264_v13 = vadd.f32 %v4623_v24, %v6178_v57 }
 0x1ae   : >> { %v6233_v23 = vpop.f32.mrf.mxu1  ;;  %v4683_v46 = vpop.f32.mrf.mxu0 }
 0x1af   : >> { %6402 = vst [vmem:[#allocation10_spill] sm:$0xff] %v6233_v23  ;;  %v2533_v0 = vadd.f32 %v6192_v54, %v2259_v17  ;;  %v2266_v54 = vadd.f32 %v2229_v18, %v6188_v6 }
 0x1b0   : >> { %v6235_v3 = vpop.f32.mrf.mxu1  ;;  %v2725_v25 = vpop.f32.mrf.mxu0 }
 0x1b1   : >> { %6403 = vst [vmem:[#allocation11_spill] sm:$0xff] %v6235_v3 }
 0x1b2   : >> { %v6237_v52 = vpop.f32.mrf.mxu1  ;;  %v4686_v12 = vpop.f32.mrf.mxu0 }
 0x1b3   : >> { %6404 = vst [vmem:[#allocation12_spill] sm:$0xff] %v6237_v52 }
 0x1b4   : >> { %v2738_v15 = vpop.f32.mrf.mxu0 }
 0x1b6   : >> { %v6239_v63 = vpop.f32.mrf.mxu1  ;;  %v4687_v62 = vpop.f32.mrf.mxu0 }
 0x1b7   : >> { %6405 = vst [vmem:[#allocation13_spill] sm:$0xff] %v6239_v63 }
 0x1b8   : >> { %v6241_v2 = vpop.f32.mrf.mxu1  ;;  %v6243_v60 = vpop.f32.mrf.mxu0 }
 0x1b9   : >> { %6406 = vst [vmem:[#allocation14_spill] sm:$0xff] %v6241_v2  ;;  %6407 = vst [vmem:[#allocation15_spill] sm:$0xff] %v6243_v60  ;;  %v2257_v2 = vadd.f32 %v2194_v19, %v6168_v42  ;;  %v2260_v60 = vadd.f32 %v4619_v10, %v6170_v55  ;;  %v2267_v42 = vadd.f32 %v4626_v35, %v6182_v45  ;;  %v6414_v35 = vld [vmem:[#allocation6_spill] sm:$0xff] }
 0x1ba   : >> { %v6245_v49 = vpop.f32.mrf.mxu1  ;;  %v4690_v34 = vpop.f32.mrf.mxu0  ;;  %v2269_v45 = vadd.f32 %v2242_v53, %v6194_v8 }
 0x1bb   : >> { %6408 = vst [vmem:[#allocation16_spill] sm:$0xff] %v6245_v49  ;;  %v2258_v49 = vadd.f32 %v2197_v39, %v6172_v40  ;;  %v2531_v19 = vadd.f32 %v6196_v47, %v2257_v2  ;;  %v2534_v10 = vadd.f32 %v6201_v58, %v2260_v60  ;;  %v2541_v6 = vadd.f32 %v6215_v14, %v2267_v42 }
 0x1bc   : >> { %v6247_v30 = vpop.f32.mrf.mxu1  ;;  %v2754_v7 = vpop.f32.mrf.mxu0 }
 0x1bd   : >> { %6409 = vst [vmem:[#allocation17_spill] sm:$0xff] %v6247_v30  ;;  %v2532_v57 = vadd.f32 %v6205_v41, %v2258_v49  ;;  %v2785_v41 = vadd.f32 %v2722_v28, %v2531_v19  ;;  %v2795_v28 = vadd.f32 %v4690_v34, %v2541_v6 }
 0x1be   : >> { %v6249_v23 = vpop.f32.mrf.mxu0  ;;  %v6422_v34 = vld [vmem:[#allocation13_spill] sm:$0xff] }
 0x1bf   : >> { %6410 = vst [vmem:[#allocation18_spill] sm:$0xff] %v6249_v23  ;;  %v6251_v3 = vpop.f32.mrf.mxu1  ;;  %v2263_v23 = vadd.f32 %v4622_v9, %v6174_v33  ;;  %v2265_v33 = vadd.f32 %v2226_v29, %v6184_v56  ;;  %v2538_v56 = vadd.f32 %v6211_v31, %v2264_v13  ;;  %v2540_v31 = vadd.f32 %v6221_v50, %v2266_v54 }
 0x1c0   : >> { %6411 = vst [vmem:[#allocation19_spill] sm:$0xff] %v6251_v3  ;;  %v2757_v52 = vpop.f32.mrf.mxu0  ;;  %v2261_v3 = vadd.f32 %v2210_v5, %v6176_v61  ;;  %v2268_v61 = vadd.f32 %v4627_v32, %v6186_v22  ;;  %v2787_v22 = vadd.f32 %v4682_v11, %v2533_v0  ;;  %v2543_v29 = vadd.f32 %v6414_v35, %v2269_v45  ;;  %v6417_v11 = vld [vmem:[#allocation11_spill] sm:$0xff] }
 0x1c1   : >> { %v6254_v20 = vpop.f32.mrf.mxu1  ;;  %v2537_v47 = vadd.f32 %v6207_v38, %v2263_v23  ;;  %v2539_v8 = vadd.f32 %v6217_v16, %v2265_v33  ;;  %v2270_v38 = vadd.f32 %v2245_v43, %v6203_v4  ;;  %v2786_v32 = vadd.f32 %v2725_v25, %v2532_v57  ;;  %v6415_v16 = vld [vmem:[#allocation9_spill] sm:$0xff]  ;;  %v6416_v4 = vld [vmem:[#allocation10_spill] sm:$0xff]  ;;  %v6419_v25 = vld [vmem:[#allocation8_spill] sm:$0xff] }
 0x1c2   : >> { %v6256_v63 = vpop.f32.mrf.mxu0  ;;  %v2535_v58 = vadd.f32 %v6209_v48, %v2261_v3  ;;  %v2542_v24 = vadd.f32 %v6219_v37, %v2268_v61  ;;  %v3187_v43 = vadd.f32 %v6416_v4, %v2785_v41  ;;  %v6423_v33 = vld [vmem:[#allocation14_spill] sm:$0xff]  ;;  %v6424_v57 = vld [vmem:[#allocation16_spill] sm:$0xff] }
 0x1c3   : >> { %6412 = vst [vmem:[#allocation20_spill] sm:$0xff] %v6256_v63  ;;  %v6261_v26 = vpop.f32.mrf.mxu1  ;;  %v2262_v63 = vadd.f32 %v2213_v21, %v6180_v36  ;;  %v2271_v36 = vadd.f32 %v4630_v44, %v6190_v27  ;;  %v2788_v27 = vadd.f32 %v4683_v46, %v2534_v10  ;;  %v2272_v21 = vadd.f32 %v4631_v1, %v6198_v51  ;;  %v6418_v46 = vld [vmem:[#allocation7_spill] sm:$0xff] }
 0x1c4   : >> { %v6263_v30 = vpop.f32.mrf.mxu0  ;;  %v3189_v44 = vadd.f32 %v6415_v16, %v2787_v22  ;;  %v2791_v37 = vadd.f32 %v4686_v12, %v2537_v47  ;;  %v2789_v53 = vadd.f32 %v2738_v15, %v2535_v58  ;;  %v2792_v51 = vadd.f32 %v4687_v62, %v2538_v56  ;;  %v6421_v62 = vld [vmem:[#allocation12_spill] sm:$0xff] }
 0x1c5   : >> { %v6271_v55 = vpop.f32.mrf.mxu1  ;;  %v2536_v49 = vadd.f32 %v6213_v59, %v2262_v63  ;;  %v6413_v59 = vld [vmem:[#allocation5_spill] sm:$0xff]  ;;  %v3190_v17 = vadd.f32 %v6417_v11, %v2788_v27  ;;  %v2793_v23 = vadd.f32 %v2754_v7, %v2539_v8  ;;  %v2546_v3 = vadd.f32 %v6418_v46, %v2272_v21 }
 0x1c6   : >> { %v6273_v40 = vpop.f32.mrf.mxu0  ;;  %v2545_v14 = vadd.f32 %v6413_v59, %v2271_v36  ;;  %v2544_v63 = vadd.f32 %v6419_v25, %v2270_v38  ;;  %v6420_v2 = vld [vmem:[#allocation18_spill] sm:$0xff]  ;;  %v2794_v12 = vadd.f32 %v2757_v52, %v2540_v31  ;;  %v3188_v13 = vadd.f32 %v6421_v62, %v2786_v32  ;;  %v6425_v36 = vld [vmem:[#allocation15_spill] sm:$0xff]  ;;  %v6428_v46 = vld [vmem:[#allocation17_spill] sm:$0xff] }
 0x1c7   : >> { %v6283_v39 = vpop.f32.mrf.mxu1  ;;  %v2796_v60 = vadd.f32 %v6420_v2, %v2542_v24  ;;  %v3193_v7 = vadd.f32 %v6422_v34, %v2791_v37  ;;  %v3191_v61 = vadd.f32 %v6423_v33, %v2789_v53  ;;  %v3194_v54 = vadd.f32 %v6424_v57, %v2792_v51  ;;  %v6426_v52 = vld [vmem:[#allocation19_spill] sm:$0xff] }
 0x1c8   : >> { %v6285_v9 = vpop.f32.mrf.mxu0  ;;  %v2790_v45 = vadd.f32 %v6425_v36, %v2536_v49  ;;  %v3197_v58 = vadd.f32 %v6426_v52, %v2795_v28  ;;  %v3195_v56 = vadd.f32 %v6254_v20, %v2793_v23  ;;  %v3196_v8 = vadd.f32 %v6271_v55, %v2794_v12 }
 0x1c9   : >> { %v6293_v5 = vpop.f32.mrf.mxu1  ;;  %v3198_v27 = vadd.f32 %v6261_v26, %v2796_v60  ;;  %v2797_v49 = vadd.f32 %v6263_v30, %v2543_v29  ;;  %v2800_v20 = vadd.f32 %v6273_v40, %v2546_v3  ;;  %v2798_v16 = vadd.f32 %v6285_v9, %v2544_v63 }
 0x1ca   : >> { %v4746_v48 = vpop.f32.mrf.mxu0  ;;  %v6427_v24 = vld [vmem:[#allocation20_spill] sm:$0xff]  ;;  %v3192_v3 = vadd.f32 %v6428_v46, %v2790_v45 }
 0x1cb   : >> { %v6304_v18 = vpop.f32.mrf.mxu1  ;;  %v3463_v0 = vadd.f32 %v4746_v48, %v3189_v44  ;;  %v2799_v21 = vadd.f32 %v6427_v24, %v2545_v14 }
 0x1cc   : >> { %v3398_v1 = vpop.f32.mrf.mxu0 }
 0x1cd   : >> { %v6309_v50 = vpop.f32.mrf.mxu1  ;;  %v3461_v19 = vadd.f32 %v3398_v1, %v3187_v43  ;;  %v3586_v37 = vmul.f32 %v3463_v0, %v3463_v0 }
 0x1ce   : >> { %v4747_v15 = vpop.f32.mrf.mxu0 }
 0x1cf   : >> { %v4754_v42 = vpop.f32.mrf.mxu1  ;;  %v3464_v10 = vadd.f32 %v4747_v15, %v3190_v17  ;;  %v3584_v48 = vmul.f32 %v3461_v19, %v3461_v19 }
 0x1d0   : >> { %v3401_v47 = vpop.f32.mrf.mxu0  ;;  %v3471_v44 = vadd.f32 %v4754_v42, %v3197_v58 }
 0x1d1   : >> { %v3430_v22 = vpop.f32.mrf.mxu1  ;;  %v4282_v6 = vpack.c.bf16 %v3464_v10, %v3463_v0  ;;  %v3462_v41 = vadd.f32 %v3401_v47, %v3188_v13  ;;  %v3587_v1 = vmul.f32 %v3464_v10, %v3464_v10  ;;  %v3201_v13 = vadd.f32 %v6283_v39, %v2799_v21 }
 0x1d2   : >> { %v4750_v38 = vpop.f32.mrf.mxu0  ;;  %v3469_v51 = vadd.f32 %v3430_v22, %v3195_v56 }
 0x1d3   : >> { %4321 = vst [vmem:[%s6321_s17 + $0x8] sm:$0xff] %v4282_v6   ;;  %v4755_v31 = vpop.f32.mrf.mxu1  ;;  %v4277_v59 = vpack.c.bf16 %v3462_v41, %v3461_v19  ;;  %v3562_v35 = vadd.f32 %v3462_v41, %v3461_v19  ;;  %v3585_v32 = vmul.f32 %v3462_v41, %v3462_v41  ;;  %v3467_v9 = vadd.f32 %v4750_v38, %v3193_v7 }
 0x1d4   : >> { %v6332_v26 = vadd.f32 %v4755_v31, %v3198_v27  ;;  %v3414_v55 = vpop.f32.mrf.mxu0  ;;  %v3199_v19 = vadd.f32 %v6293_v5, %v2797_v49  ;;  %v3592_v27 = vmul.f32 %v3469_v51, %v3469_v51 }
 0x1d5   : >> { %4278 = vst [vmem:[%s6321_s17] sm:$0xff] %v4277_v59   ;;  %v3563_v14 = vadd.f32 %v3562_v35, %v3463_v0  ;;  %v3600_v30 = vadd.f32 %v3585_v32, %v3584_v48  ;;  %v3433_v29 = vpop.f32.mrf.mxu1  ;;  %v3465_v53 = vadd.f32 %v3414_v55, %v3191_v61  ;;  %v3202_v0 = vadd.f32 %v6304_v18, %v2800_v20 }
 0x1d6   : >> { %v4302_v4 = vpack.c.bf16 %v6332_v26, %v3471_v44  ;;  %v3470_v43 = vadd.f32 %v3433_v29, %v3196_v8  ;;  %v4751_v11 = vpop.f32.mrf.mxu0  ;;  %v3590_v58 = vmul.f32 %v3467_v9, %v3467_v9  ;;  %v3594_v48 = vmul.f32 %v3471_v44, %v3471_v44 }
 0x1d7   : >> { %v3601_v40 = vadd.f32 %v3600_v30, %v3586_v37  ;;  %v4758_v17 = vpop.f32.mrf.mxu1  ;;  %v3564_v28 = vadd.f32 %v3563_v14, %v3464_v10  ;;  %v3468_v23 = vadd.f32 %v4751_v11, %v3194_v54  ;;  %v3588_v60 = vmul.f32 %v3465_v53, %v3465_v53 }
 0x1d8   : >> { %4325 = vst [vmem:[%s6321_s17 + $0x28] sm:$0xff] %v4302_v4   ;;  %v4297_v25 = vpack.c.bf16 %v3470_v43, %v3469_v51  ;;  %v3417_v63 = vpop.f32.mrf.mxu0  ;;  %v3200_v10 = vadd.f32 %v6309_v50, %v2798_v16  ;;  %v3475_v33 = vadd.f32 %v4758_v17, %v3201_v13  ;;  %v3593_v21 = vmul.f32 %v3470_v43, %v3470_v43 }
 0x1d9   : >> { %v3565_v2 = vadd.f32 %v3564_v28, %v3465_v53  ;;  %v3602_v12 = vadd.f32 %v3601_v40, %v3587_v1  ;;  %v3446_v15 = vpop.f32.mrf.mxu1  ;;  %v4292_v62 = vpack.c.bf16 %v3468_v23, %v3467_v9  ;;  %v3466_v42 = vadd.f32 %v3417_v63, %v3192_v3 }
 0x1da   : >> { %4324 = vst [vmem:[%s6321_s17 + $0x20] sm:$0xff] %v4297_v25   ;;  %v3473_v45 = vadd.f32 %v3446_v15, %v3199_v19  ;;  %v3591_v22 = vmul.f32 %v3468_v23, %v3468_v23  ;;  %v3595_v35 = vmul.f32 %v6332_v26, %v6332_v26  ;;  %v6430_v15 = vld [vmem:[#allocation3_spill] sm:$0xff] }
 0x1db   : >> { %v3603_v34 = vadd.f32 %v3602_v12, %v3588_v60  ;;  %4323 = vst [vmem:[%s6321_s17 + $0x18] sm:$0xff] %v4292_v62   ;;  %v4759_v7 = vpop.f32.mrf.mxu1  ;;  %v4287_v57 = vpack.c.bf16 %v3466_v42, %v3465_v53  ;;  %v3566_v54 = vadd.f32 %v3565_v2, %v3466_v42  ;;  %v3589_v36 = vmul.f32 %v3466_v42, %v3466_v42  ;;  %v6429_v2 = vld [vmem:[#allocation4_spill] sm:$0xff] }
 0x1dc   : >> { %v3476_v61 = vadd.f32 %v4759_v7, %v3202_v0  ;;  %v3596_v16 = vmul.f32 %v3473_v45, %v3473_v45  ;;  %v3598_v53 = vmul.f32 %v3475_v33, %v3475_v33 }
 0x1dd   : >> { %v3449_v39 = vpop.f32.mrf.mxu1  ;;  %4322 = vst [vmem:[%s6321_s17 + $0x10] sm:$0xff] %v4287_v57   ;;  %v3567_v47 = vadd.f32 %v3566_v54, %v3467_v9  ;;  %v3604_v5 = vadd.f32 %v3603_v34, %v3589_v36 }
 0x1de   : >> { %v4312_v18 = vpack.c.bf16 %v3476_v61, %v3475_v33  ;;  %v3474_v52 = vadd.f32 %v3449_v39, %v3200_v10  ;;  %v3599_v4 = vmul.f32 %v3476_v61, %v3476_v61 }
 0x1df   : >> { %v3568_v50 = vadd.f32 %v3567_v47, %v3468_v23  ;;  %v3605_v6 = vadd.f32 %v3604_v5, %v3590_v58 }
 0x1e0   : >> { %4327 = vst [vmem:[%s6321_s17 + $0x38] sm:$0xff] %v4312_v18   ;;  %v4307_v56 = vpack.c.bf16 %v3474_v52, %v3473_v45  ;;  %v3597_v14 = vmul.f32 %v3474_v52, %v3474_v52 }
 0x1e1   : >> { %v3569_v41 = vadd.f32 %v3568_v50, %v3469_v51  ;;  %v3606_v8 = vadd.f32 %v3605_v6, %v3591_v22 }
 0x1e2   : >> { %4326 = vst [vmem:[%s6321_s17 + $0x30] sm:$0xff] %v4307_v56  }
 0x1e3   : >> { %v3570_v24 = vadd.f32 %v3569_v41, %v3470_v43  ;;  %v3607_v49 = vadd.f32 %v3606_v8, %v3592_v27 }
 0x1e5   : >> { %v3571_v38 = vadd.f32 %v3570_v24, %v3471_v44  ;;  %v3608_v31 = vadd.f32 %v3607_v49, %v3593_v21 }
 0x1e7   : >> { %v3572_v59 = vadd.f32 %v3571_v38, %v6332_v26  ;;  %v3609_v32 = vadd.f32 %v3608_v31, %v3594_v48 }
 0x1e9   : >> { %v3573_v20 = vadd.f32 %v3572_v59, %v3473_v45  ;;  %v3610_v55 = vadd.f32 %v3609_v32, %v3595_v35 }
 0x1eb   : >> { %v3574_v37 = vadd.f32 %v3573_v20, %v3474_v52  ;;  %v3611_v30 = vadd.f32 %v3610_v55, %v3596_v16 }
 0x1ed   : >> { %v3575_v29 = vadd.f32 %v3574_v37, %v3475_v33  ;;  %v3612_v51 = vadd.f32 %v3611_v30, %v3597_v14 }
 0x1ef   : >> { %v3576_v1 = vadd.f32 %v3575_v29, %v3476_v61  ;;  %v3613_v43 = vadd.f32 %v3612_v51, %v3598_v53 }
 0x1f1   : >> { %v3577_v44 = vrot.slane %v3576_v1, 4  ;;  %v3614_v11 = vadd.f32 %v3613_v43, %v3599_v4 }
 0x1f3   : >> { %v3578_v40 = vadd.f32 %v3577_v44, %v3576_v1  ;;  %v3615_v9 = vrot.slane %v3614_v11, 4 }
 0x1f5   : >> { %v3579_v17 = vrot.slane %v3578_v40, 2  ;;  %v3616_v28 = vadd.f32 %v3615_v9, %v3614_v11 }
 0x1f7   : >> { %v3580_v26 = vadd.f32 %v3579_v17, %v3578_v40  ;;  %v3617_v23 = vrot.slane %v3616_v28, 2 }
 0x1f9   : >> { %v3581_v46 = vrot.slane %v3580_v26, 1  ;;  %v3618_v3 = vadd.f32 %v3617_v23, %v3616_v28 }
 0x1fb   : >> { %v3582_v25 = vadd.f32 %v3581_v46, %v3580_v26  ;;  %v3619_v63 = vrot.slane %v3618_v3, 1 }
 0x1fd   : >> { %v3583_v60 = vadd.f32 %v6429_v2, %v3582_v25   ;;  %v3620_v12 = vadd.f32 %v3619_v63, %v3618_v3  ;;  %710 = sbr.rel (!%p708_p5) target bundleno = 99 (0x63), region = 129 }
 0x1ff   : >> { %v3621_v62 = vadd.f32 %v6430_v15, %v3620_v12   ;;  %v6432_v34 = vmov %v3583_v60  ;;  %3622 = vst [vmem:[%s265_s7] sm:$0x1] (%p708_p5), %v3583_v60 }
 0x201   : >> { %v6431_v49 = vmov %v3621_v62  ;;  %3623 = vst [vmem:[%s268_s16] sm:$0x1] (%p708_p5), %v3621_v62 }
 0x202 PF: > { %s17_s21 = sadd.s32 1, %s4935_s21  }
 0x203   : > { %p14_p6 = scmp.ge.s32.totalorder %s17_s21, 4  }
 0x205   :  { %16 = sbr.rel (!%p14_p6) target bundleno = 1 (0x1), region = 140 }

// kernel: basic_block_act.3
= control target key start
LH: loop header
LB: loop body
LE: loop exit
PB: predicated region body
PF: predicated region fallthrough
CT: control target
= control target key end

     0   :  { %s4725_s15 = smov 0   ;;  %s6065_s0 = inlined_call_operand.vmem [shape: bf16[2,16,16,128], index: 0, kind: input, shape index: {}]   ;;  %s6066_s1 = inlined_call_operand.vmem [shape: bf16[9,128,128], index: 1, kind: input, shape index: {}]   ;;  %s6067_s2 = inlined_call_operand.vmem [shape: bf16[2,256,128], index: 2, kind: output, shape index: {0}]   ;;  %s6068_s3 = inlined_call_operand.vmem [shape: f32[2,1,128], index: 3, kind: output, shape index: {1}]   ;;  %s6069_s4 = inlined_call_operand.vmem [shape: f32[2,1,128], index: 4, kind: output, shape index: {2}]  }
   0x1 LB: > { %s3581_s16 = sadd.s32 4294967295, %s4681_s15   ;;  %p3585_p0 = scmp.ge.s32.totalorder %s4681_s15, 1  ;;  %s4681_s15 = sphi %s4725_s15, %s15_s15  }
   0x2   : > { %p167_p1 = scmp.lt.s32.totalorder %s4681_s15, 3 }
   0x4   : > { %p168_p2 = pnand %p3585_p0, %p167_p1 }
   0x5   : > { %p4735_p3 = scmp.lt.s32.totalorder (!%p168_p2), %s3581_s16, 1  ;;  %s4764_s5 = smov (!%p168_p2), 0  }
   0x6   : > { %171 = sbr.rel (%p168_p2) target bundleno = 490 (0x1ea), region = 28 }
   0xb   : > { %v4699_v0 = vmov 0   ;;  %s6125_s16 = smov (!%p4735_p3, %s3581_s16), 1 }
   0xc   : > { %216 = vst [vmem:[#allocation2] sm:$0xf] %v4699_v0  ;;  %217 = vst [vmem:[#allocation2 + $0x4] sm:$0xf] %v4699_v0  ;;  %s4006_s18 = sshll.u32 %s6125_s16, 7  ;;  %s211_s21 = scalar_lea.vmem %s6068_s3, %s6125_s16 }
   0xd   : > { %218 = vst [vmem:[#allocation2 + $0x8] sm:$0x1] %v4699_v0  ;;  %219 = vst [vmem:[#allocation2 + $0xc] sm:$0xf] %v4699_v0  ;;  %s4753_s24 = scalar_lea.vmem %s6065_s0, %s4006_s18  ;;  %s4758_s27 = scalar_lea.vmem %s6067_s2, %s4006_s18 }
   0xe   : > { %220 = vst [vmem:[#allocation2 + $0x10] sm:$0xf] %v4699_v0  ;;  %221 = vst [vmem:[#allocation2 + $0x14] sm:$0x1] %v4699_v0  ;;  %s214_s30 = scalar_lea.vmem %s6069_s4, %s6125_s16 }
   0xf   : > { %222 = vst [vmem:[#allocation2 + $0x18] sm:$0xf] %v4699_v0  ;;  %223 = vst [vmem:[#allocation2 + $0x1c] sm:$0xf] %v4699_v0 }
  0x10   : > { %224 = vst [vmem:[#allocation2 + $0x20] sm:$0x1] %v4699_v0  ;;  %225 = vst [vmem:[#allocation2 + $0x24] sm:$0xf] %v4699_v0 }
  0x11   : > { %226 = vst [vmem:[#allocation2 + $0x28] sm:$0xf] %v4699_v0  ;;  %227 = vst [vmem:[#allocation2 + $0x2c] sm:$0x1] %v4699_v0 }
  0x12   : > { %228 = vst [vmem:[#allocation2 + $0x30] sm:$0xf] %v4699_v0  ;;  %229 = vst [vmem:[#allocation2 + $0x34] sm:$0xf] %v4699_v0 }
  0x13   : > { %230 = vst [vmem:[#allocation2 + $0x38] sm:$0x1] %v4699_v0  ;;  %231 = vst [vmem:[#allocation2 + $0x3c] sm:$0xf] %v4699_v0 }
  0x14   : > { %232 = vst [vmem:[#allocation2 + $0x40] sm:$0xf] %v4699_v0  ;;  %233 = vst [vmem:[#allocation2 + $0x44] sm:$0x1] %v4699_v0 }
  0x15   : > { %234 = vst [vmem:[#allocation2 + $0x48] sm:$0xf] %v4699_v0  ;;  %235 = vst [vmem:[#allocation2 + $0x4c] sm:$0xf] %v4699_v0 }
  0x16   : > { %236 = vst [vmem:[#allocation2 + $0x50] sm:$0x1] %v4699_v0  ;;  %237 = vst [vmem:[#allocation2 + $0x54] sm:$0xf] %v4699_v0 }
  0x17   : > { %238 = vst [vmem:[#allocation2 + $0x58] sm:$0xf] %v4699_v0  ;;  %239 = vst [vmem:[#allocation2 + $0x5c] sm:$0x1] %v4699_v0 }
  0x18   : > { %240 = vst [vmem:[#allocation2 + $0x60] sm:$0xf] %v4699_v0  ;;  %241 = vst [vmem:[#allocation2 + $0x64] sm:$0xf] %v4699_v0 }
  0x19   : > { %242 = vst [vmem:[#allocation2 + $0x68] sm:$0x1] %v4699_v0  ;;  %243 = vst [vmem:[#allocation2 + $0x6c] sm:$0xf] %v4699_v0 }
  0x1a   : > { %244 = vst [vmem:[#allocation2 + $0x70] sm:$0xf] %v4699_v0  ;;  %245 = vst [vmem:[#allocation2 + $0x74] sm:$0x1] %v4699_v0 }
  0x1b   : > { %246 = vst [vmem:[#allocation2 + $0x78] sm:$0xf] %v4699_v0  ;;  %247 = vst [vmem:[#allocation2 + $0x7c] sm:$0xf] %v4699_v0 }
  0x1c   : > { %248 = vst [vmem:[#allocation2 + $0x80] sm:$0x1] %v4699_v0  ;;  %249 = vst [vmem:[#allocation2 + $0x84] sm:$0xf] %v4699_v0 }
  0x1d   : > { %250 = vst [vmem:[#allocation2 + $0x88] sm:$0xf] %v4699_v0  ;;  %251 = vst [vmem:[#allocation2 + $0x8c] sm:$0x1] %v4699_v0 }
  0x1e   : > { %252 = vst [vmem:[#allocation2 + $0x90] sm:$0xf] %v4699_v0  ;;  %253 = vst [vmem:[#allocation2 + $0x94] sm:$0xf] %v4699_v0 }
  0x1f   : > { %254 = vst [vmem:[#allocation2 + $0x98] sm:$0x1] %v4699_v0  ;;  %255 = vst [vmem:[#allocation2 + $0x9c] sm:$0xf] %v4699_v0 }
  0x20   : > { %256 = vst [vmem:[#allocation2 + $0xa0] sm:$0xf] %v4699_v0  ;;  %257 = vst [vmem:[#allocation2 + $0xa4] sm:$0x1] %v4699_v0 }
  0x21   : > { %258 = vst [vmem:[#allocation2 + $0xa8] sm:$0xf] %v4699_v0  ;;  %259 = vst [vmem:[#allocation2 + $0xac] sm:$0xf] %v4699_v0 }
  0x22   : > { %260 = vst [vmem:[#allocation2 + $0xb0] sm:$0x1] %v4699_v0  ;;  %261 = vst [vmem:[#allocation2 + $0xb4] sm:$0xf] %v4699_v0 }
  0x23   : > { %262 = vst [vmem:[#allocation2 + $0xb8] sm:$0xf] %v4699_v0  ;;  %263 = vst [vmem:[#allocation2 + $0xbc] sm:$0x1] %v4699_v0 }
  0x24   : > { %264 = vst [vmem:[#allocation2 + $0xc0] sm:$0xf] %v4699_v0  ;;  %265 = vst [vmem:[#allocation2 + $0xc4] sm:$0xf] %v4699_v0 }
  0x25   : > { %266 = vst [vmem:[#allocation2 + $0xc8] sm:$0x1] %v4699_v0  ;;  %267 = vst [vmem:[#allocation2 + $0xcc] sm:$0xf] %v4699_v0 }
  0x26   : > { %268 = vst [vmem:[#allocation2 + $0xd0] sm:$0xf] %v4699_v0  ;;  %269 = vst [vmem:[#allocation2 + $0xd4] sm:$0x1] %v4699_v0 }
  0x27 LB: >> { %s4009_s6 = sshll.u32 %s4685_s5, 6  ;;  %s3594_s7 = smul.u32 96, %s4685_s5  ;;  %vm463_vm0 = vcmask 1043456   ;;  %vm464_vm1 = vsmask.f32 7938  ;;  %vm470_vm4 = vcmask 1040384   ;;  %s4685_s5 = sphi %s4764_s5, %s275_s5  }
  0x28   : >> { %s4772_s8 = scalar_lea.vmem %s4753_s24, %s4009_s6  ;;  %vm297_vm2 = vsmask.f32 256  ;;  %vm298_vm3 = vsmask.f32 4368  ;;  %vm4776_vm5 = vmand %vm463_vm0, %vm464_vm1  ;;  %s275_s5 = sadd.s32 1, %s4685_s5  }
  0x29   : >> { %v280_v1 = vld [vmem:[%s4772_s8] sm:$0xf]  ;;  %v281_v2 = vld [vmem:[%s4772_s8 + $0x4] sm:$0xf]  ;;  %s4780_s9 = scalar_lea.vmem [#allocation2], %s3594_s7  ;;  %vm4786_vm6 = vmor %vm297_vm2, %vm298_vm3  ;;  %p272_p4 = scmp.ge.s32.totalorder %s275_s5, 2  }
  0x2a   : >> { %v301_v3 = vshrl.u32 %v280_v1, 16  ;;  %v304_v4 = vshll.u32 %v280_v1, 16  ;;  %v309_v6 = vshrl.u32 %v281_v2, 16  ;;  %v312_v7 = vshll.u32 %v281_v2, 16  ;;  %v282_v10 = vld [vmem:[%s4772_s8 + $0x8] sm:$0xf]  ;;  %vm4793_vm7 = vmand %vm470_vm4, %vm297_vm2 }
  0x2b   : >> { %v318_v14 = vshrl.u32 %v282_v10, 16  ;;  %v283_v15 = vld [vmem:[%s4772_s8 + $0xc] sm:$0xf]  ;;  %v321_v17 = vshll.u32 %v282_v10, 16  ;;  %v284_v20 = vld [vmem:[%s4772_s8 + $0x10] sm:$0xf] }
  0x2c   : >> { %v303_v11 = vrot.slane %v301_v3, 7  ;;  %v311_v13 = vrot.slane %v309_v6, 7  ;;  %v326_v18 = vshrl.u32 %v283_v15, 16  ;;  %v329_v19 = vshll.u32 %v283_v15, 16  ;;  %v285_v25 = vld [vmem:[%s4772_s8 + $0x14] sm:$0xf] }
  0x2d   : >> { %v3595_v8 = vld [vmem:[%s4780_s9 + $0xc] sm:$0xf]  ;;  %v3598_v9 = vld [vmem:[%s4780_s9 + $0x14] sm:$0x1]  ;;  %v320_v26 = vrot.slane %v318_v14, 7  ;;  %v335_v29 = vshrl.u32 %v284_v20, 16 }
  0x2e   : >> { %v306_v21 = vor.u32 %v304_v4, %v303_v11  ;;  %v307_v22 = vrot.slane %v303_v11, 4  ;;  %v314_v23 = vor.u32 %v312_v7, %v311_v13  ;;  %v316_v24 = vrot.slane %v311_v13, 4  ;;  %v3600_v27 = vld [vmem:[%s4780_s9 + $0x18] sm:$0xf]  ;;  %v3603_v34 = vld [vmem:[%s4780_s9 + $0x20] sm:$0x1] }
  0x2f   : >> { %v328_v28 = vrot.slane %v326_v18, 7  ;;  %v338_v30 = vshll.u32 %v284_v20, 16  ;;  %v343_v35 = vshrl.u32 %v285_v25, 16  ;;  %v286_v36 = vld [vmem:[%s4772_s8 + $0x18] sm:$0xf]  ;;  %v323_v37 = vor.u32 %v321_v17, %v320_v26  ;;  %s4902_s10 = smov (%p272_p4), 0  }
  0x30   : >> { %v467_v31 = vsel %vm4776_vm5, %v306_v21, %v3595_v8  ;;  %v315_v32 = vsel %vm4786_vm6, %v307_v22, %v314_v23  ;;  %v473_v33 = vsel %vm4793_vm7, %v316_v24, %v3598_v9  ;;  %v324_v38 = vrot.slane %v320_v26, 4  ;;  %v287_v41 = vld [vmem:[%s4772_s8 + $0x1c] sm:$0xf]  ;;  %v288_v46 = vld [vmem:[%s4772_s8 + $0x20] sm:$0xf] }
  0x31   : >> { %3596 = vst [vmem:[%s4780_s9 + $0xc] sm:$0xf] %v467_v31  ;;  %3597 = vst [vmem:[%s4780_s9 + $0x10] sm:$0xf] %v315_v32  ;;  %v331_v39 = vor.u32 %v329_v19, %v328_v28  ;;  %v333_v40 = vrot.slane %v328_v28, 4  ;;  %v337_v42 = vrot.slane %v335_v29, 7  ;;  %v476_v47 = vsel %vm4776_vm5, %v323_v37, %v3600_v27 }
  0x32   : >> { %3599 = vst [vmem:[%s4780_s9 + $0x14] sm:$0x1] %v473_v33  ;;  %v345_v43 = vrot.slane %v343_v35, 7  ;;  %v346_v44 = vshll.u32 %v285_v25, 16  ;;  %v352_v45 = vshrl.u32 %v286_v36, 16  ;;  %v355_v52 = vshll.u32 %v286_v36, 16 }
  0x33   : >> { %v332_v48 = vsel %vm4786_vm6, %v324_v38, %v331_v39  ;;  %v480_v49 = vsel %vm4793_vm7, %v333_v40, %v3603_v34  ;;  %v3605_v50 = vld [vmem:[%s4780_s9 + $0x24] sm:$0xf]  ;;  %v3608_v51 = vld [vmem:[%s4780_s9 + $0x2c] sm:$0x1]  ;;  %3601 = vst [vmem:[%s4780_s9 + $0x18] sm:$0xf] %v476_v47  ;;  %v340_v53 = vor.u32 %v338_v30, %v337_v42 }
  0x34   : >> { %3602 = vst [vmem:[%s4780_s9 + $0x1c] sm:$0xf] %v332_v48  ;;  %3604 = vst [vmem:[%s4780_s9 + $0x20] sm:$0x1] %v480_v49  ;;  %v341_v54 = vrot.slane %v337_v42, 4  ;;  %v348_v55 = vor.u32 %v346_v44, %v345_v43  ;;  %v350_v56 = vrot.slane %v345_v43, 4 }
  0x35   : >> { %v289_v57 = vld [vmem:[%s4772_s8 + $0x24] sm:$0xf]  ;;  %v354_v58 = vrot.slane %v352_v45, 7  ;;  %v360_v59 = vshrl.u32 %v287_v41, 16  ;;  %v363_v60 = vshll.u32 %v287_v41, 16  ;;  %v369_v61 = vshrl.u32 %v288_v46, 16 }
  0x36   : >> { %v290_v62 = vld [vmem:[%s4772_s8 + $0x28] sm:$0xf]  ;;  %v483_v63 = vsel %vm4776_vm5, %v340_v53, %v3605_v50  ;;  %v349_v0 = vsel %vm4786_vm6, %v341_v54, %v348_v55  ;;  %v487_v1 = vsel %vm4793_vm7, %v350_v56, %v3608_v51  ;;  %v3610_v2 = vld [vmem:[%s4780_s9 + $0x30] sm:$0xf]  ;;  %v3613_v3 = vld [vmem:[%s4780_s9 + $0x38] sm:$0x1] }
  0x37   : >> { %v372_v4 = vshll.u32 %v288_v46, 16  ;;  %3606 = vst [vmem:[%s4780_s9 + $0x24] sm:$0xf] %v483_v63  ;;  %3607 = vst [vmem:[%s4780_s9 + $0x28] sm:$0xf] %v349_v0  ;;  %v357_v6 = vor.u32 %v355_v52, %v354_v58  ;;  %v358_v7 = vrot.slane %v354_v58, 4 }
  0x38   : >> { %3609 = vst [vmem:[%s4780_s9 + $0x2c] sm:$0x1] %v487_v1  ;;  %v362_v8 = vrot.slane %v360_v59, 7  ;;  %v371_v9 = vrot.slane %v369_v61, 7  ;;  %v291_v10 = vld [vmem:[%s4772_s8 + $0x2c] sm:$0xf] }
  0x39   : >> { %v3615_v11 = vld [vmem:[%s4780_s9 + $0x3c] sm:$0xf]  ;;  %v377_v13 = vshrl.u32 %v289_v57, 16  ;;  %v380_v14 = vshll.u32 %v289_v57, 16  ;;  %v386_v15 = vshrl.u32 %v290_v62, 16  ;;  %v389_v17 = vshll.u32 %v290_v62, 16 }
  0x3a   : >> { %v490_v18 = vsel %vm4776_vm5, %v357_v6, %v3610_v2  ;;  %v365_v19 = vor.u32 %v363_v60, %v362_v8  ;;  %v367_v20 = vrot.slane %v362_v8, 4  ;;  %v374_v21 = vor.u32 %v372_v4, %v371_v9  ;;  %v292_v22 = vld [vmem:[%s4772_s8 + $0x30] sm:$0xf]  ;;  %v293_v27 = vld [vmem:[%s4772_s8 + $0x34] sm:$0xf] }
  0x3b   : >> { %3611 = vst [vmem:[%s4780_s9 + $0x30] sm:$0xf] %v490_v18  ;;  %v375_v23 = vrot.slane %v371_v9, 4  ;;  %v379_v24 = vrot.slane %v377_v13, 7  ;;  %v388_v25 = vrot.slane %v386_v15, 7  ;;  %v394_v26 = vshrl.u32 %v291_v10, 16 }
  0x3c   : >> { %v366_v28 = vsel %vm4786_vm6, %v358_v7, %v365_v19  ;;  %v494_v29 = vsel %vm4793_vm7, %v367_v20, %v3613_v3  ;;  %v497_v30 = vsel %vm4776_vm5, %v374_v21, %v3615_v11  ;;  %v3618_v31 = vld [vmem:[%s4780_s9 + $0x44] sm:$0x1]  ;;  %v3620_v32 = vld [vmem:[%s4780_s9 + $0x48] sm:$0xf]  ;;  %v397_v33 = vshll.u32 %v291_v10, 16 }
  0x3d   : >> { %3612 = vst [vmem:[%s4780_s9 + $0x34] sm:$0xf] %v366_v28  ;;  %3614 = vst [vmem:[%s4780_s9 + $0x38] sm:$0x1] %v494_v29  ;;  %v382_v34 = vor.u32 %v380_v14, %v379_v24  ;;  %v384_v35 = vrot.slane %v379_v24, 4  ;;  %v391_v36 = vor.u32 %v389_v17, %v388_v25  ;;  %v392_v37 = vrot.slane %v388_v25, 4 }
  0x3e   : >> { %3616 = vst [vmem:[%s4780_s9 + $0x3c] sm:$0xf] %v497_v30  ;;  %v294_v38 = vld [vmem:[%s4772_s8 + $0x38] sm:$0xf]  ;;  %v396_v39 = vrot.slane %v394_v26, 7  ;;  %v403_v40 = vshrl.u32 %v292_v22, 16 }
  0x3f   : >> { %v406_v41 = vshll.u32 %v292_v22, 16  ;;  %v411_v42 = vshrl.u32 %v293_v27, 16  ;;  %v295_v43 = vld [vmem:[%s4772_s8 + $0x3c] sm:$0xf]  ;;  %v383_v44 = vsel %vm4786_vm6, %v375_v23, %v382_v34  ;;  %v501_v45 = vsel %vm4793_vm7, %v384_v35, %v3618_v31  ;;  %v3623_v47 = vld [vmem:[%s4780_s9 + $0x50] sm:$0x1] }
  0x40   : >> { %v504_v46 = vsel %vm4776_vm5, %v391_v36, %v3620_v32  ;;  %v414_v48 = vshll.u32 %v293_v27, 16  ;;  %3617 = vst [vmem:[%s4780_s9 + $0x40] sm:$0xf] %v383_v44  ;;  %3619 = vst [vmem:[%s4780_s9 + $0x44] sm:$0x1] %v501_v45  ;;  %v399_v49 = vor.u32 %v397_v33, %v396_v39  ;;  %v401_v50 = vrot.slane %v396_v39, 4 }
  0x41   : >> { %3621 = vst [vmem:[%s4780_s9 + $0x48] sm:$0xf] %v504_v46  ;;  %v405_v51 = vrot.slane %v403_v40, 7  ;;  %v413_v52 = vrot.slane %v411_v42, 7  ;;  %v3625_v53 = vld [vmem:[%s4780_s9 + $0x54] sm:$0xf] }
  0x42   : >> { %v420_v54 = vshrl.u32 %v294_v38, 16  ;;  %v423_v55 = vshll.u32 %v294_v38, 16  ;;  %v428_v56 = vshrl.u32 %v295_v43, 16  ;;  %v431_v57 = vshll.u32 %v295_v43, 16  ;;  %v3628_v62 = vld [vmem:[%s4780_s9 + $0x5c] sm:$0x1] }
  0x43   : >> { %v400_v58 = vsel %vm4786_vm6, %v392_v37, %v399_v49  ;;  %v508_v59 = vsel %vm4793_vm7, %v401_v50, %v3623_v47  ;;  %v408_v60 = vor.u32 %v406_v41, %v405_v51  ;;  %v409_v61 = vrot.slane %v405_v51, 4  ;;  %v3630_v4 = vld [vmem:[%s4780_s9 + $0x60] sm:$0xf]  ;;  %v3633_v10 = vld [vmem:[%s4780_s9 + $0x68] sm:$0x1] }
  0x44   : >> { %3622 = vst [vmem:[%s4780_s9 + $0x4c] sm:$0xf] %v400_v58  ;;  %3624 = vst [vmem:[%s4780_s9 + $0x50] sm:$0x1] %v508_v59  ;;  %v416_v63 = vor.u32 %v414_v48, %v413_v52  ;;  %v418_v0 = vrot.slane %v413_v52, 4  ;;  %v422_v1 = vrot.slane %v420_v54, 7 }
  0x45   : >> { %v430_v2 = vrot.slane %v428_v56, 7  ;;  %v511_v3 = vsel %vm4776_vm5, %v408_v60, %v3625_v53  ;;  %v4898_v18 = vmov (%p272_p4), 0.0   ;;  %v4900_v19 = vmov (%p272_p4), 0.0  }
  0x46   : >> { %3626 = vst [vmem:[%s4780_s9 + $0x54] sm:$0xf] %v511_v3  ;;  %v417_v6 = vsel %vm4786_vm6, %v409_v61, %v416_v63  ;;  %v515_v7 = vsel %vm4793_vm7, %v418_v0, %v3628_v62  ;;  %v425_v8 = vor.u32 %v423_v55, %v422_v1  ;;  %v426_v9 = vrot.slane %v422_v1, 4  ;;  %274 = sbr.rel (!%p272_p4) target bundleno = 39 (0x27), region = 110 }
  0x47   : >> { %3627 = vst [vmem:[%s4780_s9 + $0x58] sm:$0xf] %v417_v6  ;;  %3629 = vst [vmem:[%s4780_s9 + $0x5c] sm:$0x1] %v515_v7  ;;  %v433_v11 = vor.u32 %v431_v57, %v430_v2  ;;  %v435_v13 = vrot.slane %v430_v2, 4 }
  0x48   : >> { %v518_v14 = vsel %vm4776_vm5, %v425_v8, %v3630_v4 }
  0x49   : >> { %3631 = vst [vmem:[%s4780_s9 + $0x60] sm:$0xf] %v518_v14  ;;  %v434_v15 = vsel %vm4786_vm6, %v426_v9, %v433_v11  ;;  %v522_v17 = vsel %vm4793_vm7, %v435_v13, %v3633_v10 }
  0x4a   : >> { %3632 = vst [vmem:[%s4780_s9 + $0x64] sm:$0xf] %v434_v15  ;;  %3634 = vst [vmem:[%s4780_s9 + $0x68] sm:$0x1] %v522_v17 }
  0x4b LB: >> { %6077 = vst [vmem:[#allocation3_spill] sm:$0xff] %v4689_v18  ;;  %6078 = vst [vmem:[#allocation4_spill] sm:$0xff] %v4693_v19  ;;  %v4563_v5 = vld [vmem:[%s6066_s1 + $0x78] sm:$0xff]   ;;  %v4565_v16 = vld [vmem:[%s6066_s1 + $0x70] sm:$0xff]   ;;  %s4010_s6 = smul.u32 96, %s4697_s10  ;;  %vm1166_vm11 = vcmask 1042432   ;;  %s4697_s10 = sphi %s4902_s10, %s529_s10   ;;  %v4693_v19 = vphi %v4900_v19, %v6123_v19   ;;  %v4689_v18 = vphi %v4898_v18, %v6122_v18  }
  0x4c   : >> { %v4564_v12 = vld [vmem:[%s6066_s1 + $0x38] sm:$0xff]   ;;  %4218 = vmatprep.subr.bf16.mxu0 %v4563_v5  ;;  %v4566_v20 = vld [vmem:[%s6066_s1 + $0x30] sm:$0xff]   ;;  %v4567_v21 = vld [vmem:[%s6066_s1 + $0x68] sm:$0xff]   ;;  %vm576_vm8 = vsmask.f32 3328  ;;  %vm1167_vm12 = vcmask 1046532  }
  0x4d   : >> { %4250 = vmatprep.subr.bf16.mxu1 %v4564_v12  ;;  %4219 = vmatpush3.bf16.msra.mxu0 %v4563_v5  ;;  %v4568_v22 = vld [vmem:[%s6066_s1 + $0x28] sm:$0xff]   ;;  %v4569_v23 = vld [vmem:[%s6066_s1 + $0x60] sm:$0xff]   ;;  %v4571_v25 = vld [vmem:[%s6066_s1 + $0x58] sm:$0xff]   ;;  %s4950_s18 = scalar_lea.vmem [#allocation2], %s4010_s6  ;;  %vm577_vm9 = vsmask.f32 7440 }
  0x4e   : >> { %4251 = vmatpush3.bf16.msra.mxu1 %v4564_v12  ;;  %4220 = vmatprep.subr.bf16.mxu0 %v4565_v16  ;;  %v4570_v24 = vld [vmem:[%s6066_s1 + $0x20] sm:$0xff]   ;;  %v4572_v26 = vld [vmem:[%s6066_s1 + $0x18] sm:$0xff]   ;;  %v4573_v27 = vld [vmem:[%s6066_s1 + $0x50] sm:$0xff]   ;;  %s3986_s25 = sshll.u32 %s4697_s10, 7  ;;  %s529_s10 = sadd.s32 1, %s4697_s10  }
  0x4f   : >> { %4252 = vmatprep.subr.bf16.mxu1 %v4566_v20  ;;  %v4574_v28 = vld [vmem:[%s6066_s1 + $0x10] sm:$0xff]   ;;  %v4575_v43 = vld [vmem:[%s6066_s1 + $0x48] sm:$0xff]   ;;  %vm4989_vm10 = vmor %vm576_vm8, %vm577_vm9  ;;  %s5992_s26 = sshra.s32 %s3986_s25, 3  ;;  %p526_p5 = scmp.ge.s32.totalorder %s529_s10, 2  }
  0x50   : >> { %v4576_v47 = vld [vmem:[%s6066_s1 + $0x8] sm:$0xff]   ;;  %v4577_v61 = vld [vmem:[%s6066_s1 + $0x40] sm:$0xff]   ;;  %v4581_v7 = vld [vmem:[%s6066_s1 + $0xb8] sm:$0xff]   ;;  %s4003_s28 = sshll.u32 %s5992_s26, 2 }
  0x51   : >> { %4221 = vmatpush3.bf16.msra.mxu0 %v4565_v16  ;;  %v4953_v29 = vld [vmem:[%s4950_s18] sm:$0xf]  ;;  %v4956_v30 = vld [vmem:[%s4950_s18 + $0x4] sm:$0xf]  ;;  %v4959_v31 = vld [vmem:[%s4950_s18 + $0x8] sm:$0x1]  ;;  %s6014_s29 = scalar_lea.vmem %s4758_s27, %s4003_s28 }
  0x52   : >> { %4253 = vmatpush3.bf16.msra.mxu1 %v4566_v20  ;;  %4222 = vmatprep.subr.bf16.mxu0 %v4567_v21  ;;  %v580_v32 = vshrl.u32 %v4953_v29, 16  ;;  %v583_v33 = vshll.u32 %v4953_v29, 16  ;;  %v589_v34 = vshll.u32 %v4956_v30, 16  ;;  %v593_v35 = vshrl.u32 %v4956_v30, 16  ;;  %v4967_v37 = vld [vmem:[%s4950_s18 + $0xc] sm:$0xf]  ;;  %vm5169_vm13 = vmor %vm1166_vm11, %vm1167_vm12 }
  0x53   : >> { %4254 = vmatprep.subr.bf16.mxu1 %v4568_v22  ;;  %v599_v36 = vshll.u32 %v4959_v31, 16  ;;  %v3670_v40 = vcombine.low %v4953_v29, %v4956_v30  ;;  %v4972_v41 = vld [vmem:[%s4950_s18 + $0x10] sm:$0xf]  ;;  %v4975_v42 = vld [vmem:[%s4950_s18 + $0x14] sm:$0x1]  ;;  %v604_v46 = vshrl.u32 %v4967_v37, 16 }
  0x54   : >> { %v582_v38 = vrot.slane %v580_v32, 4  ;;  %v585_v39 = vrot.slane %v583_v33, 5  ;;  %v591_v44 = vrot.slane %v589_v34, 5  ;;  %v595_v45 = vrot.slane %v593_v35, 4  ;;  %v4578_v63 = vld [vmem:[%s6066_s1] sm:$0xff]   ;;  %v4582_v15 = vld [vmem:[%s6066_s1 + $0xf8] sm:$0xff]  }
  0x55   : >> { %4223 = vmatpush3.bf16.msra.mxu0 %v4567_v21  ;;  %4266 = vmatprep.mubr.bf16.mxu1 %v3670_v40  ;;  %v607_v49 = vshll.u32 %v4967_v37, 16  ;;  %v613_v50 = vshll.u32 %v4972_v41, 16  ;;  %v617_v51 = vshrl.u32 %v4972_v41, 16  ;;  %v601_v54 = vrot.slane %v599_v36, 5  ;;  %v5010_v8 = vld [vmem:[%s4950_s18 + $0x18] sm:$0xf] }
  0x56   : >> { %4255 = vmatpush3.bf16.msra.mxu1 %v4568_v22  ;;  %4224 = vmatprep.subr.bf16.mxu0 %v4569_v23  ;;  %v586_v48 = vor.u32 %v585_v39, %v582_v38  ;;  %v596_v53 = vor.u32 %v595_v45, %v591_v44  ;;  %v606_v55 = vrot.slane %v604_v46, 4  ;;  %v623_v56 = vshll.u32 %v4975_v42, 16  ;;  %v5013_v9 = vld [vmem:[%s4950_s18 + $0x1c] sm:$0xf]  ;;  %v5020_v17 = vld [vmem:[%s4950_s18 + $0x20] sm:$0x1] }
  0x57   : >> { %4256 = vmatprep.subr.bf16.mxu1 %v4570_v24  ;;  %v609_v58 = vrot.slane %v607_v49, 5  ;;  %v615_v59 = vrot.slane %v613_v50, 5  ;;  %v619_v60 = vrot.slane %v617_v51, 4  ;;  %v3671_v6 = vcombine.low %v4967_v37, %v4972_v41  ;;  %v5028_v22 = vld [vmem:[%s4950_s18 + $0x24] sm:$0xf]  ;;  %v4583_v33 = vld [vmem:[%s6066_s1 + $0xb0] sm:$0xff]  }
  0x58   : >> { %v587_v57 = vrot.slane %v586_v48, 4  ;;  %v597_v62 = vrot.slane %v596_v53, 4  ;;  %v625_v3 = vrot.slane %v623_v56, 5  ;;  %v3686_v10 = vrot.slane %v4953_v29, 9  ;;  %v4584_v48 = vld [vmem:[%s6066_s1 + $0xf0] sm:$0xff]  }
  0x59   : >> { %4225 = vmatpush3.bf16.msra.mxu0 %v4569_v23  ;;  %v610_v1 = vor.u32 %v609_v58, %v606_v55  ;;  %v620_v2 = vor.u32 %v619_v60, %v615_v59  ;;  %v628_v5 = vshrl.u32 %v5010_v8, 16  ;;  %v631_v12 = vshll.u32 %v5010_v8, 16  ;;  %v5057_v60 = vld [vmem:[%s4950_s18 + $0x30] sm:$0xf] }
  0x5a   : >> { %4257 = vmatpush3.bf16.msra.mxu1 %v4570_v24  ;;  %4226 = vmatprep.subr.bf16.mxu0 %v4571_v25  ;;  %v592_v0 = vsel %vm4989_vm10, %v587_v57, %v591_v44  ;;  %v602_v4 = vsel %vm4989_vm10, %v597_v62, %v601_v54  ;;  %v637_v16 = vshll.u32 %v5013_v9, 16  ;;  %v641_v20 = vshrl.u32 %v5013_v9, 16 }
  0x5b   : >> { %4258 = vmatprep.subr.bf16.mxu1 %v4572_v26  ;;  %v3654_v11 = vcombine.low %v592_v0, %v602_v4  ;;  %v611_v13 = vrot.slane %v610_v1, 4  ;;  %v621_v14 = vrot.slane %v620_v2, 4  ;;  %v647_v21 = vshll.u32 %v5020_v17, 16  ;;  %v4587_v0 = vld [vmem:[%s6066_s1 + $0xa8] sm:$0xff]   ;;  %v5067_v1 = vld [vmem:[%s4950_s18 + $0x34] sm:$0xf] }
  0x5c   : >> { %v633_v34 = vrot.slane %v631_v12, 5  ;;  %v639_v35 = vrot.slane %v637_v16, 5  ;;  %v643_v36 = vrot.slane %v641_v20, 4  ;;  %v652_v39 = vshrl.u32 %v5028_v22, 16  ;;  %v5070_v2 = vld [vmem:[%s4950_s18 + $0x38] sm:$0x1] }
  0x5d   : >> { %4227 = vmatpush3.bf16.msra.mxu0 %v4571_v25  ;;  %4234 = vmatprep.mubr.bf16.mxu0 %v3654_v11  ;;  %v616_v23 = vsel %vm4989_vm10, %v611_v13, %v615_v59  ;;  %v626_v24 = vsel %vm4989_vm10, %v621_v14, %v625_v3  ;;  %v630_v25 = vrot.slane %v628_v5, 4  ;;  %v649_v38 = vrot.slane %v647_v21, 5  ;;  %v5079_v14 = vld [vmem:[%s4950_s18 + $0x3c] sm:$0xf]  ;;  %v5084_v20 = vld [vmem:[%s4950_s18 + $0x40] sm:$0xf] }
  0x5e   : >> { %4259 = vmatpush3.bf16.msra.mxu1 %v4572_v26  ;;  %4228 = vmatprep.subr.bf16.mxu0 %v4573_v27  ;;  %v5035_v26 = vld [vmem:[%s4950_s18 + $0x28] sm:$0xf]  ;;  %v3655_v32 = vcombine.low %v616_v23, %v626_v24  ;;  %v655_v40 = vshll.u32 %v5028_v22, 16  ;;  %v644_v45 = vor.u32 %v643_v36, %v639_v35  ;;  %v3672_v49 = vcombine.low %v5010_v8, %v5013_v9  ;;  %v4589_v23 = vld [vmem:[%s6066_s1 + $0xa0] sm:$0xff]  }
  0x5f   : >> { %4260 = vmatprep.subr.bf16.mxu1 %v4574_v28  ;;  %v634_v44 = vor.u32 %v633_v34, %v630_v25  ;;  %v665_v46 = vshrl.u32 %v5035_v26, 16  ;;  %v654_v50 = vrot.slane %v652_v39, 4  ;;  %v3673_v59 = vcombine.low %v5028_v22, %v5035_v26  ;;  %v5094_v34 = vld [vmem:[%s4950_s18 + $0x44] sm:$0x1] }
  0x60   : >> { %v657_v51 = vrot.slane %v655_v40, 5  ;;  %v645_v55 = vrot.slane %v644_v45, 4  ;;  %v676_v3 = vshrl.u32 %v5057_v60, 16  ;;  %v679_v11 = vshll.u32 %v5057_v60, 16 }
  0x61   : >> { %4229 = vmatpush3.bf16.msra.mxu0 %v4573_v27  ;;  %v5038_v27 = vld [vmem:[%s4950_s18 + $0x2c] sm:$0x1]  ;;  %v635_v54 = vrot.slane %v634_v44, 4  ;;  %v667_v56 = vrot.slane %v665_v46, 4  ;;  %v685_v13 = vshll.u32 %v5067_v1, 16  ;;  %v689_v12 = vshrl.u32 %v5067_v1, 16 }
  0x62   : >> { %4261 = vmatpush3.bf16.msra.mxu1 %v4574_v28  ;;  %4230 = vmatprep.subr.bf16.mxu0 %v4575_v43  ;;  %v1171_v28 = vrot.slane %v4956_v30, 5  ;;  %v658_v58 = vor.u32 %v657_v51, %v654_v50  ;;  %v650_v62 = vsel %vm4989_vm10, %v645_v55, %v649_v38  ;;  %v678_v5 = vrot.slane %v676_v3, 4 }
  0x63   : >> { %4262 = vmatprep.subr.bf16.mxu1 %v4576_v47  ;;  %v695_v16 = vshll.u32 %v5070_v2, 16  ;;  %v681_v24 = vrot.slane %v679_v11, 5  ;;  %v687_v25 = vrot.slane %v685_v13, 5  ;;  %v691_v36 = vrot.slane %v689_v12, 4  ;;  %v5130_v13 = vld [vmem:[%s4950_s18 + $0x54] sm:$0xf] }
  0x64   : >> { %v700_v39 = vshrl.u32 %v5079_v14, 16  ;;  %v703_v44 = vshll.u32 %v5079_v14, 16  ;;  %v709_v45 = vshll.u32 %v5084_v20, 16  ;;  %v4595_v12 = vld [vmem:[%s6066_s1 + $0x90] sm:$0xff]  }
  0x65   : >> { %4231 = vmatpush3.bf16.msra.mxu0 %v4575_v43  ;;  %v661_v43 = vshll.u32 %v5035_v26, 16  ;;  %v697_v38 = vrot.slane %v695_v16, 5  ;;  %v692_v46 = vor.u32 %v691_v36, %v687_v25 }
  0x66   : >> { %4263 = vmatpush3.bf16.msra.mxu1 %v4576_v47  ;;  %4232 = vmatprep.subr.bf16.mxu0 %v4577_v61  ;;  %v671_v47 = vshll.u32 %v5038_v27, 16  ;;  %v705_v51 = vrot.slane %v703_v44, 5 }
  0x67   : >> { %4264 = vmatprep.subr.bf16.mxu1 %v4578_v63  ;;  %v663_v53 = vrot.slane %v661_v43, 5  ;;  %v682_v43 = vor.u32 %v681_v24, %v678_v5  ;;  %v693_v55 = vrot.slane %v692_v46, 4  ;;  %v5138_v24 = vld [vmem:[%s4950_s18 + $0x58] sm:$0xf] }
  0x68   : >> { %v673_v57 = vrot.slane %v671_v47, 5  ;;  %v702_v47 = vrot.slane %v700_v39, 4  ;;  %v5145_v39 = vld [vmem:[%s4950_s18 + $0x5c] sm:$0x1] }
  0x69   : >> { %4233 = vmatpush3.bf16.msra.mxu0 %v4577_v61  ;;  %v640_v61 = vsel %vm4989_vm10, %v635_v54, %v639_v35  ;;  %v683_v50 = vrot.slane %v682_v43, 4  ;;  %v4593_v54 = vld [vmem:[%s6066_s1 + $0x98] sm:$0xff]   ;;  %v698_v3 = vsel %vm4989_vm10, %v693_v55, %v697_v38 }
  0x6a   : >> { %4265 = vmatpush3.bf16.msra.mxu1 %v4578_v63  ;;  %4282 = vmatprep.subr.bf16.mxu0 %v4581_v7  ;;  %v668_v63 = vor.u32 %v667_v56, %v663_v53  ;;  %v3656_v4 = vcombine.low %v640_v61, %v650_v62  ;;  %v706_v61 = vor.u32 %v705_v51, %v702_v47  ;;  %v748_v47 = vshrl.u32 %v5130_v13, 16 }
  0x6b   : >> { %4314 = vmatprep.subr.bf16.mxu1 %v4582_v15  ;;  %v3675_v62 = vcombine.low %v5079_v14, %v5084_v20  ;;  %v757_v51 = vshll.u32 %v5138_v24, 16 }
  0x6c   : >> { %4235 = vmatmul.mubr.bf16.vlgmr.msra.gmra.mxu0 %v3655_v32  ;;  %v3674_v32 = vcombine.low %v5057_v60, %v5067_v1  ;;  %v707_v5 = vrot.slane %v706_v61, 4 }
  0x6d   : >> { %4267 = vmatmul.mubr.bf16.vlgmr.msra.gmra.mxu1 %v3671_v6  ;;  %4283 = vmatpush3.bf16.msra.mxu0 %v4581_v7  ;;  %v659_v6 = vrot.slane %v658_v58, 4  ;;  %v4588_v7 = vld [vmem:[%s6066_s1 + $0xe8] sm:$0xff]   ;;  %v4594_v58 = vld [vmem:[%s6066_s1 + $0xd8] sm:$0xff]  }
  0x6e   : >> { %4315 = vmatpush3.bf16.msra.mxu1 %v4582_v15  ;;  %4284 = vmatprep.subr.bf16.mxu0 %v4583_v33  ;;  %v669_v15 = vrot.slane %v668_v63, 4  ;;  %v5117_v63 = vld [vmem:[%s4950_s18 + $0x48] sm:$0xf] }
  0x6f   : >> { %4316 = vmatprep.subr.bf16.mxu1 %v4584_v48  ;;  %4270 = vmatprep.mubr.bf16.mxu1 %v3672_v49  ;;  %v664_v21 = vsel %vm4989_vm10, %v659_v6, %v663_v53  ;;  %v719_v49 = vshll.u32 %v5094_v34, 16  ;;  %v711_v53 = vrot.slane %v709_v45, 5  ;;  %v5125_v6 = vld [vmem:[%s4950_s18 + $0x50] sm:$0x1]  ;;  %v727_v11 = vshll.u32 %v5117_v63, 16 }
  0x70   : >> { %4238 = vmatprep.mubr.bf16.mxu0 %v3656_v4  ;;  %v674_v35 = vsel %vm4989_vm10, %v669_v15, %v673_v57  ;;  %v743_v38 = vshll.u32 %v5125_v6, 16 }
  0x71   : >> { %4285 = vmatpush3.bf16.msra.mxu0 %v4583_v33  ;;  %v4590_v33 = vld [vmem:[%s6066_s1 + $0xe0] sm:$0xff]   ;;  %v3657_v40 = vcombine.low %v664_v21, %v674_v35  ;;  %v721_v57 = vrot.slane %v719_v49, 5  ;;  %v729_v36 = vrot.slane %v727_v11, 5 }
  0x72   : >> { %4317 = vmatpush3.bf16.msra.mxu1 %v4584_v48  ;;  %4286 = vmatprep.subr.bf16.mxu0 %v4587_v0  ;;  %v713_v48 = vshrl.u32 %v5084_v20, 16  ;;  %v745_v46 = vrot.slane %v743_v38, 5 }
  0x73   : >> { %4318 = vmatprep.subr.bf16.mxu1 %v4588_v7 }
  0x74   : >> { %4239 = vmatmul.mubr.bf16.gmra.mxu0 %v3657_v40  ;;  %v715_v56 = vrot.slane %v713_v48, 4  ;;  %v712_v40 = vsel %vm4989_vm10, %v707_v5, %v711_v53  ;;  %v1181_v5 = vrot.slane %v4975_v42, 5 }
  0x75   : >> { %4271 = vmatmul.mubr.bf16.gmra.mxu1 %v3673_v59  ;;  %4287 = vmatpush3.bf16.msra.mxu0 %v4587_v0  ;;  %v688_v59 = vsel %vm4989_vm10, %v683_v50, %v687_v25  ;;  %v5120_v0 = vld [vmem:[%s4950_s18 + $0x4c] sm:$0xf]  ;;  %v751_v50 = vshll.u32 %v5130_v13, 16 }
  0x76   : >> { %4319 = vmatpush3.bf16.msra.mxu1 %v4588_v7  ;;  %4288 = vmatprep.subr.bf16.mxu0 %v4589_v23  ;;  %v716_v4 = vor.u32 %v715_v56, %v711_v53  ;;  %v724_v7 = vshrl.u32 %v5117_v63, 16  ;;  %v3658_v15 = vcombine.low %v688_v59, %v698_v3  ;;  %v733_v16 = vshll.u32 %v5120_v0, 16  ;;  %v4599_v53 = vld [vmem:[%s6066_s1 + $0x88] sm:$0xff]  }
  0x77   : >> { %4320 = vmatprep.subr.bf16.mxu1 %v4590_v33  ;;  %4274 = vmatprep.mubr.bf16.mxu1 %v3674_v32  ;;  %v737_v21 = vshrl.u32 %v5120_v0, 16  ;;  %v4596_v32 = vld [vmem:[%s6066_s1 + $0xd0] sm:$0xff]   ;;  %v750_v56 = vrot.slane %v748_v47, 4  ;;  %v767_v59 = vshll.u32 %v5145_v39, 16  ;;  %v759_v3 = vrot.slane %v757_v51, 5 }
  0x78   : >> { %v717_v25 = vrot.slane %v716_v4, 4  ;;  %v726_v35 = vrot.slane %v724_v7, 4  ;;  %4242 = vmatprep.mubr.bf16.mxu0 %v3658_v15  ;;  %v735_v43 = vrot.slane %v733_v16, 5  ;;  %v4600_v4 = vld [vmem:[%s6066_s1 + $0xc8] sm:$0xff]   ;;  %v1173_v15 = vrot.slane %v1171_v28, 4 }
  0x79   : >> { %4289 = vmatpush3.bf16.msra.mxu0 %v4589_v23  ;;  %v739_v44 = vrot.slane %v737_v21, 4  ;;  %v3676_v23 = vcombine.low %v5117_v63, %v5120_v0  ;;  %v3677_v21 = vcombine.low %v5130_v13, %v5138_v24  ;;  %v1178_v47 = vrot.slane %v4972_v41, 5 }
  0x7a   : >> { %4321 = vmatpush3.bf16.msra.mxu1 %v4590_v33  ;;  %4290 = vmatprep.subr.bf16.mxu0 %v4593_v54  ;;  %v722_v33 = vsel %vm4989_vm10, %v717_v25, %v721_v57  ;;  %v730_v45 = vor.u32 %v729_v36, %v726_v35  ;;  %v761_v57 = vshrl.u32 %v5138_v24, 16  ;;  %v4601_v25 = vld [vmem:[%s6066_s1 + $0x80] sm:$0xff]   ;;  %v5184_v35 = vld [vmem:[%s4950_s18 + $0xc] sm:$0xf]  ;;  %v5187_v36 = vld [vmem:[%s4950_s18 + $0x10] sm:$0xf] }
  0x7b   : >> { %4322 = vmatprep.subr.bf16.mxu1 %v4594_v58  ;;  %v3659_v48 = vcombine.low %v712_v40, %v722_v33  ;;  %v740_v49 = vor.u32 %v739_v44, %v735_v43  ;;  %v769_v40 = vrot.slane %v767_v59, 5  ;;  %v5193_v44 = vld [vmem:[%s4950_s18 + $0x18] sm:$0xf]  ;;  %v1693_v30 = vshll.u32 %v5184_v35, 16 }
  0x7c   : >> { %v731_v55 = vrot.slane %v730_v45, 4  ;;  %v763_v7 = vrot.slane %v761_v57, 4  ;;  %v1180_v41 = vrot.slane %v1178_v47, 4  ;;  %v5227_v57 = vld [vmem:[%s4950_s18 + $0x24] sm:$0xf]  ;;  %v1714_v59 = vshrl.u32 %v5193_v44, 16 }
  0x7d   : >> { %4275 = vmatmul.mubr.bf16.gmra.mxu1 %v3675_v62  ;;  %4291 = vmatpush3.bf16.msra.mxu0 %v4593_v54  ;;  %v741_v61 = vrot.slane %v740_v49, 4  ;;  %v753_v62 = vrot.slane %v751_v50, 5  ;;  %v1174_v54 = vrot.slane %v4959_v31, 5  ;;  %v1703_v49 = vshrl.u32 %v5187_v36, 16 }
  0x7e   : >> { %4323 = vmatpush3.bf16.msra.mxu1 %v4594_v58  ;;  %4243 = vmatmul.mubr.bf16.gmra.mxu0 %v3659_v48  ;;  %v736_v58 = vsel %vm4989_vm10, %v731_v55, %v735_v43  ;;  %v764_v42 = vor.u32 %v763_v7, %v759_v3  ;;  %v4602_v43 = vld [vmem:[%s6066_s1 + $0xc0] sm:$0xff]   ;;  %v5208_v48 = vld [vmem:[%s4950_s18 + $0x1c] sm:$0xf] }
  0x7f   : >> { %4292 = vmatprep.subr.bf16.mxu0 %v4595_v12  ;;  %4324 = vmatprep.subr.bf16.mxu1 %v4596_v32  ;;  %v746_v31 = vsel %vm4989_vm10, %v741_v61, %v745_v46  ;;  %v754_v16 = vor.u32 %v753_v62, %v750_v56  ;;  %v1175_v45 = vsel %vm5169_vm13, %v1173_v15, %v1174_v54  ;;  %v1185_v56 = vrot.slane %v5013_v9, 5 }
  0x80   : >> { %4278 = vmatprep.mubr.bf16.mxu1 %v3676_v23  ;;  %v3660_v38 = vcombine.low %v736_v58, %v746_v31  ;;  %v765_v33 = vrot.slane %v764_v42, 4  ;;  %v3768_v46 = vcombine.low %v5184_v35, %v5187_v36  ;;  %v3769_v55 = vcombine.low %v5193_v44, %v5208_v48  ;;  %v4608_v58 = vld [vmem:[%s6066_s1 + $0x170] sm:$0xff]  }
  0x81   : >> { %4293 = vmatpush3.bf16.msra.mxu0 %v4595_v12  ;;  %v755_v23 = vrot.slane %v754_v16, 4  ;;  %v1172_v12 = vsel %vm5169_vm13, %v3686_v10, %v1171_v28  ;;  %v3687_v10 = vrot.slane %v4967_v37, 9  ;;  %v4605_v37 = vld [vmem:[%s6066_s1 + $0x138] sm:$0xff]   ;;  %v1717_v61 = vshll.u32 %v5193_v44, 16 }
  0x82   : >> { %4325 = vmatpush3.bf16.msra.mxu1 %v4596_v32  ;;  %4294 = vmatprep.subr.bf16.mxu0 %v4599_v53  ;;  %v1690_v32 = vshrl.u32 %v5184_v35, 16  ;;  %v770_v28 = vsel %vm4989_vm10, %v765_v33, %v769_v40  ;;  %v3710_v51 = vcombine.low %v1172_v12, %v1175_v45  ;;  %v3688_v62 = vrot.slane %v5010_v8, 9 }
  0x83   : >> { %4326 = vmatprep.subr.bf16.mxu1 %v4600_v4  ;;  %4246 = vmatprep.mubr.bf16.mxu0 %v3660_v38  ;;  %v760_v29 = vsel %vm4989_vm10, %v755_v23, %v759_v3  ;;  %v1188_v3 = vrot.slane %v5020_v17, 5  ;;  %v1179_v54 = vsel %vm5169_vm13, %v3687_v10, %v1178_v47  ;;  %v1727_v9 = vshrl.u32 %v5208_v48, 16 }
  0x84   : >> { %v3661_v50 = vcombine.low %v760_v29, %v770_v28  ;;  %v1187_v7 = vrot.slane %v1185_v56, 4  ;;  %v1738_v15 = vshrl.u32 %v5227_v57, 16  ;;  %v1182_v8 = vsel %vm5169_vm13, %v1180_v41, %v1181_v5  ;;  %v4612_v29 = vld [vmem:[%s6066_s1 + $0x168] sm:$0xff]   ;;  %v5277_v41 = vld [vmem:[%s4950_s18 + $0x3c] sm:$0xf] }
  0x85   : >> { %4279 = vmatmul.mubr.bf16.gmra.mxu1 %v3677_v21  ;;  %4295 = vmatpush3.bf16.msra.mxu0 %v4599_v53  ;;  %v4606_v53 = vld [vmem:[%s6066_s1 + $0x178] sm:$0xff]   ;;  %v1741_v31 = vshll.u32 %v5227_v57, 16  ;;  %v1192_v16 = vrot.slane %v5035_v26, 5  ;;  %v5250_v21 = vld [vmem:[%s4950_s18 + $0x30] sm:$0xf]  ;;  %v3689_v42 = vrot.slane %v5028_v22, 9  ;;  %v1186_v5 = vsel %vm5169_vm13, %v3688_v62, %v1185_v56 }
  0x86   : >> { %4327 = vmatpush3.bf16.msra.mxu1 %v4600_v4  ;;  %4296 = vmatprep.subr.bf16.mxu0 %v4601_v25  ;;  %v5234_v4 = vld [vmem:[%s4950_s18 + $0x28] sm:$0xf]  ;;  %v1189_v40 = vsel %vm5169_vm13, %v1187_v7, %v1188_v3  ;;  %v1195_v26 = vrot.slane %v5038_v27, 5  ;;  %v3711_v23 = vcombine.low %v1179_v54, %v1182_v8  ;;  %v4607_v22 = vld [vmem:[%s6066_s1 + $0x130] sm:$0xff]   ;;  %v1762_v33 = vshrl.u32 %v5250_v21, 16  ;;  %v4614_v62 = vld [vmem:[%s6066_s1 + $0x160] sm:$0xff]  }
  0x87   : >> { %4328 = vmatprep.subr.bf16.mxu1 %v4602_v43  ;;  %4330 = vmatprep.mubr.bf16.mxu1 %v3768_v46  ;;  %v3770_v17 = vcombine.low %v5227_v57, %v5234_v4  ;;  %v1751_v38 = vshrl.u32 %v5234_v4, 16  ;;  %v1765_v45 = vshll.u32 %v5250_v21, 16  ;;  %v1199_v46 = vrot.slane %v5067_v1, 5  ;;  %v5302_v8 = vld [vmem:[%s4950_s18 + $0x4c] sm:$0xf] }
  0x88   : >> { %4247 = vmatmul.mubr.bf16.gmra.mxu0 %v3661_v50  ;;  %v3712_v27 = vcombine.low %v1186_v5, %v1189_v40  ;;  %v3690_v10 = vrot.slane %v5057_v60, 9  ;;  %v1202_v28 = vrot.slane %v5070_v2, 5  ;;  %v1786_v1 = vshrl.u32 %v5277_v41, 16  ;;  %v4611_v2 = vld [vmem:[%s6066_s1 + $0x128] sm:$0xff]  }
  0x89   : >> { %4297 = vmatpush3.bf16.msra.mxu0 %v4601_v25  ;;  %4298 = vmatprep.mubr.bf16.mxu0 %v3710_v51  ;;  %v5255_v25 = vld [vmem:[%s4950_s18 + $0x34] sm:$0xf]  ;;  %v1201_v50 = vrot.slane %v1199_v46, 4  ;;  %v5280_v51 = vld [vmem:[%s4950_s18 + $0x40] sm:$0xf]  ;;  %v1193_v56 = vsel %vm5169_vm13, %v3689_v42, %v1192_v16  ;;  %v1206_v54 = vrot.slane %v5084_v20, 5 }
  0x8a   : >> { %4329 = vmatpush3.bf16.msra.mxu1 %v4602_v43  ;;  %4346 = vmatprep.subr.bf16.mxu0 %v4605_v37  ;;  %v1194_v43 = vrot.slane %v1192_v16, 4  ;;  %v3771_v12 = vcombine.low %v5250_v21, %v5255_v25  ;;  %v1775_v47 = vshrl.u32 %v5255_v25, 16  ;;  %v1799_v3 = vshrl.u32 %v5280_v51, 16 }
  0x8b   : >> { %4378 = vmatprep.subr.bf16.mxu1 %v4606_v53  ;;  %v1209_v7 = vrot.slane %v5094_v34, 5  ;;  %v1200_v16 = vsel %vm5169_vm13, %v3690_v10, %v1199_v46  ;;  %v1203_v42 = vsel %vm5169_vm13, %v1201_v50, %v1202_v28  ;;  %v1208_v5 = vrot.slane %v1206_v54, 4 }
  0x8c   : >> { %v1196_v60 = vsel %vm5169_vm13, %v1194_v43, %v1195_v26  ;;  %v3772_v34 = vcombine.low %v5277_v41, %v5280_v51  ;;  %v1823_v40 = vshrl.u32 %v5302_v8, 16  ;;  %v3692_v43 = vrot.slane %v5117_v63, 9  ;;  %v4618_v63 = vld [vmem:[%s6066_s1 + $0x158] sm:$0xff]  }
  0x8d   : >> { %4331 = vmatmul.mubr.bf16.vlgmr.msra.gmra.mxu1 %v3769_v55  ;;  %v1789_v55 = vshll.u32 %v5277_v41, 16  ;;  %v1213_v26 = vrot.slane %v5120_v0, 5  ;;  %v3714_v46 = vcombine.low %v1200_v16, %v1203_v42  ;;  %v5331_v0 = vld [vmem:[%s4950_s18 + $0x54] sm:$0xf]  ;;  %v4617_v16 = vld [vmem:[%s6066_s1 + $0x118] sm:$0xff]  }
  0x8e   : >> { %4379 = vmatpush3.bf16.msra.mxu1 %v4606_v53  ;;  %4334 = vmatprep.mubr.bf16.mxu1 %v3770_v17  ;;  %v3691_v53 = vrot.slane %v5079_v14, 9  ;;  %v5298_v14 = vld [vmem:[%s4950_s18 + $0x48] sm:$0xf]  ;;  %v1834_v10 = vshrl.u32 %v5331_v0, 16  ;;  %v4620_v42 = vld [vmem:[%s6066_s1 + $0x150] sm:$0xff]  }
  0x8f   : >> { %4380 = vmatprep.subr.bf16.mxu1 %v4608_v58  ;;  %v1810_v17 = vshrl.u32 %v5298_v14, 16  ;;  %v1813_v20 = vshll.u32 %v5298_v14, 16 }
  0x90   : >> { %4299 = vmatmul.mubr.bf16.vlgmr.msra.gmra.mxu0 %v3711_v23  ;;  %v1216_v23 = vrot.slane %v5125_v6, 5  ;;  %v5334_v6 = vld [vmem:[%s4950_s18 + $0x58] sm:$0xf] }
  0x91   : >> { %4347 = vmatpush3.bf16.msra.mxu0 %v4605_v37  ;;  %4302 = vmatprep.mubr.bf16.mxu0 %v3712_v27  ;;  %v3713_v37 = vcombine.low %v1193_v56, %v1196_v60  ;;  %v5321_v27 = vsel %vm5169_vm13, %v3691_v53, %v1206_v54  ;;  %v5341_v53 = vld [vmem:[%s4950_s18 + $0x60] sm:$0xf]  ;;  %v5345_v56 = vsel %vm5169_vm13, %v3692_v43, %v1213_v26  ;;  %v1220_v60 = vrot.slane %v5138_v24, 5  ;;  %v5350_v54 = vld [vmem:[%s4950_s18 + $0x64] sm:$0xf] }
  0x92   : >> { %4381 = vmatpush3.bf16.msra.mxu1 %v4608_v58  ;;  %4348 = vmatprep.subr.bf16.mxu0 %v4607_v22  ;;  %v4613_v58 = vld [vmem:[%s6066_s1 + $0x120] sm:$0xff]  }
  0x93   : >> { %4382 = vmatprep.subr.bf16.mxu1 %v4612_v29  ;;  %v1222_v43 = vrot.slane %v1220_v60, 4 }
  0x95   : >> { %4335 = vmatmul.mubr.bf16.gmra.mxu1 %v3771_v12  ;;  %4349 = vmatpush3.bf16.msra.mxu0 %v4607_v22  ;;  %v5325_v12 = vsel %vm5169_vm13, %v1208_v5, %v1209_v7  ;;  %v3693_v22 = vrot.slane %v5130_v13, 9  ;;  %v1223_v13 = vrot.slane %v5145_v39, 5  ;;  %v3773_v7 = vcombine.low %v5298_v14, %v5302_v8 }
  0x96   : >> { %4383 = vmatpush3.bf16.msra.mxu1 %v4612_v29  ;;  %4350 = vmatprep.subr.bf16.mxu0 %v4611_v2  ;;  %v1215_v29 = vrot.slane %v1213_v26, 4  ;;  %v2101_v39 = vrot.slane %v5187_v36, 5 }
  0x97   : >> { %4384 = vmatprep.subr.bf16.mxu1 %v4614_v62  ;;  %4338 = vmatprep.mubr.bf16.mxu1 %v3772_v34  ;;  %v5368_v34 = vsel %vm5169_vm13, %v3693_v22, %v1220_v60  ;;  %v1699_v22 = vshll.u32 %v5187_v36, 16 }
  0x98   : >> { %4303 = vmatmul.mubr.bf16.gmra.mxu0 %v3713_v37  ;;  %v1217_v5 = vsel %vm5169_vm13, %v1215_v29, %v1216_v23  ;;  %v3715_v37 = vcombine.low %v5321_v27, %v5325_v12  ;;  %v3774_v29 = vcombine.low %v5331_v0, %v5334_v6  ;;  %v3730_v27 = vld [vmem:[%s4950_s18 + $0x14] sm:$0x1]  ;;  %v1692_v12 = vrot.slane %v1690_v32, 4  ;;  %v5395_v32 = vld [vmem:[%s4950_s18 + $0x20] sm:$0x1] }
  0x99   : >> { %4351 = vmatpush3.bf16.msra.mxu0 %v4611_v2  ;;  %4306 = vmatprep.mubr.bf16.mxu0 %v3714_v46  ;;  %v3716_v23 = vcombine.low %v5345_v56, %v1217_v5  ;;  %v3775_v2 = vcombine.low %v5341_v53, %v5350_v54  ;;  %v1695_v46 = vrot.slane %v1693_v30, 5  ;;  %v4619_v56 = vld [vmem:[%s6066_s1 + $0x110] sm:$0xff]   ;;  %v1709_v5 = vshll.u32 %v3730_v27, 16  ;;  %v4624_v30 = vld [vmem:[%s6066_s1 + $0x148] sm:$0xff]  }
  0x9a   : >> { %4385 = vmatpush3.bf16.msra.mxu1 %v4614_v62  ;;  %4352 = vmatprep.subr.bf16.mxu0 %v4613_v58  ;;  %v5378_v62 = vsel %vm5169_vm13, %v1222_v43, %v1223_v13  ;;  %v1705_v13 = vrot.slane %v1703_v49, 4  ;;  %v3816_v43 = vrot.slane %v5184_v35, 9  ;;  %v1701_v26 = vrot.slane %v1699_v22, 5 }
  0x9b   : >> { %4386 = vmatprep.subr.bf16.mxu1 %v4618_v63  ;;  %v3717_v60 = vcombine.low %v5368_v34, %v5378_v62  ;;  %v2104_v24 = vrot.slane %v3730_v27, 5  ;;  %v1711_v50 = vrot.slane %v1709_v5, 5  ;;  %v1716_v49 = vrot.slane %v1714_v59, 4  ;;  %v4627_v34 = vld [vmem:[%s6066_s1 + $0x1b8] sm:$0xff]   ;;  %v4630_v62 = vld [vmem:[%s6066_s1 + $0x1f0] sm:$0xff]  }
  0x9c   : >> { %v1719_v35 = vrot.slane %v1717_v61, 5  ;;  %v1706_v28 = vor.u32 %v1705_v13, %v1701_v26  ;;  %v1729_v22 = vrot.slane %v1727_v9, 4  ;;  %v1733_v59 = vshll.u32 %v5395_v32, 16  ;;  %v4623_v9 = vld [vmem:[%s6066_s1 + $0x108] sm:$0xff]  }
  0x9d   : >> { %4339 = vmatmul.mubr.bf16.gmra.mxu1 %v3773_v7  ;;  %4353 = vmatpush3.bf16.msra.mxu0 %v4613_v58  ;;  %v1696_v7 = vor.u32 %v1695_v46, %v1692_v12  ;;  %v1723_v58 = vshll.u32 %v5208_v48, 16  ;;  %v2102_v12 = vsel %vm5169_vm13, %v3816_v43, %v2101_v39  ;;  %v2103_v46 = vrot.slane %v2101_v39, 4 }
  0x9e   : >> { %4387 = vmatpush3.bf16.msra.mxu1 %v4618_v63  ;;  %4354 = vmatprep.subr.bf16.mxu0 %v4617_v16  ;;  %v1720_v36 = vor.u32 %v1719_v35, %v1716_v49  ;;  %v3817_v39 = vrot.slane %v5193_v44, 9  ;;  %v1735_v5 = vrot.slane %v1733_v59, 5  ;;  %v2108_v44 = vrot.slane %v5208_v48, 5  ;;  %v3739_v59 = vld [vmem:[%s4950_s18 + $0x38] sm:$0x1] }
  0x9f   : >> { %4388 = vmatprep.subr.bf16.mxu1 %v4620_v42  ;;  %4342 = vmatprep.mubr.bf16.mxu1 %v3774_v29  ;;  %v1697_v63 = vrot.slane %v1696_v7, 4  ;;  %v1725_v27 = vrot.slane %v1723_v58, 5  ;;  %v1707_v29 = vrot.slane %v1706_v28, 4  ;;  %v2105_v13 = vsel %vm5169_vm13, %v2103_v46, %v2104_v24  ;;  %v4625_v7 = vld [vmem:[%s6066_s1 + $0x100] sm:$0xff]  }
  0xa0   : >> { %4307 = vmatmul.mubr.bf16.gmra.mxu0 %v3715_v37  ;;  %v1721_v37 = vrot.slane %v1720_v36, 4  ;;  %v2111_v24 = vrot.slane %v5395_v32, 5  ;;  %v1740_v43 = vrot.slane %v1738_v15, 4  ;;  %v2109_v48 = vsel %vm5169_vm13, %v3817_v39, %v2108_v44 }
  0xa1   : >> { %4355 = vmatpush3.bf16.msra.mxu0 %v4617_v16  ;;  %v1702_v61 = vsel %vm4989_vm10, %v1697_v63, %v1701_v26  ;;  %4310 = vmatprep.mubr.bf16.mxu0 %v3716_v23  ;;  %v4626_v16 = vld [vmem:[%s6066_s1 + $0x140] sm:$0xff]   ;;  %v1730_v26 = vor.u32 %v1729_v22, %v1725_v27  ;;  %v1712_v28 = vsel %vm4989_vm10, %v1707_v29, %v1711_v50  ;;  %v3736_v23 = vld [vmem:[%s4950_s18 + $0x2c] sm:$0x1]  ;;  %v1743_v50 = vrot.slane %v1741_v31, 5 }
  0xa2   : >> { %4389 = vmatpush3.bf16.msra.mxu1 %v4620_v42  ;;  %4356 = vmatprep.subr.bf16.mxu0 %v4619_v56  ;;  %v3840_v42 = vcombine.low %v2102_v12, %v2105_v13  ;;  %v3800_v49 = vcombine.low %v1702_v61, %v1712_v28  ;;  %v1726_v35 = vsel %vm4989_vm10, %v1721_v37, %v1725_v27  ;;  %v2110_v15 = vrot.slane %v2108_v44, 4  ;;  %v5475_v44 = vld [vmem:[%s4950_s18 + $0x44] sm:$0x1] }
  0xa3   : >> { %4390 = vmatprep.subr.bf16.mxu1 %v4624_v30  ;;  %v1731_v58 = vrot.slane %v1730_v26, 4  ;;  %v1747_v32 = vshll.u32 %v5234_v4, 16  ;;  %v1753_v63 = vrot.slane %v1751_v38, 4  ;;  %v3818_v12 = vrot.slane %v5227_v57, 9 }
  0xa4   : >> { %v2112_v36 = vsel %vm5169_vm13, %v2110_v15, %v2111_v24  ;;  %v2115_v22 = vrot.slane %v5234_v4, 5  ;;  %v2118_v13 = vrot.slane %v3736_v23, 5  ;;  %v1764_v4 = vrot.slane %v1762_v33, 4 }
  0xa5   : >> { %4343 = vmatmul.mubr.bf16.gmra.mxu1 %v3775_v2  ;;  %4357 = vmatpush3.bf16.msra.mxu0 %v4619_v56  ;;  %v4628_v2 = vld [vmem:[%s6066_s1 + $0x1f8] sm:$0xff]   ;;  %v1736_v31 = vsel %vm4989_vm10, %v1731_v58, %v1735_v5  ;;  %v1744_v56 = vor.u32 %v1743_v50, %v1740_v43  ;;  %v1749_v27 = vrot.slane %v1747_v32, 5  ;;  %v3841_v38 = vcombine.low %v2109_v48, %v2112_v36  ;;  %v4631_v36 = vld [vmem:[%s6066_s1 + $0x1a8] sm:$0xff]  }
  0xa6   : >> { %4391 = vmatpush3.bf16.msra.mxu1 %v4624_v30  ;;  %4358 = vmatprep.subr.bf16.mxu0 %v4623_v9  ;;  %v1757_v30 = vshll.u32 %v3736_v23, 16  ;;  %v3801_v46 = vcombine.low %v1726_v35, %v1736_v31  ;;  %v2116_v39 = vsel %vm5169_vm13, %v3818_v12, %v2115_v22  ;;  %v1777_v33 = vrot.slane %v1775_v47, 4  ;;  %v4629_v47 = vld [vmem:[%s6066_s1 + $0x1b0] sm:$0xff]  }
  0xa7   : >> { %4392 = vmatprep.subr.bf16.mxu1 %v4626_v16  ;;  %4394 = vmatprep.mubr.bf16.mxu1 %v3840_v42  ;;  %v1745_v61 = vrot.slane %v1744_v56, 4  ;;  %v1754_v57 = vor.u32 %v1753_v63, %v1749_v27  ;;  %v2117_v42 = vrot.slane %v2115_v22, 4  ;;  %v1781_v5 = vshll.u32 %v3739_v59, 16 }
  0xa8   : >> { %4311 = vmatmul.mubr.bf16.gmra.mxu0 %v3717_v60  ;;  %v1759_v29 = vrot.slane %v1757_v30, 5  ;;  %v3819_v28 = vrot.slane %v5250_v21, 9  ;;  %v2125_v58 = vrot.slane %v3739_v59, 5  ;;  %v1788_v21 = vrot.slane %v1786_v1, 4  ;;  %v3745_v59 = vld [vmem:[%s4950_s18 + $0x50] sm:$0x1] }
  0xa9   : >> { %4359 = vmatpush3.bf16.msra.mxu0 %v4623_v9  ;;  %4362 = vmatprep.mubr.bf16.mxu0 %v3800_v49  ;;  %v1750_v60 = vsel %vm4989_vm10, %v1745_v61, %v1749_v27  ;;  %v1767_v9 = vrot.slane %v1765_v45, 5  ;;  %v1755_v37 = vrot.slane %v1754_v57, 4  ;;  %v2119_v26 = vsel %vm5169_vm13, %v2117_v42, %v2118_v13 }
  0xaa   : >> { %4393 = vmatpush3.bf16.msra.mxu1 %v4626_v16  ;;  %4360 = vmatprep.subr.bf16.mxu0 %v4625_v7  ;;  %v1771_v16 = vshll.u32 %v5255_v25, 16  ;;  %v3842_v24 = vcombine.low %v2116_v39, %v2119_v26  ;;  %v2122_v45 = vrot.slane %v5255_v25, 5  ;;  %v1783_v35 = vrot.slane %v1781_v5, 5 }
  0xab   : >> { %4442 = vmatprep.subr.bf16.mxu1 %v4628_v2  ;;  %v1768_v23 = vor.u32 %v1767_v9, %v1764_v4  ;;  %v1760_v49 = vsel %vm4989_vm10, %v1755_v37, %v1759_v29  ;;  %v1791_v32 = vrot.slane %v1789_v55, 5  ;;  %v1795_v1 = vshll.u32 %v5280_v51, 16 }
  0xac   : >> { %v1773_v43 = vrot.slane %v1771_v16, 5  ;;  %v3802_v50 = vcombine.low %v1750_v60, %v1760_v49  ;;  %v2123_v25 = vsel %vm5169_vm13, %v3819_v28, %v2122_v45  ;;  %v1801_v63 = vrot.slane %v1799_v3, 4  ;;  %v4634_v3 = vld [vmem:[%s6066_s1 + $0x1e0] sm:$0xff]  }
  0xad   : >> { %4395 = vmatmul.mubr.bf16.vlgmr.msra.gmra.mxu1 %v3841_v38  ;;  %4361 = vmatpush3.bf16.msra.mxu0 %v4625_v7  ;;  %v1769_v48 = vrot.slane %v1768_v23, 4  ;;  %v4632_v7 = vld [vmem:[%s6066_s1 + $0x1e8] sm:$0xff]   ;;  %v1805_v30 = vshll.u32 %v5475_v44, 16  ;;  %v3820_v12 = vrot.slane %v5277_v41, 9  ;;  %v1797_v27 = vrot.slane %v1795_v1, 5  ;;  %v4633_v60 = vld [vmem:[%s6066_s1 + $0x1a0] sm:$0xff]  }
  0xae   : >> { %4443 = vmatpush3.bf16.msra.mxu1 %v4628_v2  ;;  %4410 = vmatprep.subr.bf16.mxu0 %v4627_v34  ;;  %v1778_v15 = vor.u32 %v1777_v33, %v1773_v43  ;;  %v2124_v2 = vrot.slane %v2122_v45, 4  ;;  %v2129_v22 = vrot.slane %v5280_v51, 5  ;;  %v2132_v29 = vrot.slane %v5475_v44, 5 }
  0xaf   : >> { %4444 = vmatprep.subr.bf16.mxu1 %v4630_v62  ;;  %4398 = vmatprep.mubr.bf16.mxu1 %v3842_v24  ;;  %v1774_v31 = vsel %vm4989_vm10, %v1769_v48, %v1773_v43  ;;  %v1807_v61 = vrot.slane %v1805_v30, 5  ;;  %v1802_v39 = vor.u32 %v1801_v63, %v1797_v27  ;;  %v1812_v51 = vrot.slane %v1810_v17, 4 }
  0xb0   : >> { %4363 = vmatmul.mubr.bf16.vlgmr.msra.gmra.mxu0 %v3801_v46  ;;  %v1779_v56 = vrot.slane %v1778_v15, 4  ;;  %v2126_v55 = vsel %vm5169_vm13, %v2124_v2, %v2125_v58  ;;  %v1792_v46 = vor.u32 %v1791_v32, %v1788_v21  ;;  %v2130_v42 = vsel %vm5169_vm13, %v3820_v12, %v2129_v22 }
  0xb1   : >> { %4411 = vmatpush3.bf16.msra.mxu0 %v4627_v34  ;;  %4366 = vmatprep.mubr.bf16.mxu0 %v3802_v50  ;;  %v3843_v38 = vcombine.low %v2123_v25, %v2126_v55  ;;  %v2131_v4 = vrot.slane %v2129_v22, 4  ;;  %v1815_v34 = vrot.slane %v1813_v20, 5  ;;  %v1803_v16 = vrot.slane %v1802_v39, 4  ;;  %v4635_v25 = vld [vmem:[%s6066_s1 + $0x198] sm:$0xff]  }
  0xb2   : >> { %4445 = vmatpush3.bf16.msra.mxu1 %v4630_v62  ;;  %4412 = vmatprep.subr.bf16.mxu0 %v4629_v47  ;;  %v1784_v41 = vsel %vm4989_vm10, %v1779_v56, %v1783_v35  ;;  %v1793_v57 = vrot.slane %v1792_v46, 4  ;;  %v1819_v62 = vshll.u32 %v5302_v8, 16  ;;  %v1825_v33 = vrot.slane %v1823_v40, 4  ;;  %v4636_v40 = vld [vmem:[%s6066_s1 + $0x1d8] sm:$0xff]  }
  0xb3   : >> { %v3803_v13 = vcombine.low %v1774_v31, %v1784_v41  ;;  %4446 = vmatprep.subr.bf16.mxu1 %v4632_v7  ;;  %v1829_v37 = vshll.u32 %v3745_v59, 16  ;;  %v2133_v17 = vsel %vm5169_vm13, %v2131_v4, %v2132_v29  ;;  %v1816_v20 = vor.u32 %v1815_v34, %v1812_v51  ;;  %v3748_v35 = vld [vmem:[%s4950_s18 + $0x5c] sm:$0x1] }
  0xb4   : >> { %v1798_v9 = vsel %vm4989_vm10, %v1793_v57, %v1797_v27  ;;  %v1821_v26 = vrot.slane %v1819_v62, 5  ;;  %v3821_v5 = vrot.slane %v5298_v14, 9  ;;  %v1808_v28 = vsel %vm4989_vm10, %v1803_v16, %v1807_v61  ;;  %v5578_v62 = vld [vmem:[%s4950_s18 + $0x18] sm:$0xf] }
  0xb5   : >> { %4399 = vmatmul.mubr.bf16.gmra.mxu1 %v3843_v38  ;;  %4413 = vmatpush3.bf16.msra.mxu0 %v4629_v47  ;;  %v3844_v44 = vcombine.low %v2130_v42, %v2133_v17  ;;  %v1831_v24 = vrot.slane %v1829_v37, 5  ;;  %v2136_v23 = vrot.slane %v5302_v8, 5  ;;  %v3804_v43 = vcombine.low %v1798_v9, %v1808_v28  ;;  %v4639_v37 = vld [vmem:[%s6066_s1 + $0x188] sm:$0xff]   ;;  %v5587_v17 = vld [vmem:[%s4950_s18 + $0x1c] sm:$0xf] }
  0xb6   : >> { %4447 = vmatpush3.bf16.msra.mxu1 %v4632_v7  ;;  %4414 = vmatprep.subr.bf16.mxu0 %v4631_v36  ;;  %v1817_v45 = vrot.slane %v1816_v20, 4  ;;  %v1826_v47 = vor.u32 %v1825_v33, %v1821_v26  ;;  %v2139_v49 = vrot.slane %v3745_v59, 5  ;;  %v1836_v21 = vrot.slane %v1834_v10, 4  ;;  %v4638_v7 = vld [vmem:[%s6066_s1 + $0x1d0] sm:$0xff]   ;;  %v3751_v59 = vld [vmem:[%s4950_s18 + $0x68] sm:$0x1] }
  0xb7   : >> { %4448 = vmatprep.subr.bf16.mxu1 %v4634_v3  ;;  %v2137_v14 = vsel %vm5169_vm13, %v3821_v5, %v2136_v23  ;;  %v2138_v58 = vrot.slane %v2136_v23, 4  ;;  %v6083_v8 = vshll.u32 %v5331_v0, 16  ;;  %v1843_v2 = vshll.u32 %v5334_v6, 16  ;;  %4402 = vmatprep.mubr.bf16.mxu1 %v3844_v44  ;;  %v5591_v44 = vld [vmem:[%s4950_s18 + $0x20] sm:$0x1] }
  0xb8   : >> { %4367 = vmatmul.mubr.bf16.gmra.mxu0 %v3803_v13  ;;  %v1822_v48 = vsel %vm4989_vm10, %v1817_v45, %v1821_v26  ;;  %v1827_v15 = vrot.slane %v1826_v47, 4  ;;  %v6084_v10 = vshrl.u32 %v5334_v6, 16  ;;  %v1853_v31 = vshll.u32 %v3748_v35, 16  ;;  %v4640_v13 = vld [vmem:[%s6066_s1 + $0x1c8] sm:$0xff]  }
  0xb9   : >> { %4415 = vmatpush3.bf16.msra.mxu0 %v4631_v36  ;;  %v1839_v50 = vrot.slane %v6083_v8, 5  ;;  %4370 = vmatprep.mubr.bf16.mxu0 %v3804_v43  ;;  %v2140_v1 = vsel %vm5169_vm13, %v2138_v58, %v2139_v49  ;;  %v3822_v56 = vrot.slane %v5331_v0, 9  ;;  %v1845_v55 = vrot.slane %v1843_v2, 5  ;;  %v4637_v0 = vld [vmem:[%s6066_s1 + $0x190] sm:$0xff]   ;;  %v4642_v49 = vld [vmem:[%s6066_s1 + $0x1c0] sm:$0xff]  }
  0xba   : >> { %4449 = vmatpush3.bf16.msra.mxu1 %v4634_v3  ;;  %4416 = vmatprep.subr.bf16.mxu0 %v4633_v60  ;;  %v1849_v32 = vrot.slane %v6084_v10, 4  ;;  %v1832_v30 = vsel %vm4989_vm10, %v1827_v15, %v1831_v24  ;;  %v3845_v12 = vcombine.low %v2137_v14, %v2140_v1  ;;  %v2143_v36 = vrot.slane %v5334_v6, 5  ;;  %v5606_v8 = vld [vmem:[%s4950_s18 + $0x24] sm:$0xf] }
  0xbb   : >> { %4450 = vmatprep.subr.bf16.mxu1 %v4636_v40  ;;  %v1840_v63 = vor.u32 %v1839_v50, %v1836_v21  ;;  %v3805_v3 = vcombine.low %v1822_v48, %v1832_v30  ;;  %v1855_v27 = vrot.slane %v1853_v31, 5  ;;  %v2146_v22 = vrot.slane %v3748_v35, 5  ;;  %v4641_v10 = vld [vmem:[%s6066_s1 + $0x180] sm:$0xff]   ;;  %v5621_v31 = vld [vmem:[%s4950_s18 + $0x2c] sm:$0x1] }
  0xbc   : >> { %v1850_v41 = vor.u32 %v1849_v32, %v1845_v55  ;;  %v2144_v38 = vsel %vm5169_vm13, %v3822_v56, %v2143_v36  ;;  %v2145_v6 = vrot.slane %v2143_v36, 4  ;;  %v6085_v61 = vshrl.u32 %v5341_v53, 16  ;;  %v5626_v36 = vld [vmem:[%s4950_s18 + $0x30] sm:$0xf] }
  0xbd   : >> { %4417 = vmatpush3.bf16.msra.mxu0 %v4633_v60  ;;  %v1841_v46 = vrot.slane %v1840_v63, 4  ;;  %4403 = vmatmul.mubr.bf16.gmra.mxu1 %v3845_v12  ;;  %v6086_v39 = vshll.u32 %v5341_v53, 16  ;;  %v1867_v4 = vshll.u32 %v5350_v54, 16  ;;  %v6087_v51 = vshrl.u32 %v5350_v54, 16 }
  0xbe   : >> { %4451 = vmatpush3.bf16.msra.mxu1 %v4636_v40  ;;  %4418 = vmatprep.subr.bf16.mxu0 %v4635_v25  ;;  %v1860_v29 = vrot.slane %v6085_v61, 4  ;;  %v1851_v60 = vrot.slane %v1850_v41, 4  ;;  %v2147_v9 = vsel %vm5169_vm13, %v2145_v6, %v2146_v22  ;;  %v1877_v16 = vshll.u32 %v3751_v59, 16 }
  0xbf   : >> { %4452 = vmatprep.subr.bf16.mxu1 %v4638_v7  ;;  %v1846_v57 = vsel %vm4989_vm10, %v1841_v46, %v1845_v55  ;;  %v1863_v42 = vrot.slane %v6086_v39, 5  ;;  %v1873_v34 = vrot.slane %v6087_v51, 4  ;;  %v3823_v33 = vrot.slane %v5341_v53, 9 }
  0xc0   : >> { %4371 = vmatmul.mubr.bf16.gmra.mxu0 %v3805_v3  ;;  %v3846_v20 = vcombine.low %v2144_v38, %v2147_v9  ;;  %v1869_v5 = vrot.slane %v1867_v4, 5  ;;  %v2150_v28 = vrot.slane %v5350_v54, 5  ;;  %v1856_v53 = vsel %vm4989_vm10, %v1851_v60, %v1855_v27  ;;  %v5629_v3 = vld [vmem:[%s4950_s18 + $0x34] sm:$0xf] }
  0xc1   : >> { %4419 = vmatpush3.bf16.msra.mxu0 %v4635_v25  ;;  %v1864_v26 = vor.u32 %v1863_v42, %v1860_v29  ;;  %v1879_v24 = vrot.slane %v1877_v16, 5  ;;  %v2153_v23 = vrot.slane %v3751_v59, 5  ;;  %v3898_v40 = vcombine.low %v5578_v62, %v5587_v17 }
  0xc2   : >> { %4453 = vmatpush3.bf16.msra.mxu1 %v4638_v7  ;;  %4420 = vmatprep.subr.bf16.mxu0 %v4637_v0  ;;  %v3806_v43 = vcombine.low %v1846_v57, %v1856_v53  ;;  %v1874_v47 = vor.u32 %v1873_v34, %v1869_v5  ;;  %v2151_v54 = vsel %vm5169_vm13, %v3823_v33, %v2150_v28  ;;  %v2152_v35 = vrot.slane %v2150_v28, 4  ;;  %v5613_v7 = vld [vmem:[%s4950_s18 + $0x28] sm:$0xf]  ;;  %v5657_v53 = vld [vmem:[%s4950_s18 + $0x3c] sm:$0xf] }
  0xc3   : >> { %4454 = vmatprep.subr.bf16.mxu1 %v4640_v13  ;;  %4406 = vmatprep.mubr.bf16.mxu1 %v3846_v20  ;;  %v1865_v45 = vrot.slane %v1864_v26, 4  ;;  %v2620_v14 = vshrl.u32 %v5578_v62, 16  ;;  %v2623_v58 = vshll.u32 %v5578_v62, 16  ;;  %v2633_v21 = vshrl.u32 %v5587_v17, 16 }
  0xc4   : >> { %4374 = vmatprep.mubr.bf16.mxu0 %v3806_v43  ;;  %v1875_v48 = vrot.slane %v1874_v47, 4  ;;  %v2629_v15 = vshll.u32 %v5587_v17, 16  ;;  %v2639_v25 = vshll.u32 %v5591_v44, 16  ;;  %v2154_v2 = vsel %vm5169_vm13, %v2152_v35, %v2153_v23  ;;  %v4646_v23 = vld [vmem:[%s6066_s1 + $0x230] sm:$0xff]   ;;  %v5665_v47 = vld [vmem:[%s4950_s18 + $0x40] sm:$0xf] }
  0xc5   : >> { %4421 = vmatpush3.bf16.msra.mxu0 %v4637_v0  ;;  %v1870_v50 = vsel %vm4989_vm10, %v1865_v45, %v1869_v5  ;;  %v2622_v32 = vrot.slane %v2620_v14, 4  ;;  %v2625_v1 = vrot.slane %v2623_v58, 5  ;;  %v2635_v63 = vrot.slane %v2633_v21, 4  ;;  %v5637_v0 = vld [vmem:[%s6066_s1 + $0x238] sm:$0xff]   ;;  %v5669_v58 = vld [vmem:[%s4950_s18 + $0x44] sm:$0x1] }
  0xc6   : >> { %4422 = vmatprep.subr.bf16.mxu0 %v4639_v37  ;;  %4455 = vmatpush3.bf16.msra.mxu1 %v4640_v13  ;;  %v1880_v56 = vsel %vm4989_vm10, %v1875_v48, %v1879_v24  ;;  %v3847_v30 = vcombine.low %v2151_v54, %v2154_v2  ;;  %v2631_v12 = vrot.slane %v2629_v15, 5  ;;  %v2641_v55 = vrot.slane %v2639_v25, 5 }
  0xc7   : >> { %4456 = vmatprep.subr.bf16.mxu1 %v4642_v49  ;;  %v3807_v46 = vcombine.low %v1870_v50, %v1880_v56  ;;  %v2626_v27 = vor.u32 %v2625_v1, %v2622_v32  ;;  %v3899_v22 = vcombine.low %v5606_v8, %v5613_v7  ;;  %v2644_v59 = vshrl.u32 %v5606_v8, 16 }
  0xc8   : >> { %4407 = vmatmul.mubr.bf16.gmra.mxu1 %v3847_v30  ;;  %v2636_v41 = vor.u32 %v2635_v63, %v2631_v12  ;;  %v2647_v38 = vshll.u32 %v5606_v8, 16  ;;  %v2657_v6 = vshrl.u32 %v5613_v7, 16  ;;  %v2653_v61 = vshll.u32 %v5613_v7, 16 }
  0xc9   : >> { %4423 = vmatpush3.bf16.msra.mxu0 %v4639_v37  ;;  %v2627_v29 = vrot.slane %v2626_v27, 4  ;;  %v2646_v13 = vrot.slane %v2644_v59, 4  ;;  %v2663_v57 = vshll.u32 %v5621_v31, 16  ;;  %v3900_v39 = vcombine.low %v5626_v36, %v5629_v3  ;;  %v5651_v37 = vld [vmem:[%s4950_s18 + $0x38] sm:$0x1] }
  0xca   : >> { %4375 = vmatmul.mubr.bf16.gmra.mxu0 %v3807_v46  ;;  %4424 = vmatprep.subr.bf16.mxu0 %v4641_v10  ;;  %v2637_v42 = vrot.slane %v2636_v41, 4  ;;  %v2649_v4 = vrot.slane %v2647_v38, 5  ;;  %v2655_v51 = vrot.slane %v2653_v61, 5  ;;  %v2659_v34 = vrot.slane %v2657_v6, 4  ;;  %v5687_v41 = vld [vmem:[%s4950_s18 + $0x4c] sm:$0xf] }
  0xcb   : >> { %4457 = vmatpush3.bf16.msra.mxu1 %v4642_v49  ;;  %4426 = vmatprep.mubr.bf16.mxu0 %v3898_v40  ;;  %v2632_v60 = vsel %vm4989_vm10, %v2627_v29, %v2631_v12  ;;  %v2665_v9 = vrot.slane %v2663_v57, 5  ;;  %v2668_v16 = vshrl.u32 %v5626_v36, 16  ;;  %v2671_v33 = vshll.u32 %v5626_v36, 16  ;;  %v5681_v12 = vld [vmem:[%s4950_s18 + $0x48] sm:$0xf] }
  0xcc   : >> { %4506 = vmatprep.subr.bf16.mxu1 %v5637_v0  ;;  %v2642_v20 = vsel %vm4989_vm10, %v2637_v42, %v2641_v55  ;;  %v2650_v26 = vor.u32 %v2649_v4, %v2646_v13  ;;  %v2660_v5 = vor.u32 %v2659_v34, %v2655_v51  ;;  %v2681_v28 = vshrl.u32 %v5629_v3, 16  ;;  %v4649_v61 = vld [vmem:[%s6066_s1 + $0x228] sm:$0xff]   ;;  %v5699_v4 = vld [vmem:[%s4950_s18 + $0x50] sm:$0x1] }
  0xcd   : >> { %4425 = vmatpush3.bf16.msra.mxu0 %v4641_v10  ;;  %v3930_v24 = vcombine.low %v2632_v60, %v2642_v20  ;;  %v2670_v40 = vrot.slane %v2668_v16, 4  ;;  %v2673_v43 = vrot.slane %v2671_v33, 5  ;;  %v2677_v45 = vshll.u32 %v5629_v3, 16  ;;  %v5707_v16 = vld [vmem:[%s4950_s18 + $0x54] sm:$0xf] }
  0xce   : >> { %4474 = vmatprep.subr.bf16.mxu0 %v5637_v0  ;;  %v2651_v54 = vrot.slane %v2650_v26, 4  ;;  %v2661_v49 = vrot.slane %v2660_v5, 4  ;;  %v2683_v35 = vrot.slane %v2681_v28, 4  ;;  %v2687_v14 = vshll.u32 %v5651_v37, 16  ;;  %v4650_v26 = vld [vmem:[%s6066_s1 + $0x220] sm:$0xff]  }
  0xcf   : >> { %4458 = vmatprep.mubr.bf16.mxu1 %v3930_v24  ;;  %v2674_v21 = vor.u32 %v2673_v43, %v2670_v40  ;;  %v2679_v50 = vrot.slane %v2677_v45, 5  ;;  %v3901_v48 = vcombine.low %v5657_v53, %v5665_v47  ;;  %v2692_v15 = vshrl.u32 %v5657_v53, 16  ;;  %v5714_v45 = vld [vmem:[%s4950_s18 + $0x58] sm:$0xf] }
  0xd0   : >> { %v2656_v25 = vsel %vm4989_vm10, %v2651_v54, %v2655_v51  ;;  %v2666_v2 = vsel %vm4989_vm10, %v2661_v49, %v2665_v9  ;;  %v2689_v10 = vrot.slane %v2687_v14, 5  ;;  %v2695_v32 = vshll.u32 %v5657_v53, 16 }
  0xd1   : >> { %v3931_v1 = vcombine.low %v2656_v25, %v2666_v2  ;;  %v2675_v63 = vrot.slane %v2674_v21, 4  ;;  %v2684_v56 = vor.u32 %v2683_v35, %v2679_v50  ;;  %v2705_v30 = vshrl.u32 %v5665_v47, 16 }
  0xd2   : >> { %4427 = vmatmul.mubr.bf16.vlgmr.msra.gmra.mxu0 %v3899_v22  ;;  %v2694_v55 = vrot.slane %v2692_v15, 4  ;;  %v2697_v46 = vrot.slane %v2695_v32, 5  ;;  %v2701_v27 = vshll.u32 %v5665_v47, 16  ;;  %v2711_v59 = vshll.u32 %v5669_v58, 16 }
  0xd3   : >> { %4475 = vmatpush3.bf16.msra.mxu0 %v5637_v0  ;;  %4430 = vmatprep.mubr.bf16.mxu0 %v3900_v39  ;;  %v2680_v22 = vsel %vm4989_vm10, %v2675_v63, %v2679_v50  ;;  %v2685_v38 = vrot.slane %v2684_v56, 4  ;;  %v2707_v6 = vrot.slane %v2705_v30, 4  ;;  %v3902_v29 = vcombine.low %v5681_v12, %v5687_v41 }
  0xd4   : >> { %4459 = vmatmul.mubr.bf16.vlgmr.msra.gmra.mxu1 %v3931_v1  ;;  %4476 = vmatprep.subr.bf16.mxu0 %v4646_v23  ;;  %v2698_v13 = vor.u32 %v2697_v46, %v2694_v55  ;;  %v2703_v57 = vrot.slane %v2701_v27, 5  ;;  %v2713_v39 = vrot.slane %v2711_v59, 5  ;;  %v2716_v42 = vshrl.u32 %v5681_v12, 16  ;;  %v4653_v55 = vld [vmem:[%s6066_s1 + $0x218] sm:$0xff]   ;;  %v5734_v46 = vld [vmem:[%s4950_s18 + $0x60] sm:$0xf] }
  0xd5   : >> { %4514 = vmatpush3.bf16.msra.mxu1 %v5637_v0  ;;  %v2690_v51 = vsel %vm4989_vm10, %v2685_v38, %v2689_v10  ;;  %v2719_v34 = vshll.u32 %v5681_v12, 16  ;;  %v2729_v60 = vshrl.u32 %v5687_v41, 16  ;;  %v2725_v9 = vshll.u32 %v5687_v41, 16 }
  0xd6   : >> { %4507 = vmatprep.subr.bf16.mxu1 %v4646_v23  ;;  %v3932_v0 = vcombine.low %v2680_v22, %v2690_v51  ;;  %v2699_v33 = vrot.slane %v2698_v13, 4  ;;  %v2708_v20 = vor.u32 %v2707_v6, %v2703_v57  ;;  %v2718_v5 = vrot.slane %v2716_v42, 4  ;;  %v5742_v6 = vld [vmem:[%s4950_s18 + $0x64] sm:$0xf] }
  0xd7   : >> { %4477 = vmatpush3.bf16.msra.mxu0 %v4646_v23  ;;  %v2721_v28 = vrot.slane %v2719_v34, 5  ;;  %v2727_v24 = vrot.slane %v2725_v9, 5  ;;  %v2731_v40 = vrot.slane %v2729_v60, 4  ;;  %v2735_v43 = vshll.u32 %v5699_v4, 16  ;;  %v4654_v60 = vld [vmem:[%s6066_s1 + $0x210] sm:$0xff]  }
  0xd8   : >> { %4478 = vmatprep.subr.bf16.mxu0 %v4649_v61  ;;  %4462 = vmatprep.mubr.bf16.mxu1 %v3932_v0  ;;  %v2704_v54 = vsel %vm4989_vm10, %v2699_v33, %v2703_v57  ;;  %v2709_v49 = vrot.slane %v2708_v20, 4  ;;  %v3903_v35 = vcombine.low %v5707_v16, %v5714_v45  ;;  %v2740_v14 = vshrl.u32 %v5707_v16, 16 }
  0xd9   : >> { %4515 = vmatpush3.bf16.msra.mxu1 %v4646_v23  ;;  %v2722_v21 = vor.u32 %v2721_v28, %v2718_v5  ;;  %v2732_v50 = vor.u32 %v2731_v40, %v2727_v24  ;;  %v2737_v15 = vrot.slane %v2735_v43, 5  ;;  %v2743_v25 = vshll.u32 %v5707_v16, 16  ;;  %v5762_v28 = vld [vmem:[%s4950_s18 + $0x6c] sm:$0xf] }
  0xda   : >> { %4431 = vmatmul.mubr.bf16.gmra.mxu0 %v3901_v48  ;;  %4508 = vmatprep.subr.bf16.mxu1 %v4649_v61  ;;  %v2714_v23 = vsel %vm4989_vm10, %v2709_v49, %v2713_v39  ;;  %v2753_v2 = vshrl.u32 %v5714_v45, 16  ;;  %v3951_v10 = vrot.slane %v5707_v16, 9  ;;  %v3066_v32 = vrot.slane %v5714_v45, 5  ;;  %v5728_v48 = vld [vmem:[%s4950_s18 + $0x5c] sm:$0x1] }
  0xdb   : >> { %4479 = vmatpush3.bf16.msra.mxu0 %v4649_v61  ;;  %4434 = vmatprep.mubr.bf16.mxu0 %v3902_v29  ;;  %v3933_v1 = vcombine.low %v2704_v54, %v2714_v23  ;;  %v2723_v63 = vrot.slane %v2722_v21, 4  ;;  %v2733_v56 = vrot.slane %v2732_v50, 4  ;;  %v2742_v30 = vrot.slane %v2740_v14, 4  ;;  %v5751_v39 = vld [vmem:[%s4950_s18 + $0x68] sm:$0x1] }
  0xdc   : >> { %4480 = vmatprep.subr.bf16.mxu0 %v4650_v26  ;;  %v5738_v27 = vrot.slane %v3066_v32, 4  ;;  %v2745_v59 = vrot.slane %v2743_v25, 5  ;;  %v2749_v22 = vshll.u32 %v5714_v45, 16  ;;  %v2755_v38 = vrot.slane %v2753_v2, 4  ;;  %v5767_v49 = vld [vmem:[%s4950_s18 + $0x70] sm:$0xf] }
  0xdd   : >> { %4516 = vmatpush3.bf16.msra.mxu1 %v4649_v61  ;;  %v2728_v29 = vsel %vm4989_vm10, %v2723_v63, %v2727_v24  ;;  %v2738_v13 = vsel %vm4989_vm10, %v2733_v56, %v2737_v15  ;;  %v2759_v61 = vshll.u32 %v5728_v48, 16  ;;  %v3069_v57 = vrot.slane %v5728_v48, 5  ;;  %v5772_v25 = vld [vmem:[%s4950_s18 + $0x74] sm:$0x1] }
  0xde   : >> { %4463 = vmatmul.mubr.bf16.gmra.mxu1 %v3933_v1  ;;  %4509 = vmatprep.subr.bf16.mxu1 %v4650_v26  ;;  %v3934_v42 = vcombine.low %v2728_v29, %v2738_v13  ;;  %v2746_v51 = vor.u32 %v2745_v59, %v2742_v30  ;;  %v2751_v34 = vrot.slane %v2749_v22, 5  ;;  %v3904_v9 = vcombine.low %v5734_v46, %v5742_v6  ;;  %v4657_v59 = vld [vmem:[%s6066_s1 + $0x208] sm:$0xff]  }
  0xdf   : >> { %4481 = vmatpush3.bf16.msra.mxu0 %v4650_v26  ;;  %v2761_v0 = vrot.slane %v2759_v61, 5  ;;  %v2764_v33 = vshrl.u32 %v5734_v46, 16  ;;  %v2767_v20 = vshll.u32 %v5734_v46, 16  ;;  %v2777_v5 = vshrl.u32 %v5742_v6, 16 }
  0xe0   : >> { %4482 = vmatprep.subr.bf16.mxu0 %v4653_v55  ;;  %4466 = vmatprep.mubr.bf16.mxu1 %v3934_v42  ;;  %v2747_v24 = vrot.slane %v2746_v51, 4  ;;  %v2756_v40 = vor.u32 %v2755_v38, %v2751_v34  ;;  %v2773_v43 = vshll.u32 %v5742_v6, 16  ;;  %v2783_v54 = vshll.u32 %v5751_v39, 16 }
  0xe1   : >> { %4517 = vmatpush3.bf16.msra.mxu1 %v4650_v26  ;;  %v2766_v14 = vrot.slane %v2764_v33, 4  ;;  %v2769_v21 = vrot.slane %v2767_v20, 5  ;;  %v2779_v50 = vrot.slane %v2777_v5, 4  ;;  %v3905_v15 = vcombine.low %v5762_v28, %v5767_v49 }
  0xe2   : >> { %4435 = vmatmul.mubr.bf16.gmra.mxu0 %v3903_v35  ;;  %4510 = vmatprep.subr.bf16.mxu1 %v4653_v55  ;;  %v2752_v26 = vsel %vm4989_vm10, %v2747_v24, %v2751_v34  ;;  %v2757_v23 = vrot.slane %v2756_v40, 4  ;;  %v2775_v2 = vrot.slane %v2773_v43, 5  ;;  %v2785_v1 = vrot.slane %v2783_v54, 5  ;;  %v4658_v24 = vld [vmem:[%s6066_s1 + $0x200] sm:$0xff]  }
  0xe3   : >> { %4483 = vmatpush3.bf16.msra.mxu0 %v4653_v55  ;;  %4438 = vmatprep.mubr.bf16.mxu0 %v3904_v9  ;;  %v2770_v63 = vor.u32 %v2769_v21, %v2766_v14  ;;  %v2788_v35 = vshrl.u32 %v5762_v28, 16  ;;  %v2791_v56 = vshll.u32 %v5762_v28, 16  ;;  %v2801_v30 = vshrl.u32 %v5767_v49, 16 }
  0xe4   : >> { %4484 = vmatprep.subr.bf16.mxu0 %v4654_v60  ;;  %v2762_v22 = vsel %vm4989_vm10, %v2757_v23, %v2761_v0  ;;  %v2780_v38 = vor.u32 %v2779_v50, %v2775_v2  ;;  %v2797_v29 = vshll.u32 %v5767_v49, 16  ;;  %v2807_v13 = vshll.u32 %v5772_v25, 16 }
  0xe5   : >> { %4518 = vmatpush3.bf16.msra.mxu1 %v4653_v55  ;;  %v3935_v61 = vcombine.low %v2752_v26, %v2762_v22  ;;  %v2771_v42 = vrot.slane %v2770_v63, 4  ;;  %v2790_v51 = vrot.slane %v2788_v35, 4  ;;  %v2793_v34 = vrot.slane %v2791_v56, 5 }
  0xe6   : >> { %4511 = vmatprep.subr.bf16.mxu1 %v4654_v60  ;;  %v2781_v9 = vrot.slane %v2780_v38, 4  ;;  %v2799_v33 = vrot.slane %v2797_v29, 5  ;;  %v2803_v20 = vrot.slane %v2801_v30, 4  ;;  %v2809_v5 = vrot.slane %v2807_v13, 5 }
  0xe7   : >> { %4485 = vmatpush3.bf16.msra.mxu0 %v4654_v60  ;;  %4467 = vmatmul.mubr.bf16.gmra.mxu1 %v3935_v61  ;;  %v2776_v0 = vsel %vm4989_vm10, %v2771_v42, %v2775_v2  ;;  %v2794_v55 = vor.u32 %v2793_v34, %v2790_v51  ;;  %v3946_v40 = vrot.slane %v5578_v62, 9  ;;  %v3031_v43 = vrot.slane %v5587_v17, 5 }
  0xe8   : >> { %4486 = vmatprep.subr.bf16.mxu0 %v4657_v59  ;;  %v2786_v54 = vsel %vm4989_vm10, %v2781_v9, %v2785_v1  ;;  %v2804_v14 = vor.u32 %v2803_v20, %v2799_v33  ;;  %v3034_v21 = vrot.slane %v5591_v44, 5  ;;  %v3950_v50 = vrot.slane %v5681_v12, 9 }
  0xe9   : >> { %4519 = vmatpush3.bf16.msra.mxu1 %v4654_v60  ;;  %v3936_v26 = vcombine.low %v2776_v0, %v2786_v54  ;;  %v2795_v23 = vrot.slane %v2794_v55, 4  ;;  %v3032_v2 = vsel %vm5169_vm13, %v3946_v40, %v3031_v43  ;;  %v3033_v63 = vrot.slane %v3031_v43, 4 }
  0xea   : >> { %4439 = vmatmul.mubr.bf16.gmra.mxu0 %v3905_v15  ;;  %4512 = vmatprep.subr.bf16.mxu1 %v4657_v59  ;;  %v2805_v62 = vrot.slane %v2804_v14, 4  ;;  %v3059_v17 = vrot.slane %v5687_v41, 5  ;;  %v3062_v60 = vrot.slane %v5699_v4, 5  ;;  %v3947_v1 = vrot.slane %v5606_v8, 9 }
  0xeb   : >> { %4487 = vmatpush3.bf16.msra.mxu0 %v4657_v59  ;;  %4470 = vmatprep.mubr.bf16.mxu1 %v3936_v26  ;;  %v2800_v44 = vsel %vm4989_vm10, %v2795_v23, %v2799_v33  ;;  %v3035_v12 = vsel %vm5169_vm13, %v3033_v63, %v3034_v21  ;;  %v3038_v15 = vrot.slane %v5613_v7, 5  ;;  %v3041_v35 = vrot.slane %v5621_v31, 5 }
  0xec   : >> { %4488 = vmatprep.subr.bf16.mxu0 %v4658_v24  ;;  %v2810_v56 = vsel %vm4989_vm10, %v2805_v62, %v2809_v5  ;;  %v3970_v41 = vcombine.low %v3032_v2, %v3035_v12  ;;  %v3060_v8 = vsel %vm5169_vm13, %v3950_v50, %v3059_v17  ;;  %v3061_v4 = vrot.slane %v3059_v17, 4 }
  0xed   : >> { %4520 = vmatpush3.bf16.msra.mxu1 %v4657_v59  ;;  %v3937_v30 = vcombine.low %v2800_v44, %v2810_v56  ;;  %v3039_v22 = vsel %vm5169_vm13, %v3947_v1, %v3038_v15  ;;  %v3040_v38 = vrot.slane %v3038_v15, 4  ;;  %v3067_v52 = vsel %vm5169_vm13, %v3951_v10, %v3066_v32 }
  0xee   : >> { %4513 = vmatprep.subr.bf16.mxu1 %v4658_v24  ;;  %4490 = vmatprep.mubr.bf16.mxu0 %v3970_v41  ;;  %v3063_v7 = vsel %vm5169_vm13, %v3061_v4, %v3062_v60  ;;  %v3948_v31 = vrot.slane %v5626_v36, 9  ;;  %v3045_v59 = vrot.slane %v5629_v3, 5  ;;  %v3070_v45 = vsel %vm5169_vm13, %v5738_v27, %v3069_v57 }
  0xef   : >> { %4489 = vmatpush3.bf16.msra.mxu0 %v4658_v24  ;;  %4471 = vmatmul.mubr.bf16.gmra.mxu1 %v3937_v30  ;;  %v3974_v29 = vcombine.low %v3060_v8, %v3063_v7  ;;  %v3042_v13 = vsel %vm5169_vm13, %v3040_v38, %v3041_v35  ;;  %v3048_v16 = vrot.slane %v5651_v37, 5  ;;  %v3952_v3 = vrot.slane %v5734_v46, 9 }
  0xf0   : >> { %v3971_v61 = vcombine.low %v3039_v22, %v3042_v13  ;;  %v3046_v36 = vsel %vm5169_vm13, %v3948_v31, %v3045_v59  ;;  %v3047_v10 = vrot.slane %v3045_v59, 4  ;;  %v3073_v32 = vrot.slane %v5742_v6, 5 }
  0xf1   : >> { %4521 = vmatpush3.bf16.msra.mxu1 %v4658_v24  ;;  %4498 = vmatprep.mubr.bf16.mxu1 %v3974_v29  ;;  %v3076_v42 = vrot.slane %v5751_v39, 5  ;;  %v3949_v48 = vrot.slane %v5657_v53, 9  ;;  %v3052_v51 = vrot.slane %v5665_v47, 5  ;;  %v3975_v27 = vcombine.low %v3067_v52, %v3070_v45 }
  0xf2   : >> { %4491 = vmatmul.mubr.bf16.vlgmr.msra.gmra.mxu0 %v3971_v61  ;;  %v3049_v37 = vsel %vm5169_vm13, %v3047_v10, %v3048_v16  ;;  %v3055_v57 = vrot.slane %v5669_v58, 5  ;;  %v3080_v34 = vrot.slane %v5767_v49, 5  ;;  %v3074_v46 = vsel %vm5169_vm13, %v3952_v3, %v3073_v32 }
  0xf3   : >> { %v3972_v9 = vcombine.low %v3046_v36, %v3049_v37  ;;  %v3075_v6 = vrot.slane %v3073_v32, 4  ;;  %v3953_v39 = vrot.slane %v5762_v28, 9  ;;  %v3053_v53 = vsel %vm5169_vm13, %v3949_v48, %v3052_v51 }
  0xf4   : >> { %v3054_v47 = vrot.slane %v3052_v51, 4  ;;  %v3082_v33 = vrot.slane %v3080_v34, 4  ;;  %v3083_v20 = vrot.slane %v5772_v25, 5 }
  0xf5   : >> { %4494 = vmatprep.mubr.bf16.mxu0 %v3972_v9  ;;  %v3077_v58 = vsel %vm5169_vm13, %v3075_v6, %v3076_v42  ;;  %v3081_v28 = vsel %vm5169_vm13, %v3953_v39, %v3080_v34 }
  0xf6   : >> { %v3976_v5 = vcombine.low %v3074_v46, %v3077_v58  ;;  %v3056_v49 = vsel %vm5169_vm13, %v3054_v47, %v3055_v57  ;;  %v3084_v55 = vsel %vm5169_vm13, %v3082_v33, %v3083_v20 }
  0xf7   : >> { %4499 = vmatmul.mubr.bf16.vlgmr.msra.gmra.mxu1 %v3975_v27  ;;  %v3973_v0 = vcombine.low %v3053_v53, %v3056_v49  ;;  %v3977_v24 = vcombine.low %v3081_v28, %v3084_v55 }
  0xf8   : >> { %4502 = vmatprep.mubr.bf16.mxu1 %v3976_v5 }
  0xfa   : >> { %4495 = vmatmul.mubr.bf16.gmra.mxu0 %v3973_v0 }
  0xff   : >> { %4503 = vmatmul.mubr.bf16.gmra.mxu1 %v3977_v24 }
 0x12c   : >> { %v4236_v25 = vpop.f32.mrf.mxu0 }
 0x12d   : >> { %v4268_v40 = vpop.f32.mrf.mxu1 }
 0x12e   : >> { %v1104_v43 = vadd.f32 %v4268_v40, %v4236_v25  ;;  %v902_v54 = vpop.f32.mrf.mxu0 }
 0x12f   : >> { %v1095_v14 = vpop.f32.mrf.mxu1 }
 0x130   : >> { %v1096_v21 = vadd.f32 %v1095_v14, %v902_v54  ;;  %v4237_v50 = vpop.f32.mrf.mxu0 }
 0x131   : >> { %v4269_v26 = vpop.f32.mrf.mxu1 }
 0x132   : >> { %v1107_v23 = vadd.f32 %v4269_v26, %v4237_v50  ;;  %v905_v2 = vpop.f32.mrf.mxu0 }
 0x133   : >> { %v1098_v63 = vpop.f32.mrf.mxu1 }
 0x134   : >> { %v1099_v62 = vadd.f32 %v1098_v63, %v905_v2  ;;  %v4240_v17 = vpop.f32.mrf.mxu0 }
 0x135   : >> { %v4272_v60 = vpop.f32.mrf.mxu1 }
 0x136   : >> { %v1120_v1 = vadd.f32 %v4272_v60, %v4240_v17  ;;  %v918_v11 = vpop.f32.mrf.mxu0 }
 0x137   : >> { %v1111_v44 = vpop.f32.mrf.mxu1 }
 0x138   : >> { %v1112_v12 = vadd.f32 %v1111_v44, %v918_v11  ;;  %v4241_v15 = vpop.f32.mrf.mxu0 }
 0x139   : >> { %v4273_v35 = vpop.f32.mrf.mxu1 }
 0x13a   : >> { %v1123_v56 = vadd.f32 %v4273_v35, %v4241_v15  ;;  %v921_v41 = vpop.f32.mrf.mxu0 }
 0x13b   : >> { %v1114_v8 = vpop.f32.mrf.mxu1 }
 0x13c   : >> { %v1115_v4 = vadd.f32 %v1114_v8, %v921_v41 }
 0x13d   : >> { %v4276_v30 = vpop.f32.mrf.mxu1 }
 0x13e   : >> { %v4244_v22 = vpop.f32.mrf.mxu0 }
 0x13f   : >> { %v1127_v38 = vpop.f32.mrf.mxu1  ;;  %v1136_v7 = vadd.f32 %v4276_v30, %v4244_v22 }
 0x140   : >> { %v934_v52 = vpop.f32.mrf.mxu0 }
 0x141   : >> { %v4277_v31 = vpop.f32.mrf.mxu1  ;;  %v1128_v59 = vadd.f32 %v1127_v38, %v934_v52 }
 0x142   : >> { %v4245_v29 = vpop.f32.mrf.mxu0 }
 0x143   : >> { %v1130_v13 = vpop.f32.mrf.mxu1  ;;  %v1139_v45 = vadd.f32 %v4277_v31, %v4245_v29 }
 0x144   : >> { %v937_v16 = vpop.f32.mrf.mxu0 }
 0x145   : >> { %v4280_v61 = vpop.f32.mrf.mxu1  ;;  %v1131_v36 = vadd.f32 %v1130_v13, %v937_v16 }
 0x147   : >> { %v1143_v10 = vpop.f32.mrf.mxu1 }
 0x148   : >> { %v4248_v3 = vpop.f32.mrf.mxu0 }
 0x149   : >> { %v4281_v32 = vpop.f32.mrf.mxu1  ;;  %v1152_v42 = vadd.f32 %v4280_v61, %v4248_v3 }
 0x14a   : >> { %v950_v48 = vpop.f32.mrf.mxu0 }
 0x14b   : >> { %v1146_v51 = vpop.f32.mrf.mxu1  ;;  %v1144_v27 = vadd.f32 %v1143_v10, %v950_v48 }
 0x14c   : >> { %v4249_v37 = vpop.f32.mrf.mxu0 }
 0x14d   : >> { %v4332_v57 = vpop.f32.mrf.mxu1  ;;  %v1155_v34 = vadd.f32 %v4281_v32, %v4249_v37 }
 0x14e   : >> { %v953_v9 = vpop.f32.mrf.mxu0 }
 0x14f   : >> { %v1610_v46 = vpop.f32.mrf.mxu1  ;;  %v5857_v6 = vadd.f32 %v1146_v51, %v953_v9 }
 0x150   : >> { %v4300_v39 = vpop.f32.mrf.mxu0 }
 0x151   : >> { %v4333_v53 = vpop.f32.mrf.mxu1  ;;  %v1421_v47 = vadd.f32 %v4300_v39, %v1104_v43 }
 0x152   : >> { %v1356_v33 = vpop.f32.mrf.mxu0 }
 0x153   : >> { %v1613_v20 = vpop.f32.mrf.mxu1  ;;  %v5859_v58 = vadd.f32 %v4332_v57, %v1421_v47  ;;  %v1419_v5 = vadd.f32 %v1356_v33, %v1096_v21 }
 0x154   : >> { %v4301_v49 = vpop.f32.mrf.mxu0 }
 0x155   : >> { %v4336_v0 = vpop.f32.mrf.mxu1  ;;  %v5861_v28 = vadd.f32 %v1610_v46, %v1419_v5  ;;  %v1422_v55 = vadd.f32 %v4301_v49, %v1107_v23 }
 0x156   : >> { %v1359_v24 = vpop.f32.mrf.mxu0 }
 0x157   : >> { %v1626_v25 = vpop.f32.mrf.mxu1  ;;  %v5863_v40 = vadd.f32 %v4333_v53, %v1422_v55  ;;  %v1420_v54 = vadd.f32 %v1359_v24, %v1099_v62 }
 0x158   : >> { %v4304_v14 = vpop.f32.mrf.mxu0 }
 0x159   : >> { %v4337_v50 = vpop.f32.mrf.mxu1  ;;  %v5865_v26 = vadd.f32 %v1613_v20, %v1420_v54  ;;  %v1425_v43 = vadd.f32 %v4304_v14, %v1120_v1 }
 0x15a   : >> { %v1372_v2 = vpop.f32.mrf.mxu0 }
 0x15b   : >> { %v1629_v63 = vpop.f32.mrf.mxu1  ;;  %v5867_v17 = vadd.f32 %v4336_v0, %v1425_v43  ;;  %v1423_v21 = vadd.f32 %v1372_v2, %v1112_v12 }
 0x15c   : >> { %v4305_v60 = vpop.f32.mrf.mxu0 }
 0x15d   : >> { %v4340_v11 = vpop.f32.mrf.mxu1  ;;  %v5869_v44 = vadd.f32 %v1626_v25, %v1423_v21  ;;  %v1426_v23 = vadd.f32 %v4305_v60, %v1123_v56 }
 0x15e   : >> { %v1375_v15 = vpop.f32.mrf.mxu0 }
 0x15f   : >> { %v1642_v35 = vpop.f32.mrf.mxu1  ;;  %v5871_v41 = vadd.f32 %v4337_v50, %v1426_v23  ;;  %v1424_v62 = vadd.f32 %v1375_v15, %v1115_v4 }
 0x160   : >> { %v4308_v8 = vpop.f32.mrf.mxu0 }
 0x161   : >> { %v4341_v30 = vpop.f32.mrf.mxu1  ;;  %v5873_v22 = vadd.f32 %v1629_v63, %v1424_v62  ;;  %v1429_v1 = vadd.f32 %v4308_v8, %v1136_v7 }
 0x162   : >> { %v1388_v38 = vpop.f32.mrf.mxu0 }
 0x163   : >> { %v1645_v52 = vpop.f32.mrf.mxu1  ;;  %v5875_v31 = vadd.f32 %v4340_v11, %v1429_v1  ;;  %v1427_v12 = vadd.f32 %v1388_v38, %v1128_v59 }
 0x164   : >> { %v4309_v29 = vpop.f32.mrf.mxu0 }
 0x165   : >> { %v4344_v13 = vpop.f32.mrf.mxu1  ;;  %v5877_v16 = vadd.f32 %v1642_v35, %v1427_v12  ;;  %v1430_v56 = vadd.f32 %v4309_v29, %v1139_v45 }
 0x166   : >> { %v1391_v61 = vpop.f32.mrf.mxu0 }
 0x167   : >> { %v1658_v10 = vpop.f32.mrf.mxu1  ;;  %v5879_v3 = vadd.f32 %v4341_v30, %v1430_v56  ;;  %v1428_v4 = vadd.f32 %v1391_v61, %v1131_v36 }
 0x168   : >> { %v4312_v32 = vpop.f32.mrf.mxu0 }
 0x169   : >> { %v4345_v48 = vpop.f32.mrf.mxu1  ;;  %v5881_v51 = vadd.f32 %v1645_v52, %v1428_v4  ;;  %v1433_v7 = vadd.f32 %v4312_v32, %v1152_v42 }
 0x16a   : >> { %v1404_v37 = vpop.f32.mrf.mxu0 }
 0x16b   : >> { %v1661_v57 = vpop.f32.mrf.mxu1  ;;  %v5883_v9 = vadd.f32 %v4344_v13, %v1433_v7  ;;  %v1431_v59 = vadd.f32 %v1404_v37, %v1144_v27 }
 0x16c   : >> { %v4313_v46 = vpop.f32.mrf.mxu0 }
 0x16d   : >> { %v5885_v39 = vpop.f32.mrf.mxu1  ;;  %v5887_v53 = vadd.f32 %v1658_v10, %v1431_v59  ;;  %v1434_v45 = vadd.f32 %v4313_v46, %v1155_v34 }
 0x16e   : >> { %v1407_v47 = vpop.f32.mrf.mxu0 }
 0x16f   : >> { %v5889_v33 = vpop.f32.mrf.mxu1  ;;  %v5891_v36 = vadd.f32 %v4345_v48, %v1434_v45  ;;  %v1432_v20 = vadd.f32 %v1407_v47, %v5857_v6 }
 0x170   : >> { %v4364_v5 = vpop.f32.mrf.mxu0 }
 0x171   : >> { %v5894_v42 = vpop.f32.mrf.mxu1  ;;  %v5896_v49 = vadd.f32 %v1661_v57, %v1432_v20 }
 0x172   : >> { %v2012_v0 = vpop.f32.mrf.mxu0 }
 0x173   : >> { %v5898_v27 = vpop.f32.mrf.mxu1 }
 0x174   : >> { %v4365_v55 = vpop.f32.mrf.mxu0 }
 0x175   : >> { %v5900_v24 = vpop.f32.mrf.mxu1 }
 0x176   : >> { %v2015_v25 = vpop.f32.mrf.mxu0 }
 0x177   : >> { %v5902_v34 = vpop.f32.mrf.mxu1 }
 0x178   : >> { %v4368_v54 = vpop.f32.mrf.mxu0 }
 0x179   : >> { %v5904_v14 = vpop.f32.mrf.mxu1 }
 0x17a   : >> { %v2028_v50 = vpop.f32.mrf.mxu0 }
 0x17b   : >> { %v5906_v43 = vpop.f32.mrf.mxu1 }
 0x17c   : >> { %v4369_v6 = vpop.f32.mrf.mxu0 }
 0x17d   : >> { %v5908_v63 = vpop.f32.mrf.mxu1 }
 0x17e   : >> { %v2031_v2 = vpop.f32.mrf.mxu0 }
 0x17f   : >> { %v5910_v60 = vpop.f32.mrf.mxu1 }
 0x180   : >> { %v4372_v21 = vpop.f32.mrf.mxu0 }
 0x181   : >> { %v5912_v23 = vpop.f32.mrf.mxu1 }
 0x182   : >> { %v2044_v11 = vpop.f32.mrf.mxu0 }
 0x183   : >> { %v5914_v35 = vpop.f32.mrf.mxu1 }
 0x184   : >> { %v4373_v15 = vpop.f32.mrf.mxu0 }
 0x186   : >> { %v2047_v62 = vpop.f32.mrf.mxu0 }
 0x188   : >> { %v5916_v8 = vpop.f32.mrf.mxu1 }
 0x189   : >> { %6088 = vst [vmem:[#allocation5_spill] sm:$0xff] %v5916_v8 }
 0x18a   : >> { %v4376_v30 = vpop.f32.mrf.mxu0  ;;  %v5918_v1 = vpop.f32.mrf.mxu1 }
 0x18b   : >> { %6089 = vst [vmem:[#allocation6_spill] sm:$0xff] %v5918_v1 }
 0x18c   : >> { %v2060_v38 = vpop.f32.mrf.mxu0  ;;  %v5920_v52 = vpop.f32.mrf.mxu1 }
 0x18d   : >> { %6090 = vst [vmem:[#allocation7_spill] sm:$0xff] %v5920_v52 }
 0x18e   : >> { %v4377_v12 = vpop.f32.mrf.mxu0  ;;  %v5922_v13 = vpop.f32.mrf.mxu1 }
 0x18f   : >> { %6091 = vst [vmem:[#allocation8_spill] sm:$0xff] %v5922_v13 }
 0x190   : >> { %v2063_v29 = vpop.f32.mrf.mxu0 }
 0x192   : >> { %v4428_v56 = vpop.f32.mrf.mxu0 }
 0x194   : >> { %v5924_v61 = vpop.f32.mrf.mxu1  ;;  %v2540_v10 = vpop.f32.mrf.mxu0 }
 0x195   : >> { %6092 = vst [vmem:[#allocation9_spill] sm:$0xff] %v5924_v61  ;;  %v2077_v61 = vadd.f32 %v4364_v5, %v5859_v58  ;;  %v2082_v58 = vadd.f32 %v4369_v6, %v5871_v41 }
 0x196   : >> { %v5926_v4 = vpop.f32.mrf.mxu1  ;;  %v4429_v32 = vpop.f32.mrf.mxu0 }
 0x197   : >> { %6093 = vst [vmem:[#allocation10_spill] sm:$0xff] %v5926_v4  ;;  %v2351_v5 = vadd.f32 %v5885_v39, %v2077_v61  ;;  %v2084_v39 = vadd.f32 %v2047_v62, %v5881_v51 }
 0x198   : >> { %v5928_v48 = vpop.f32.mrf.mxu1  ;;  %v2543_v7 = vpop.f32.mrf.mxu0 }
 0x199   : >> { %6094 = vst [vmem:[#allocation11_spill] sm:$0xff] %v5928_v48 }
 0x19a   : >> { %v5930_v37 = vpop.f32.mrf.mxu1  ;;  %v4432_v57 = vpop.f32.mrf.mxu0 }
 0x19b   : >> { %6095 = vst [vmem:[#allocation12_spill] sm:$0xff] %v5930_v37 }
 0x19c   : >> { %v2556_v59 = vpop.f32.mrf.mxu0 }
 0x19e   : >> { %v5932_v46 = vpop.f32.mrf.mxu1  ;;  %v4433_v45 = vpop.f32.mrf.mxu0 }
 0x19f   : >> { %6096 = vst [vmem:[#allocation13_spill] sm:$0xff] %v5932_v46 }
 0x1a0   : >> { %v5934_v47 = vpop.f32.mrf.mxu1  ;;  %v5936_v20 = vpop.f32.mrf.mxu0 }
 0x1a1   : >> { %6097 = vst [vmem:[#allocation14_spill] sm:$0xff] %v5934_v47  ;;  %6098 = vst [vmem:[#allocation15_spill] sm:$0xff] %v5936_v20  ;;  %v2075_v47 = vadd.f32 %v2012_v0, %v5861_v28  ;;  %v2078_v20 = vadd.f32 %v4365_v55, %v5863_v40  ;;  %v2085_v28 = vadd.f32 %v4372_v21, %v5875_v31  ;;  %v6105_v21 = vld [vmem:[#allocation6_spill] sm:$0xff] }
 0x1a2   : >> { %v5938_v18 = vpop.f32.mrf.mxu1  ;;  %v4436_v19 = vpop.f32.mrf.mxu0  ;;  %v2087_v31 = vadd.f32 %v2060_v38, %v5887_v53 }
 0x1a3   : >> { %6099 = vst [vmem:[#allocation16_spill] sm:$0xff] %v5938_v18  ;;  %v2076_v18 = vadd.f32 %v2015_v25, %v5865_v26  ;;  %v2349_v0 = vadd.f32 %v5889_v33, %v2075_v47  ;;  %v2352_v55 = vadd.f32 %v5894_v42, %v2078_v20  ;;  %v2359_v51 = vadd.f32 %v5908_v63, %v2085_v28 }
 0x1a4   : >> { %v5940_v13 = vpop.f32.mrf.mxu1  ;;  %v2572_v52 = vpop.f32.mrf.mxu0 }
 0x1a5   : >> { %6100 = vst [vmem:[#allocation17_spill] sm:$0xff] %v5940_v13  ;;  %v2350_v41 = vadd.f32 %v5898_v27, %v2076_v18  ;;  %v2603_v27 = vadd.f32 %v2540_v10, %v2349_v0  ;;  %v2613_v10 = vadd.f32 %v4436_v19, %v2359_v51 }
 0x1a6   : >> { %v5942_v4 = vpop.f32.mrf.mxu0  ;;  %v6113_v19 = vld [vmem:[#allocation13_spill] sm:$0xff] }
 0x1a7   : >> { %6101 = vst [vmem:[#allocation18_spill] sm:$0xff] %v5942_v4  ;;  %v5944_v48 = vpop.f32.mrf.mxu1  ;;  %v2081_v4 = vadd.f32 %v4368_v54, %v5867_v17  ;;  %v2083_v17 = vadd.f32 %v2044_v11, %v5877_v16  ;;  %v2356_v16 = vadd.f32 %v5904_v14, %v2082_v58  ;;  %v2358_v14 = vadd.f32 %v5914_v35, %v2084_v39 }
 0x1a8   : >> { %6102 = vst [vmem:[#allocation19_spill] sm:$0xff] %v5944_v48  ;;  %v2575_v37 = vpop.f32.mrf.mxu0  ;;  %v2079_v48 = vadd.f32 %v2028_v50, %v5869_v44  ;;  %v2086_v44 = vadd.f32 %v4373_v15, %v5879_v3  ;;  %v2605_v3 = vadd.f32 %v4428_v56, %v2351_v5  ;;  %v2361_v11 = vadd.f32 %v6105_v21, %v2087_v31  ;;  %v6108_v56 = vld [vmem:[#allocation11_spill] sm:$0xff] }
 0x1a9   : >> { %v5947_v1 = vpop.f32.mrf.mxu1  ;;  %v2355_v33 = vadd.f32 %v5900_v24, %v2081_v4  ;;  %v2357_v53 = vadd.f32 %v5910_v60, %v2083_v17  ;;  %v2088_v24 = vadd.f32 %v2063_v29, %v5896_v49  ;;  %v2604_v15 = vadd.f32 %v2543_v7, %v2350_v41  ;;  %v6106_v60 = vld [vmem:[#allocation9_spill] sm:$0xff]  ;;  %v6107_v49 = vld [vmem:[#allocation10_spill] sm:$0xff]  ;;  %v6110_v7 = vld [vmem:[#allocation8_spill] sm:$0xff] }
 0x1aa   : >> { %v5949_v46 = vpop.f32.mrf.mxu0  ;;  %v2353_v42 = vadd.f32 %v5902_v34, %v2079_v48  ;;  %v2360_v6 = vadd.f32 %v5912_v23, %v2086_v44  ;;  %v3005_v29 = vadd.f32 %v6107_v49, %v2603_v27  ;;  %v6114_v17 = vld [vmem:[#allocation14_spill] sm:$0xff]  ;;  %v6115_v41 = vld [vmem:[#allocation16_spill] sm:$0xff] }
 0x1ab   : >> { %6103 = vst [vmem:[#allocation20_spill] sm:$0xff] %v5949_v46  ;;  %v5954_v8 = vpop.f32.mrf.mxu1  ;;  %v2080_v46 = vadd.f32 %v2031_v2, %v5873_v22  ;;  %v2089_v22 = vadd.f32 %v4376_v30, %v5883_v9  ;;  %v2606_v9 = vadd.f32 %v4429_v32, %v2352_v55  ;;  %v2090_v2 = vadd.f32 %v4377_v12, %v5891_v36  ;;  %v6109_v32 = vld [vmem:[#allocation7_spill] sm:$0xff] }
 0x1ac   : >> { %v5956_v13 = vpop.f32.mrf.mxu0  ;;  %v3007_v30 = vadd.f32 %v6106_v60, %v2605_v3  ;;  %v2609_v23 = vadd.f32 %v4432_v57, %v2355_v33  ;;  %v2607_v38 = vadd.f32 %v2556_v59, %v2353_v42  ;;  %v2610_v36 = vadd.f32 %v4433_v45, %v2356_v16  ;;  %v6112_v45 = vld [vmem:[#allocation12_spill] sm:$0xff] }
 0x1ad   : >> { %v5964_v40 = vpop.f32.mrf.mxu1  ;;  %v2354_v18 = vadd.f32 %v5906_v43, %v2080_v46  ;;  %v6104_v43 = vld [vmem:[#allocation5_spill] sm:$0xff]  ;;  %v3008_v61 = vadd.f32 %v6108_v56, %v2606_v9  ;;  %v2611_v4 = vadd.f32 %v2572_v52, %v2357_v53  ;;  %v2364_v48 = vadd.f32 %v6109_v32, %v2090_v2 }
 0x1ae   : >> { %v5966_v26 = vpop.f32.mrf.mxu0  ;;  %v2363_v63 = vadd.f32 %v6104_v43, %v2089_v22  ;;  %v2362_v46 = vadd.f32 %v6110_v7, %v2088_v24  ;;  %v6111_v47 = vld [vmem:[#allocation18_spill] sm:$0xff]  ;;  %v2612_v57 = vadd.f32 %v2575_v37, %v2358_v14  ;;  %v3006_v58 = vadd.f32 %v6112_v45, %v2604_v15  ;;  %v6116_v22 = vld [vmem:[#allocation15_spill] sm:$0xff]  ;;  %v6119_v32 = vld [vmem:[#allocation17_spill] sm:$0xff] }
 0x1af   : >> { %v5976_v25 = vpop.f32.mrf.mxu1  ;;  %v2614_v20 = vadd.f32 %v6111_v47, %v2360_v6  ;;  %v3011_v52 = vadd.f32 %v6113_v19, %v2609_v23  ;;  %v3009_v44 = vadd.f32 %v6114_v17, %v2607_v38  ;;  %v3012_v39 = vadd.f32 %v6115_v41, %v2610_v36  ;;  %v6117_v37 = vld [vmem:[#allocation19_spill] sm:$0xff] }
 0x1b0   : >> { %v5978_v54 = vpop.f32.mrf.mxu0  ;;  %v2608_v31 = vadd.f32 %v6116_v22, %v2354_v18  ;;  %v3015_v42 = vadd.f32 %v6117_v37, %v2613_v10  ;;  %v3013_v16 = vadd.f32 %v5947_v1, %v2611_v4  ;;  %v3014_v53 = vadd.f32 %v5964_v40, %v2612_v57 }
 0x1b1   : >> { %v5986_v50 = vpop.f32.mrf.mxu1  ;;  %v3016_v9 = vadd.f32 %v5954_v8, %v2614_v20  ;;  %v2615_v18 = vadd.f32 %v5956_v13, %v2361_v11  ;;  %v2618_v1 = vadd.f32 %v5966_v26, %v2364_v48  ;;  %v2616_v60 = vadd.f32 %v5978_v54, %v2362_v46 }
 0x1b2   : >> { %v4492_v34 = vpop.f32.mrf.mxu0  ;;  %v6118_v6 = vld [vmem:[#allocation20_spill] sm:$0xff]  ;;  %v3010_v48 = vadd.f32 %v6119_v32, %v2608_v31 }
 0x1b3   : >> { %v5997_v62 = vpop.f32.mrf.mxu1  ;;  %v3281_v5 = vadd.f32 %v4492_v34, %v3007_v30  ;;  %v2617_v2 = vadd.f32 %v6118_v6, %v2363_v63 }
 0x1b4   : >> { %v3216_v12 = vpop.f32.mrf.mxu0 }
 0x1b5   : >> { %v6002_v35 = vpop.f32.mrf.mxu1  ;;  %v3279_v0 = vadd.f32 %v3216_v12, %v3005_v29  ;;  %v3404_v23 = vmul.f32 %v3281_v5, %v3281_v5 }
 0x1b6   : >> { %v4493_v59 = vpop.f32.mrf.mxu0 }
 0x1b7   : >> { %v4500_v28 = vpop.f32.mrf.mxu1  ;;  %v3282_v55 = vadd.f32 %v4493_v59, %v3008_v61  ;;  %v3402_v34 = vmul.f32 %v3279_v0, %v3279_v0 }
 0x1b8   : >> { %v3219_v33 = vpop.f32.mrf.mxu0  ;;  %v3289_v30 = vadd.f32 %v4500_v28, %v3015_v42 }
 0x1b9   : >> { %v3248_v3 = vpop.f32.mrf.mxu1  ;;  %v4035_v51 = vpack.c.bf16 %v3282_v55, %v3281_v5  ;;  %v3280_v27 = vadd.f32 %v3219_v33, %v3006_v58  ;;  %v3405_v12 = vmul.f32 %v3282_v55, %v3282_v55  ;;  %v3019_v58 = vadd.f32 %v5976_v25, %v2617_v2 }
 0x1ba   : >> { %v4496_v24 = vpop.f32.mrf.mxu0  ;;  %v3287_v36 = vadd.f32 %v3248_v3, %v3013_v16 }
 0x1bb   : >> { %4067 = vst [vmem:[%s6014_s29 + $0x8] sm:$0xff] %v4035_v51   ;;  %v4501_v14 = vpop.f32.mrf.mxu1  ;;  %v4030_v43 = vpack.c.bf16 %v3280_v27, %v3279_v0  ;;  %v3380_v21 = vadd.f32 %v3280_v27, %v3279_v0  ;;  %v3403_v15 = vmul.f32 %v3280_v27, %v3280_v27  ;;  %v3285_v54 = vadd.f32 %v4496_v24, %v3011_v52 }
 0x1bc   : >> { %v6025_v8 = vadd.f32 %v4501_v14, %v3016_v9  ;;  %v3232_v40 = vpop.f32.mrf.mxu0  ;;  %v3017_v0 = vadd.f32 %v5986_v50, %v2615_v18  ;;  %v3410_v9 = vmul.f32 %v3287_v36, %v3287_v36 }
 0x1bd   : >> { %4031 = vst [vmem:[%s6014_s29] sm:$0xff] %v4030_v43   ;;  %v3381_v63 = vadd.f32 %v3380_v21, %v3281_v5  ;;  %v3418_v13 = vadd.f32 %v3403_v15, %v3402_v34  ;;  %v3251_v11 = vpop.f32.mrf.mxu1  ;;  %v3283_v38 = vadd.f32 %v3232_v40, %v3009_v44  ;;  %v3020_v5 = vadd.f32 %v5997_v62, %v2618_v1 }
 0x1be   : >> { %v4055_v49 = vpack.c.bf16 %v6025_v8, %v3289_v30  ;;  %v3288_v29 = vadd.f32 %v3251_v11, %v3014_v53  ;;  %v4497_v56 = vpop.f32.mrf.mxu0  ;;  %v3408_v42 = vmul.f32 %v3285_v54, %v3285_v54  ;;  %v3412_v34 = vmul.f32 %v3289_v30, %v3289_v30 }
 0x1bf   : >> { %v3419_v26 = vadd.f32 %v3418_v13, %v3404_v23  ;;  %v4504_v61 = vpop.f32.mrf.mxu1  ;;  %v3382_v10 = vadd.f32 %v3381_v63, %v3282_v55  ;;  %v3286_v4 = vadd.f32 %v4497_v56, %v3012_v39  ;;  %v3406_v20 = vmul.f32 %v3283_v38, %v3283_v38 }
 0x1c0   : >> { %4071 = vst [vmem:[%s6014_s29 + $0x28] sm:$0xff] %v4055_v49   ;;  %v4050_v7 = vpack.c.bf16 %v3288_v29, %v3287_v36  ;;  %v3235_v46 = vpop.f32.mrf.mxu0  ;;  %v3018_v55 = vadd.f32 %v6002_v35, %v2616_v60  ;;  %v3293_v17 = vadd.f32 %v4504_v61, %v3019_v58  ;;  %v3411_v2 = vmul.f32 %v3288_v29, %v3288_v29 }
 0x1c1   : >> { %v3383_v47 = vadd.f32 %v3382_v10, %v3283_v38  ;;  %v3420_v57 = vadd.f32 %v3419_v26, %v3405_v12  ;;  %v3264_v59 = vpop.f32.mrf.mxu1  ;;  %v4045_v45 = vpack.c.bf16 %v3286_v4, %v3285_v54  ;;  %v3284_v28 = vadd.f32 %v3235_v46, %v3010_v48 }
 0x1c2   : >> { %4070 = vst [vmem:[%s6014_s29 + $0x20] sm:$0xff] %v4050_v7   ;;  %v3291_v31 = vadd.f32 %v3264_v59, %v3017_v0  ;;  %v3409_v3 = vmul.f32 %v3286_v4, %v3286_v4  ;;  %v3413_v21 = vmul.f32 %v6025_v8, %v6025_v8  ;;  %v6121_v59 = vld [vmem:[#allocation3_spill] sm:$0xff] }
 0x1c3   : >> { %v3421_v19 = vadd.f32 %v3420_v57, %v3406_v20  ;;  %4069 = vst [vmem:[%s6014_s29 + $0x18] sm:$0xff] %v4045_v45   ;;  %v4505_v52 = vpop.f32.mrf.mxu1  ;;  %v4040_v41 = vpack.c.bf16 %v3284_v28, %v3283_v38  ;;  %v3384_v39 = vadd.f32 %v3383_v47, %v3284_v28  ;;  %v3407_v22 = vmul.f32 %v3284_v28, %v3284_v28  ;;  %v6120_v47 = vld [vmem:[#allocation4_spill] sm:$0xff] }
 0x1c4   : >> { %v3294_v44 = vadd.f32 %v4505_v52, %v3020_v5  ;;  %v3414_v60 = vmul.f32 %v3291_v31, %v3291_v31  ;;  %v3416_v38 = vmul.f32 %v3293_v17, %v3293_v17 }
 0x1c5   : >> { %v3267_v25 = vpop.f32.mrf.mxu1  ;;  %4068 = vst [vmem:[%s6014_s29 + $0x10] sm:$0xff] %v4040_v41   ;;  %v3385_v33 = vadd.f32 %v3384_v39, %v3285_v54  ;;  %v3422_v50 = vadd.f32 %v3421_v19, %v3407_v22 }
 0x1c6   : >> { %v4065_v62 = vpack.c.bf16 %v3294_v44, %v3293_v17  ;;  %v3292_v37 = vadd.f32 %v3267_v25, %v3018_v55  ;;  %v3417_v49 = vmul.f32 %v3294_v44, %v3294_v44 }
 0x1c7   : >> { %v3386_v35 = vadd.f32 %v3385_v33, %v3286_v4  ;;  %v3423_v51 = vadd.f32 %v3422_v50, %v3408_v42 }
 0x1c8   : >> { %4073 = vst [vmem:[%s6014_s29 + $0x38] sm:$0xff] %v4065_v62   ;;  %v4060_v16 = vpack.c.bf16 %v3292_v37, %v3291_v31  ;;  %v3415_v63 = vmul.f32 %v3292_v37, %v3292_v37 }
 0x1c9   : >> { %v3387_v27 = vadd.f32 %v3386_v35, %v3287_v36  ;;  %v3424_v53 = vadd.f32 %v3423_v51, %v3409_v3 }
 0x1ca   : >> { %4072 = vst [vmem:[%s6014_s29 + $0x30] sm:$0xff] %v4060_v16  }
 0x1cb   : >> { %v3388_v6 = vadd.f32 %v3387_v27, %v3288_v29  ;;  %v3425_v18 = vadd.f32 %v3424_v53, %v3410_v9 }
 0x1cd   : >> { %v3389_v24 = vadd.f32 %v3388_v6, %v3289_v30  ;;  %v3426_v14 = vadd.f32 %v3425_v18, %v3411_v2 }
 0x1cf   : >> { %v3390_v43 = vadd.f32 %v3389_v24, %v6025_v8  ;;  %v3427_v15 = vadd.f32 %v3426_v14, %v3412_v34 }
 0x1d1   : >> { %v3391_v1 = vadd.f32 %v3390_v43, %v3291_v31  ;;  %v3428_v40 = vadd.f32 %v3427_v15, %v3413_v21 }
 0x1d3   : >> { %v3392_v23 = vadd.f32 %v3391_v1, %v3292_v37  ;;  %v3429_v13 = vadd.f32 %v3428_v40, %v3414_v60 }
 0x1d5   : >> { %v3393_v11 = vadd.f32 %v3392_v23, %v3293_v17  ;;  %v3430_v36 = vadd.f32 %v3429_v13, %v3415_v63 }
 0x1d7   : >> { %v3394_v12 = vadd.f32 %v3393_v11, %v3294_v44  ;;  %v3431_v29 = vadd.f32 %v3430_v36, %v3416_v38 }
 0x1d9   : >> { %v3395_v30 = vrot.slane %v3394_v12, 4  ;;  %v3432_v56 = vadd.f32 %v3431_v29, %v3417_v49 }
 0x1db   : >> { %v3396_v26 = vadd.f32 %v3395_v30, %v3394_v12  ;;  %v3433_v54 = vrot.slane %v3432_v56, 4 }
 0x1dd   : >> { %v3397_v61 = vrot.slane %v3396_v26, 2  ;;  %v3434_v10 = vadd.f32 %v3433_v54, %v3432_v56 }
 0x1df   : >> { %v3398_v8 = vadd.f32 %v3397_v61, %v3396_v26  ;;  %v3435_v4 = vrot.slane %v3434_v10, 2 }
 0x1e1   : >> { %v3399_v32 = vrot.slane %v3398_v8, 1  ;;  %v3436_v48 = vadd.f32 %v3435_v4, %v3434_v10 }
 0x1e3   : >> { %v3400_v7 = vadd.f32 %v3399_v32, %v3398_v8  ;;  %v3437_v46 = vrot.slane %v3436_v48, 1 }
 0x1e5   : >> { %v3401_v20 = vadd.f32 %v6120_v47, %v3400_v7   ;;  %v3438_v57 = vadd.f32 %v3437_v46, %v3436_v48  ;;  %528 = sbr.rel (!%p526_p5) target bundleno = 75 (0x4b), region = 121 }
 0x1e7   : >> { %v3439_v45 = vadd.f32 %v6121_v59, %v3438_v57   ;;  %v6123_v19 = vmov %v3401_v20  ;;  %3440 = vst [vmem:[%s211_s21] sm:$0x1] (%p526_p5), %v3401_v20 }
 0x1e9   : >> { %v6122_v18 = vmov %v3439_v45  ;;  %3441 = vst [vmem:[%s214_s30] sm:$0x1] (%p526_p5), %v3439_v45 }
 0x1ea PF: > { %s15_s15 = sadd.s32 1, %s4681_s15  }
 0x1eb   : > { %p12_p6 = scmp.ge.s32.totalorder %s15_s15, 4  }
 0x1ed   :  { %14 = sbr.rel (!%p12_p6) target bundleno = 1 (0x1), region = 132 }

</bundles_post_ra>
